<compile_context>
chip_gen: v7x
topology: tpu7x:2x2x1
jax: 0.10.0
libtpu: 0.0.40
codegen_flags: <defaults>
</compile_context>

<pallas_src>
import math

import jax
import jax.numpy as jnp
from jax.experimental import pallas as pl
from jax.experimental.pallas import tpu as pltpu

# ----------------------------- configuration --------------------------------
B, N_COMP, SEQ = 2, 3, 8          # batch, recipe components, tokens per component
VOCAB = 50
V_PAD = 64                        # vocab padded to a lane-friendly size
HID = 32                          # hidden_recipe
N_HEADS = 4
HEAD_DIM = HID // N_HEADS
N_LAYERS = 2
DFF = 64                          # transformer feed-forward dim (small stand-in)
OUT = 16                          # output_size (joint embedding dim)
C_IN, IMG_H, IMG_W = 4, 16, 16    # image NCHW
IN_FEATS = 64                     # synthetic backbone output channels
NUM_POS = 50                      # LearnedPositionalEncoding num_embeddings
LN_EPS = 1e-5

# order in which stacked per-layer transformer params are passed to the kernel
LAYER_KEYS = ("in_w", "in_b", "out_w", "out_b", "ln1_g", "ln1_b",
              "ff1_w", "ff1_b", "ff2_w", "ff2_b", "ln2_g", "ln2_b")


# --------------------------- in-kernel helpers --------------------------------
def _ln(x, g, b):
    mu = jnp.mean(x, axis=-1, keepdims=True)
    var = jnp.mean(jnp.square(x - mu), axis=-1, keepdims=True)
    return (x - mu) * jax.lax.rsqrt(var + LN_EPS) * g + b


def _tf_layer(x3, ign_f, lw, l):
    """One post-norm TransformerEncoderLayer on x3: [M, S, D]; ign_f: [M, S]."""
    M, S, D = x3.shape
    MS = M * S
    x2 = x3.reshape(MS, D)

    # fused QKV projection (weights pre-transposed to [D, 3D])
    qkv = jnp.dot(x2, lw["in_w"][l], preferred_element_type=jnp.float32) + lw["in_b"][l]
    q3 = qkv[:, 0 * D:1 * D].reshape(M, S, D)
    k3 = qkv[:, 1 * D:2 * D].reshape(M, S, D)
    v3 = qkv[:, 2 * D:3 * D].reshape(M, S, D)

    out_w = lw["out_w"][l]                       # [D, D]
    scale = 1.0 / math.sqrt(HEAD_DIM)
    mask3 = ign_f[:, None, :] > 0.5              # [M, 1, S] True = ignore key

    # per-head attention, output projection accumulated per head (no concat)
    attn = jnp.zeros((MS, D), jnp.float32)
    for h in range(N_HEADS):
        sl = slice(h * HEAD_DIM, (h + 1) * HEAD_DIM)
        s = jnp.einsum("mqd,mkd->mqk", q3[:, :, sl], k3[:, :, sl],
                       preferred_element_type=jnp.float32) * scale
        s = jnp.where(mask3, -1e9, s)
        s = s - jnp.max(s, axis=-1, keepdims=True)
        p = jnp.exp(s)
        p = p * pl.reciprocal(jnp.sum(p, axis=-1, keepdims=True), approx=True)
        oh = jnp.einsum("mqk,mkd->mqd", p, v3[:, :, sl],
                        preferred_element_type=jnp.float32)
        attn = attn + jnp.dot(oh.reshape(MS, HEAD_DIM), out_w[sl, :],
                              preferred_element_type=jnp.float32)
    attn = attn + lw["out_b"][l]

    x2 = _ln(x2 + attn, lw["ln1_g"][l], lw["ln1_b"][l])
    ff = jnp.maximum(
        jnp.dot(x2, lw["ff1_w"][l], preferred_element_type=jnp.float32) + lw["ff1_b"][l],
        0.0)
    ff = jnp.dot(ff, lw["ff2_w"][l], preferred_element_type=jnp.float32) + lw["ff2_b"][l]
    x2 = _ln(x2 + ff, lw["ln2_g"][l], lw["ln2_b"][l])
    return x2.reshape(M, S, D)


def _avg_pool(x3, ign_f):
    """AvgPoolSequence: masked mean over sequence. x3: [M,S,D]; ign_f 1.0=ignored."""
    valid = 1.0 - ign_f
    length = jnp.sum(valid, axis=-1, keepdims=True)
    w = valid / (length + 1e-12)
    return jnp.sum(x3 * w[:, :, None], axis=1)


# ------------------------------- fused kernels --------------------------------
def _recipe_kernel(tok_ref, ign_ref, mign_ref, emb_ref, pos_tf_ref, pos_m_ref,
                   *rest):
    nl = len(LAYER_KEYS)
    tf_lw = dict(zip(LAYER_KEYS, rest[:nl]))
    mg_lw = dict(zip(LAYER_KEYS, rest[nl:2 * nl]))
    lin_w_ref = rest[2 * nl]
    lin_b_ref = rest[2 * nl + 1]
    out_ref = rest[2 * nl + 2]

    M = B * N_COMP
    MS = M * SEQ

    # ---- word embedding: padded one-hot @ table (MXU-friendly) ----
    tok = tok_ref[...]                                        # [MS, 1] int32
    iota = jax.lax.broadcasted_iota(jnp.int32, (MS, V_PAD), 1)
    onehot = (iota == tok).astype(jnp.float32)
    emb = jnp.dot(onehot, emb_ref[...], preferred_element_type=jnp.float32)
    x3 = emb.reshape(M, SEQ, HID)

    # ---- SingleTransformerEncoder #1 (per-component token encoder) ----
    ign_f = ign_ref[...]                                      # [M, SEQ]
    x3 = x3 + pos_tf_ref[0:SEQ, :][None, :, :]                # learned pos-enc
    for l in range(N_LAYERS):
        x3 = _tf_layer(x3, ign_f, tf_lw, l)
    comp = _avg_pool(x3, ign_f)                               # [M, HID]

    # ---- SingleTransformerEncoder #2 (component merger) ----
    y3 = comp.reshape(B, N_COMP, HID)
    mign_f = mign_ref[...]                                    # [B, N_COMP]
    y3 = y3 + pos_m_ref[0:N_COMP, :][None, :, :]
    for l in range(N_LAYERS):
        y3 = _tf_layer(y3, mign_f, mg_lw, l)
    pooled = _avg_pool(y3, mign_f)                            # [B, HID]

    # ---- final Tanh(Linear(.)) ----
    rec = jnp.dot(pooled, lin_w_ref[...], preferred_element_type=jnp.float32)
    rec = rec + lin_b_ref[...]
    out_ref[...] = jnp.tanh(rec)


def _image_kernel(img_ref, bw_ref, fcw_ref, fcb_ref, o_ref):
    # img2d: [B*HW, C]; bw: [C, F]; fcw: [F, OUT]
    feats = jnp.dot(img_ref[...], bw_ref[...],
                    preferred_element_type=jnp.float32)       # [B*HW, F]
    pooled = jnp.mean(feats.reshape(B, IMG_H * IMG_W, IN_FEATS), axis=1)  # [B, F]
    out = jnp.dot(pooled, fcw_ref[...],
                  preferred_element_type=jnp.float32) + fcb_ref[...]
    o_ref[...] = jnp.tanh(out)


# ---------------------------- pallas_call glue -------------------------------
def _fs(shape):
    # whole-array block (satisfies the (8,128) rule by using full dims)
    nd = len(shape)
    return pl.BlockSpec(shape, lambda *args, _nd=nd: (0,) * _nd)


def recipe_forward(recipe, params):
    rp = params["recipe"]
    input_rs = recipe.reshape(B * N_COMP, SEQ)
    ignore = (input_rs == 0).at[:, 0].set(False)              # ignore_mask[:, 0] = 0
    ignore_f = ignore.astype(jnp.float32)
    mask_list = (recipe > 0).sum(axis=-1) > 0                 # [B, N]
    merger_ignore_f = jnp.logical_not(mask_list).astype(jnp.float32)
    tok2d = input_rs.reshape(B * N_COMP * SEQ, 1).astype(jnp.int32)

    args = [tok2d, ignore_f, merger_ignore_f,
            rp["word_emb"], rp["tf"]["pos"], rp["merger"]["pos"]]
    args += [rp["tf"]["layers"][k] for k in LAYER_KEYS]
    args += [rp["merger"]["layers"][k] for k in LAYER_KEYS]
    args += [params["lin_w"], params["lin_b"]]

    return pl.pallas_call(
        _recipe_kernel,
        grid=(1,),
        in_specs=[_fs(a.shape) for a in args],
        out_specs=_fs((B, OUT)),
        out_shape=jax.ShapeDtypeStruct((B, OUT), jnp.float32),
        compiler_params=pltpu.CompilerParams(dimension_semantics=("arbitrary",)),
    )(*args)


def image_forward(img, params):
    ip = params["image"]
    # layout: NCHW -> (B*H*W, C_in) channels-last flattened (wrapper plumbing)
    img2d = img.transpose(0, 2, 3, 1).reshape(B * IMG_H * IMG_W, C_IN)
    args = [img2d, ip["backbone_w"], ip["fc_w"], ip["fc_b"]]
    return pl.pallas_call(
        _image_kernel,
        grid=(1,),
        in_specs=[_fs(a.shape) for a in args],
        out_specs=_fs((B, OUT)),
        out_shape=jax.ShapeDtypeStruct((B, OUT), jnp.float32),
        compiler_params=pltpu.CompilerParams(dimension_semantics=("arbitrary",)),
    )(img2d, ip["backbone_w"], ip["fc_w"], ip["fc_b"])


def joint_embedding(img, recipe, params):
    recipe_feat = recipe_forward(recipe, params)   # Tanh(Linear(recipe_encoder(..)))
    img_feat = image_forward(img, params)          # tanh inside
    return img_feat, recipe_feat


# ------------------------------ parameters -----------------------------------
def init_params(key):
    keys = iter(jax.random.split(key, 64))

    def nrm(shape, scale=0.05):
        return jax.random.normal(next(keys), shape, jnp.float32) * scale

    def tf_params():
        L = N_LAYERS
        # All linear weights pre-transposed to (in, out) so the kernel never .T's
        layers = dict(
            in_w=nrm((L, HID, 3 * HID)), in_b=jnp.zeros((L, 1, 3 * HID), jnp.float32),
            out_w=nrm((L, HID, HID)),    out_b=jnp.zeros((L, 1, HID), jnp.float32),
            ln1_g=jnp.ones((L, 1, HID), jnp.float32),
            ln1_b=jnp.zeros((L, 1, HID), jnp.float32),
            ff1_w=nrm((L, HID, DFF)),    ff1_b=jnp.zeros((L, 1, DFF), jnp.float32),
            ff2_w=nrm((L, DFF, HID)),    ff2_b=jnp.zeros((L, 1, HID), jnp.float32),
            ln2_g=jnp.ones((L, 1, HID), jnp.float32),
            ln2_b=jnp.zeros((L, 1, HID), jnp.float32),
        )
        return dict(pos=nrm((NUM_POS, HID)), layers=layers)

    word_emb = jnp.zeros((V_PAD, HID), jnp.float32).at[:VOCAB].set(nrm((VOCAB, HID)))

    return dict(
        recipe=dict(word_emb=word_emb, tf=tf_params(), merger=tf_params()),
        image=dict(backbone_w=nrm((C_IN, IN_FEATS)),       # (C, F) pre-transposed
                   fc_w=nrm((IN_FEATS, OUT)),              # (F, OUT) pre-transposed
                   fc_b=jnp.zeros((1, OUT), jnp.float32)),
        lin_w=nrm((HID, OUT)),                             # (HID, OUT) pre-transposed
        lin_b=jnp.zeros((1, OUT), jnp.float32),
    )


# --------------------------------- main ---------------------------------------
if __name__ == "__main__":
    key = jax.random.PRNGKey(0)
    pkey, rkey, ikey = jax.random.split(key, 3)
    params = init_params(pkey)

    # recipe tokens: [B, N_COMP, SEQ] ints, 0 = padding
    recipe = jax.random.randint(rkey, (B, N_COMP, SEQ), 0, VOCAB, dtype=jnp.int32)
    recipe = recipe.at[:, :, SEQ - 2:].set(0)       # pad tail tokens
    recipe = recipe.at[1, N_COMP - 1, :].set(0)     # one fully-padded component
    recipe = recipe.at[:, 0, 0].set(1)              # every sample has a valid component

    # image: NCHW
    img = jax.random.normal(ikey, (B, C_IN, IMG_H, IMG_W), jnp.float32)

    fwd = jax.jit(joint_embedding)
    img_feat, recipe_feat = fwd(img, recipe, params)
    jax.block_until_ready((img_feat, recipe_feat))

    assert img_feat.shape == (B, OUT) and recipe_feat.shape == (B, OUT)
    assert bool(jnp.all(jnp.isfinite(img_feat))) and bool(jnp.all(jnp.isfinite(recipe_feat)))
    print("KERNEL_OK")
</pallas_src>

<mosaic_0001>
module attributes {stable_mosaic.version = 11 : i64} {
  func.func @_image_kernel(%arg0: i32, %arg1: memref<512x4xf32, #tpu.memory_space<vmem>>, %arg2: memref<4x64xf32, #tpu.memory_space<vmem>>, %arg3: memref<64x16xf32, #tpu.memory_space<vmem>>, %arg4: memref<1x16xf32, #tpu.memory_space<vmem>>, %arg5: memref<2x16xf32, #tpu.memory_space<vmem>>) attributes {dimension_semantics = [#tpu.dimension_semantics<arbitrary>], iteration_bounds = array<i64: 1>, scalar_prefetch = 0 : i64, scratch_operands = 0 : i64, tpu.core_type = #tpu.core_type<tc>, window_params = [{pipeline_mode = #tpu.pipeline_mode<synchronous>, transform_indices = @transform_0, window_bounds = array<i64: 512, 4>}, {pipeline_mode = #tpu.pipeline_mode<synchronous>, transform_indices = @transform_1, window_bounds = array<i64: 4, 64>}, {pipeline_mode = #tpu.pipeline_mode<synchronous>, transform_indices = @transform_2, window_bounds = array<i64: 64, 16>}, {pipeline_mode = #tpu.pipeline_mode<synchronous>, transform_indices = @transform_3, window_bounds = array<i64: 1, 16>}, {pipeline_mode = #tpu.pipeline_mode<synchronous>, transform_indices = @transform_4, window_bounds = array<i64: 2, 16>}]} {
    %c0 = arith.constant 0 : index
    %c0_0 = arith.constant 0 : index
    %0 = vector.load %arg1[%c0, %c0_0] : memref<512x4xf32, #tpu.memory_space<vmem>>, vector<512x4xf32>
    %c0_1 = arith.constant 0 : index
    %c0_2 = arith.constant 0 : index
    %1 = vector.load %arg2[%c0_1, %c0_2] : memref<4x64xf32, #tpu.memory_space<vmem>>, vector<4x64xf32>
    %cst = arith.constant dense<0.000000e+00> : vector<512x64xf32>
    %2 = tpu.matmul %0, %1, %cst {dimension_numbers = #tpu.dot_dimension_numbers<[1], [0], [0], [1], [0, 0, 1, 1], [], []>} : vector<512x4xf32>, vector<4x64xf32>, vector<512x64xf32> -> vector<512x64xf32>
    %3 = vector.shape_cast %2 : vector<512x64xf32> to vector<2x256x64xf32>
    %cst_3 = arith.constant dense<0.000000e+00> : vector<2x64xf32>
    %4 = vector.multi_reduction <add>, %3, %cst_3 [1] : vector<2x256x64xf32> to vector<2x64xf32>
    %cst_4 = arith.constant 2.560000e+02 : f32
    %5 = vector.broadcast %cst_4 : f32 to vector<2x64xf32>
    %6 = arith.divf %4, %5 : vector<2x64xf32>
    %c0_5 = arith.constant 0 : index
    %c0_6 = arith.constant 0 : index
    %7 = vector.load %arg3[%c0_5, %c0_6] : memref<64x16xf32, #tpu.memory_space<vmem>>, vector<64x16xf32>
    %cst_7 = arith.constant dense<0.000000e+00> : vector<2x16xf32>
    %8 = tpu.matmul %6, %7, %cst_7 {dimension_numbers = #tpu.dot_dimension_numbers<[1], [0], [0], [1], [0, 0, 1, 1], [], []>} : vector<2x64xf32>, vector<64x16xf32>, vector<2x16xf32> -> vector<2x16xf32>
    %c0_8 = arith.constant 0 : index
    %c0_9 = arith.constant 0 : index
    %9 = vector.load %arg4[%c0_8, %c0_9] : memref<1x16xf32, #tpu.memory_space<vmem>>, vector<1x16xf32>
    %10 = vector.broadcast %9 : vector<1x16xf32> to vector<2x16xf32>
    %11 = arith.addf %8, %10 : vector<2x16xf32>
    %12 = math.tanh %11 : vector<2x16xf32>
    %c0_10 = arith.constant 0 : index
    %c0_11 = arith.constant 0 : index
    %13 = vector.load %arg5[%c0_10, %c0_11] : memref<2x16xf32, #tpu.memory_space<vmem>>, vector<2x16xf32>
    tpu.vector_store %arg5[%c0_10, %c0_11], %12 {strides = array<i32>} : memref<2x16xf32, #tpu.memory_space<vmem>>, vector<2x16xf32>,
    return
  }
  func.func @transform_0(%arg0: i32) -> (i32, i32) {
    %c0_i32 = arith.constant 0 : i32
    %c0_i32_0 = arith.constant 0 : i32
    %c0_i32_1 = arith.constant 0 : i32
    return %c0_i32, %c0_i32_0 : i32, i32
  }
  func.func @transform_1(%arg0: i32) -> (i32, i32) {
    %c0_i32 = arith.constant 0 : i32
    %c0_i32_0 = arith.constant 0 : i32
    %c0_i32_1 = arith.constant 0 : i32
    return %c0_i32, %c0_i32_0 : i32, i32
  }
  func.func @transform_2(%arg0: i32) -> (i32, i32) {
    %c0_i32 = arith.constant 0 : i32
    %c0_i32_0 = arith.constant 0 : i32
    %c0_i32_1 = arith.constant 0 : i32
    return %c0_i32, %c0_i32_0 : i32, i32
  }
  func.func @transform_3(%arg0: i32) -> (i32, i32) {
    %c0_i32 = arith.constant 0 : i32
    %c0_i32_0 = arith.constant 0 : i32
    %c0_i32_1 = arith.constant 0 : i32
    return %c0_i32, %c0_i32_0 : i32, i32
  }
  func.func @transform_4(%arg0: i32) -> (i32, i32) {
    %c0_i32 = arith.constant 0 : i32
    %c0_i32_0 = arith.constant 0 : i32
    %c0_i32_1 = arith.constant 0 : i32
    return %c0_i32, %c0_i32_0 : i32, i32
  }
}

module attributes {stable_mosaic.version = 11 : i64} {
  func.func @_recipe_kernel(%arg0: i32, %arg1: memref<48x1xi32, #tpu.memory_space<vmem>>, %arg2: memref<6x8xf32, #tpu.memory_space<vmem>>, %arg3: memref<2x3xf32, #tpu.memory_space<vmem>>, %arg4: memref<64x32xf32, #tpu.memory_space<vmem>>, %arg5: memref<50x32xf32, #tpu.memory_space<vmem>>, %arg6: memref<50x32xf32, #tpu.memory_space<vmem>>, %arg7: memref<2x32x96xf32, #tpu.memory_space<vmem>>, %arg8: memref<2x1x96xf32, #tpu.memory_space<vmem>>, %arg9: memref<2x32x32xf32, #tpu.memory_space<vmem>>, %arg10: memref<2x1x32xf32, #tpu.memory_space<vmem>>, %arg11: memref<2x1x32xf32, #tpu.memory_space<vmem>>, %arg12: memref<2x1x32xf32, #tpu.memory_space<vmem>>, %arg13: memref<2x32x64xf32, #tpu.memory_space<vmem>>, %arg14: memref<2x1x64xf32, #tpu.memory_space<vmem>>, %arg15: memref<2x64x32xf32, #tpu.memory_space<vmem>>, %arg16: memref<2x1x32xf32, #tpu.memory_space<vmem>>, %arg17: memref<2x1x32xf32, #tpu.memory_space<vmem>>, %arg18: memref<2x1x32xf32, #tpu.memory_space<vmem>>, %arg19: memref<2x32x96xf32, #tpu.memory_space<vmem>>, %arg20: memref<2x1x96xf32, #tpu.memory_space<vmem>>, %arg21: memref<2x32x32xf32, #tpu.memory_space<vmem>>, %arg22: memref<2x1x32xf32, #tpu.memory_space<vmem>>, %arg23: memref<2x1x32xf32, #tpu.memory_space<vmem>>, %arg24: memref<2x1x32xf32, #tpu.memory_space<vmem>>, %arg25: memref<2x32x64xf32, #tpu.memory_space<vmem>>, %arg26: memref<2x1x64xf32, #tpu.memory_space<vmem>>, %arg27: memref<2x64x32xf32, #tpu.memory_space<vmem>>, %arg28: memref<2x1x32xf32, #tpu.memory_space<vmem>>, %arg29: memref<2x1x32xf32, #tpu.memory_space<vmem>>, %arg30: memref<2x1x32xf32, #tpu.memory_space<vmem>>, %arg31: memref<32x16xf32, #tpu.memory_space<vmem>>, %arg32: memref<1x16xf32, #tpu.memory_space<vmem>>, %arg33: memref<2x16xf32, #tpu.memory_space<vmem>>) attributes {dimension_semantics = [#tpu.dimension_semantics<arbitrary>], iteration_bounds = array<i64: 1>, scalar_prefetch = 0 : i64, scratch_operands = 0 : i64, tpu.core_type = #tpu.core_type<tc>, window_params = [{pipeline_mode = #tpu.pipeline_mode<synchronous>, transform_indices = @transform_0, window_bounds = array<i64: 48, 1>}, {pipeline_mode = #tpu.pipeline_mode<synchronous>, transform_indices = @transform_1, window_bounds = array<i64: 6, 8>}, {pipeline_mode = #tpu.pipeline_mode<synchronous>, transform_indices = @transform_2, window_bounds = array<i64: 2, 3>}, {pipeline_mode = #tpu.pipeline_mode<synchronous>, transform_indices = @transform_3, window_bounds = array<i64: 64, 32>}, {pipeline_mode = #tpu.pipeline_mode<synchronous>, transform_indices = @transform_4, window_bounds = array<i64: 50, 32>}, {pipeline_mode = #tpu.pipeline_mode<synchronous>, transform_indices = @transform_5, window_bounds = array<i64: 50, 32>}, {pipeline_mode = #tpu.pipeline_mode<synchronous>, transform_indices = @transform_6, window_bounds = array<i64: 2, 32, 96>}, {pipeline_mode = #tpu.pipeline_mode<synchronous>, transform_indices = @transform_7, window_bounds = array<i64: 2, 1, 96>}, {pipeline_mode = #tpu.pipeline_mode<synchronous>, transform_indices = @transform_8, window_bounds = array<i64: 2, 32, 32>}, {pipeline_mode = #tpu.pipeline_mode<synchronous>, transform_indices = @transform_9, window_bounds = array<i64: 2, 1, 32>}, {pipeline_mode = #tpu.pipeline_mode<synchronous>, transform_indices = @transform_10, window_bounds = array<i64: 2, 1, 32>}, {pipeline_mode = #tpu.pipeline_mode<synchronous>, transform_indices = @transform_11, window_bounds = array<i64: 2, 1, 32>}, {pipeline_mode = #tpu.pipeline_mode<synchronous>, transform_indices = @transform_12, window_bounds = array<i64: 2, 32, 64>}, {pipeline_mode = #tpu.pipeline_mode<synchronous>, transform_indices = @transform_13, window_bounds = array<i64: 2, 1, 64>}, {pipeline_mode = #tpu.pipeline_mode<synchronous>, transform_indices = @transform_14, window_bounds = array<i64: 2, 64, 32>}, {pipeline_mode = #tpu.pipeline_mode<synchronous>, transform_indices = @transform_15, window_bounds = array<i64: 2, 1, 32>}, {pipeline_mode = #tpu.pipeline_mode<synchronous>, transform_indices = @transform_16, window_bounds = array<i64: 2, 1, 32>}, {pipeline_mode = #tpu.pipeline_mode<synchronous>, transform_indices = @transform_17, window_bounds = array<i64: 2, 1, 32>}, {pipeline_mode = #tpu.pipeline_mode<synchronous>, transform_indices = @transform_18, window_bounds = array<i64: 2, 32, 96>}, {pipeline_mode = #tpu.pipeline_mode<synchronous>, transform_indices = @transform_19, window_bounds = array<i64: 2, 1, 96>}, {pipeline_mode = #tpu.pipeline_mode<synchronous>, transform_indices = @transform_20, window_bounds = array<i64: 2, 32, 32>}, {pipeline_mode = #tpu.pipeline_mode<synchronous>, transform_indices = @transform_21, window_bounds = array<i64: 2, 1, 32>}, {pipeline_mode = #tpu.pipeline_mode<synchronous>, transform_indices = @transform_22, window_bounds = array<i64: 2, 1, 32>}, {pipeline_mode = #tpu.pipeline_mode<synchronous>, transform_indices = @transform_23, window_bounds = array<i64: 2, 1, 32>}, {pipeline_mode = #tpu.pipeline_mode<synchronous>, transform_indices = @transform_24, window_bounds = array<i64: 2, 32, 64>}, {pipeline_mode = #tpu.pipeline_mode<synchronous>, transform_indices = @transform_25, window_bounds = array<i64: 2, 1, 64>}, {pipeline_mode = #tpu.pipeline_mode<synchronous>, transform_indices = @transform_26, window_bounds = array<i64: 2, 64, 32>}, {pipeline_mode = #tpu.pipeline_mode<synchronous>, transform_indices = @transform_27, window_bounds = array<i64: 2, 1, 32>}, {pipeline_mode = #tpu.pipeline_mode<synchronous>, transform_indices = @transform_28, window_bounds = array<i64: 2, 1, 32>}, {pipeline_mode = #tpu.pipeline_mode<synchronous>, transform_indices = @transform_29, window_bounds = array<i64: 2, 1, 32>}, {pipeline_mode = #tpu.pipeline_mode<synchronous>, transform_indices = @transform_30, window_bounds = array<i64: 32, 16>}, {pipeline_mode = #tpu.pipeline_mode<synchronous>, transform_indices = @transform_31, window_bounds = array<i64: 1, 16>}, {pipeline_mode = #tpu.pipeline_mode<synchronous>, transform_indices = @transform_32, window_bounds = array<i64: 2, 16>}]} {
    %c0 = arith.constant 0 : index
    %c0_0 = arith.constant 0 : index
    %0 = vector.load %arg1[%c0, %c0_0] : memref<48x1xi32, #tpu.memory_space<vmem>>, vector<48x1xi32>
    %1 = tpu.iota {dimensions = array<i32: 1>} : vector<48x64xi32>
    %2 = vector.broadcast %0 : vector<48x1xi32> to vector<48x64xi32>
    %3 = arith.cmpi eq, %1, %2 : vector<48x64xi32>
    %4 = arith.extui %3 : vector<48x64xi1> to vector<48x64xi32>
    %5 = arith.sitofp %4 : vector<48x64xi32> to vector<48x64xf32>
    %c0_1 = arith.constant 0 : index
    %c0_2 = arith.constant 0 : index
    %6 = vector.load %arg4[%c0_1, %c0_2] : memref<64x32xf32, #tpu.memory_space<vmem>>, vector<64x32xf32>
    %cst = arith.constant dense<0.000000e+00> : vector<48x32xf32>
    %7 = tpu.matmul %5, %6, %cst {dimension_numbers = #tpu.dot_dimension_numbers<[1], [0], [0], [1], [0, 0, 1, 1], [], []>} : vector<48x64xf32>, vector<64x32xf32>, vector<48x32xf32> -> vector<48x32xf32>
    %8 = vector.shape_cast %7 : vector<48x32xf32> to vector<6x8x32xf32>
    %c0_3 = arith.constant 0 : index
    %c0_4 = arith.constant 0 : index
    %9 = vector.load %arg2[%c0_3, %c0_4] : memref<6x8xf32, #tpu.memory_space<vmem>>, vector<6x8xf32>
    %c0_5 = arith.constant 0 : index
    %c0_6 = arith.constant 0 : index
    %10 = vector.load %arg5[%c0_5, %c0_6] : memref<50x32xf32, #tpu.memory_space<vmem>>, vector<8x32xf32>
    %11 = vector.shape_cast %10 : vector<8x32xf32> to vector<1x8x32xf32>
    %12 = vector.broadcast %11 : vector<1x8x32xf32> to vector<6x8x32xf32>
    %13 = arith.addf %8, %12 : vector<6x8x32xf32>
    %14 = vector.shape_cast %13 : vector<6x8x32xf32> to vector<48x32xf32>
    %c0_7 = arith.constant 0 : index
    %c0_8 = arith.constant 0 : index
    %c0_9 = arith.constant 0 : index
    %15 = vector.load %arg7[%c0_7, %c0_8, %c0_9] : memref<2x32x96xf32, #tpu.memory_space<vmem>>, vector<1x32x96xf32>
    %16 = vector.shape_cast %15 : vector<1x32x96xf32> to vector<32x96xf32>
    %cst_10 = arith.constant dense<0.000000e+00> : vector<48x96xf32>
    %17 = tpu.matmul %14, %16, %cst_10 {dimension_numbers = #tpu.dot_dimension_numbers<[1], [0], [0], [1], [0, 0, 1, 1], [], []>} : vector<48x32xf32>, vector<32x96xf32>, vector<48x96xf32> -> vector<48x96xf32>
    %c0_11 = arith.constant 0 : index
    %c0_12 = arith.constant 0 : index
    %c0_13 = arith.constant 0 : index
    %18 = vector.load %arg8[%c0_11, %c0_12, %c0_13] : memref<2x1x96xf32, #tpu.memory_space<vmem>>, vector<1x1x96xf32>
    %19 = vector.shape_cast %18 : vector<1x1x96xf32> to vector<1x96xf32>
    %20 = vector.broadcast %19 : vector<1x96xf32> to vector<48x96xf32>
    %21 = arith.addf %17, %20 : vector<48x96xf32>
    %22 = vector.extract_strided_slice %21 {offsets = [0, 0], sizes = [48, 32], strides = [1, 1]} : vector<48x96xf32> to vector<48x32xf32>
    %23 = vector.shape_cast %22 : vector<48x32xf32> to vector<6x8x32xf32>
    %24 = vector.extract_strided_slice %21 {offsets = [0, 32], sizes = [48, 32], strides = [1, 1]} : vector<48x96xf32> to vector<48x32xf32>
    %25 = vector.shape_cast %24 : vector<48x32xf32> to vector<6x8x32xf32>
    %26 = vector.extract_strided_slice %21 {offsets = [0, 64], sizes = [48, 32], strides = [1, 1]} : vector<48x96xf32> to vector<48x32xf32>
    %27 = vector.shape_cast %26 : vector<48x32xf32> to vector<6x8x32xf32>
    %c0_14 = arith.constant 0 : index
    %c0_15 = arith.constant 0 : index
    %c0_16 = arith.constant 0 : index
    %28 = vector.load %arg9[%c0_14, %c0_15, %c0_16] : memref<2x32x32xf32, #tpu.memory_space<vmem>>, vector<1x32x32xf32>
    %29 = vector.shape_cast %28 : vector<1x32x32xf32> to vector<32x32xf32>
    %30 = vector.shape_cast %9 : vector<6x8xf32> to vector<6x1x8xf32>
    %cst_17 = arith.constant 5.000000e-01 : f32
    %31 = vector.broadcast %cst_17 : f32 to vector<6x1x8xf32>
    %32 = arith.cmpf ogt, %30, %31 : vector<6x1x8xf32>
    %cst_18 = arith.constant 0.000000e+00 : f32
    %33 = vector.broadcast %cst_18 : f32 to vector<48x32xf32>
    %34 = vector.extract_strided_slice %23 {offsets = [0, 0, 0], sizes = [6, 8, 8], strides = [1, 1, 1]} : vector<6x8x32xf32> to vector<6x8x8xf32>
    %35 = vector.extract_strided_slice %25 {offsets = [0, 0, 0], sizes = [6, 8, 8], strides = [1, 1, 1]} : vector<6x8x32xf32> to vector<6x8x8xf32>
    "tpu.trace_start"() <{level = 10 : i32, message = "mqd,mkd->mqk"}> : () -> ()
    %cst_19 = arith.constant dense<0.000000e+00> : vector<6x8x8xf32>
    %36 = tpu.matmul %34, %35, %cst_19 {dimension_numbers = #tpu.dot_dimension_numbers<[2], [2], [1], [1], [0, 0, 0, 1, 1, 1], [0], [0]>} : vector<6x8x8xf32>, vector<6x8x8xf32>, vector<6x8x8xf32> -> vector<6x8x8xf32>
    "tpu.trace_stop"() : () -> ()
    %cst_20 = arith.constant 0.353553385 : f32
    %37 = vector.broadcast %cst_20 : f32 to vector<6x8x8xf32>
    %38 = arith.mulf %36, %37 : vector<6x8x8xf32>
    %cst_21 = arith.constant -1.000000e+09 : f32
    %39 = vector.shape_cast %32 : vector<6x1x8xi1> to vector<6x1x8xi1>
    %40 = vector.broadcast %39 : vector<6x1x8xi1> to vector<6x8x8xi1>
    %41 = vector.broadcast %cst_21 : f32 to vector<6x8x8xf32>
    %42 = arith.select %40, %41, %38 : vector<6x8x8xi1>, vector<6x8x8xf32>
    %cst_22 = arith.constant dense<0xFF800000> : vector<6x8xf32>
    %43 = vector.multi_reduction <maximumf>, %42, %cst_22 [2] : vector<6x8x8xf32> to vector<6x8xf32>
    %44 = vector.shape_cast %43 : vector<6x8xf32> to vector<6x8x1xf32>
    %45 = vector.broadcast %44 : vector<6x8x1xf32> to vector<6x8x8xf32>
    %46 = arith.subf %42, %45 : vector<6x8x8xf32>
    %47 = math.exp %46 : vector<6x8x8xf32>
    %cst_23 = arith.constant dense<0.000000e+00> : vector<6x8xf32>
    %48 = vector.multi_reduction <add>, %47, %cst_23 [2] : vector<6x8x8xf32> to vector<6x8xf32>
    %49 = vector.shape_cast %48 : vector<6x8xf32> to vector<6x8x1xf32>
    %50 = tpu.reciprocal %49 {approx = true} : vector<6x8x1xf32> -> vector<6x8x1xf32>
    %51 = vector.broadcast %50 : vector<6x8x1xf32> to vector<6x8x8xf32>
    %52 = arith.mulf %47, %51 : vector<6x8x8xf32>
    %53 = vector.extract_strided_slice %27 {offsets = [0, 0, 0], sizes = [6, 8, 8], strides = [1, 1, 1]} : vector<6x8x32xf32> to vector<6x8x8xf32>
    "tpu.trace_start"() <{level = 10 : i32, message = "mqk,mkd->mqd"}> : () -> ()
    %cst_24 = arith.constant dense<0.000000e+00> : vector<6x8x8xf32>
    %54 = tpu.matmul %52, %53, %cst_24 {dimension_numbers = #tpu.dot_dimension_numbers<[2], [1], [1], [2], [0, 0, 0, 1, 1, 2], [0], [0]>} : vector<6x8x8xf32>, vector<6x8x8xf32>, vector<6x8x8xf32> -> vector<6x8x8xf32>
    "tpu.trace_stop"() : () -> ()
    %55 = vector.shape_cast %54 : vector<6x8x8xf32> to vector<48x8xf32>
    %56 = vector.extract_strided_slice %29 {offsets = [0, 0], sizes = [8, 32], strides = [1, 1]} : vector<32x32xf32> to vector<8x32xf32>
    %cst_25 = arith.constant dense<0.000000e+00> : vector<48x32xf32>
    %57 = tpu.matmul %55, %56, %cst_25 {dimension_numbers = #tpu.dot_dimension_numbers<[1], [0], [0], [1], [0, 0, 1, 1], [], []>} : vector<48x8xf32>, vector<8x32xf32>, vector<48x32xf32> -> vector<48x32xf32>
    %58 = arith.addf %33, %57 : vector<48x32xf32>
    %59 = vector.extract_strided_slice %23 {offsets = [0, 0, 8], sizes = [6, 8, 8], strides = [1, 1, 1]} : vector<6x8x32xf32> to vector<6x8x8xf32>
    %60 = vector.extract_strided_slice %25 {offsets = [0, 0, 8], sizes = [6, 8, 8], strides = [1, 1, 1]} : vector<6x8x32xf32> to vector<6x8x8xf32>
    "tpu.trace_start"() <{level = 10 : i32, message = "mqd,mkd->mqk"}> : () -> ()
    %cst_26 = arith.constant dense<0.000000e+00> : vector<6x8x8xf32>
    %61 = tpu.matmul %59, %60, %cst_26 {dimension_numbers = #tpu.dot_dimension_numbers<[2], [2], [1], [1], [0, 0, 0, 1, 1, 1], [0], [0]>} : vector<6x8x8xf32>, vector<6x8x8xf32>, vector<6x8x8xf32> -> vector<6x8x8xf32>
    "tpu.trace_stop"() : () -> ()
    %cst_27 = arith.constant 0.353553385 : f32
    %62 = vector.broadcast %cst_27 : f32 to vector<6x8x8xf32>
    %63 = arith.mulf %61, %62 : vector<6x8x8xf32>
    %cst_28 = arith.constant -1.000000e+09 : f32
    %64 = vector.shape_cast %32 : vector<6x1x8xi1> to vector<6x1x8xi1>
    %65 = vector.broadcast %64 : vector<6x1x8xi1> to vector<6x8x8xi1>
    %66 = vector.broadcast %cst_28 : f32 to vector<6x8x8xf32>
    %67 = arith.select %65, %66, %63 : vector<6x8x8xi1>, vector<6x8x8xf32>
    %cst_29 = arith.constant dense<0xFF800000> : vector<6x8xf32>
    %68 = vector.multi_reduction <maximumf>, %67, %cst_29 [2] : vector<6x8x8xf32> to vector<6x8xf32>
    %69 = vector.shape_cast %68 : vector<6x8xf32> to vector<6x8x1xf32>
    %70 = vector.broadcast %69 : vector<6x8x1xf32> to vector<6x8x8xf32>
    %71 = arith.subf %67, %70 : vector<6x8x8xf32>
    %72 = math.exp %71 : vector<6x8x8xf32>
    %cst_30 = arith.constant dense<0.000000e+00> : vector<6x8xf32>
    %73 = vector.multi_reduction <add>, %72, %cst_30 [2] : vector<6x8x8xf32> to vector<6x8xf32>
    %74 = vector.shape_cast %73 : vector<6x8xf32> to vector<6x8x1xf32>
    %75 = tpu.reciprocal %74 {approx = true} : vector<6x8x1xf32> -> vector<6x8x1xf32>
    %76 = vector.broadcast %75 : vector<6x8x1xf32> to vector<6x8x8xf32>
    %77 = arith.mulf %72, %76 : vector<6x8x8xf32>
    %78 = vector.extract_strided_slice %27 {offsets = [0, 0, 8], sizes = [6, 8, 8], strides = [1, 1, 1]} : vector<6x8x32xf32> to vector<6x8x8xf32>
    "tpu.trace_start"() <{level = 10 : i32, message = "mqk,mkd->mqd"}> : () -> ()
    %cst_31 = arith.constant dense<0.000000e+00> : vector<6x8x8xf32>
    %79 = tpu.matmul %77, %78, %cst_31 {dimension_numbers = #tpu.dot_dimension_numbers<[2], [1], [1], [2], [0, 0, 0, 1, 1, 2], [0], [0]>} : vector<6x8x8xf32>, vector<6x8x8xf32>, vector<6x8x8xf32> -> vector<6x8x8xf32>
    "tpu.trace_stop"() : () -> ()
    %80 = vector.shape_cast %79 : vector<6x8x8xf32> to vector<48x8xf32>
    %81 = vector.extract_strided_slice %29 {offsets = [8, 0], sizes = [8, 32], strides = [1, 1]} : vector<32x32xf32> to vector<8x32xf32>
    %cst_32 = arith.constant dense<0.000000e+00> : vector<48x32xf32>
    %82 = tpu.matmul %80, %81, %cst_32 {dimension_numbers = #tpu.dot_dimension_numbers<[1], [0], [0], [1], [0, 0, 1, 1], [], []>} : vector<48x8xf32>, vector<8x32xf32>, vector<48x32xf32> -> vector<48x32xf32>
    %83 = arith.addf %58, %82 : vector<48x32xf32>
    %84 = vector.extract_strided_slice %23 {offsets = [0, 0, 16], sizes = [6, 8, 8], strides = [1, 1, 1]} : vector<6x8x32xf32> to vector<6x8x8xf32>
    %85 = vector.extract_strided_slice %25 {offsets = [0, 0, 16], sizes = [6, 8, 8], strides = [1, 1, 1]} : vector<6x8x32xf32> to vector<6x8x8xf32>
    "tpu.trace_start"() <{level = 10 : i32, message = "mqd,mkd->mqk"}> : () -> ()
    %cst_33 = arith.constant dense<0.000000e+00> : vector<6x8x8xf32>
    %86 = tpu.matmul %84, %85, %cst_33 {dimension_numbers = #tpu.dot_dimension_numbers<[2], [2], [1], [1], [0, 0, 0, 1, 1, 1], [0], [0]>} : vector<6x8x8xf32>, vector<6x8x8xf32>, vector<6x8x8xf32> -> vector<6x8x8xf32>
    "tpu.trace_stop"() : () -> ()
    %cst_34 = arith.constant 0.353553385 : f32
    %87 = vector.broadcast %cst_34 : f32 to vector<6x8x8xf32>
    %88 = arith.mulf %86, %87 : vector<6x8x8xf32>
    %cst_35 = arith.constant -1.000000e+09 : f32
    %89 = vector.shape_cast %32 : vector<6x1x8xi1> to vector<6x1x8xi1>
    %90 = vector.broadcast %89 : vector<6x1x8xi1> to vector<6x8x8xi1>
    %91 = vector.broadcast %cst_35 : f32 to vector<6x8x8xf32>
    %92 = arith.select %90, %91, %88 : vector<6x8x8xi1>, vector<6x8x8xf32>
    %cst_36 = arith.constant dense<0xFF800000> : vector<6x8xf32>
    %93 = vector.multi_reduction <maximumf>, %92, %cst_36 [2] : vector<6x8x8xf32> to vector<6x8xf32>
    %94 = vector.shape_cast %93 : vector<6x8xf32> to vector<6x8x1xf32>
    %95 = vector.broadcast %94 : vector<6x8x1xf32> to vector<6x8x8xf32>
    %96 = arith.subf %92, %95 : vector<6x8x8xf32>
    %97 = math.exp %96 : vector<6x8x8xf32>
    %cst_37 = arith.constant dense<0.000000e+00> : vector<6x8xf32>
    %98 = vector.multi_reduction <add>, %97, %cst_37 [2] : vector<6x8x8xf32> to vector<6x8xf32>
    %99 = vector.shape_cast %98 : vector<6x8xf32> to vector<6x8x1xf32>
    %100 = tpu.reciprocal %99 {approx = true} : vector<6x8x1xf32> -> vector<6x8x1xf32>
    %101 = vector.broadcast %100 : vector<6x8x1xf32> to vector<6x8x8xf32>
    %102 = arith.mulf %97, %101 : vector<6x8x8xf32>
    %103 = vector.extract_strided_slice %27 {offsets = [0, 0, 16], sizes = [6, 8, 8], strides = [1, 1, 1]} : vector<6x8x32xf32> to vector<6x8x8xf32>
    "tpu.trace_start"() <{level = 10 : i32, message = "mqk,mkd->mqd"}> : () -> ()
    %cst_38 = arith.constant dense<0.000000e+00> : vector<6x8x8xf32>
    %104 = tpu.matmul %102, %103, %cst_38 {dimension_numbers = #tpu.dot_dimension_numbers<[2], [1], [1], [2], [0, 0, 0, 1, 1, 2], [0], [0]>} : vector<6x8x8xf32>, vector<6x8x8xf32>, vector<6x8x8xf32> -> vector<6x8x8xf32>
    "tpu.trace_stop"() : () -> ()
    %105 = vector.shape_cast %104 : vector<6x8x8xf32> to vector<48x8xf32>
    %106 = vector.extract_strided_slice %29 {offsets = [16, 0], sizes = [8, 32], strides = [1, 1]} : vector<32x32xf32> to vector<8x32xf32>
    %cst_39 = arith.constant dense<0.000000e+00> : vector<48x32xf32>
    %107 = tpu.matmul %105, %106, %cst_39 {dimension_numbers = #tpu.dot_dimension_numbers<[1], [0], [0], [1], [0, 0, 1, 1], [], []>} : vector<48x8xf32>, vector<8x32xf32>, vector<48x32xf32> -> vector<48x32xf32>
    %108 = arith.addf %83, %107 : vector<48x32xf32>
    %109 = vector.extract_strided_slice %23 {offsets = [0, 0, 24], sizes = [6, 8, 8], strides = [1, 1, 1]} : vector<6x8x32xf32> to vector<6x8x8xf32>
    %110 = vector.extract_strided_slice %25 {offsets = [0, 0, 24], sizes = [6, 8, 8], strides = [1, 1, 1]} : vector<6x8x32xf32> to vector<6x8x8xf32>
    "tpu.trace_start"() <{level = 10 : i32, message = "mqd,mkd->mqk"}> : () -> ()
    %cst_40 = arith.constant dense<0.000000e+00> : vector<6x8x8xf32>
    %111 = tpu.matmul %109, %110, %cst_40 {dimension_numbers = #tpu.dot_dimension_numbers<[2], [2], [1], [1], [0, 0, 0, 1, 1, 1], [0], [0]>} : vector<6x8x8xf32>, vector<6x8x8xf32>, vector<6x8x8xf32> -> vector<6x8x8xf32>
    "tpu.trace_stop"() : () -> ()
    %cst_41 = arith.constant 0.353553385 : f32
    %112 = vector.broadcast %cst_41 : f32 to vector<6x8x8xf32>
    %113 = arith.mulf %111, %112 : vector<6x8x8xf32>
    %cst_42 = arith.constant -1.000000e+09 : f32
    %114 = vector.shape_cast %32 : vector<6x1x8xi1> to vector<6x1x8xi1>
    %115 = vector.broadcast %114 : vector<6x1x8xi1> to vector<6x8x8xi1>
    %116 = vector.broadcast %cst_42 : f32 to vector<6x8x8xf32>
    %117 = arith.select %115, %116, %113 : vector<6x8x8xi1>, vector<6x8x8xf32>
    %cst_43 = arith.constant dense<0xFF800000> : vector<6x8xf32>
    %118 = vector.multi_reduction <maximumf>, %117, %cst_43 [2] : vector<6x8x8xf32> to vector<6x8xf32>
    %119 = vector.shape_cast %118 : vector<6x8xf32> to vector<6x8x1xf32>
    %120 = vector.broadcast %119 : vector<6x8x1xf32> to vector<6x8x8xf32>
    %121 = arith.subf %117, %120 : vector<6x8x8xf32>
    %122 = math.exp %121 : vector<6x8x8xf32>
    %cst_44 = arith.constant dense<0.000000e+00> : vector<6x8xf32>
    %123 = vector.multi_reduction <add>, %122, %cst_44 [2] : vector<6x8x8xf32> to vector<6x8xf32>
    %124 = vector.shape_cast %123 : vector<6x8xf32> to vector<6x8x1xf32>
    %125 = tpu.reciprocal %124 {approx = true} : vector<6x8x1xf32> -> vector<6x8x1xf32>
    %126 = vector.broadcast %125 : vector<6x8x1xf32> to vector<6x8x8xf32>
    %127 = arith.mulf %122, %126 : vector<6x8x8xf32>
    %128 = vector.extract_strided_slice %27 {offsets = [0, 0, 24], sizes = [6, 8, 8], strides = [1, 1, 1]} : vector<6x8x32xf32> to vector<6x8x8xf32>
    "tpu.trace_start"() <{level = 10 : i32, message = "mqk,mkd->mqd"}> : () -> ()
    %cst_45 = arith.constant dense<0.000000e+00> : vector<6x8x8xf32>
    %129 = tpu.matmul %127, %128, %cst_45 {dimension_numbers = #tpu.dot_dimension_numbers<[2], [1], [1], [2], [0, 0, 0, 1, 1, 2], [0], [0]>} : vector<6x8x8xf32>, vector<6x8x8xf32>, vector<6x8x8xf32> -> vector<6x8x8xf32>
    "tpu.trace_stop"() : () -> ()
    %130 = vector.shape_cast %129 : vector<6x8x8xf32> to vector<48x8xf32>
    %131 = vector.extract_strided_slice %29 {offsets = [24, 0], sizes = [8, 32], strides = [1, 1]} : vector<32x32xf32> to vector<8x32xf32>
    %cst_46 = arith.constant dense<0.000000e+00> : vector<48x32xf32>
    %132 = tpu.matmul %130, %131, %cst_46 {dimension_numbers = #tpu.dot_dimension_numbers<[1], [0], [0], [1], [0, 0, 1, 1], [], []>} : vector<48x8xf32>, vector<8x32xf32>, vector<48x32xf32> -> vector<48x32xf32>
    %133 = arith.addf %108, %132 : vector<48x32xf32>
    %c0_47 = arith.constant 0 : index
    %c0_48 = arith.constant 0 : index
    %c0_49 = arith.constant 0 : index
    %134 = vector.load %arg10[%c0_47, %c0_48, %c0_49] : memref<2x1x32xf32, #tpu.memory_space<vmem>>, vector<1x1x32xf32>
    %135 = vector.shape_cast %134 : vector<1x1x32xf32> to vector<1x32xf32>
    %136 = vector.broadcast %135 : vector<1x32xf32> to vector<48x32xf32>
    %137 = arith.addf %133, %136 : vector<48x32xf32>
    %138 = arith.addf %14, %137 : vector<48x32xf32>
    %c0_50 = arith.constant 0 : index
    %c0_51 = arith.constant 0 : index
    %c0_52 = arith.constant 0 : index
    %139 = vector.load %arg11[%c0_50, %c0_51, %c0_52] : memref<2x1x32xf32, #tpu.memory_space<vmem>>, vector<1x1x32xf32>
    %140 = vector.shape_cast %139 : vector<1x1x32xf32> to vector<1x32xf32>
    %c0_53 = arith.constant 0 : index
    %c0_54 = arith.constant 0 : index
    %c0_55 = arith.constant 0 : index
    %141 = vector.load %arg12[%c0_53, %c0_54, %c0_55] : memref<2x1x32xf32, #tpu.memory_space<vmem>>, vector<1x1x32xf32>
    %142 = vector.shape_cast %141 : vector<1x1x32xf32> to vector<1x32xf32>
    %cst_56 = arith.constant dense<0.000000e+00> : vector<48xf32>
    %143 = vector.multi_reduction <add>, %138, %cst_56 [1] : vector<48x32xf32> to vector<48xf32>
    %144 = vector.shape_cast %143 : vector<48xf32> to vector<48x1xf32>
    %cst_57 = arith.constant 3.200000e+01 : f32
    %145 = vector.broadcast %cst_57 : f32 to vector<48x1xf32>
    %146 = arith.divf %144, %145 : vector<48x1xf32>
    %147 = vector.broadcast %146 : vector<48x1xf32> to vector<48x32xf32>
    %148 = arith.subf %138, %147 : vector<48x32xf32>
    %149 = arith.mulf %148, %148 : vector<48x32xf32>
    %cst_58 = arith.constant dense<0.000000e+00> : vector<48xf32>
    %150 = vector.multi_reduction <add>, %149, %cst_58 [1] : vector<48x32xf32> to vector<48xf32>
    %151 = vector.shape_cast %150 : vector<48xf32> to vector<48x1xf32>
    %cst_59 = arith.constant 3.200000e+01 : f32
    %152 = vector.broadcast %cst_59 : f32 to vector<48x1xf32>
    %153 = arith.divf %151, %152 : vector<48x1xf32>
    %154 = vector.broadcast %146 : vector<48x1xf32> to vector<48x32xf32>
    %155 = arith.subf %138, %154 : vector<48x32xf32>
    %cst_60 = arith.constant 9.99999974E-6 : f32
    %156 = vector.broadcast %cst_60 : f32 to vector<48x1xf32>
    %157 = arith.addf %153, %156 : vector<48x1xf32>
    %158 = math.rsqrt %157 : vector<48x1xf32>
    %159 = vector.broadcast %158 : vector<48x1xf32> to vector<48x32xf32>
    %160 = arith.mulf %155, %159 : vector<48x32xf32>
    %161 = vector.broadcast %140 : vector<1x32xf32> to vector<48x32xf32>
    %162 = arith.mulf %160, %161 : vector<48x32xf32>
    %163 = vector.broadcast %142 : vector<1x32xf32> to vector<48x32xf32>
    %164 = arith.addf %162, %163 : vector<48x32xf32>
    %c0_61 = arith.constant 0 : index
    %c0_62 = arith.constant 0 : index
    %c0_63 = arith.constant 0 : index
    %165 = vector.load %arg13[%c0_61, %c0_62, %c0_63] : memref<2x32x64xf32, #tpu.memory_space<vmem>>, vector<1x32x64xf32>
    %166 = vector.shape_cast %165 : vector<1x32x64xf32> to vector<32x64xf32>
    %cst_64 = arith.constant dense<0.000000e+00> : vector<48x64xf32>
    %167 = tpu.matmul %164, %166, %cst_64 {dimension_numbers = #tpu.dot_dimension_numbers<[1], [0], [0], [1], [0, 0, 1, 1], [], []>} : vector<48x32xf32>, vector<32x64xf32>, vector<48x64xf32> -> vector<48x64xf32>
    %c0_65 = arith.constant 0 : index
    %c0_66 = arith.constant 0 : index
    %c0_67 = arith.constant 0 : index
    %168 = vector.load %arg14[%c0_65, %c0_66, %c0_67] : memref<2x1x64xf32, #tpu.memory_space<vmem>>, vector<1x1x64xf32>
    %169 = vector.shape_cast %168 : vector<1x1x64xf32> to vector<1x64xf32>
    %170 = vector.broadcast %169 : vector<1x64xf32> to vector<48x64xf32>
    %171 = arith.addf %167, %170 : vector<48x64xf32>
    %cst_68 = arith.constant 0.000000e+00 : f32
    %172 = vector.broadcast %cst_68 : f32 to vector<48x64xf32>
    %173 = arith.maximumf %171, %172 : vector<48x64xf32>
    %c0_69 = arith.constant 0 : index
    %c0_70 = arith.constant 0 : index
    %c0_71 = arith.constant 0 : index
    %174 = vector.load %arg15[%c0_69, %c0_70, %c0_71] : memref<2x64x32xf32, #tpu.memory_space<vmem>>, vector<1x64x32xf32>
    %175 = vector.shape_cast %174 : vector<1x64x32xf32> to vector<64x32xf32>
    %cst_72 = arith.constant dense<0.000000e+00> : vector<48x32xf32>
    %176 = tpu.matmul %173, %175, %cst_72 {dimension_numbers = #tpu.dot_dimension_numbers<[1], [0], [0], [1], [0, 0, 1, 1], [], []>} : vector<48x64xf32>, vector<64x32xf32>, vector<48x32xf32> -> vector<48x32xf32>
    %c0_73 = arith.constant 0 : index
    %c0_74 = arith.constant 0 : index
    %c0_75 = arith.constant 0 : index
    %177 = vector.load %arg16[%c0_73, %c0_74, %c0_75] : memref<2x1x32xf32, #tpu.memory_space<vmem>>, vector<1x1x32xf32>
    %178 = vector.shape_cast %177 : vector<1x1x32xf32> to vector<1x32xf32>
    %179 = vector.broadcast %178 : vector<1x32xf32> to vector<48x32xf32>
    %180 = arith.addf %176, %179 : vector<48x32xf32>
    %181 = arith.addf %164, %180 : vector<48x32xf32>
    %c0_76 = arith.constant 0 : index
    %c0_77 = arith.constant 0 : index
    %c0_78 = arith.constant 0 : index
    %182 = vector.load %arg17[%c0_76, %c0_77, %c0_78] : memref<2x1x32xf32, #tpu.memory_space<vmem>>, vector<1x1x32xf32>
    %183 = vector.shape_cast %182 : vector<1x1x32xf32> to vector<1x32xf32>
    %c0_79 = arith.constant 0 : index
    %c0_80 = arith.constant 0 : index
    %c0_81 = arith.constant 0 : index
    %184 = vector.load %arg18[%c0_79, %c0_80, %c0_81] : memref<2x1x32xf32, #tpu.memory_space<vmem>>, vector<1x1x32xf32>
    %185 = vector.shape_cast %184 : vector<1x1x32xf32> to vector<1x32xf32>
    %cst_82 = arith.constant dense<0.000000e+00> : vector<48xf32>
    %186 = vector.multi_reduction <add>, %181, %cst_82 [1] : vector<48x32xf32> to vector<48xf32>
    %187 = vector.shape_cast %186 : vector<48xf32> to vector<48x1xf32>
    %cst_83 = arith.constant 3.200000e+01 : f32
    %188 = vector.broadcast %cst_83 : f32 to vector<48x1xf32>
    %189 = arith.divf %187, %188 : vector<48x1xf32>
    %190 = vector.broadcast %189 : vector<48x1xf32> to vector<48x32xf32>
    %191 = arith.subf %181, %190 : vector<48x32xf32>
    %192 = arith.mulf %191, %191 : vector<48x32xf32>
    %cst_84 = arith.constant dense<0.000000e+00> : vector<48xf32>
    %193 = vector.multi_reduction <add>, %192, %cst_84 [1] : vector<48x32xf32> to vector<48xf32>
    %194 = vector.shape_cast %193 : vector<48xf32> to vector<48x1xf32>
    %cst_85 = arith.constant 3.200000e+01 : f32
    %195 = vector.broadcast %cst_85 : f32 to vector<48x1xf32>
    %196 = arith.divf %194, %195 : vector<48x1xf32>
    %197 = vector.broadcast %189 : vector<48x1xf32> to vector<48x32xf32>
    %198 = arith.subf %181, %197 : vector<48x32xf32>
    %cst_86 = arith.constant 9.99999974E-6 : f32
    %199 = vector.broadcast %cst_86 : f32 to vector<48x1xf32>
    %200 = arith.addf %196, %199 : vector<48x1xf32>
    %201 = math.rsqrt %200 : vector<48x1xf32>
    %202 = vector.broadcast %201 : vector<48x1xf32> to vector<48x32xf32>
    %203 = arith.mulf %198, %202 : vector<48x32xf32>
    %204 = vector.broadcast %183 : vector<1x32xf32> to vector<48x32xf32>
    %205 = arith.mulf %203, %204 : vector<48x32xf32>
    %206 = vector.broadcast %185 : vector<1x32xf32> to vector<48x32xf32>
    %207 = arith.addf %205, %206 : vector<48x32xf32>
    %208 = vector.shape_cast %207 : vector<48x32xf32> to vector<6x8x32xf32>
    %209 = vector.shape_cast %208 : vector<6x8x32xf32> to vector<48x32xf32>
    %c1 = arith.constant 1 : index
    %c0_87 = arith.constant 0 : index
    %c0_88 = arith.constant 0 : index
    %210 = vector.load %arg7[%c1, %c0_87, %c0_88] : memref<2x32x96xf32, #tpu.memory_space<vmem>>, vector<1x32x96xf32>
    %211 = vector.shape_cast %210 : vector<1x32x96xf32> to vector<32x96xf32>
    %cst_89 = arith.constant dense<0.000000e+00> : vector<48x96xf32>
    %212 = tpu.matmul %209, %211, %cst_89 {dimension_numbers = #tpu.dot_dimension_numbers<[1], [0], [0], [1], [0, 0, 1, 1], [], []>} : vector<48x32xf32>, vector<32x96xf32>, vector<48x96xf32> -> vector<48x96xf32>
    %c1_90 = arith.constant 1 : index
    %c0_91 = arith.constant 0 : index
    %c0_92 = arith.constant 0 : index
    %213 = vector.load %arg8[%c1_90, %c0_91, %c0_92] : memref<2x1x96xf32, #tpu.memory_space<vmem>>, vector<1x1x96xf32>
    %214 = vector.shape_cast %213 : vector<1x1x96xf32> to vector<1x96xf32>
    %215 = vector.broadcast %214 : vector<1x96xf32> to vector<48x96xf32>
    %216 = arith.addf %212, %215 : vector<48x96xf32>
    %217 = vector.extract_strided_slice %216 {offsets = [0, 0], sizes = [48, 32], strides = [1, 1]} : vector<48x96xf32> to vector<48x32xf32>
    %218 = vector.shape_cast %217 : vector<48x32xf32> to vector<6x8x32xf32>
    %219 = vector.extract_strided_slice %216 {offsets = [0, 32], sizes = [48, 32], strides = [1, 1]} : vector<48x96xf32> to vector<48x32xf32>
    %220 = vector.shape_cast %219 : vector<48x32xf32> to vector<6x8x32xf32>
    %221 = vector.extract_strided_slice %216 {offsets = [0, 64], sizes = [48, 32], strides = [1, 1]} : vector<48x96xf32> to vector<48x32xf32>
    %222 = vector.shape_cast %221 : vector<48x32xf32> to vector<6x8x32xf32>
    %c1_93 = arith.constant 1 : index
    %c0_94 = arith.constant 0 : index
    %c0_95 = arith.constant 0 : index
    %223 = vector.load %arg9[%c1_93, %c0_94, %c0_95] : memref<2x32x32xf32, #tpu.memory_space<vmem>>, vector<1x32x32xf32>
    %224 = vector.shape_cast %223 : vector<1x32x32xf32> to vector<32x32xf32>
    %225 = vector.shape_cast %9 : vector<6x8xf32> to vector<6x1x8xf32>
    %cst_96 = arith.constant 5.000000e-01 : f32
    %226 = vector.broadcast %cst_96 : f32 to vector<6x1x8xf32>
    %227 = arith.cmpf ogt, %225, %226 : vector<6x1x8xf32>
    %cst_97 = arith.constant 0.000000e+00 : f32
    %228 = vector.broadcast %cst_97 : f32 to vector<48x32xf32>
    %229 = vector.extract_strided_slice %218 {offsets = [0, 0, 0], sizes = [6, 8, 8], strides = [1, 1, 1]} : vector<6x8x32xf32> to vector<6x8x8xf32>
    %230 = vector.extract_strided_slice %220 {offsets = [0, 0, 0], sizes = [6, 8, 8], strides = [1, 1, 1]} : vector<6x8x32xf32> to vector<6x8x8xf32>
    "tpu.trace_start"() <{level = 10 : i32, message = "mqd,mkd->mqk"}> : () -> ()
    %cst_98 = arith.constant dense<0.000000e+00> : vector<6x8x8xf32>
    %231 = tpu.matmul %229, %230, %cst_98 {dimension_numbers = #tpu.dot_dimension_numbers<[2], [2], [1], [1], [0, 0, 0, 1, 1, 1], [0], [0]>} : vector<6x8x8xf32>, vector<6x8x8xf32>, vector<6x8x8xf32> -> vector<6x8x8xf32>
    "tpu.trace_stop"() : () -> ()
    %cst_99 = arith.constant 0.353553385 : f32
    %232 = vector.broadcast %cst_99 : f32 to vector<6x8x8xf32>
    %233 = arith.mulf %231, %232 : vector<6x8x8xf32>
    %cst_100 = arith.constant -1.000000e+09 : f32
    %234 = vector.shape_cast %227 : vector<6x1x8xi1> to vector<6x1x8xi1>
    %235 = vector.broadcast %234 : vector<6x1x8xi1> to vector<6x8x8xi1>
    %236 = vector.broadcast %cst_100 : f32 to vector<6x8x8xf32>
    %237 = arith.select %235, %236, %233 : vector<6x8x8xi1>, vector<6x8x8xf32>
    %cst_101 = arith.constant dense<0xFF800000> : vector<6x8xf32>
    %238 = vector.multi_reduction <maximumf>, %237, %cst_101 [2] : vector<6x8x8xf32> to vector<6x8xf32>
    %239 = vector.shape_cast %238 : vector<6x8xf32> to vector<6x8x1xf32>
    %240 = vector.broadcast %239 : vector<6x8x1xf32> to vector<6x8x8xf32>
    %241 = arith.subf %237, %240 : vector<6x8x8xf32>
    %242 = math.exp %241 : vector<6x8x8xf32>
    %cst_102 = arith.constant dense<0.000000e+00> : vector<6x8xf32>
    %243 = vector.multi_reduction <add>, %242, %cst_102 [2] : vector<6x8x8xf32> to vector<6x8xf32>
    %244 = vector.shape_cast %243 : vector<6x8xf32> to vector<6x8x1xf32>
    %245 = tpu.reciprocal %244 {approx = true} : vector<6x8x1xf32> -> vector<6x8x1xf32>
    %246 = vector.broadcast %245 : vector<6x8x1xf32> to vector<6x8x8xf32>
    %247 = arith.mulf %242, %246 : vector<6x8x8xf32>
    %248 = vector.extract_strided_slice %222 {offsets = [0, 0, 0], sizes = [6, 8, 8], strides = [1, 1, 1]} : vector<6x8x32xf32> to vector<6x8x8xf32>
    "tpu.trace_start"() <{level = 10 : i32, message = "mqk,mkd->mqd"}> : () -> ()
    %cst_103 = arith.constant dense<0.000000e+00> : vector<6x8x8xf32>
    %249 = tpu.matmul %247, %248, %cst_103 {dimension_numbers = #tpu.dot_dimension_numbers<[2], [1], [1], [2], [0, 0, 0, 1, 1, 2], [0], [0]>} : vector<6x8x8xf32>, vector<6x8x8xf32>, vector<6x8x8xf32> -> vector<6x8x8xf32>
    "tpu.trace_stop"() : () -> ()
    %250 = vector.shape_cast %249 : vector<6x8x8xf32> to vector<48x8xf32>
    %251 = vector.extract_strided_slice %224 {offsets = [0, 0], sizes = [8, 32], strides = [1, 1]} : vector<32x32xf32> to vector<8x32xf32>
    %cst_104 = arith.constant dense<0.000000e+00> : vector<48x32xf32>
    %252 = tpu.matmul %250, %251, %cst_104 {dimension_numbers = #tpu.dot_dimension_numbers<[1], [0], [0], [1], [0, 0, 1, 1], [], []>} : vector<48x8xf32>, vector<8x32xf32>, vector<48x32xf32> -> vector<48x32xf32>
    %253 = arith.addf %228, %252 : vector<48x32xf32>
    %254 = vector.extract_strided_slice %218 {offsets = [0, 0, 8], sizes = [6, 8, 8], strides = [1, 1, 1]} : vector<6x8x32xf32> to vector<6x8x8xf32>
    %255 = vector.extract_strided_slice %220 {offsets = [0, 0, 8], sizes = [6, 8, 8], strides = [1, 1, 1]} : vector<6x8x32xf32> to vector<6x8x8xf32>
    "tpu.trace_start"() <{level = 10 : i32, message = "mqd,mkd->mqk"}> : () -> ()
    %cst_105 = arith.constant dense<0.000000e+00> : vector<6x8x8xf32>
    %256 = tpu.matmul %254, %255, %cst_105 {dimension_numbers = #tpu.dot_dimension_numbers<[2], [2], [1], [1], [0, 0, 0, 1, 1, 1], [0], [0]>} : vector<6x8x8xf32>, vector<6x8x8xf32>, vector<6x8x8xf32> -> vector<6x8x8xf32>
    "tpu.trace_stop"() : () -> ()
    %cst_106 = arith.constant 0.353553385 : f32
    %257 = vector.broadcast %cst_106 : f32 to vector<6x8x8xf32>
    %258 = arith.mulf %256, %257 : vector<6x8x8xf32>
    %cst_107 = arith.constant -1.000000e+09 : f32
    %259 = vector.shape_cast %227 : vector<6x1x8xi1> to vector<6x1x8xi1>
    %260 = vector.broadcast %259 : vector<6x1x8xi1> to vector<6x8x8xi1>
    %261 = vector.broadcast %cst_107 : f32 to vector<6x8x8xf32>
    %262 = arith.select %260, %261, %258 : vector<6x8x8xi1>, vector<6x8x8xf32>
    %cst_108 = arith.constant dense<0xFF800000> : vector<6x8xf32>
    %263 = vector.multi_reduction <maximumf>, %262, %cst_108 [2] : vector<6x8x8xf32> to vector<6x8xf32>
    %264 = vector.shape_cast %263 : vector<6x8xf32> to vector<6x8x1xf32>
    %265 = vector.broadcast %264 : vector<6x8x1xf32> to vector<6x8x8xf32>
    %266 = arith.subf %262, %265 : vector<6x8x8xf32>
    %267 = math.exp %266 : vector<6x8x8xf32>
    %cst_109 = arith.constant dense<0.000000e+00> : vector<6x8xf32>
    %268 = vector.multi_reduction <add>, %267, %cst_109 [2] : vector<6x8x8xf32> to vector<6x8xf32>
    %269 = vector.shape_cast %268 : vector<6x8xf32> to vector<6x8x1xf32>
    %270 = tpu.reciprocal %269 {approx = true} : vector<6x8x1xf32> -> vector<6x8x1xf32>
    %271 = vector.broadcast %270 : vector<6x8x1xf32> to vector<6x8x8xf32>
    %272 = arith.mulf %267, %271 : vector<6x8x8xf32>
    %273 = vector.extract_strided_slice %222 {offsets = [0, 0, 8], sizes = [6, 8, 8], strides = [1, 1, 1]} : vector<6x8x32xf32> to vector<6x8x8xf32>
    "tpu.trace_start"() <{level = 10 : i32, message = "mqk,mkd->mqd"}> : () -> ()
    %cst_110 = arith.constant dense<0.000000e+00> : vector<6x8x8xf32>
    %274 = tpu.matmul %272, %273, %cst_110 {dimension_numbers = #tpu.dot_dimension_numbers<[2], [1], [1], [2], [0, 0, 0, 1, 1, 2], [0], [0]>} : vector<6x8x8xf32>, vector<6x8x8xf32>, vector<6x8x8xf32> -> vector<6x8x8xf32>
    "tpu.trace_stop"() : () -> ()
    %275 = vector.shape_cast %274 : vector<6x8x8xf32> to vector<48x8xf32>
    %276 = vector.extract_strided_slice %224 {offsets = [8, 0], sizes = [8, 32], strides = [1, 1]} : vector<32x32xf32> to vector<8x32xf32>
    %cst_111 = arith.constant dense<0.000000e+00> : vector<48x32xf32>
    %277 = tpu.matmul %275, %276, %cst_111 {dimension_numbers = #tpu.dot_dimension_numbers<[1], [0], [0], [1], [0, 0, 1, 1], [], []>} : vector<48x8xf32>, vector<8x32xf32>, vector<48x32xf32> -> vector<48x32xf32>
    %278 = arith.addf %253, %277 : vector<48x32xf32>
    %279 = vector.extract_strided_slice %218 {offsets = [0, 0, 16], sizes = [6, 8, 8], strides = [1, 1, 1]} : vector<6x8x32xf32> to vector<6x8x8xf32>
    %280 = vector.extract_strided_slice %220 {offsets = [0, 0, 16], sizes = [6, 8, 8], strides = [1, 1, 1]} : vector<6x8x32xf32> to vector<6x8x8xf32>
    "tpu.trace_start"() <{level = 10 : i32, message = "mqd,mkd->mqk"}> : () -> ()
    %cst_112 = arith.constant dense<0.000000e+00> : vector<6x8x8xf32>
    %281 = tpu.matmul %279, %280, %cst_112 {dimension_numbers = #tpu.dot_dimension_numbers<[2], [2], [1], [1], [0, 0, 0, 1, 1, 1], [0], [0]>} : vector<6x8x8xf32>, vector<6x8x8xf32>, vector<6x8x8xf32> -> vector<6x8x8xf32>
    "tpu.trace_stop"() : () -> ()
    %cst_113 = arith.constant 0.353553385 : f32
    %282 = vector.broadcast %cst_113 : f32 to vector<6x8x8xf32>
    %283 = arith.mulf %281, %282 : vector<6x8x8xf32>
    %cst_114 = arith.constant -1.000000e+09 : f32
    %284 = vector.shape_cast %227 : vector<6x1x8xi1> to vector<6x1x8xi1>
    %285 = vector.broadcast %284 : vector<6x1x8xi1> to vector<6x8x8xi1>
    %286 = vector.broadcast %cst_114 : f32 to vector<6x8x8xf32>
    %287 = arith.select %285, %286, %283 : vector<6x8x8xi1>, vector<6x8x8xf32>
    %cst_115 = arith.constant dense<0xFF800000> : vector<6x8xf32>
    %288 = vector.multi_reduction <maximumf>, %287, %cst_115 [2] : vector<6x8x8xf32> to vector<6x8xf32>
    %289 = vector.shape_cast %288 : vector<6x8xf32> to vector<6x8x1xf32>
    %290 = vector.broadcast %289 : vector<6x8x1xf32> to vector<6x8x8xf32>
    %291 = arith.subf %287, %290 : vector<6x8x8xf32>
    %292 = math.exp %291 : vector<6x8x8xf32>
    %cst_116 = arith.constant dense<0.000000e+00> : vector<6x8xf32>
    %293 = vector.multi_reduction <add>, %292, %cst_116 [2] : vector<6x8x8xf32> to vector<6x8xf32>
    %294 = vector.shape_cast %293 : vector<6x8xf32> to vector<6x8x1xf32>
    %295 = tpu.reciprocal %294 {approx = true} : vector<6x8x1xf32> -> vector<6x8x1xf32>
    %296 = vector.broadcast %295 : vector<6x8x1xf32> to vector<6x8x8xf32>
    %297 = arith.mulf %292, %296 : vector<6x8x8xf32>
    %298 = vector.extract_strided_slice %222 {offsets = [0, 0, 16], sizes = [6, 8, 8], strides = [1, 1, 1]} : vector<6x8x32xf32> to vector<6x8x8xf32>
    "tpu.trace_start"() <{level = 10 : i32, message = "mqk,mkd->mqd"}> : () -> ()
    %cst_117 = arith.constant dense<0.000000e+00> : vector<6x8x8xf32>
    %299 = tpu.matmul %297, %298, %cst_117 {dimension_numbers = #tpu.dot_dimension_numbers<[2], [1], [1], [2], [0, 0, 0, 1, 1, 2], [0], [0]>} : vector<6x8x8xf32>, vector<6x8x8xf32>, vector<6x8x8xf32> -> vector<6x8x8xf32>
    "tpu.trace_stop"() : () -> ()
    %300 = vector.shape_cast %299 : vector<6x8x8xf32> to vector<48x8xf32>
    %301 = vector.extract_strided_slice %224 {offsets = [16, 0], sizes = [8, 32], strides = [1, 1]} : vector<32x32xf32> to vector<8x32xf32>
    %cst_118 = arith.constant dense<0.000000e+00> : vector<48x32xf32>
    %302 = tpu.matmul %300, %301, %cst_118 {dimension_numbers = #tpu.dot_dimension_numbers<[1], [0], [0], [1], [0, 0, 1, 1], [], []>} : vector<48x8xf32>, vector<8x32xf32>, vector<48x32xf32> -> vector<48x32xf32>
    %303 = arith.addf %278, %302 : vector<48x32xf32>
    %304 = vector.extract_strided_slice %218 {offsets = [0, 0, 24], sizes = [6, 8, 8], strides = [1, 1, 1]} : vector<6x8x32xf32> to vector<6x8x8xf32>
    %305 = vector.extract_strided_slice %220 {offsets = [0, 0, 24], sizes = [6, 8, 8], strides = [1, 1, 1]} : vector<6x8x32xf32> to vector<6x8x8xf32>
    "tpu.trace_start"() <{level = 10 : i32, message = "mqd,mkd->mqk"}> : () -> ()
    %cst_119 = arith.constant dense<0.000000e+00> : vector<6x8x8xf32>
    %306 = tpu.matmul %304, %305, %cst_119 {dimension_numbers = #tpu.dot_dimension_numbers<[2], [2], [1], [1], [0, 0, 0, 1, 1, 1], [0], [0]>} : vector<6x8x8xf32>, vector<6x8x8xf32>, vector<6x8x8xf32> -> vector<6x8x8xf32>
    "tpu.trace_stop"() : () -> ()
    %cst_120 = arith.constant 0.353553385 : f32
    %307 = vector.broadcast %cst_120 : f32 to vector<6x8x8xf32>
    %308 = arith.mulf %306, %307 : vector<6x8x8xf32>
    %cst_121 = arith.constant -1.000000e+09 : f32
    %309 = vector.shape_cast %227 : vector<6x1x8xi1> to vector<6x1x8xi1>
    %310 = vector.broadcast %309 : vector<6x1x8xi1> to vector<6x8x8xi1>
    %311 = vector.broadcast %cst_121 : f32 to vector<6x8x8xf32>
    %312 = arith.select %310, %311, %308 : vector<6x8x8xi1>, vector<6x8x8xf32>
    %cst_122 = arith.constant dense<0xFF800000> : vector<6x8xf32>
    %313 = vector.multi_reduction <maximumf>, %312, %cst_122 [2] : vector<6x8x8xf32> to vector<6x8xf32>
    %314 = vector.shape_cast %313 : vector<6x8xf32> to vector<6x8x1xf32>
    %315 = vector.broadcast %314 : vector<6x8x1xf32> to vector<6x8x8xf32>
    %316 = arith.subf %312, %315 : vector<6x8x8xf32>
    %317 = math.exp %316 : vector<6x8x8xf32>
    %cst_123 = arith.constant dense<0.000000e+00> : vector<6x8xf32>
    %318 = vector.multi_reduction <add>, %317, %cst_123 [2] : vector<6x8x8xf32> to vector<6x8xf32>
    %319 = vector.shape_cast %318 : vector<6x8xf32> to vector<6x8x1xf32>
    %320 = tpu.reciprocal %319 {approx = true} : vector<6x8x1xf32> -> vector<6x8x1xf32>
    %321 = vector.broadcast %320 : vector<6x8x1xf32> to vector<6x8x8xf32>
    %322 = arith.mulf %317, %321 : vector<6x8x8xf32>
    %323 = vector.extract_strided_slice %222 {offsets = [0, 0, 24], sizes = [6, 8, 8], strides = [1, 1, 1]} : vector<6x8x32xf32> to vector<6x8x8xf32>
    "tpu.trace_start"() <{level = 10 : i32, message = "mqk,mkd->mqd"}> : () -> ()
    %cst_124 = arith.constant dense<0.000000e+00> : vector<6x8x8xf32>
    %324 = tpu.matmul %322, %323, %cst_124 {dimension_numbers = #tpu.dot_dimension_numbers<[2], [1], [1], [2], [0, 0, 0, 1, 1, 2], [0], [0]>} : vector<6x8x8xf32>, vector<6x8x8xf32>, vector<6x8x8xf32> -> vector<6x8x8xf32>
    "tpu.trace_stop"() : () -> ()
    %325 = vector.shape_cast %324 : vector<6x8x8xf32> to vector<48x8xf32>
    %326 = vector.extract_strided_slice %224 {offsets = [24, 0], sizes = [8, 32], strides = [1, 1]} : vector<32x32xf32> to vector<8x32xf32>
    %cst_125 = arith.constant dense<0.000000e+00> : vector<48x32xf32>
    %327 = tpu.matmul %325, %326, %cst_125 {dimension_numbers = #tpu.dot_dimension_numbers<[1], [0], [0], [1], [0, 0, 1, 1], [], []>} : vector<48x8xf32>, vector<8x32xf32>, vector<48x32xf32> -> vector<48x32xf32>
    %328 = arith.addf %303, %327 : vector<48x32xf32>
    %c1_126 = arith.constant 1 : index
    %c0_127 = arith.constant 0 : index
    %c0_128 = arith.constant 0 : index
    %329 = vector.load %arg10[%c1_126, %c0_127, %c0_128] : memref<2x1x32xf32, #tpu.memory_space<vmem>>, vector<1x1x32xf32>
    %330 = vector.shape_cast %329 : vector<1x1x32xf32> to vector<1x32xf32>
    %331 = vector.broadcast %330 : vector<1x32xf32> to vector<48x32xf32>
    %332 = arith.addf %328, %331 : vector<48x32xf32>
    %333 = arith.addf %209, %332 : vector<48x32xf32>
    %c1_129 = arith.constant 1 : index
    %c0_130 = arith.constant 0 : index
    %c0_131 = arith.constant 0 : index
    %334 = vector.load %arg11[%c1_129, %c0_130, %c0_131] : memref<2x1x32xf32, #tpu.memory_space<vmem>>, vector<1x1x32xf32>
    %335 = vector.shape_cast %334 : vector<1x1x32xf32> to vector<1x32xf32>
    %c1_132 = arith.constant 1 : index
    %c0_133 = arith.constant 0 : index
    %c0_134 = arith.constant 0 : index
    %336 = vector.load %arg12[%c1_132, %c0_133, %c0_134] : memref<2x1x32xf32, #tpu.memory_space<vmem>>, vector<1x1x32xf32>
    %337 = vector.shape_cast %336 : vector<1x1x32xf32> to vector<1x32xf32>
    %cst_135 = arith.constant dense<0.000000e+00> : vector<48xf32>
    %338 = vector.multi_reduction <add>, %333, %cst_135 [1] : vector<48x32xf32> to vector<48xf32>
    %339 = vector.shape_cast %338 : vector<48xf32> to vector<48x1xf32>
    %cst_136 = arith.constant 3.200000e+01 : f32
    %340 = vector.broadcast %cst_136 : f32 to vector<48x1xf32>
    %341 = arith.divf %339, %340 : vector<48x1xf32>
    %342 = vector.broadcast %341 : vector<48x1xf32> to vector<48x32xf32>
    %343 = arith.subf %333, %342 : vector<48x32xf32>
    %344 = arith.mulf %343, %343 : vector<48x32xf32>
    %cst_137 = arith.constant dense<0.000000e+00> : vector<48xf32>
    %345 = vector.multi_reduction <add>, %344, %cst_137 [1] : vector<48x32xf32> to vector<48xf32>
    %346 = vector.shape_cast %345 : vector<48xf32> to vector<48x1xf32>
    %cst_138 = arith.constant 3.200000e+01 : f32
    %347 = vector.broadcast %cst_138 : f32 to vector<48x1xf32>
    %348 = arith.divf %346, %347 : vector<48x1xf32>
    %349 = vector.broadcast %341 : vector<48x1xf32> to vector<48x32xf32>
    %350 = arith.subf %333, %349 : vector<48x32xf32>
    %cst_139 = arith.constant 9.99999974E-6 : f32
    %351 = vector.broadcast %cst_139 : f32 to vector<48x1xf32>
    %352 = arith.addf %348, %351 : vector<48x1xf32>
    %353 = math.rsqrt %352 : vector<48x1xf32>
    %354 = vector.broadcast %353 : vector<48x1xf32> to vector<48x32xf32>
    %355 = arith.mulf %350, %354 : vector<48x32xf32>
    %356 = vector.broadcast %335 : vector<1x32xf32> to vector<48x32xf32>
    %357 = arith.mulf %355, %356 : vector<48x32xf32>
    %358 = vector.broadcast %337 : vector<1x32xf32> to vector<48x32xf32>
    %359 = arith.addf %357, %358 : vector<48x32xf32>
    %c1_140 = arith.constant 1 : index
    %c0_141 = arith.constant 0 : index
    %c0_142 = arith.constant 0 : index
    %360 = vector.load %arg13[%c1_140, %c0_141, %c0_142] : memref<2x32x64xf32, #tpu.memory_space<vmem>>, vector<1x32x64xf32>
    %361 = vector.shape_cast %360 : vector<1x32x64xf32> to vector<32x64xf32>
    %cst_143 = arith.constant dense<0.000000e+00> : vector<48x64xf32>
    %362 = tpu.matmul %359, %361, %cst_143 {dimension_numbers = #tpu.dot_dimension_numbers<[1], [0], [0], [1], [0, 0, 1, 1], [], []>} : vector<48x32xf32>, vector<32x64xf32>, vector<48x64xf32> -> vector<48x64xf32>
    %c1_144 = arith.constant 1 : index
    %c0_145 = arith.constant 0 : index
    %c0_146 = arith.constant 0 : index
    %363 = vector.load %arg14[%c1_144, %c0_145, %c0_146] : memref<2x1x64xf32, #tpu.memory_space<vmem>>, vector<1x1x64xf32>
    %364 = vector.shape_cast %363 : vector<1x1x64xf32> to vector<1x64xf32>
    %365 = vector.broadcast %364 : vector<1x64xf32> to vector<48x64xf32>
    %366 = arith.addf %362, %365 : vector<48x64xf32>
    %cst_147 = arith.constant 0.000000e+00 : f32
    %367 = vector.broadcast %cst_147 : f32 to vector<48x64xf32>
    %368 = arith.maximumf %366, %367 : vector<48x64xf32>
    %c1_148 = arith.constant 1 : index
    %c0_149 = arith.constant 0 : index
    %c0_150 = arith.constant 0 : index
    %369 = vector.load %arg15[%c1_148, %c0_149, %c0_150] : memref<2x64x32xf32, #tpu.memory_space<vmem>>, vector<1x64x32xf32>
    %370 = vector.shape_cast %369 : vector<1x64x32xf32> to vector<64x32xf32>
    %cst_151 = arith.constant dense<0.000000e+00> : vector<48x32xf32>
    %371 = tpu.matmul %368, %370, %cst_151 {dimension_numbers = #tpu.dot_dimension_numbers<[1], [0], [0], [1], [0, 0, 1, 1], [], []>} : vector<48x64xf32>, vector<64x32xf32>, vector<48x32xf32> -> vector<48x32xf32>
    %c1_152 = arith.constant 1 : index
    %c0_153 = arith.constant 0 : index
    %c0_154 = arith.constant 0 : index
    %372 = vector.load %arg16[%c1_152, %c0_153, %c0_154] : memref<2x1x32xf32, #tpu.memory_space<vmem>>, vector<1x1x32xf32>
    %373 = vector.shape_cast %372 : vector<1x1x32xf32> to vector<1x32xf32>
    %374 = vector.broadcast %373 : vector<1x32xf32> to vector<48x32xf32>
    %375 = arith.addf %371, %374 : vector<48x32xf32>
    %376 = arith.addf %359, %375 : vector<48x32xf32>
    %c1_155 = arith.constant 1 : index
    %c0_156 = arith.constant 0 : index
    %c0_157 = arith.constant 0 : index
    %377 = vector.load %arg17[%c1_155, %c0_156, %c0_157] : memref<2x1x32xf32, #tpu.memory_space<vmem>>, vector<1x1x32xf32>
    %378 = vector.shape_cast %377 : vector<1x1x32xf32> to vector<1x32xf32>
    %c1_158 = arith.constant 1 : index
    %c0_159 = arith.constant 0 : index
    %c0_160 = arith.constant 0 : index
    %379 = vector.load %arg18[%c1_158, %c0_159, %c0_160] : memref<2x1x32xf32, #tpu.memory_space<vmem>>, vector<1x1x32xf32>
    %380 = vector.shape_cast %379 : vector<1x1x32xf32> to vector<1x32xf32>
    %cst_161 = arith.constant dense<0.000000e+00> : vector<48xf32>
    %381 = vector.multi_reduction <add>, %376, %cst_161 [1] : vector<48x32xf32> to vector<48xf32>
    %382 = vector.shape_cast %381 : vector<48xf32> to vector<48x1xf32>
    %cst_162 = arith.constant 3.200000e+01 : f32
    %383 = vector.broadcast %cst_162 : f32 to vector<48x1xf32>
    %384 = arith.divf %382, %383 : vector<48x1xf32>
    %385 = vector.broadcast %384 : vector<48x1xf32> to vector<48x32xf32>
    %386 = arith.subf %376, %385 : vector<48x32xf32>
    %387 = arith.mulf %386, %386 : vector<48x32xf32>
    %cst_163 = arith.constant dense<0.000000e+00> : vector<48xf32>
    %388 = vector.multi_reduction <add>, %387, %cst_163 [1] : vector<48x32xf32> to vector<48xf32>
    %389 = vector.shape_cast %388 : vector<48xf32> to vector<48x1xf32>
    %cst_164 = arith.constant 3.200000e+01 : f32
    %390 = vector.broadcast %cst_164 : f32 to vector<48x1xf32>
    %391 = arith.divf %389, %390 : vector<48x1xf32>
    %392 = vector.broadcast %384 : vector<48x1xf32> to vector<48x32xf32>
    %393 = arith.subf %376, %392 : vector<48x32xf32>
    %cst_165 = arith.constant 9.99999974E-6 : f32
    %394 = vector.broadcast %cst_165 : f32 to vector<48x1xf32>
    %395 = arith.addf %391, %394 : vector<48x1xf32>
    %396 = math.rsqrt %395 : vector<48x1xf32>
    %397 = vector.broadcast %396 : vector<48x1xf32> to vector<48x32xf32>
    %398 = arith.mulf %393, %397 : vector<48x32xf32>
    %399 = vector.broadcast %378 : vector<1x32xf32> to vector<48x32xf32>
    %400 = arith.mulf %398, %399 : vector<48x32xf32>
    %401 = vector.broadcast %380 : vector<1x32xf32> to vector<48x32xf32>
    %402 = arith.addf %400, %401 : vector<48x32xf32>
    %403 = vector.shape_cast %402 : vector<48x32xf32> to vector<6x8x32xf32>
    %cst_166 = arith.constant 1.000000e+00 : f32
    %404 = vector.broadcast %cst_166 : f32 to vector<6x8xf32>
    %405 = arith.subf %404, %9 : vector<6x8xf32>
    %cst_167 = arith.constant dense<0.000000e+00> : vector<6xf32>
    %406 = vector.multi_reduction <add>, %405, %cst_167 [1] : vector<6x8xf32> to vector<6xf32>
    %407 = vector.shape_cast %406 : vector<6xf32> to vector<6x1xf32>
    %cst_168 = arith.constant 9.99999996E-13 : f32
    %408 = vector.broadcast %cst_168 : f32 to vector<6x1xf32>
    %409 = arith.addf %407, %408 : vector<6x1xf32>
    %410 = vector.broadcast %409 : vector<6x1xf32> to vector<6x8xf32>
    %411 = arith.divf %405, %410 : vector<6x8xf32>
    %412 = vector.shape_cast %411 : vector<6x8xf32> to vector<6x8x1xf32>
    %413 = vector.broadcast %412 : vector<6x8x1xf32> to vector<6x8x32xf32>
    %414 = arith.mulf %403, %413 : vector<6x8x32xf32>
    %cst_169 = arith.constant dense<0.000000e+00> : vector<6x32xf32>
    %415 = vector.multi_reduction <add>, %414, %cst_169 [1] : vector<6x8x32xf32> to vector<6x32xf32>
    %416 = vector.shape_cast %415 : vector<6x32xf32> to vector<2x3x32xf32>
    %c0_170 = arith.constant 0 : index
    %c0_171 = arith.constant 0 : index
    %417 = vector.load %arg3[%c0_170, %c0_171] : memref<2x3xf32, #tpu.memory_space<vmem>>, vector<2x3xf32>
    %c0_172 = arith.constant 0 : index
    %c0_173 = arith.constant 0 : index
    %418 = vector.load %arg6[%c0_172, %c0_173] : memref<50x32xf32, #tpu.memory_space<vmem>>, vector<3x32xf32>
    %419 = vector.shape_cast %418 : vector<3x32xf32> to vector<1x3x32xf32>
    %420 = vector.broadcast %419 : vector<1x3x32xf32> to vector<2x3x32xf32>
    %421 = arith.addf %416, %420 : vector<2x3x32xf32>
    %422 = vector.shape_cast %421 : vector<2x3x32xf32> to vector<6x32xf32>
    %c0_174 = arith.constant 0 : index
    %c0_175 = arith.constant 0 : index
    %c0_176 = arith.constant 0 : index
    %423 = vector.load %arg19[%c0_174, %c0_175, %c0_176] : memref<2x32x96xf32, #tpu.memory_space<vmem>>, vector<1x32x96xf32>
    %424 = vector.shape_cast %423 : vector<1x32x96xf32> to vector<32x96xf32>
    %cst_177 = arith.constant dense<0.000000e+00> : vector<6x96xf32>
    %425 = tpu.matmul %422, %424, %cst_177 {dimension_numbers = #tpu.dot_dimension_numbers<[1], [0], [0], [1], [0, 0, 1, 1], [], []>} : vector<6x32xf32>, vector<32x96xf32>, vector<6x96xf32> -> vector<6x96xf32>
    %c0_178 = arith.constant 0 : index
    %c0_179 = arith.constant 0 : index
    %c0_180 = arith.constant 0 : index
    %426 = vector.load %arg20[%c0_178, %c0_179, %c0_180] : memref<2x1x96xf32, #tpu.memory_space<vmem>>, vector<1x1x96xf32>
    %427 = vector.shape_cast %426 : vector<1x1x96xf32> to vector<1x96xf32>
    %428 = vector.broadcast %427 : vector<1x96xf32> to vector<6x96xf32>
    %429 = arith.addf %425, %428 : vector<6x96xf32>
    %430 = vector.extract_strided_slice %429 {offsets = [0, 0], sizes = [6, 32], strides = [1, 1]} : vector<6x96xf32> to vector<6x32xf32>
    %431 = vector.shape_cast %430 : vector<6x32xf32> to vector<2x3x32xf32>
    %432 = vector.extract_strided_slice %429 {offsets = [0, 32], sizes = [6, 32], strides = [1, 1]} : vector<6x96xf32> to vector<6x32xf32>
    %433 = vector.shape_cast %432 : vector<6x32xf32> to vector<2x3x32xf32>
    %434 = vector.extract_strided_slice %429 {offsets = [0, 64], sizes = [6, 32], strides = [1, 1]} : vector<6x96xf32> to vector<6x32xf32>
    %435 = vector.shape_cast %434 : vector<6x32xf32> to vector<2x3x32xf32>
    %c0_181 = arith.constant 0 : index
    %c0_182 = arith.constant 0 : index
    %c0_183 = arith.constant 0 : index
    %436 = vector.load %arg21[%c0_181, %c0_182, %c0_183] : memref<2x32x32xf32, #tpu.memory_space<vmem>>, vector<1x32x32xf32>
    %437 = vector.shape_cast %436 : vector<1x32x32xf32> to vector<32x32xf32>
    %438 = vector.shape_cast %417 : vector<2x3xf32> to vector<2x1x3xf32>
    %cst_184 = arith.constant 5.000000e-01 : f32
    %439 = vector.broadcast %cst_184 : f32 to vector<2x1x3xf32>
    %440 = arith.cmpf ogt, %438, %439 : vector<2x1x3xf32>
    %cst_185 = arith.constant 0.000000e+00 : f32
    %441 = vector.broadcast %cst_185 : f32 to vector<6x32xf32>
    %442 = vector.extract_strided_slice %431 {offsets = [0, 0, 0], sizes = [2, 3, 8], strides = [1, 1, 1]} : vector<2x3x32xf32> to vector<2x3x8xf32>
    %443 = vector.extract_strided_slice %433 {offsets = [0, 0, 0], sizes = [2, 3, 8], strides = [1, 1, 1]} : vector<2x3x32xf32> to vector<2x3x8xf32>
    "tpu.trace_start"() <{level = 10 : i32, message = "mqd,mkd->mqk"}> : () -> ()
    %cst_186 = arith.constant dense<0.000000e+00> : vector<2x3x3xf32>
    %444 = tpu.matmul %442, %443, %cst_186 {dimension_numbers = #tpu.dot_dimension_numbers<[2], [2], [1], [1], [0, 0, 0, 1, 1, 1], [0], [0]>} : vector<2x3x8xf32>, vector<2x3x8xf32>, vector<2x3x3xf32> -> vector<2x3x3xf32>
    "tpu.trace_stop"() : () -> ()
    %cst_187 = arith.constant 0.353553385 : f32
    %445 = vector.broadcast %cst_187 : f32 to vector<2x3x3xf32>
    %446 = arith.mulf %444, %445 : vector<2x3x3xf32>
    %cst_188 = arith.constant -1.000000e+09 : f32
    %447 = vector.shape_cast %440 : vector<2x1x3xi1> to vector<2x1x3xi1>
    %448 = vector.broadcast %447 : vector<2x1x3xi1> to vector<2x3x3xi1>
    %449 = vector.broadcast %cst_188 : f32 to vector<2x3x3xf32>
    %450 = arith.select %448, %449, %446 : vector<2x3x3xi1>, vector<2x3x3xf32>
    %cst_189 = arith.constant dense<0xFF800000> : vector<2x3xf32>
    %451 = vector.multi_reduction <maximumf>, %450, %cst_189 [2] : vector<2x3x3xf32> to vector<2x3xf32>
    %452 = vector.shape_cast %451 : vector<2x3xf32> to vector<2x3x1xf32>
    %453 = vector.broadcast %452 : vector<2x3x1xf32> to vector<2x3x3xf32>
    %454 = arith.subf %450, %453 : vector<2x3x3xf32>
    %455 = math.exp %454 : vector<2x3x3xf32>
    %cst_190 = arith.constant dense<0.000000e+00> : vector<2x3xf32>
    %456 = vector.multi_reduction <add>, %455, %cst_190 [2] : vector<2x3x3xf32> to vector<2x3xf32>
    %457 = vector.shape_cast %456 : vector<2x3xf32> to vector<2x3x1xf32>
    %458 = tpu.reciprocal %457 {approx = true} : vector<2x3x1xf32> -> vector<2x3x1xf32>
    %459 = vector.broadcast %458 : vector<2x3x1xf32> to vector<2x3x3xf32>
    %460 = arith.mulf %455, %459 : vector<2x3x3xf32>
    %461 = vector.extract_strided_slice %435 {offsets = [0, 0, 0], sizes = [2, 3, 8], strides = [1, 1, 1]} : vector<2x3x32xf32> to vector<2x3x8xf32>
    "tpu.trace_start"() <{level = 10 : i32, message = "mqk,mkd->mqd"}> : () -> ()
    %cst_191 = arith.constant dense<0.000000e+00> : vector<2x3x8xf32>
    %462 = tpu.matmul %460, %461, %cst_191 {dimension_numbers = #tpu.dot_dimension_numbers<[2], [1], [1], [2], [0, 0, 0, 1, 1, 2], [0], [0]>} : vector<2x3x3xf32>, vector<2x3x8xf32>, vector<2x3x8xf32> -> vector<2x3x8xf32>
    "tpu.trace_stop"() : () -> ()
    %463 = vector.shape_cast %462 : vector<2x3x8xf32> to vector<6x8xf32>
    %464 = vector.extract_strided_slice %437 {offsets = [0, 0], sizes = [8, 32], strides = [1, 1]} : vector<32x32xf32> to vector<8x32xf32>
    %cst_192 = arith.constant dense<0.000000e+00> : vector<6x32xf32>
    %465 = tpu.matmul %463, %464, %cst_192 {dimension_numbers = #tpu.dot_dimension_numbers<[1], [0], [0], [1], [0, 0, 1, 1], [], []>} : vector<6x8xf32>, vector<8x32xf32>, vector<6x32xf32> -> vector<6x32xf32>
    %466 = arith.addf %441, %465 : vector<6x32xf32>
    %467 = vector.extract_strided_slice %431 {offsets = [0, 0, 8], sizes = [2, 3, 8], strides = [1, 1, 1]} : vector<2x3x32xf32> to vector<2x3x8xf32>
    %468 = vector.extract_strided_slice %433 {offsets = [0, 0, 8], sizes = [2, 3, 8], strides = [1, 1, 1]} : vector<2x3x32xf32> to vector<2x3x8xf32>
    "tpu.trace_start"() <{level = 10 : i32, message = "mqd,mkd->mqk"}> : () -> ()
    %cst_193 = arith.constant dense<0.000000e+00> : vector<2x3x3xf32>
    %469 = tpu.matmul %467, %468, %cst_193 {dimension_numbers = #tpu.dot_dimension_numbers<[2], [2], [1], [1], [0, 0, 0, 1, 1, 1], [0], [0]>} : vector<2x3x8xf32>, vector<2x3x8xf32>, vector<2x3x3xf32> -> vector<2x3x3xf32>
    "tpu.trace_stop"() : () -> ()
    %cst_194 = arith.constant 0.353553385 : f32
    %470 = vector.broadcast %cst_194 : f32 to vector<2x3x3xf32>
    %471 = arith.mulf %469, %470 : vector<2x3x3xf32>
    %cst_195 = arith.constant -1.000000e+09 : f32
    %472 = vector.shape_cast %440 : vector<2x1x3xi1> to vector<2x1x3xi1>
    %473 = vector.broadcast %472 : vector<2x1x3xi1> to vector<2x3x3xi1>
    %474 = vector.broadcast %cst_195 : f32 to vector<2x3x3xf32>
    %475 = arith.select %473, %474, %471 : vector<2x3x3xi1>, vector<2x3x3xf32>
    %cst_196 = arith.constant dense<0xFF800000> : vector<2x3xf32>
    %476 = vector.multi_reduction <maximumf>, %475, %cst_196 [2] : vector<2x3x3xf32> to vector<2x3xf32>
    %477 = vector.shape_cast %476 : vector<2x3xf32> to vector<2x3x1xf32>
    %478 = vector.broadcast %477 : vector<2x3x1xf32> to vector<2x3x3xf32>
    %479 = arith.subf %475, %478 : vector<2x3x3xf32>
    %480 = math.exp %479 : vector<2x3x3xf32>
    %cst_197 = arith.constant dense<0.000000e+00> : vector<2x3xf32>
    %481 = vector.multi_reduction <add>, %480, %cst_197 [2] : vector<2x3x3xf32> to vector<2x3xf32>
    %482 = vector.shape_cast %481 : vector<2x3xf32> to vector<2x3x1xf32>
    %483 = tpu.reciprocal %482 {approx = true} : vector<2x3x1xf32> -> vector<2x3x1xf32>
    %484 = vector.broadcast %483 : vector<2x3x1xf32> to vector<2x3x3xf32>
    %485 = arith.mulf %480, %484 : vector<2x3x3xf32>
    %486 = vector.extract_strided_slice %435 {offsets = [0, 0, 8], sizes = [2, 3, 8], strides = [1, 1, 1]} : vector<2x3x32xf32> to vector<2x3x8xf32>
    "tpu.trace_start"() <{level = 10 : i32, message = "mqk,mkd->mqd"}> : () -> ()
    %cst_198 = arith.constant dense<0.000000e+00> : vector<2x3x8xf32>
    %487 = tpu.matmul %485, %486, %cst_198 {dimension_numbers = #tpu.dot_dimension_numbers<[2], [1], [1], [2], [0, 0, 0, 1, 1, 2], [0], [0]>} : vector<2x3x3xf32>, vector<2x3x8xf32>, vector<2x3x8xf32> -> vector<2x3x8xf32>
    "tpu.trace_stop"() : () -> ()
    %488 = vector.shape_cast %487 : vector<2x3x8xf32> to vector<6x8xf32>
    %489 = vector.extract_strided_slice %437 {offsets = [8, 0], sizes = [8, 32], strides = [1, 1]} : vector<32x32xf32> to vector<8x32xf32>
    %cst_199 = arith.constant dense<0.000000e+00> : vector<6x32xf32>
    %490 = tpu.matmul %488, %489, %cst_199 {dimension_numbers = #tpu.dot_dimension_numbers<[1], [0], [0], [1], [0, 0, 1, 1], [], []>} : vector<6x8xf32>, vector<8x32xf32>, vector<6x32xf32> -> vector<6x32xf32>
    %491 = arith.addf %466, %490 : vector<6x32xf32>
    %492 = vector.extract_strided_slice %431 {offsets = [0, 0, 16], sizes = [2, 3, 8], strides = [1, 1, 1]} : vector<2x3x32xf32> to vector<2x3x8xf32>
    %493 = vector.extract_strided_slice %433 {offsets = [0, 0, 16], sizes = [2, 3, 8], strides = [1, 1, 1]} : vector<2x3x32xf32> to vector<2x3x8xf32>
    "tpu.trace_start"() <{level = 10 : i32, message = "mqd,mkd->mqk"}> : () -> ()
    %cst_200 = arith.constant dense<0.000000e+00> : vector<2x3x3xf32>
    %494 = tpu.matmul %492, %493, %cst_200 {dimension_numbers = #tpu.dot_dimension_numbers<[2], [2], [1], [1], [0, 0, 0, 1, 1, 1], [0], [0]>} : vector<2x3x8xf32>, vector<2x3x8xf32>, vector<2x3x3xf32> -> vector<2x3x3xf32>
    "tpu.trace_stop"() : () -> ()
    %cst_201 = arith.constant 0.353553385 : f32
    %495 = vector.broadcast %cst_201 : f32 to vector<2x3x3xf32>
    %496 = arith.mulf %494, %495 : vector<2x3x3xf32>
    %cst_202 = arith.constant -1.000000e+09 : f32
    %497 = vector.shape_cast %440 : vector<2x1x3xi1> to vector<2x1x3xi1>
    %498 = vector.broadcast %497 : vector<2x1x3xi1> to vector<2x3x3xi1>
    %499 = vector.broadcast %cst_202 : f32 to vector<2x3x3xf32>
    %500 = arith.select %498, %499, %496 : vector<2x3x3xi1>, vector<2x3x3xf32>
    %cst_203 = arith.constant dense<0xFF800000> : vector<2x3xf32>
    %501 = vector.multi_reduction <maximumf>, %500, %cst_203 [2] : vector<2x3x3xf32> to vector<2x3xf32>
    %502 = vector.shape_cast %501 : vector<2x3xf32> to vector<2x3x1xf32>
    %503 = vector.broadcast %502 : vector<2x3x1xf32> to vector<2x3x3xf32>
    %504 = arith.subf %500, %503 : vector<2x3x3xf32>
    %505 = math.exp %504 : vector<2x3x3xf32>
    %cst_204 = arith.constant dense<0.000000e+00> : vector<2x3xf32>
    %506 = vector.multi_reduction <add>, %505, %cst_204 [2] : vector<2x3x3xf32> to vector<2x3xf32>
    %507 = vector.shape_cast %506 : vector<2x3xf32> to vector<2x3x1xf32>
    %508 = tpu.reciprocal %507 {approx = true} : vector<2x3x1xf32> -> vector<2x3x1xf32>
    %509 = vector.broadcast %508 : vector<2x3x1xf32> to vector<2x3x3xf32>
    %510 = arith.mulf %505, %509 : vector<2x3x3xf32>
    %511 = vector.extract_strided_slice %435 {offsets = [0, 0, 16], sizes = [2, 3, 8], strides = [1, 1, 1]} : vector<2x3x32xf32> to vector<2x3x8xf32>
    "tpu.trace_start"() <{level = 10 : i32, message = "mqk,mkd->mqd"}> : () -> ()
    %cst_205 = arith.constant dense<0.000000e+00> : vector<2x3x8xf32>
    %512 = tpu.matmul %510, %511, %cst_205 {dimension_numbers = #tpu.dot_dimension_numbers<[2], [1], [1], [2], [0, 0, 0, 1, 1, 2], [0], [0]>} : vector<2x3x3xf32>, vector<2x3x8xf32>, vector<2x3x8xf32> -> vector<2x3x8xf32>
    "tpu.trace_stop"() : () -> ()
    %513 = vector.shape_cast %512 : vector<2x3x8xf32> to vector<6x8xf32>
    %514 = vector.extract_strided_slice %437 {offsets = [16, 0], sizes = [8, 32], strides = [1, 1]} : vector<32x32xf32> to vector<8x32xf32>
    %cst_206 = arith.constant dense<0.000000e+00> : vector<6x32xf32>
    %515 = tpu.matmul %513, %514, %cst_206 {dimension_numbers = #tpu.dot_dimension_numbers<[1], [0], [0], [1], [0, 0, 1, 1], [], []>} : vector<6x8xf32>, vector<8x32xf32>, vector<6x32xf32> -> vector<6x32xf32>
    %516 = arith.addf %491, %515 : vector<6x32xf32>
    %517 = vector.extract_strided_slice %431 {offsets = [0, 0, 24], sizes = [2, 3, 8], strides = [1, 1, 1]} : vector<2x3x32xf32> to vector<2x3x8xf32>
    %518 = vector.extract_strided_slice %433 {offsets = [0, 0, 24], sizes = [2, 3, 8], strides = [1, 1, 1]} : vector<2x3x32xf32> to vector<2x3x8xf32>
    "tpu.trace_start"() <{level = 10 : i32, message = "mqd,mkd->mqk"}> : () -> ()
    %cst_207 = arith.constant dense<0.000000e+00> : vector<2x3x3xf32>
    %519 = tpu.matmul %517, %518, %cst_207 {dimension_numbers = #tpu.dot_dimension_numbers<[2], [2], [1], [1], [0, 0, 0, 1, 1, 1], [0], [0]>} : vector<2x3x8xf32>, vector<2x3x8xf32>, vector<2x3x3xf32> -> vector<2x3x3xf32>
    "tpu.trace_stop"() : () -> ()
    %cst_208 = arith.constant 0.353553385 : f32
    %520 = vector.broadcast %cst_208 : f32 to vector<2x3x3xf32>
    %521 = arith.mulf %519, %520 : vector<2x3x3xf32>
    %cst_209 = arith.constant -1.000000e+09 : f32
    %522 = vector.shape_cast %440 : vector<2x1x3xi1> to vector<2x1x3xi1>
    %523 = vector.broadcast %522 : vector<2x1x3xi1> to vector<2x3x3xi1>
    %524 = vector.broadcast %cst_209 : f32 to vector<2x3x3xf32>
    %525 = arith.select %523, %524, %521 : vector<2x3x3xi1>, vector<2x3x3xf32>
    %cst_210 = arith.constant dense<0xFF800000> : vector<2x3xf32>
    %526 = vector.multi_reduction <maximumf>, %525, %cst_210 [2] : vector<2x3x3xf32> to vector<2x3xf32>
    %527 = vector.shape_cast %526 : vector<2x3xf32> to vector<2x3x1xf32>
    %528 = vector.broadcast %527 : vector<2x3x1xf32> to vector<2x3x3xf32>
    %529 = arith.subf %525, %528 : vector<2x3x3xf32>
    %530 = math.exp %529 : vector<2x3x3xf32>
    %cst_211 = arith.constant dense<0.000000e+00> : vector<2x3xf32>
    %531 = vector.multi_reduction <add>, %530, %cst_211 [2] : vector<2x3x3xf32> to vector<2x3xf32>
    %532 = vector.shape_cast %531 : vector<2x3xf32> to vector<2x3x1xf32>
    %533 = tpu.reciprocal %532 {approx = true} : vector<2x3x1xf32> -> vector<2x3x1xf32>
    %534 = vector.broadcast %533 : vector<2x3x1xf32> to vector<2x3x3xf32>
    %535 = arith.mulf %530, %534 : vector<2x3x3xf32>
    %536 = vector.extract_strided_slice %435 {offsets = [0, 0, 24], sizes = [2, 3, 8], strides = [1, 1, 1]} : vector<2x3x32xf32> to vector<2x3x8xf32>
    "tpu.trace_start"() <{level = 10 : i32, message = "mqk,mkd->mqd"}> : () -> ()
    %cst_212 = arith.constant dense<0.000000e+00> : vector<2x3x8xf32>
    %537 = tpu.matmul %535, %536, %cst_212 {dimension_numbers = #tpu.dot_dimension_numbers<[2], [1], [1], [2], [0, 0, 0, 1, 1, 2], [0], [0]>} : vector<2x3x3xf32>, vector<2x3x8xf32>, vector<2x3x8xf32> -> vector<2x3x8xf32>
    "tpu.trace_stop"() : () -> ()
    %538 = vector.shape_cast %537 : vector<2x3x8xf32> to vector<6x8xf32>
    %539 = vector.extract_strided_slice %437 {offsets = [24, 0], sizes = [8, 32], strides = [1, 1]} : vector<32x32xf32> to vector<8x32xf32>
    %cst_213 = arith.constant dense<0.000000e+00> : vector<6x32xf32>
    %540 = tpu.matmul %538, %539, %cst_213 {dimension_numbers = #tpu.dot_dimension_numbers<[1], [0], [0], [1], [0, 0, 1, 1], [], []>} : vector<6x8xf32>, vector<8x32xf32>, vector<6x32xf32> -> vector<6x32xf32>
    %541 = arith.addf %516, %540 : vector<6x32xf32>
    %c0_214 = arith.constant 0 : index
    %c0_215 = arith.constant 0 : index
    %c0_216 = arith.constant 0 : index
    %542 = vector.load %arg22[%c0_214, %c0_215, %c0_216] : memref<2x1x32xf32, #tpu.memory_space<vmem>>, vector<1x1x32xf32>
    %543 = vector.shape_cast %542 : vector<1x1x32xf32> to vector<1x32xf32>
    %544 = vector.broadcast %543 : vector<1x32xf32> to vector<6x32xf32>
    %545 = arith.addf %541, %544 : vector<6x32xf32>
    %546 = arith.addf %422, %545 : vector<6x32xf32>
    %c0_217 = arith.constant 0 : index
    %c0_218 = arith.constant 0 : index
    %c0_219 = arith.constant 0 : index
    %547 = vector.load %arg23[%c0_217, %c0_218, %c0_219] : memref<2x1x32xf32, #tpu.memory_space<vmem>>, vector<1x1x32xf32>
    %548 = vector.shape_cast %547 : vector<1x1x32xf32> to vector<1x32xf32>
    %c0_220 = arith.constant 0 : index
    %c0_221 = arith.constant 0 : index
    %c0_222 = arith.constant 0 : index
    %549 = vector.load %arg24[%c0_220, %c0_221, %c0_222] : memref<2x1x32xf32, #tpu.memory_space<vmem>>, vector<1x1x32xf32>
    %550 = vector.shape_cast %549 : vector<1x1x32xf32> to vector<1x32xf32>
    %cst_223 = arith.constant dense<0.000000e+00> : vector<6xf32>
    %551 = vector.multi_reduction <add>, %546, %cst_223 [1] : vector<6x32xf32> to vector<6xf32>
    %552 = vector.shape_cast %551 : vector<6xf32> to vector<6x1xf32>
    %cst_224 = arith.constant 3.200000e+01 : f32
    %553 = vector.broadcast %cst_224 : f32 to vector<6x1xf32>
    %554 = arith.divf %552, %553 : vector<6x1xf32>
    %555 = vector.broadcast %554 : vector<6x1xf32> to vector<6x32xf32>
    %556 = arith.subf %546, %555 : vector<6x32xf32>
    %557 = arith.mulf %556, %556 : vector<6x32xf32>
    %cst_225 = arith.constant dense<0.000000e+00> : vector<6xf32>
    %558 = vector.multi_reduction <add>, %557, %cst_225 [1] : vector<6x32xf32> to vector<6xf32>
    %559 = vector.shape_cast %558 : vector<6xf32> to vector<6x1xf32>
    %cst_226 = arith.constant 3.200000e+01 : f32
    %560 = vector.broadcast %cst_226 : f32 to vector<6x1xf32>
    %561 = arith.divf %559, %560 : vector<6x1xf32>
    %562 = vector.broadcast %554 : vector<6x1xf32> to vector<6x32xf32>
    %563 = arith.subf %546, %562 : vector<6x32xf32>
    %cst_227 = arith.constant 9.99999974E-6 : f32
    %564 = vector.broadcast %cst_227 : f32 to vector<6x1xf32>
    %565 = arith.addf %561, %564 : vector<6x1xf32>
    %566 = math.rsqrt %565 : vector<6x1xf32>
    %567 = vector.broadcast %566 : vector<6x1xf32> to vector<6x32xf32>
    %568 = arith.mulf %563, %567 : vector<6x32xf32>
    %569 = vector.broadcast %548 : vector<1x32xf32> to vector<6x32xf32>
    %570 = arith.mulf %568, %569 : vector<6x32xf32>
    %571 = vector.broadcast %550 : vector<1x32xf32> to vector<6x32xf32>
    %572 = arith.addf %570, %571 : vector<6x32xf32>
    %c0_228 = arith.constant 0 : index
    %c0_229 = arith.constant 0 : index
    %c0_230 = arith.constant 0 : index
    %573 = vector.load %arg25[%c0_228, %c0_229, %c0_230] : memref<2x32x64xf32, #tpu.memory_space<vmem>>, vector<1x32x64xf32>
    %574 = vector.shape_cast %573 : vector<1x32x64xf32> to vector<32x64xf32>
    %cst_231 = arith.constant dense<0.000000e+00> : vector<6x64xf32>
    %575 = tpu.matmul %572, %574, %cst_231 {dimension_numbers = #tpu.dot_dimension_numbers<[1], [0], [0], [1], [0, 0, 1, 1], [], []>} : vector<6x32xf32>, vector<32x64xf32>, vector<6x64xf32> -> vector<6x64xf32>
    %c0_232 = arith.constant 0 : index
    %c0_233 = arith.constant 0 : index
    %c0_234 = arith.constant 0 : index
    %576 = vector.load %arg26[%c0_232, %c0_233, %c0_234] : memref<2x1x64xf32, #tpu.memory_space<vmem>>, vector<1x1x64xf32>
    %577 = vector.shape_cast %576 : vector<1x1x64xf32> to vector<1x64xf32>
    %578 = vector.broadcast %577 : vector<1x64xf32> to vector<6x64xf32>
    %579 = arith.addf %575, %578 : vector<6x64xf32>
    %cst_235 = arith.constant 0.000000e+00 : f32
    %580 = vector.broadcast %cst_235 : f32 to vector<6x64xf32>
    %581 = arith.maximumf %579, %580 : vector<6x64xf32>
    %c0_236 = arith.constant 0 : index
    %c0_237 = arith.constant 0 : index
    %c0_238 = arith.constant 0 : index
    %582 = vector.load %arg27[%c0_236, %c0_237, %c0_238] : memref<2x64x32xf32, #tpu.memory_space<vmem>>, vector<1x64x32xf32>
    %583 = vector.shape_cast %582 : vector<1x64x32xf32> to vector<64x32xf32>
    %cst_239 = arith.constant dense<0.000000e+00> : vector<6x32xf32>
    %584 = tpu.matmul %581, %583, %cst_239 {dimension_numbers = #tpu.dot_dimension_numbers<[1], [0], [0], [1], [0, 0, 1, 1], [], []>} : vector<6x64xf32>, vector<64x32xf32>, vector<6x32xf32> -> vector<6x32xf32>
    %c0_240 = arith.constant 0 : index
    %c0_241 = arith.constant 0 : index
    %c0_242 = arith.constant 0 : index
    %585 = vector.load %arg28[%c0_240, %c0_241, %c0_242] : memref<2x1x32xf32, #tpu.memory_space<vmem>>, vector<1x1x32xf32>
    %586 = vector.shape_cast %585 : vector<1x1x32xf32> to vector<1x32xf32>
    %587 = vector.broadcast %586 : vector<1x32xf32> to vector<6x32xf32>
    %588 = arith.addf %584, %587 : vector<6x32xf32>
    %589 = arith.addf %572, %588 : vector<6x32xf32>
    %c0_243 = arith.constant 0 : index
    %c0_244 = arith.constant 0 : index
    %c0_245 = arith.constant 0 : index
    %590 = vector.load %arg29[%c0_243, %c0_244, %c0_245] : memref<2x1x32xf32, #tpu.memory_space<vmem>>, vector<1x1x32xf32>
    %591 = vector.shape_cast %590 : vector<1x1x32xf32> to vector<1x32xf32>
    %c0_246 = arith.constant 0 : index
    %c0_247 = arith.constant 0 : index
    %c0_248 = arith.constant 0 : index
    %592 = vector.load %arg30[%c0_246, %c0_247, %c0_248] : memref<2x1x32xf32, #tpu.memory_space<vmem>>, vector<1x1x32xf32>
    %593 = vector.shape_cast %592 : vector<1x1x32xf32> to vector<1x32xf32>
    %cst_249 = arith.constant dense<0.000000e+00> : vector<6xf32>
    %594 = vector.multi_reduction <add>, %589, %cst_249 [1] : vector<6x32xf32> to vector<6xf32>
    %595 = vector.shape_cast %594 : vector<6xf32> to vector<6x1xf32>
    %cst_250 = arith.constant 3.200000e+01 : f32
    %596 = vector.broadcast %cst_250 : f32 to vector<6x1xf32>
    %597 = arith.divf %595, %596 : vector<6x1xf32>
    %598 = vector.broadcast %597 : vector<6x1xf32> to vector<6x32xf32>
    %599 = arith.subf %589, %598 : vector<6x32xf32>
    %600 = arith.mulf %599, %599 : vector<6x32xf32>
    %cst_251 = arith.constant dense<0.000000e+00> : vector<6xf32>
    %601 = vector.multi_reduction <add>, %600, %cst_251 [1] : vector<6x32xf32> to vector<6xf32>
    %602 = vector.shape_cast %601 : vector<6xf32> to vector<6x1xf32>
    %cst_252 = arith.constant 3.200000e+01 : f32
    %603 = vector.broadcast %cst_252 : f32 to vector<6x1xf32>
    %604 = arith.divf %602, %603 : vector<6x1xf32>
    %605 = vector.broadcast %597 : vector<6x1xf32> to vector<6x32xf32>
    %606 = arith.subf %589, %605 : vector<6x32xf32>
    %cst_253 = arith.constant 9.99999974E-6 : f32
    %607 = vector.broadcast %cst_253 : f32 to vector<6x1xf32>
    %608 = arith.addf %604, %607 : vector<6x1xf32>
    %609 = math.rsqrt %608 : vector<6x1xf32>
    %610 = vector.broadcast %609 : vector<6x1xf32> to vector<6x32xf32>
    %611 = arith.mulf %606, %610 : vector<6x32xf32>
    %612 = vector.broadcast %591 : vector<1x32xf32> to vector<6x32xf32>
    %613 = arith.mulf %611, %612 : vector<6x32xf32>
    %614 = vector.broadcast %593 : vector<1x32xf32> to vector<6x32xf32>
    %615 = arith.addf %613, %614 : vector<6x32xf32>
    %616 = vector.shape_cast %615 : vector<6x32xf32> to vector<2x3x32xf32>
    %617 = vector.shape_cast %616 : vector<2x3x32xf32> to vector<6x32xf32>
    %c1_254 = arith.constant 1 : index
    %c0_255 = arith.constant 0 : index
    %c0_256 = arith.constant 0 : index
    %618 = vector.load %arg19[%c1_254, %c0_255, %c0_256] : memref<2x32x96xf32, #tpu.memory_space<vmem>>, vector<1x32x96xf32>
    %619 = vector.shape_cast %618 : vector<1x32x96xf32> to vector<32x96xf32>
    %cst_257 = arith.constant dense<0.000000e+00> : vector<6x96xf32>
    %620 = tpu.matmul %617, %619, %cst_257 {dimension_numbers = #tpu.dot_dimension_numbers<[1], [0], [0], [1], [0, 0, 1, 1], [], []>} : vector<6x32xf32>, vector<32x96xf32>, vector<6x96xf32> -> vector<6x96xf32>
    %c1_258 = arith.constant 1 : index
    %c0_259 = arith.constant 0 : index
    %c0_260 = arith.constant 0 : index
    %621 = vector.load %arg20[%c1_258, %c0_259, %c0_260] : memref<2x1x96xf32, #tpu.memory_space<vmem>>, vector<1x1x96xf32>
    %622 = vector.shape_cast %621 : vector<1x1x96xf32> to vector<1x96xf32>
    %623 = vector.broadcast %622 : vector<1x96xf32> to vector<6x96xf32>
    %624 = arith.addf %620, %623 : vector<6x96xf32>
    %625 = vector.extract_strided_slice %624 {offsets = [0, 0], sizes = [6, 32], strides = [1, 1]} : vector<6x96xf32> to vector<6x32xf32>
    %626 = vector.shape_cast %625 : vector<6x32xf32> to vector<2x3x32xf32>
    %627 = vector.extract_strided_slice %624 {offsets = [0, 32], sizes = [6, 32], strides = [1, 1]} : vector<6x96xf32> to vector<6x32xf32>
    %628 = vector.shape_cast %627 : vector<6x32xf32> to vector<2x3x32xf32>
    %629 = vector.extract_strided_slice %624 {offsets = [0, 64], sizes = [6, 32], strides = [1, 1]} : vector<6x96xf32> to vector<6x32xf32>
    %630 = vector.shape_cast %629 : vector<6x32xf32> to vector<2x3x32xf32>
    %c1_261 = arith.constant 1 : index
    %c0_262 = arith.constant 0 : index
    %c0_263 = arith.constant 0 : index
    %631 = vector.load %arg21[%c1_261, %c0_262, %c0_263] : memref<2x32x32xf32, #tpu.memory_space<vmem>>, vector<1x32x32xf32>
    %632 = vector.shape_cast %631 : vector<1x32x32xf32> to vector<32x32xf32>
    %633 = vector.shape_cast %417 : vector<2x3xf32> to vector<2x1x3xf32>
    %cst_264 = arith.constant 5.000000e-01 : f32
    %634 = vector.broadcast %cst_264 : f32 to vector<2x1x3xf32>
    %635 = arith.cmpf ogt, %633, %634 : vector<2x1x3xf32>
    %cst_265 = arith.constant 0.000000e+00 : f32
    %636 = vector.broadcast %cst_265 : f32 to vector<6x32xf32>
    %637 = vector.extract_strided_slice %626 {offsets = [0, 0, 0], sizes = [2, 3, 8], strides = [1, 1, 1]} : vector<2x3x32xf32> to vector<2x3x8xf32>
    %638 = vector.extract_strided_slice %628 {offsets = [0, 0, 0], sizes = [2, 3, 8], strides = [1, 1, 1]} : vector<2x3x32xf32> to vector<2x3x8xf32>
    "tpu.trace_start"() <{level = 10 : i32, message = "mqd,mkd->mqk"}> : () -> ()
    %cst_266 = arith.constant dense<0.000000e+00> : vector<2x3x3xf32>
    %639 = tpu.matmul %637, %638, %cst_266 {dimension_numbers = #tpu.dot_dimension_numbers<[2], [2], [1], [1], [0, 0, 0, 1, 1, 1], [0], [0]>} : vector<2x3x8xf32>, vector<2x3x8xf32>, vector<2x3x3xf32> -> vector<2x3x3xf32>
    "tpu.trace_stop"() : () -> ()
    %cst_267 = arith.constant 0.353553385 : f32
    %640 = vector.broadcast %cst_267 : f32 to vector<2x3x3xf32>
    %641 = arith.mulf %639, %640 : vector<2x3x3xf32>
    %cst_268 = arith.constant -1.000000e+09 : f32
    %642 = vector.shape_cast %635 : vector<2x1x3xi1> to vector<2x1x3xi1>
    %643 = vector.broadcast %642 : vector<2x1x3xi1> to vector<2x3x3xi1>
    %644 = vector.broadcast %cst_268 : f32 to vector<2x3x3xf32>
    %645 = arith.select %643, %644, %641 : vector<2x3x3xi1>, vector<2x3x3xf32>
    %cst_269 = arith.constant dense<0xFF800000> : vector<2x3xf32>
    %646 = vector.multi_reduction <maximumf>, %645, %cst_269 [2] : vector<2x3x3xf32> to vector<2x3xf32>
    %647 = vector.shape_cast %646 : vector<2x3xf32> to vector<2x3x1xf32>
    %648 = vector.broadcast %647 : vector<2x3x1xf32> to vector<2x3x3xf32>
    %649 = arith.subf %645, %648 : vector<2x3x3xf32>
    %650 = math.exp %649 : vector<2x3x3xf32>
    %cst_270 = arith.constant dense<0.000000e+00> : vector<2x3xf32>
    %651 = vector.multi_reduction <add>, %650, %cst_270 [2] : vector<2x3x3xf32> to vector<2x3xf32>
    %652 = vector.shape_cast %651 : vector<2x3xf32> to vector<2x3x1xf32>
    %653 = tpu.reciprocal %652 {approx = true} : vector<2x3x1xf32> -> vector<2x3x1xf32>
    %654 = vector.broadcast %653 : vector<2x3x1xf32> to vector<2x3x3xf32>
    %655 = arith.mulf %650, %654 : vector<2x3x3xf32>
    %656 = vector.extract_strided_slice %630 {offsets = [0, 0, 0], sizes = [2, 3, 8], strides = [1, 1, 1]} : vector<2x3x32xf32> to vector<2x3x8xf32>
    "tpu.trace_start"() <{level = 10 : i32, message = "mqk,mkd->mqd"}> : () -> ()
    %cst_271 = arith.constant dense<0.000000e+00> : vector<2x3x8xf32>
    %657 = tpu.matmul %655, %656, %cst_271 {dimension_numbers = #tpu.dot_dimension_numbers<[2], [1], [1], [2], [0, 0, 0, 1, 1, 2], [0], [0]>} : vector<2x3x3xf32>, vector<2x3x8xf32>, vector<2x3x8xf32> -> vector<2x3x8xf32>
    "tpu.trace_stop"() : () -> ()
    %658 = vector.shape_cast %657 : vector<2x3x8xf32> to vector<6x8xf32>
    %659 = vector.extract_strided_slice %632 {offsets = [0, 0], sizes = [8, 32], strides = [1, 1]} : vector<32x32xf32> to vector<8x32xf32>
    %cst_272 = arith.constant dense<0.000000e+00> : vector<6x32xf32>
    %660 = tpu.matmul %658, %659, %cst_272 {dimension_numbers = #tpu.dot_dimension_numbers<[1], [0], [0], [1], [0, 0, 1, 1], [], []>} : vector<6x8xf32>, vector<8x32xf32>, vector<6x32xf32> -> vector<6x32xf32>
    %661 = arith.addf %636, %660 : vector<6x32xf32>
    %662 = vector.extract_strided_slice %626 {offsets = [0, 0, 8], sizes = [2, 3, 8], strides = [1, 1, 1]} : vector<2x3x32xf32> to vector<2x3x8xf32>
    %663 = vector.extract_strided_slice %628 {offsets = [0, 0, 8], sizes = [2, 3, 8], strides = [1, 1, 1]} : vector<2x3x32xf32> to vector<2x3x8xf32>
    "tpu.trace_start"() <{level = 10 : i32, message = "mqd,mkd->mqk"}> : () -> ()
    %cst_273 = arith.constant dense<0.000000e+00> : vector<2x3x3xf32>
    %664 = tpu.matmul %662, %663, %cst_273 {dimension_numbers = #tpu.dot_dimension_numbers<[2], [2], [1], [1], [0, 0, 0, 1, 1, 1], [0], [0]>} : vector<2x3x8xf32>, vector<2x3x8xf32>, vector<2x3x3xf32> -> vector<2x3x3xf32>
    "tpu.trace_stop"() : () -> ()
    %cst_274 = arith.constant 0.353553385 : f32
    %665 = vector.broadcast %cst_274 : f32 to vector<2x3x3xf32>
    %666 = arith.mulf %664, %665 : vector<2x3x3xf32>
    %cst_275 = arith.constant -1.000000e+09 : f32
    %667 = vector.shape_cast %635 : vector<2x1x3xi1> to vector<2x1x3xi1>
    %668 = vector.broadcast %667 : vector<2x1x3xi1> to vector<2x3x3xi1>
    %669 = vector.broadcast %cst_275 : f32 to vector<2x3x3xf32>
    %670 = arith.select %668, %669, %666 : vector<2x3x3xi1>, vector<2x3x3xf32>
    %cst_276 = arith.constant dense<0xFF800000> : vector<2x3xf32>
    %671 = vector.multi_reduction <maximumf>, %670, %cst_276 [2] : vector<2x3x3xf32> to vector<2x3xf32>
    %672 = vector.shape_cast %671 : vector<2x3xf32> to vector<2x3x1xf32>
    %673 = vector.broadcast %672 : vector<2x3x1xf32> to vector<2x3x3xf32>
    %674 = arith.subf %670, %673 : vector<2x3x3xf32>
    %675 = math.exp %674 : vector<2x3x3xf32>
    %cst_277 = arith.constant dense<0.000000e+00> : vector<2x3xf32>
    %676 = vector.multi_reduction <add>, %675, %cst_277 [2] : vector<2x3x3xf32> to vector<2x3xf32>
    %677 = vector.shape_cast %676 : vector<2x3xf32> to vector<2x3x1xf32>
    %678 = tpu.reciprocal %677 {approx = true} : vector<2x3x1xf32> -> vector<2x3x1xf32>
    %679 = vector.broadcast %678 : vector<2x3x1xf32> to vector<2x3x3xf32>
    %680 = arith.mulf %675, %679 : vector<2x3x3xf32>
    %681 = vector.extract_strided_slice %630 {offsets = [0, 0, 8], sizes = [2, 3, 8], strides = [1, 1, 1]} : vector<2x3x32xf32> to vector<2x3x8xf32>
    "tpu.trace_start"() <{level = 10 : i32, message = "mqk,mkd->mqd"}> : () -> ()
    %cst_278 = arith.constant dense<0.000000e+00> : vector<2x3x8xf32>
    %682 = tpu.matmul %680, %681, %cst_278 {dimension_numbers = #tpu.dot_dimension_numbers<[2], [1], [1], [2], [0, 0, 0, 1, 1, 2], [0], [0]>} : vector<2x3x3xf32>, vector<2x3x8xf32>, vector<2x3x8xf32> -> vector<2x3x8xf32>
    "tpu.trace_stop"() : () -> ()
    %683 = vector.shape_cast %682 : vector<2x3x8xf32> to vector<6x8xf32>
    %684 = vector.extract_strided_slice %632 {offsets = [8, 0], sizes = [8, 32], strides = [1, 1]} : vector<32x32xf32> to vector<8x32xf32>
    %cst_279 = arith.constant dense<0.000000e+00> : vector<6x32xf32>
    %685 = tpu.matmul %683, %684, %cst_279 {dimension_numbers = #tpu.dot_dimension_numbers<[1], [0], [0], [1], [0, 0, 1, 1], [], []>} : vector<6x8xf32>, vector<8x32xf32>, vector<6x32xf32> -> vector<6x32xf32>
    %686 = arith.addf %661, %685 : vector<6x32xf32>
    %687 = vector.extract_strided_slice %626 {offsets = [0, 0, 16], sizes = [2, 3, 8], strides = [1, 1, 1]} : vector<2x3x32xf32> to vector<2x3x8xf32>
    %688 = vector.extract_strided_slice %628 {offsets = [0, 0, 16], sizes = [2, 3, 8], strides = [1, 1, 1]} : vector<2x3x32xf32> to vector<2x3x8xf32>
    "tpu.trace_start"() <{level = 10 : i32, message = "mqd,mkd->mqk"}> : () -> ()
    %cst_280 = arith.constant dense<0.000000e+00> : vector<2x3x3xf32>
    %689 = tpu.matmul %687, %688, %cst_280 {dimension_numbers = #tpu.dot_dimension_numbers<[2], [2], [1], [1], [0, 0, 0, 1, 1, 1], [0], [0]>} : vector<2x3x8xf32>, vector<2x3x8xf32>, vector<2x3x3xf32> -> vector<2x3x3xf32>
    "tpu.trace_stop"() : () -> ()
    %cst_281 = arith.constant 0.353553385 : f32
    %690 = vector.broadcast %cst_281 : f32 to vector<2x3x3xf32>
    %691 = arith.mulf %689, %690 : vector<2x3x3xf32>
    %cst_282 = arith.constant -1.000000e+09 : f32
    %692 = vector.shape_cast %635 : vector<2x1x3xi1> to vector<2x1x3xi1>
    %693 = vector.broadcast %692 : vector<2x1x3xi1> to vector<2x3x3xi1>
    %694 = vector.broadcast %cst_282 : f32 to vector<2x3x3xf32>
    %695 = arith.select %693, %694, %691 : vector<2x3x3xi1>, vector<2x3x3xf32>
    %cst_283 = arith.constant dense<0xFF800000> : vector<2x3xf32>
    %696 = vector.multi_reduction <maximumf>, %695, %cst_283 [2] : vector<2x3x3xf32> to vector<2x3xf32>
    %697 = vector.shape_cast %696 : vector<2x3xf32> to vector<2x3x1xf32>
    %698 = vector.broadcast %697 : vector<2x3x1xf32> to vector<2x3x3xf32>
    %699 = arith.subf %695, %698 : vector<2x3x3xf32>
    %700 = math.exp %699 : vector<2x3x3xf32>
    %cst_284 = arith.constant dense<0.000000e+00> : vector<2x3xf32>
    %701 = vector.multi_reduction <add>, %700, %cst_284 [2] : vector<2x3x3xf32> to vector<2x3xf32>
    %702 = vector.shape_cast %701 : vector<2x3xf32> to vector<2x3x1xf32>
    %703 = tpu.reciprocal %702 {approx = true} : vector<2x3x1xf32> -> vector<2x3x1xf32>
    %704 = vector.broadcast %703 : vector<2x3x1xf32> to vector<2x3x3xf32>
    %705 = arith.mulf %700, %704 : vector<2x3x3xf32>
    %706 = vector.extract_strided_slice %630 {offsets = [0, 0, 16], sizes = [2, 3, 8], strides = [1, 1, 1]} : vector<2x3x32xf32> to vector<2x3x8xf32>
    "tpu.trace_start"() <{level = 10 : i32, message = "mqk,mkd->mqd"}> : () -> ()
    %cst_285 = arith.constant dense<0.000000e+00> : vector<2x3x8xf32>
    %707 = tpu.matmul %705, %706, %cst_285 {dimension_numbers = #tpu.dot_dimension_numbers<[2], [1], [1], [2], [0, 0, 0, 1, 1, 2], [0], [0]>} : vector<2x3x3xf32>, vector<2x3x8xf32>, vector<2x3x8xf32> -> vector<2x3x8xf32>
    "tpu.trace_stop"() : () -> ()
    %708 = vector.shape_cast %707 : vector<2x3x8xf32> to vector<6x8xf32>
    %709 = vector.extract_strided_slice %632 {offsets = [16, 0], sizes = [8, 32], strides = [1, 1]} : vector<32x32xf32> to vector<8x32xf32>
    %cst_286 = arith.constant dense<0.000000e+00> : vector<6x32xf32>
    %710 = tpu.matmul %708, %709, %cst_286 {dimension_numbers = #tpu.dot_dimension_numbers<[1], [0], [0], [1], [0, 0, 1, 1], [], []>} : vector<6x8xf32>, vector<8x32xf32>, vector<6x32xf32> -> vector<6x32xf32>
    %711 = arith.addf %686, %710 : vector<6x32xf32>
    %712 = vector.extract_strided_slice %626 {offsets = [0, 0, 24], sizes = [2, 3, 8], strides = [1, 1, 1]} : vector<2x3x32xf32> to vector<2x3x8xf32>
    %713 = vector.extract_strided_slice %628 {offsets = [0, 0, 24], sizes = [2, 3, 8], strides = [1, 1, 1]} : vector<2x3x32xf32> to vector<2x3x8xf32>
    "tpu.trace_start"() <{level = 10 : i32, message = "mqd,mkd->mqk"}> : () -> ()
    %cst_287 = arith.constant dense<0.000000e+00> : vector<2x3x3xf32>
    %714 = tpu.matmul %712, %713, %cst_287 {dimension_numbers = #tpu.dot_dimension_numbers<[2], [2], [1], [1], [0, 0, 0, 1, 1, 1], [0], [0]>} : vector<2x3x8xf32>, vector<2x3x8xf32>, vector<2x3x3xf32> -> vector<2x3x3xf32>
    "tpu.trace_stop"() : () -> ()
    %cst_288 = arith.constant 0.353553385 : f32
    %715 = vector.broadcast %cst_288 : f32 to vector<2x3x3xf32>
    %716 = arith.mulf %714, %715 : vector<2x3x3xf32>
    %cst_289 = arith.constant -1.000000e+09 : f32
    %717 = vector.shape_cast %635 : vector<2x1x3xi1> to vector<2x1x3xi1>
    %718 = vector.broadcast %717 : vector<2x1x3xi1> to vector<2x3x3xi1>
    %719 = vector.broadcast %cst_289 : f32 to vector<2x3x3xf32>
    %720 = arith.select %718, %719, %716 : vector<2x3x3xi1>, vector<2x3x3xf32>
    %cst_290 = arith.constant dense<0xFF800000> : vector<2x3xf32>
    %721 = vector.multi_reduction <maximumf>, %720, %cst_290 [2] : vector<2x3x3xf32> to vector<2x3xf32>
    %722 = vector.shape_cast %721 : vector<2x3xf32> to vector<2x3x1xf32>
    %723 = vector.broadcast %722 : vector<2x3x1xf32> to vector<2x3x3xf32>
    %724 = arith.subf %720, %723 : vector<2x3x3xf32>
    %725 = math.exp %724 : vector<2x3x3xf32>
    %cst_291 = arith.constant dense<0.000000e+00> : vector<2x3xf32>
    %726 = vector.multi_reduction <add>, %725, %cst_291 [2] : vector<2x3x3xf32> to vector<2x3xf32>
    %727 = vector.shape_cast %726 : vector<2x3xf32> to vector<2x3x1xf32>
    %728 = tpu.reciprocal %727 {approx = true} : vector<2x3x1xf32> -> vector<2x3x1xf32>
    %729 = vector.broadcast %728 : vector<2x3x1xf32> to vector<2x3x3xf32>
    %730 = arith.mulf %725, %729 : vector<2x3x3xf32>
    %731 = vector.extract_strided_slice %630 {offsets = [0, 0, 24], sizes = [2, 3, 8], strides = [1, 1, 1]} : vector<2x3x32xf32> to vector<2x3x8xf32>
    "tpu.trace_start"() <{level = 10 : i32, message = "mqk,mkd->mqd"}> : () -> ()
    %cst_292 = arith.constant dense<0.000000e+00> : vector<2x3x8xf32>
    %732 = tpu.matmul %730, %731, %cst_292 {dimension_numbers = #tpu.dot_dimension_numbers<[2], [1], [1], [2], [0, 0, 0, 1, 1, 2], [0], [0]>} : vector<2x3x3xf32>, vector<2x3x8xf32>, vector<2x3x8xf32> -> vector<2x3x8xf32>
    "tpu.trace_stop"() : () -> ()
    %733 = vector.shape_cast %732 : vector<2x3x8xf32> to vector<6x8xf32>
    %734 = vector.extract_strided_slice %632 {offsets = [24, 0], sizes = [8, 32], strides = [1, 1]} : vector<32x32xf32> to vector<8x32xf32>
    %cst_293 = arith.constant dense<0.000000e+00> : vector<6x32xf32>
    %735 = tpu.matmul %733, %734, %cst_293 {dimension_numbers = #tpu.dot_dimension_numbers<[1], [0], [0], [1], [0, 0, 1, 1], [], []>} : vector<6x8xf32>, vector<8x32xf32>, vector<6x32xf32> -> vector<6x32xf32>
    %736 = arith.addf %711, %735 : vector<6x32xf32>
    %c1_294 = arith.constant 1 : index
    %c0_295 = arith.constant 0 : index
    %c0_296 = arith.constant 0 : index
    %737 = vector.load %arg22[%c1_294, %c0_295, %c0_296] : memref<2x1x32xf32, #tpu.memory_space<vmem>>, vector<1x1x32xf32>
    %738 = vector.shape_cast %737 : vector<1x1x32xf32> to vector<1x32xf32>
    %739 = vector.broadcast %738 : vector<1x32xf32> to vector<6x32xf32>
    %740 = arith.addf %736, %739 : vector<6x32xf32>
    %741 = arith.addf %617, %740 : vector<6x32xf32>
    %c1_297 = arith.constant 1 : index
    %c0_298 = arith.constant 0 : index
    %c0_299 = arith.constant 0 : index
    %742 = vector.load %arg23[%c1_297, %c0_298, %c0_299] : memref<2x1x32xf32, #tpu.memory_space<vmem>>, vector<1x1x32xf32>
    %743 = vector.shape_cast %742 : vector<1x1x32xf32> to vector<1x32xf32>
    %c1_300 = arith.constant 1 : index
    %c0_301 = arith.constant 0 : index
    %c0_302 = arith.constant 0 : index
    %744 = vector.load %arg24[%c1_300, %c0_301, %c0_302] : memref<2x1x32xf32, #tpu.memory_space<vmem>>, vector<1x1x32xf32>
    %745 = vector.shape_cast %744 : vector<1x1x32xf32> to vector<1x32xf32>
    %cst_303 = arith.constant dense<0.000000e+00> : vector<6xf32>
    %746 = vector.multi_reduction <add>, %741, %cst_303 [1] : vector<6x32xf32> to vector<6xf32>
    %747 = vector.shape_cast %746 : vector<6xf32> to vector<6x1xf32>
    %cst_304 = arith.constant 3.200000e+01 : f32
    %748 = vector.broadcast %cst_304 : f32 to vector<6x1xf32>
    %749 = arith.divf %747, %748 : vector<6x1xf32>
    %750 = vector.broadcast %749 : vector<6x1xf32> to vector<6x32xf32>
    %751 = arith.subf %741, %750 : vector<6x32xf32>
    %752 = arith.mulf %751, %751 : vector<6x32xf32>
    %cst_305 = arith.constant dense<0.000000e+00> : vector<6xf32>
    %753 = vector.multi_reduction <add>, %752, %cst_305 [1] : vector<6x32xf32> to vector<6xf32>
    %754 = vector.shape_cast %753 : vector<6xf32> to vector<6x1xf32>
    %cst_306 = arith.constant 3.200000e+01 : f32
    %755 = vector.broadcast %cst_306 : f32 to vector<6x1xf32>
    %756 = arith.divf %754, %755 : vector<6x1xf32>
    %757 = vector.broadcast %749 : vector<6x1xf32> to vector<6x32xf32>
    %758 = arith.subf %741, %757 : vector<6x32xf32>
    %cst_307 = arith.constant 9.99999974E-6 : f32
    %759 = vector.broadcast %cst_307 : f32 to vector<6x1xf32>
    %760 = arith.addf %756, %759 : vector<6x1xf32>
    %761 = math.rsqrt %760 : vector<6x1xf32>
    %762 = vector.broadcast %761 : vector<6x1xf32> to vector<6x32xf32>
    %763 = arith.mulf %758, %762 : vector<6x32xf32>
    %764 = vector.broadcast %743 : vector<1x32xf32> to vector<6x32xf32>
    %765 = arith.mulf %763, %764 : vector<6x32xf32>
    %766 = vector.broadcast %745 : vector<1x32xf32> to vector<6x32xf32>
    %767 = arith.addf %765, %766 : vector<6x32xf32>
    %c1_308 = arith.constant 1 : index
    %c0_309 = arith.constant 0 : index
    %c0_310 = arith.constant 0 : index
    %768 = vector.load %arg25[%c1_308, %c0_309, %c0_310] : memref<2x32x64xf32, #tpu.memory_space<vmem>>, vector<1x32x64xf32>
    %769 = vector.shape_cast %768 : vector<1x32x64xf32> to vector<32x64xf32>
    %cst_311 = arith.constant dense<0.000000e+00> : vector<6x64xf32>
    %770 = tpu.matmul %767, %769, %cst_311 {dimension_numbers = #tpu.dot_dimension_numbers<[1], [0], [0], [1], [0, 0, 1, 1], [], []>} : vector<6x32xf32>, vector<32x64xf32>, vector<6x64xf32> -> vector<6x64xf32>
    %c1_312 = arith.constant 1 : index
    %c0_313 = arith.constant 0 : index
    %c0_314 = arith.constant 0 : index
    %771 = vector.load %arg26[%c1_312, %c0_313, %c0_314] : memref<2x1x64xf32, #tpu.memory_space<vmem>>, vector<1x1x64xf32>
    %772 = vector.shape_cast %771 : vector<1x1x64xf32> to vector<1x64xf32>
    %773 = vector.broadcast %772 : vector<1x64xf32> to vector<6x64xf32>
    %774 = arith.addf %770, %773 : vector<6x64xf32>
    %cst_315 = arith.constant 0.000000e+00 : f32
    %775 = vector.broadcast %cst_315 : f32 to vector<6x64xf32>
    %776 = arith.maximumf %774, %775 : vector<6x64xf32>
    %c1_316 = arith.constant 1 : index
    %c0_317 = arith.constant 0 : index
    %c0_318 = arith.constant 0 : index
    %777 = vector.load %arg27[%c1_316, %c0_317, %c0_318] : memref<2x64x32xf32, #tpu.memory_space<vmem>>, vector<1x64x32xf32>
    %778 = vector.shape_cast %777 : vector<1x64x32xf32> to vector<64x32xf32>
    %cst_319 = arith.constant dense<0.000000e+00> : vector<6x32xf32>
    %779 = tpu.matmul %776, %778, %cst_319 {dimension_numbers = #tpu.dot_dimension_numbers<[1], [0], [0], [1], [0, 0, 1, 1], [], []>} : vector<6x64xf32>, vector<64x32xf32>, vector<6x32xf32> -> vector<6x32xf32>
    %c1_320 = arith.constant 1 : index
    %c0_321 = arith.constant 0 : index
    %c0_322 = arith.constant 0 : index
    %780 = vector.load %arg28[%c1_320, %c0_321, %c0_322] : memref<2x1x32xf32, #tpu.memory_space<vmem>>, vector<1x1x32xf32>
    %781 = vector.shape_cast %780 : vector<1x1x32xf32> to vector<1x32xf32>
    %782 = vector.broadcast %781 : vector<1x32xf32> to vector<6x32xf32>
    %783 = arith.addf %779, %782 : vector<6x32xf32>
    %784 = arith.addf %767, %783 : vector<6x32xf32>
    %c1_323 = arith.constant 1 : index
    %c0_324 = arith.constant 0 : index
    %c0_325 = arith.constant 0 : index
    %785 = vector.load %arg29[%c1_323, %c0_324, %c0_325] : memref<2x1x32xf32, #tpu.memory_space<vmem>>, vector<1x1x32xf32>
    %786 = vector.shape_cast %785 : vector<1x1x32xf32> to vector<1x32xf32>
    %c1_326 = arith.constant 1 : index
    %c0_327 = arith.constant 0 : index
    %c0_328 = arith.constant 0 : index
    %787 = vector.load %arg30[%c1_326, %c0_327, %c0_328] : memref<2x1x32xf32, #tpu.memory_space<vmem>>, vector<1x1x32xf32>
    %788 = vector.shape_cast %787 : vector<1x1x32xf32> to vector<1x32xf32>
    %cst_329 = arith.constant dense<0.000000e+00> : vector<6xf32>
    %789 = vector.multi_reduction <add>, %784, %cst_329 [1] : vector<6x32xf32> to vector<6xf32>
    %790 = vector.shape_cast %789 : vector<6xf32> to vector<6x1xf32>
    %cst_330 = arith.constant 3.200000e+01 : f32
    %791 = vector.broadcast %cst_330 : f32 to vector<6x1xf32>
    %792 = arith.divf %790, %791 : vector<6x1xf32>
    %793 = vector.broadcast %792 : vector<6x1xf32> to vector<6x32xf32>
    %794 = arith.subf %784, %793 : vector<6x32xf32>
    %795 = arith.mulf %794, %794 : vector<6x32xf32>
    %cst_331 = arith.constant dense<0.000000e+00> : vector<6xf32>
    %796 = vector.multi_reduction <add>, %795, %cst_331 [1] : vector<6x32xf32> to vector<6xf32>
    %797 = vector.shape_cast %796 : vector<6xf32> to vector<6x1xf32>
    %cst_332 = arith.constant 3.200000e+01 : f32
    %798 = vector.broadcast %cst_332 : f32 to vector<6x1xf32>
    %799 = arith.divf %797, %798 : vector<6x1xf32>
    %800 = vector.broadcast %792 : vector<6x1xf32> to vector<6x32xf32>
    %801 = arith.subf %784, %800 : vector<6x32xf32>
    %cst_333 = arith.constant 9.99999974E-6 : f32
    %802 = vector.broadcast %cst_333 : f32 to vector<6x1xf32>
    %803 = arith.addf %799, %802 : vector<6x1xf32>
    %804 = math.rsqrt %803 : vector<6x1xf32>
    %805 = vector.broadcast %804 : vector<6x1xf32> to vector<6x32xf32>
    %806 = arith.mulf %801, %805 : vector<6x32xf32>
    %807 = vector.broadcast %786 : vector<1x32xf32> to vector<6x32xf32>
    %808 = arith.mulf %806, %807 : vector<6x32xf32>
    %809 = vector.broadcast %788 : vector<1x32xf32> to vector<6x32xf32>
    %810 = arith.addf %808, %809 : vector<6x32xf32>
    %811 = vector.shape_cast %810 : vector<6x32xf32> to vector<2x3x32xf32>
    %cst_334 = arith.constant 1.000000e+00 : f32
    %812 = vector.broadcast %cst_334 : f32 to vector<2x3xf32>
    %813 = arith.subf %812, %417 : vector<2x3xf32>
    %cst_335 = arith.constant dense<0.000000e+00> : vector<2xf32>
    %814 = vector.multi_reduction <add>, %813, %cst_335 [1] : vector<2x3xf32> to vector<2xf32>
    %815 = vector.shape_cast %814 : vector<2xf32> to vector<2x1xf32>
    %cst_336 = arith.constant 9.99999996E-13 : f32
    %816 = vector.broadcast %cst_336 : f32 to vector<2x1xf32>
    %817 = arith.addf %815, %816 : vector<2x1xf32>
    %818 = vector.broadcast %817 : vector<2x1xf32> to vector<2x3xf32>
    %819 = arith.divf %813, %818 : vector<2x3xf32>
    %820 = vector.shape_cast %819 : vector<2x3xf32> to vector<2x3x1xf32>
    %821 = vector.broadcast %820 : vector<2x3x1xf32> to vector<2x3x32xf32>
    %822 = arith.mulf %811, %821 : vector<2x3x32xf32>
    %cst_337 = arith.constant dense<0.000000e+00> : vector<2x32xf32>
    %823 = vector.multi_reduction <add>, %822, %cst_337 [1] : vector<2x3x32xf32> to vector<2x32xf32>
    %c0_338 = arith.constant 0 : index
    %c0_339 = arith.constant 0 : index
    %824 = vector.load %arg31[%c0_338, %c0_339] : memref<32x16xf32, #tpu.memory_space<vmem>>, vector<32x16xf32>
    %cst_340 = arith.constant dense<0.000000e+00> : vector<2x16xf32>
    %825 = tpu.matmul %823, %824, %cst_340 {dimension_numbers = #tpu.dot_dimension_numbers<[1], [0], [0], [1], [0, 0, 1, 1], [], []>} : vector<2x32xf32>, vector<32x16xf32>, vector<2x16xf32> -> vector<2x16xf32>
    %c0_341 = arith.constant 0 : index
    %c0_342 = arith.constant 0 : index
    %826 = vector.load %arg32[%c0_341, %c0_342] : memref<1x16xf32, #tpu.memory_space<vmem>>, vector<1x16xf32>
    %827 = vector.broadcast %826 : vector<1x16xf32> to vector<2x16xf32>
    %828 = arith.addf %825, %827 : vector<2x16xf32>
    %829 = math.tanh %828 : vector<2x16xf32>
    %c0_343 = arith.constant 0 : index
    %c0_344 = arith.constant 0 : index
    %830 = vector.load %arg33[%c0_343, %c0_344] : memref<2x16xf32, #tpu.memory_space<vmem>>, vector<2x16xf32>
    tpu.vector_store %arg33[%c0_343, %c0_344], %829 {strides = array<i32>} : memref<2x16xf32, #tpu.memory_space<vmem>>, vector<2x16xf32>,
    return
  }
  func.func @transform_0(%arg0: i32) -> (i32, i32) {
    %c0_i32 = arith.constant 0 : i32
    %c0_i32_0 = arith.constant 0 : i32
    %c0_i32_1 = arith.constant 0 : i32
    return %c0_i32, %c0_i32_0 : i32, i32
  }
  func.func @transform_1(%arg0: i32) -> (i32, i32) {
    %c0_i32 = arith.constant 0 : i32
    %c0_i32_0 = arith.constant 0 : i32
    %c0_i32_1 = arith.constant 0 : i32
    return %c0_i32, %c0_i32_0 : i32, i32
  }
  func.func @transform_2(%arg0: i32) -> (i32, i32) {
    %c0_i32 = arith.constant 0 : i32
    %c0_i32_0 = arith.constant 0 : i32
    %c0_i32_1 = arith.constant 0 : i32
    return %c0_i32, %c0_i32_0 : i32, i32
  }
  func.func @transform_3(%arg0: i32) -> (i32, i32) {
    %c0_i32 = arith.constant 0 : i32
    %c0_i32_0 = arith.constant 0 : i32
    %c0_i32_1 = arith.constant 0 : i32
    return %c0_i32, %c0_i32_0 : i32, i32
  }
  func.func @transform_4(%arg0: i32) -> (i32, i32) {
    %c0_i32 = arith.constant 0 : i32
    %c0_i32_0 = arith.constant 0 : i32
    %c0_i32_1 = arith.constant 0 : i32
    return %c0_i32, %c0_i32_0 : i32, i32
  }
  func.func @transform_5(%arg0: i32) -> (i32, i32) {
    %c0_i32 = arith.constant 0 : i32
    %c0_i32_0 = arith.constant 0 : i32
    %c0_i32_1 = arith.constant 0 : i32
    return %c0_i32, %c0_i32_0 : i32, i32
  }
  func.func @transform_6(%arg0: i32) -> (i32, i32, i32) {
    %c0_i32 = arith.constant 0 : i32
    %c0_i32_0 = arith.constant 0 : i32
    %c0_i32_1 = arith.constant 0 : i32
    %c0_i32_2 = arith.constant 0 : i32
    return %c0_i32, %c0_i32_0, %c0_i32_1 : i32, i32, i32
  }
  func.func @transform_7(%arg0: i32) -> (i32, i32, i32) {
    %c0_i32 = arith.constant 0 : i32
    %c0_i32_0 = arith.constant 0 : i32
    %c0_i32_1 = arith.constant 0 : i32
    %c0_i32_2 = arith.constant 0 : i32
    return %c0_i32, %c0_i32_0, %c0_i32_1 : i32, i32, i32
  }
  func.func @transform_8(%arg0: i32) -> (i32, i32, i32) {
    %c0_i32 = arith.constant 0 : i32
    %c0_i32_0 = arith.constant 0 : i32
    %c0_i32_1 = arith.constant 0 : i32
    %c0_i32_2 = arith.constant 0 : i32
    return %c0_i32, %c0_i32_0, %c0_i32_1 : i32, i32, i32
  }
  func.func @transform_9(%arg0: i32) -> (i32, i32, i32) {
    %c0_i32 = arith.constant 0 : i32
    %c0_i32_0 = arith.constant 0 : i32
    %c0_i32_1 = arith.constant 0 : i32
    %c0_i32_2 = arith.constant 0 : i32
    return %c0_i32, %c0_i32_0, %c0_i32_1 : i32, i32, i32
  }
  func.func @transform_10(%arg0: i32) -> (i32, i32, i32) {
    %c0_i32 = arith.constant 0 : i32
    %c0_i32_0 = arith.constant 0 : i32
    %c0_i32_1 = arith.constant 0 : i32
    %c0_i32_2 = arith.constant 0 : i32
    return %c0_i32, %c0_i32_0, %c0_i32_1 : i32, i32, i32
  }
  func.func @transform_11(%arg0: i32) -> (i32, i32, i32) {
    %c0_i32 = arith.constant 0 : i32
    %c0_i32_0 = arith.constant 0 : i32
    %c0_i32_1 = arith.constant 0 : i32
    %c0_i32_2 = arith.constant 0 : i32
    return %c0_i32, %c0_i32_0, %c0_i32_1 : i32, i32, i32
  }
  func.func @transform_12(%arg0: i32) -> (i32, i32, i32) {
    %c0_i32 = arith.constant 0 : i32
    %c0_i32_0 = arith.constant 0 : i32
    %c0_i32_1 = arith.constant 0 : i32
    %c0_i32_2 = arith.constant 0 : i32
    return %c0_i32, %c0_i32_0, %c0_i32_1 : i32, i32, i32
  }
  func.func @transform_13(%arg0: i32) -> (i32, i32, i32) {
    %c0_i32 = arith.constant 0 : i32
    %c0_i32_0 = arith.constant 0 : i32
    %c0_i32_1 = arith.constant 0 : i32
    %c0_i32_2 = arith.constant 0 : i32
    return %c0_i32, %c0_i32_0, %c0_i32_1 : i32, i32, i32
  }
  func.func @transform_14(%arg0: i32) -> (i32, i32, i32) {
    %c0_i32 = arith.constant 0 : i32
    %c0_i32_0 = arith.constant 0 : i32
    %c0_i32_1 = arith.constant 0 : i32
    %c0_i32_2 = arith.constant 0 : i32
    return %c0_i32, %c0_i32_0, %c0_i32_1 : i32, i32, i32
  }
  func.func @transform_15(%arg0: i32) -> (i32, i32, i32) {
    %c0_i32 = arith.constant 0 : i32
    %c0_i32_0 = arith.constant 0 : i32
    %c0_i32_1 = arith.constant 0 : i32
    %c0_i32_2 = arith.constant 0 : i32
    return %c0_i32, %c0_i32_0, %c0_i32_1 : i32, i32, i32
  }
  func.func @transform_16(%arg0: i32) -> (i32, i32, i32) {
    %c0_i32 = arith.constant 0 : i32
    %c0_i32_0 = arith.constant 0 : i32
    %c0_i32_1 = arith.constant 0 : i32
    %c0_i32_2 = arith.constant 0 : i32
    return %c0_i32, %c0_i32_0, %c0_i32_1 : i32, i32, i32
  }
  func.func @transform_17(%arg0: i32) -> (i32, i32, i32) {
    %c0_i32 = arith.constant 0 : i32
    %c0_i32_0 = arith.constant 0 : i32
    %c0_i32_1 = arith.constant 0 : i32
    %c0_i32_2 = arith.constant 0 : i32
    return %c0_i32, %c0_i32_0, %c0_i32_1 : i32, i32, i32
  }
  func.func @transform_18(%arg0: i32) -> (i32, i32, i32) {
    %c0_i32 = arith.constant 0 : i32
    %c0_i32_0 = arith.constant 0 : i32
    %c0_i32_1 = arith.constant 0 : i32
    %c0_i32_2 = arith.constant 0 : i32
    return %c0_i32, %c0_i32_0, %c0_i32_1 : i32, i32, i32
  }
  func.func @transform_19(%arg0: i32) -> (i32, i32, i32) {
    %c0_i32 = arith.constant 0 : i32
    %c0_i32_0 = arith.constant 0 : i32
    %c0_i32_1 = arith.constant 0 : i32
    %c0_i32_2 = arith.constant 0 : i32
    return %c0_i32, %c0_i32_0, %c0_i32_1 : i32, i32, i32
  }
  func.func @transform_20(%arg0: i32) -> (i32, i32, i32) {
    %c0_i32 = arith.constant 0 : i32
    %c0_i32_0 = arith.constant 0 : i32
    %c0_i32_1 = arith.constant 0 : i32
    %c0_i32_2 = arith.constant 0 : i32
    return %c0_i32, %c0_i32_0, %c0_i32_1 : i32, i32, i32
  }
  func.func @transform_21(%arg0: i32) -> (i32, i32, i32) {
    %c0_i32 = arith.constant 0 : i32
    %c0_i32_0 = arith.constant 0 : i32
    %c0_i32_1 = arith.constant 0 : i32
    %c0_i32_2 = arith.constant 0 : i32
    return %c0_i32, %c0_i32_0, %c0_i32_1 : i32, i32, i32
  }
  func.func @transform_22(%arg0: i32) -> (i32, i32, i32) {
    %c0_i32 = arith.constant 0 : i32
    %c0_i32_0 = arith.constant 0 : i32
    %c0_i32_1 = arith.constant 0 : i32
    %c0_i32_2 = arith.constant 0 : i32
    return %c0_i32, %c0_i32_0, %c0_i32_1 : i32, i32, i32
  }
  func.func @transform_23(%arg0: i32) -> (i32, i32, i32) {
    %c0_i32 = arith.constant 0 : i32
    %c0_i32_0 = arith.constant 0 : i32
    %c0_i32_1 = arith.constant 0 : i32
    %c0_i32_2 = arith.constant 0 : i32
    return %c0_i32, %c0_i32_0, %c0_i32_1 : i32, i32, i32
  }
  func.func @transform_24(%arg0: i32) -> (i32, i32, i32) {
    %c0_i32 = arith.constant 0 : i32
    %c0_i32_0 = arith.constant 0 : i32
    %c0_i32_1 = arith.constant 0 : i32
    %c0_i32_2 = arith.constant 0 : i32
    return %c0_i32, %c0_i32_0, %c0_i32_1 : i32, i32, i32
  }
  func.func @transform_25(%arg0: i32) -> (i32, i32, i32) {
    %c0_i32 = arith.constant 0 : i32
    %c0_i32_0 = arith.constant 0 : i32
    %c0_i32_1 = arith.constant 0 : i32
    %c0_i32_2 = arith.constant 0 : i32
    return %c0_i32, %c0_i32_0, %c0_i32_1 : i32, i32, i32
  }
  func.func @transform_26(%arg0: i32) -> (i32, i32, i32) {
    %c0_i32 = arith.constant 0 : i32
    %c0_i32_0 = arith.constant 0 : i32
    %c0_i32_1 = arith.constant 0 : i32
    %c0_i32_2 = arith.constant 0 : i32
    return %c0_i32, %c0_i32_0, %c0_i32_1 : i32, i32, i32
  }
  func.func @transform_27(%arg0: i32) -> (i32, i32, i32) {
    %c0_i32 = arith.constant 0 : i32
    %c0_i32_0 = arith.constant 0 : i32
    %c0_i32_1 = arith.constant 0 : i32
    %c0_i32_2 = arith.constant 0 : i32
    return %c0_i32, %c0_i32_0, %c0_i32_1 : i32, i32, i32
  }
  func.func @transform_28(%arg0: i32) -> (i32, i32, i32) {
    %c0_i32 = arith.constant 0 : i32
    %c0_i32_0 = arith.constant 0 : i32
    %c0_i32_1 = arith.constant 0 : i32
    %c0_i32_2 = arith.constant 0 : i32
    return %c0_i32, %c0_i32_0, %c0_i32_1 : i32, i32, i32
  }
  func.func @transform_29(%arg0: i32) -> (i32, i32, i32) {
    %c0_i32 = arith.constant 0 : i32
    %c0_i32_0 = arith.constant 0 : i32
    %c0_i32_1 = arith.constant 0 : i32
    %c0_i32_2 = arith.constant 0 : i32
    return %c0_i32, %c0_i32_0, %c0_i32_1 : i32, i32, i32
  }
  func.func @transform_30(%arg0: i32) -> (i32, i32) {
    %c0_i32 = arith.constant 0 : i32
    %c0_i32_0 = arith.constant 0 : i32
    %c0_i32_1 = arith.constant 0 : i32
    return %c0_i32, %c0_i32_0 : i32, i32
  }
  func.func @transform_31(%arg0: i32) -> (i32, i32) {
    %c0_i32 = arith.constant 0 : i32
    %c0_i32_0 = arith.constant 0 : i32
    %c0_i32_1 = arith.constant 0 : i32
    return %c0_i32, %c0_i32_0 : i32, i32
  }
  func.func @transform_32(%arg0: i32) -> (i32, i32) {
    %c0_i32 = arith.constant 0 : i32
    %c0_i32_0 = arith.constant 0 : i32
    %c0_i32_1 = arith.constant 0 : i32
    return %c0_i32, %c0_i32_0 : i32, i32
  }
}

</mosaic_0001>

<bundles_post_ra>
// kernel: joint_embedding.3
= control target key start
LH: loop header
LB: loop body
LE: loop exit
PB: predicated region body
PF: predicated region fallthrough
CT: control target
= control target key end

     0   :  { %vm276_vm0 = vcmask 1043456   ;;  %vm83_vm1 = vcmask 31744   ;;  %s1693_s0 = inlined_call_operand.vmem [shape: f32[512,4], index: 0, kind: input, shape index: {}]   ;;  %s1694_s1 = inlined_call_operand.vmem [shape: f32[4,64], index: 1, kind: input, shape index: {}]   ;;  %s1695_s2 = inlined_call_operand.vmem [shape: f32[64,16], index: 2, kind: input, shape index: {}]   ;;  %s1696_s3 = inlined_call_operand.vmem [shape: f32[1,16], index: 3, kind: input, shape index: {}]   ;;  %s1697_s4 = inlined_call_operand.hbm [shape: f32[2,16], index: 4, kind: output, shape index: {}]  }
   0x1   :  { %v82_v0 = vld [vmem:[%s1694_s1] sm:$0xf]  ;;  %v19_v2 = vld [vmem:[%s1693_s0 + $0x8] sm:$0xff]  ;;  %v20_v3 = vld [vmem:[%s1693_s0 + $0x10] sm:$0xff] }
   0x2   :  { %v18_v1 = vld [vmem:[%s1693_s0] sm:$0xff]  ;;  %1056 = vmatprep.subr.msk.mxu0 %vm276_vm0, %v82_v0  ;;  %1185 = vmatprep.subr.msk.mxu1 %vm276_vm0, %v82_v0  ;;  %v21_v4 = vld [vmem:[%s1693_s0 + $0x18] sm:$0xff]  ;;  %v23_v6 = vld [vmem:[%s1693_s0 + $0x28] sm:$0xff] }
   0x3   :  { %1058 = vmatprep.mubr.msk.f32.mxu0 %vm83_vm1, %v18_v1  ;;  %1057 = vmatpush3.msk.msra.mxu0 %vm276_vm0, %v82_v0  ;;  %v22_v5 = vld [vmem:[%s1693_s0 + $0x20] sm:$0xff]  ;;  %v24_v7 = vld [vmem:[%s1693_s0 + $0x30] sm:$0xff]  ;;  %v25_v9 = vld [vmem:[%s1693_s0 + $0x38] sm:$0xff] }
   0x4   :  { %1059 = vmatmul.mubr.msk.f32.vlgmr.msra.gmra.mrb[0].mxu0 %vm83_vm1, %v19_v2  ;;  %1186 = vmatpush3.msk.msra.mxu1 %vm276_vm0, %v82_v0  ;;  %v52_v8 = vld [vmem:[%s1693_s0 + $0x110] sm:$0xff]  ;;  %v53_v10 = vld [vmem:[%s1693_s0 + $0x118] sm:$0xff]  ;;  %v54_v11 = vld [vmem:[%s1693_s0 + $0x120] sm:$0xff] }
   0x5   :  { %1061 = vmatprep.mubr.msk.f32.mxu0 %vm83_vm1, %v20_v3  ;;  %1109 = vmatprep.mubr.msk.f32.mxu1 %vm83_vm1, %v52_v8  ;;  %v26_v12 = vld [vmem:[%s1693_s0 + $0x40] sm:$0xff]  ;;  %v55_v13 = vld [vmem:[%s1693_s0 + $0x128] sm:$0xff]  ;;  %v56_v14 = vld [vmem:[%s1693_s0 + $0x130] sm:$0xff] }
   0x6   :  { %1110 = vmatmul.mubr.msk.f32.vlgmr.msra.gmra.mrb[0].mxu1 %vm83_vm1, %v53_v10  ;;  %v27_v15 = vld [vmem:[%s1693_s0 + $0x48] sm:$0xff]  ;;  %v28_v16 = vld [vmem:[%s1693_s0 + $0x50] sm:$0xff]  ;;  %v57_v17 = vld [vmem:[%s1693_s0 + $0x138] sm:$0xff] }
   0x7   :  { %1112 = vmatprep.mubr.msk.f32.mxu1 %vm83_vm1, %v54_v11  ;;  %v58_v18 = vld [vmem:[%s1693_s0 + $0x140] sm:$0xff]  ;;  %v29_v19 = vld [vmem:[%s1693_s0 + $0x58] sm:$0xff] }
   0x8   :  { %1062 = vmatmul.mubr.msk.f32.gmra.mrb[2].mxu0 %vm83_vm1, %v21_v4  ;;  %v30_v20 = vld [vmem:[%s1693_s0 + $0x60] sm:$0xff] }
   0x9   :  { %1064 = vmatprep.mubr.msk.f32.mxu0 %vm83_vm1, %v22_v5 }
   0xa   :  { %1113 = vmatmul.mubr.msk.f32.gmra.mrb[2].mxu1 %vm83_vm1, %v55_v13 }
   0xb   :  { %1115 = vmatprep.mubr.msk.f32.mxu1 %vm83_vm1, %v56_v14 }
   0xc   :  { %1065 = vmatmul.mubr.msk.f32.gmra.mrb[4].mxu0 %vm83_vm1, %v23_v6 }
   0xd   :  { %1067 = vmatprep.mubr.msk.f32.mxu0 %vm83_vm1, %v24_v7 }
   0xe   :  { %1116 = vmatmul.mubr.msk.f32.gmra.mrb[4].mxu1 %vm83_vm1, %v57_v17 }
  0x10   :  { %1068 = vmatmul.mubr.msk.f32.gmra.mrb[6].mxu0 %vm83_vm1, %v25_v9 }
  0x11   :  { %1070 = vmatprep.mubr.msk.f32.mxu0 %vm83_vm1, %v26_v12 }
  0x14   :  { %1071 = vmatmul.mubr.msk.f32.gmra.mrb[8].mxu0 %vm83_vm1, %v27_v15 }
  0x15   :  { %1073 = vmatprep.mubr.msk.f32.mxu0 %vm83_vm1, %v28_v16 }
  0x16   :  { %9 = vsyncpa [#allocation3], 0  ;;  %1118 = vmatprep.mubr.msk.f32.mxu1 %vm83_vm1, %v58_v18  ;;  %v59_v21 = vld [vmem:[%s1693_s0 + $0x148] sm:$0xff]  ;;  %v60_v22 = vld [vmem:[%s1693_s0 + $0x150] sm:$0xff]  ;;  %v1217_v3 = vmov 0.0|0.0   ;;  %vm665_vm2 = vcmask 523264  }
  0x17   :  { %v31_v23 = vld [vmem:[%s1693_s0 + $0x68] sm:$0xff]  ;;  %v32_v24 = vld [vmem:[%s1693_s0 + $0x70] sm:$0xff]  ;;  %1119 = vmatmul.mubr.msk.f32.gmra.mrb[6].mxu1 %vm83_vm1, %v59_v21  ;;  %v61_v25 = vld [vmem:[%s1693_s0 + $0x158] sm:$0xff]  ;;  %1173 = vmatprep.subr.bf16.mxu1 %v1217_v3  ;;  %vm1218_vm3 = vmmov 0   ;;  %vm824_vm4 = vcmask 1041409   ;;  %s1220_s25 = smov [#allocation2]  }
  0x18   :  { %1074 = vmatmul.mubr.msk.f32.gmra.mrb[10].mxu0 %vm83_vm1, %v29_v19  ;;  %1121 = vmatprep.mubr.msk.f32.mxu1 %vm83_vm1, %v60_v22  ;;  %v62_v26 = vld [vmem:[%s1693_s0 + $0x160] sm:$0xff]  ;;  %v33_v27 = vld [vmem:[%s1693_s0 + $0x78] sm:$0xff]  ;;  %v63_v29 = vld [vmem:[%s1693_s0 + $0x168] sm:$0xff]  ;;  %s907_s26 = sshll.u32 %s1220_s25, 4  ;;  %vm899_vm5 = vcmask 123904   ;;  %s908_s26 = int_to_ptr.vmem [resolvable:$true] %s907_s26 }
  0x19   :  { %1076 = vmatprep.mubr.msk.f32.mxu0 %vm83_vm1, %v30_v20  ;;  %v34_v28 = vld [vmem:[%s1693_s0 + $0x80] sm:$0xff]  ;;  %v64_v30 = vld [vmem:[%s1693_s0 + $0x170] sm:$0xff]  ;;  %v35_v31 = vld [vmem:[%s1693_s0 + $0x88] sm:$0xff]  ;;  %s1193_s27 = scalar_lea.vmem %s908_s26, 32  ;;  %p1198_p1 = scmp.lt.s32.totalorder %s908_s26, %s908_s26 }
  0x1a   :  { %v36_v32 = vld [vmem:[%s1693_s0 + $0x90] sm:$0xff]  ;;  %v65_v33 = vld [vmem:[%s1693_s0 + $0x178] sm:$0xff]  ;;  %v66_v34 = vld [vmem:[%s1693_s0 + $0x180] sm:$0xff]  ;;  %p1194_p0 = scmp.ne.s32.totalorder %s908_s26, %s1193_s27  ;;  %p1199_p2 = scmp.lt.s32.totalorder %s1193_s27, %s1193_s27 }
  0x1b   :  { %1122 = vmatmul.mubr.msk.f32.gmra.mrb[8].mxu1 %vm83_vm1, %v61_v25  ;;  %v37_v35 = vld [vmem:[%s1693_s0 + $0x98] sm:$0xff]  ;;  %v38_v36 = vld [vmem:[%s1693_s0 + $0xa0] sm:$0xff]  ;;  %v67_v37 = vld [vmem:[%s1693_s0 + $0x188] sm:$0xff] }
  0x1c   :  { %1077 = vmatmul.mubr.msk.f32.gmra.mrb[12].mxu0 %vm83_vm1, %v31_v23  ;;  %1124 = vmatprep.mubr.msk.f32.mxu1 %vm83_vm1, %v62_v26  ;;  %v68_v38 = vld [vmem:[%s1693_s0 + $0x190] sm:$0xff]  ;;  %v39_v39 = vld [vmem:[%s1693_s0 + $0xa8] sm:$0xff]  ;;  %v69_v41 = vld [vmem:[%s1693_s0 + $0x198] sm:$0xff]  ;;  %p1200_p3 = por %p1199_p2, %p1198_p1 }
  0x1d   :  { %1079 = vmatprep.mubr.msk.f32.mxu0 %vm83_vm1, %v32_v24  ;;  %v40_v40 = vld [vmem:[%s1693_s0 + $0xb0] sm:$0xff]  ;;  %v70_v42 = vld [vmem:[%s1693_s0 + $0x1a0] sm:$0xff]  ;;  %v41_v43 = vld [vmem:[%s1693_s0 + $0xb8] sm:$0xff] }
  0x1e   :  { %v42_v44 = vld [vmem:[%s1693_s0 + $0xc0] sm:$0xff]  ;;  %v71_v45 = vld [vmem:[%s1693_s0 + $0x1a8] sm:$0xff]  ;;  %v72_v46 = vld [vmem:[%s1693_s0 + $0x1b0] sm:$0xff]  ;;  %p1201_p4 = pnand %p1200_p3, %p1194_p0 }
  0x1f   :  { %1125 = vmatmul.mubr.msk.f32.gmra.mrb[10].mxu1 %vm83_vm1, %v63_v29  ;;  %v43_v47 = vld [vmem:[%s1693_s0 + $0xc8] sm:$0xff]  ;;  %v44_v48 = vld [vmem:[%s1693_s0 + $0xd0] sm:$0xff]  ;;  %v73_v49 = vld [vmem:[%s1693_s0 + $0x1b8] sm:$0xff] }
  0x20   :  { %1080 = vmatmul.mubr.msk.f32.gmra.mrb[14].mxu0 %vm83_vm1, %v33_v27  ;;  %1127 = vmatprep.mubr.msk.f32.mxu1 %vm83_vm1, %v64_v30  ;;  %v74_v50 = vld [vmem:[%s1693_s0 + $0x1c0] sm:$0xff]  ;;  %v45_v51 = vld [vmem:[%s1693_s0 + $0xd8] sm:$0xff]  ;;  %v75_v53 = vld [vmem:[%s1693_s0 + $0x1c8] sm:$0xff] }
  0x21   :  { %1082 = vmatprep.mubr.msk.f32.mxu0 %vm83_vm1, %v34_v28  ;;  %v46_v52 = vld [vmem:[%s1693_s0 + $0xe0] sm:$0xff]  ;;  %v76_v54 = vld [vmem:[%s1693_s0 + $0x1d0] sm:$0xff]  ;;  %v47_v55 = vld [vmem:[%s1693_s0 + $0xe8] sm:$0xff] }
  0x22   :  { %v48_v56 = vld [vmem:[%s1693_s0 + $0xf0] sm:$0xff]  ;;  %v77_v57 = vld [vmem:[%s1693_s0 + $0x1d8] sm:$0xff]  ;;  %v78_v58 = vld [vmem:[%s1693_s0 + $0x1e0] sm:$0xff] }
  0x23   :  { %1128 = vmatmul.mubr.msk.f32.gmra.mrb[12].mxu1 %vm83_vm1, %v65_v33  ;;  %v49_v59 = vld [vmem:[%s1693_s0 + $0xf8] sm:$0xff]  ;;  %v50_v60 = vld [vmem:[%s1693_s0 + $0x100] sm:$0xff]  ;;  %v79_v61 = vld [vmem:[%s1693_s0 + $0x1e8] sm:$0xff] }
  0x24   :  { %1083 = vmatmul.mubr.msk.f32.gmra.mrb[16].mxu0 %vm83_vm1, %v35_v31  ;;  %1130 = vmatprep.mubr.msk.f32.mxu1 %vm83_vm1, %v66_v34  ;;  %v80_v62 = vld [vmem:[%s1693_s0 + $0x1f0] sm:$0xff]  ;;  %v51_v63 = vld [vmem:[%s1693_s0 + $0x108] sm:$0xff]  ;;  %v81_v0 = vld [vmem:[%s1693_s0 + $0x1f8] sm:$0xff] }
  0x25   :  { %1085 = vmatprep.mubr.msk.f32.mxu0 %vm83_vm1, %v36_v32  ;;  %v807_v1 = vld [vmem:[%s1695_s2] sm:$0xff]  ;;  %v808_v2 = vld [vmem:[%s1695_s2 + $0x8] sm:$0xff]  ;;  %v809_v5 = vld [vmem:[%s1695_s2 + $0x10] sm:$0xff] }
  0x26   :  { %v1174_v4 = vpack.c.bf16 %v808_v2, %v807_v1  ;;  %v810_v6 = vld [vmem:[%s1695_s2 + $0x18] sm:$0xff]  ;;  %v811_v8 = vld [vmem:[%s1695_s2 + $0x20] sm:$0xff]  ;;  %v812_v9 = vld [vmem:[%s1695_s2 + $0x28] sm:$0xff] }
  0x27   :  { %1131 = vmatmul.mubr.msk.f32.gmra.mrb[14].mxu1 %vm83_vm1, %v67_v37  ;;  %v1177_v7 = vpack.c.bf16 %v810_v6, %v809_v5  ;;  %v1180_v10 = vpack.c.bf16 %v812_v9, %v811_v8  ;;  %v813_v26 = vld [vmem:[%s1695_s2 + $0x30] sm:$0xff]  ;;  %v814_v27 = vld [vmem:[%s1695_s2 + $0x38] sm:$0xff]  ;;  %v1219_v37 = vmov 0.0  }
  0x28   :  { %1086 = vmatmul.mubr.msk.f32.gmra.mrb[18].mxu0 %vm83_vm1, %v37_v35  ;;  %1133 = vmatprep.mubr.msk.f32.mxu1 %vm83_vm1, %v68_v38  ;;  %v1183_v30 = vpack.c.bf16 %v814_v27, %v813_v26 }
  0x29   :  { %1088 = vmatprep.mubr.msk.f32.mxu0 %vm83_vm1, %v38_v36  ;;  %1175 = vmatpush3.bf16.msra.mxu1 %v1174_v4 }
  0x2a   :  { %1176 = vmatprep.subr.bf16.mxu1 %v1217_v3 }
  0x2b   :  { %1134 = vmatmul.mubr.msk.f32.gmra.mrb[16].mxu1 %vm83_vm1, %v69_v41 }
  0x2c   :  { %1089 = vmatmul.mubr.msk.f32.gmra.mrb[20].mxu0 %vm83_vm1, %v39_v39  ;;  %1136 = vmatprep.mubr.msk.f32.mxu1 %vm83_vm1, %v70_v42 }
  0x2d   :  { %1091 = vmatprep.mubr.msk.f32.mxu0 %vm83_vm1, %v40_v40  ;;  %1178 = vmatpush3.bf16.msra.mxu1 %v1177_v7 }
  0x2e   :  { %1179 = vmatprep.subr.bf16.mxu1 %v1217_v3 }
  0x2f   :  { %1137 = vmatmul.mubr.msk.f32.gmra.mrb[18].mxu1 %vm83_vm1, %v71_v45 }
  0x30   :  { %1092 = vmatmul.mubr.msk.f32.gmra.mrb[22].mxu0 %vm83_vm1, %v41_v43  ;;  %1139 = vmatprep.mubr.msk.f32.mxu1 %vm83_vm1, %v72_v46 }
  0x31   :  { %1094 = vmatprep.mubr.msk.f32.mxu0 %vm83_vm1, %v42_v44  ;;  %1181 = vmatpush3.bf16.msra.mxu1 %v1180_v10 }
  0x32   :  { %1182 = vmatprep.subr.bf16.mxu1 %v1217_v3 }
  0x33   :  { %1140 = vmatmul.mubr.msk.f32.gmra.mrb[20].mxu1 %vm83_vm1, %v73_v49 }
  0x34   :  { %1095 = vmatmul.mubr.msk.f32.gmra.mrb[24].mxu0 %vm83_vm1, %v43_v47  ;;  %1142 = vmatprep.mubr.msk.f32.mxu1 %vm83_vm1, %v74_v50 }
  0x35   :  { %1097 = vmatprep.mubr.msk.f32.mxu0 %vm83_vm1, %v44_v48  ;;  %1184 = vmatpush3.bf16.msra.mxu1 %v1183_v30 }
  0x37   :  { %1143 = vmatmul.mubr.msk.f32.gmra.mrb[22].mxu1 %vm83_vm1, %v75_v53 }
  0x38   :  { %1098 = vmatmul.mubr.msk.f32.gmra.mrb[26].mxu0 %vm83_vm1, %v45_v51  ;;  %1145 = vmatprep.mubr.msk.f32.mxu1 %vm83_vm1, %v76_v54 }
  0x39   :  { %1100 = vmatprep.mubr.msk.f32.mxu0 %vm83_vm1, %v46_v52 }
  0x3b   :  { %1146 = vmatmul.mubr.msk.f32.gmra.mrb[24].mxu1 %vm83_vm1, %v77_v57 }
  0x3c   :  { %1101 = vmatmul.mubr.msk.f32.gmra.mrb[28].mxu0 %vm83_vm1, %v47_v55  ;;  %1148 = vmatprep.mubr.msk.f32.mxu1 %vm83_vm1, %v78_v58 }
  0x3d   :  { %1103 = vmatprep.mubr.msk.f32.mxu0 %vm83_vm1, %v48_v56 }
  0x3f   :  { %1149 = vmatmul.mubr.msk.f32.gmra.mrb[26].mxu1 %vm83_vm1, %v79_v61 }
  0x40   :  { %1104 = vmatmul.mubr.msk.f32.gmra.mrb[30].mxu0 %vm83_vm1, %v49_v59  ;;  %1151 = vmatprep.mubr.msk.f32.mxu1 %vm83_vm1, %v80_v62 }
  0x41   :  { %1106 = vmatprep.mubr.msk.f32.mxu0 %vm83_vm1, %v50_v60 }
  0x43   :  { %1152 = vmatmul.mubr.msk.f32.gmra.mrb[28].mxu1 %vm83_vm1, %v81_v0 }
  0x44   :  { %1107 = vmatmul.mubr.msk.f32.gmra.mrb[32].mxu0 %vm83_vm1, %v51_v63  ;;  %1170 = vmatprep.mubr.msk.f32.mxu1 %vm1218_vm3, %v1219_v37 }
  0xd7   :  { %v1060_v11 = vpop.f32.mrb[0].mxu0 }
  0xd8   :  { %v667_v12 = vsel %vm665_vm2, %v1060_v11, 0.0  ;;  %v346_v13 = vpop.f32.mrb[1].mxu0 }
  0xd9   :  { %v666_v14 = vsel %vm665_vm2, %v346_v13, 0.0  ;;  %v1528_v25 = vpop.f32.mrb[0].mxu1 }
  0xda   :  { %v668_v15 = vadd.f32 %v667_v12, %v666_v14  ;;  %v1536_v29 = vpop.f32.mrb[1].mxu1 }
  0xdb   :  { %v1063_v16 = vpop.f32.mrb[2].mxu0 }
  0xdc   :  { %v356_v17 = vpop.f32.mrb[3].mxu0  ;;  %v671_v20 = vsel %vm665_vm2, %v1063_v16, 0.0 }
  0xdd   :  { %v669_v18 = vsel %vm665_vm2, %v356_v17, 0.0  ;;  %v1540_v36 = vpop.f32.mrb[2].mxu1 }
  0xde   :  { %v670_v19 = vadd.f32 %v669_v18, %v668_v15  ;;  %v1542_v39 = vpop.f32.mrb[3].mxu1 }
  0xdf   :  { %v1066_v21 = vpop.f32.mrb[4].mxu0 }
  0xe0   :  { %v366_v22 = vpop.f32.mrb[5].mxu0  ;;  %v672_v23 = vadd.f32 %v671_v20, %v670_v19  ;;  %v675_v31 = vsel %vm665_vm2, %v1066_v21, 0.0 }
  0xe1   :  { %v673_v24 = vsel %vm665_vm2, %v366_v22, 0.0  ;;  %v1546_v45 = vpop.f32.mrb[4].mxu1 }
  0xe2   :  { %v674_v28 = vadd.f32 %v673_v24, %v672_v23  ;;  %v1548_v47 = vpop.f32.mrb[5].mxu1 }
  0xe3   :  { %v1069_v32 = vpop.f32.mrb[6].mxu0 }
  0xe4   :  { %v376_v33 = vpop.f32.mrb[7].mxu0  ;;  %v676_v34 = vadd.f32 %v675_v31, %v674_v28  ;;  %v679_v40 = vsel %vm665_vm2, %v1069_v32, 0.0 }
  0xe5   :  { %v677_v35 = vsel %vm665_vm2, %v376_v33, 0.0 }
  0xe6   :  { %v678_v38 = vadd.f32 %v677_v35, %v676_v34 }
  0xe7   :  { %v1072_v41 = vpop.f32.mrb[8].mxu0 }
  0xe8   :  { %v386_v42 = vpop.f32.mrb[9].mxu0  ;;  %v680_v43 = vadd.f32 %v679_v40, %v678_v38  ;;  %v683_v48 = vsel %vm665_vm2, %v1072_v41, 0.0 }
  0xe9   :  { %v681_v44 = vsel %vm665_vm2, %v386_v42, 0.0 }
  0xea   :  { %v682_v46 = vadd.f32 %v681_v44, %v680_v43  ;;  %v1552_v53 = vpop.f32.mrb[6].mxu1 }
  0xeb   :  { %v1075_v49 = vpop.f32.mrb[10].mxu0  ;;  %v1554_v55 = vpop.f32.mrb[7].mxu1 }
  0xec   :  { %v396_v50 = vpop.f32.mrb[11].mxu0  ;;  %v684_v51 = vadd.f32 %v683_v48, %v682_v46  ;;  %v687_v56 = vsel %vm665_vm2, %v1075_v49, 0.0 }
  0xed   :  { %v685_v52 = vsel %vm665_vm2, %v396_v50, 0.0 }
  0xee   :  { %v686_v54 = vadd.f32 %v685_v52, %v684_v51  ;;  %v1558_v61 = vpop.f32.mrb[8].mxu1 }
  0xef   :  { %v1078_v57 = vpop.f32.mrb[12].mxu0  ;;  %v1560_v63 = vpop.f32.mrb[9].mxu1 }
  0xf0   :  { %v406_v58 = vpop.f32.mrb[13].mxu0  ;;  %v688_v59 = vadd.f32 %v687_v56, %v686_v54  ;;  %v691_v0 = vsel %vm665_vm2, %v1078_v57, 0.0 }
  0xf1   :  { %v689_v60 = vsel %vm665_vm2, %v406_v58, 0.0 }
  0xf2   :  { %v690_v62 = vadd.f32 %v689_v60, %v688_v59  ;;  %v1564_v5 = vpop.f32.mrb[10].mxu1 }
  0xf3   :  { %v1081_v1 = vpop.f32.mrb[14].mxu0  ;;  %v1566_v7 = vpop.f32.mrb[11].mxu1 }
  0xf4   :  { %v416_v2 = vpop.f32.mrb[15].mxu0  ;;  %v692_v3 = vadd.f32 %v691_v0, %v690_v62  ;;  %v695_v8 = vsel %vm665_vm2, %v1081_v1, 0.0 }
  0xf5   :  { %v693_v4 = vsel %vm665_vm2, %v416_v2, 0.0 }
  0xf6   :  { %v694_v6 = vadd.f32 %v693_v4, %v692_v3  ;;  %v1570_v13 = vpop.f32.mrb[12].mxu1 }
  0xf7   :  { %v1084_v9 = vpop.f32.mrb[16].mxu0  ;;  %v1572_v15 = vpop.f32.mrb[13].mxu1 }
  0xf8   :  { %v426_v10 = vpop.f32.mrb[17].mxu0  ;;  %v696_v11 = vadd.f32 %v695_v8, %v694_v6  ;;  %v699_v16 = vsel %vm665_vm2, %v1084_v9, 0.0 }
  0xf9   :  { %v697_v12 = vsel %vm665_vm2, %v426_v10, 0.0 }
  0xfa   :  { %v698_v14 = vadd.f32 %v697_v12, %v696_v11  ;;  %v1576_v21 = vpop.f32.mrb[14].mxu1 }
  0xfb   :  { %v1087_v17 = vpop.f32.mrb[18].mxu0  ;;  %v1578_v23 = vpop.f32.mrb[15].mxu1 }
  0xfc   :  { %v436_v18 = vpop.f32.mrb[19].mxu0  ;;  %v700_v19 = vadd.f32 %v699_v16, %v698_v14  ;;  %v703_v24 = vsel %vm665_vm2, %v1087_v17, 0.0 }
  0xfd   :  { %v701_v20 = vsel %vm665_vm2, %v436_v18, 0.0 }
  0xfe   :  { %v702_v22 = vadd.f32 %v701_v20, %v700_v19  ;;  %v1582_v31 = vpop.f32.mrb[16].mxu1 }
  0xff   :  { %v1090_v26 = vpop.f32.mrb[20].mxu0  ;;  %v1584_v33 = vpop.f32.mrb[17].mxu1 }
 0x100   :  { %v446_v27 = vpop.f32.mrb[21].mxu0  ;;  %v704_v28 = vadd.f32 %v703_v24, %v702_v22  ;;  %v707_v34 = vsel %vm665_vm2, %v1090_v26, 0.0 }
 0x101   :  { %v705_v30 = vsel %vm665_vm2, %v446_v27, 0.0 }
 0x102   :  { %v706_v32 = vadd.f32 %v705_v30, %v704_v28  ;;  %v1588_v41 = vpop.f32.mrb[18].mxu1 }
 0x103   :  { %v1093_v35 = vpop.f32.mrb[22].mxu0  ;;  %v1590_v43 = vpop.f32.mrb[19].mxu1 }
 0x104   :  { %v456_v37 = vpop.f32.mrb[23].mxu0  ;;  %v708_v38 = vadd.f32 %v707_v34, %v706_v32  ;;  %v711_v44 = vsel %vm665_vm2, %v1093_v35, 0.0  ;;  %v738_v34 = vsel %vm665_vm2, %v1536_v29, 0.0 }
 0x105   :  { %v709_v40 = vsel %vm665_vm2, %v456_v37, 0.0 }
 0x106   :  { %v710_v42 = vadd.f32 %v709_v40, %v708_v38  ;;  %v1594_v51 = vpop.f32.mrb[20].mxu1 }
 0x107   :  { %v1096_v46 = vpop.f32.mrb[24].mxu0  ;;  %v1596_v54 = vpop.f32.mrb[21].mxu1 }
 0x108   :  { %v466_v48 = vpop.f32.mrb[25].mxu0  ;;  %v712_v49 = vadd.f32 %v711_v44, %v710_v42  ;;  %v715_v56 = vsel %vm665_vm2, %v1096_v46, 0.0  ;;  %v740_v42 = vsel %vm665_vm2, %v1528_v25, 0.0  ;;  %v742_v44 = vsel %vm665_vm2, %v1542_v39, 0.0 }
 0x109   :  { %v713_v50 = vsel %vm665_vm2, %v466_v48, 0.0  ;;  %v752_v39 = vsel %vm665_vm2, %v1552_v53, 0.0 }
 0x10a   :  { %v714_v52 = vadd.f32 %v713_v50, %v712_v49  ;;  %v1600_v62 = vpop.f32.mrb[22].mxu1  ;;  %v744_v49 = vsel %vm665_vm2, %v1540_v36, 0.0  ;;  %v746_v50 = vsel %vm665_vm2, %v1548_v47, 0.0  ;;  %v756_v47 = vsel %vm665_vm2, %v1558_v61, 0.0 }
 0x10b   :  { %v1099_v57 = vpop.f32.mrb[26].mxu0  ;;  %v1602_v1 = vpop.f32.mrb[23].mxu1 }
 0x10c   :  { %v476_v58 = vpop.f32.mrb[27].mxu0  ;;  %v716_v59 = vadd.f32 %v715_v56, %v714_v52  ;;  %v719_v2 = vsel %vm665_vm2, %v1099_v57, 0.0  ;;  %v748_v56 = vsel %vm665_vm2, %v1546_v45, 0.0  ;;  %v750_v57 = vsel %vm665_vm2, %v1554_v55, 0.0 }
 0x10d   :  { %v717_v60 = vsel %vm665_vm2, %v476_v58, 0.0  ;;  %v760_v55 = vsel %vm665_vm2, %v1564_v5, 0.0 }
 0x10e   :  { %v718_v0 = vadd.f32 %v717_v60, %v716_v59  ;;  %v1606_v9 = vpop.f32.mrb[24].mxu1  ;;  %v754_v59 = vsel %vm665_vm2, %v1560_v63, 0.0  ;;  %v764_v63 = vsel %vm665_vm2, %v1570_v13, 0.0 }
 0x10f   :  { %v1102_v3 = vpop.f32.mrb[28].mxu0  ;;  %v1608_v11 = vpop.f32.mrb[25].mxu1 }
 0x110   :  { %v486_v4 = vpop.f32.mrb[29].mxu0  ;;  %v720_v6 = vadd.f32 %v719_v2, %v718_v0  ;;  %v723_v12 = vsel %vm665_vm2, %v1102_v3, 0.0  ;;  %v758_v0 = vsel %vm665_vm2, %v1566_v7, 0.0  ;;  %v762_v3 = vsel %vm665_vm2, %v1572_v15, 0.0 }
 0x111   :  { %v721_v8 = vsel %vm665_vm2, %v486_v4, 0.0  ;;  %v768_v7 = vsel %vm665_vm2, %v1576_v21, 0.0  ;;  %v772_v15 = vsel %vm665_vm2, %v1582_v31, 0.0 }
 0x112   :  { %v722_v10 = vadd.f32 %v721_v8, %v720_v6  ;;  %v1612_v19 = vpop.f32.mrb[26].mxu1  ;;  %v766_v6 = vsel %vm665_vm2, %v1578_v23, 0.0  ;;  %v776_v23 = vsel %vm665_vm2, %v1588_v41, 0.0 }
 0x113   :  { %v1105_v14 = vpop.f32.mrb[30].mxu0  ;;  %v646_v22 = vpop.f32.mrb[27].mxu1 }
 0x114   :  { %v496_v16 = vpop.f32.mrb[31].mxu0  ;;  %v724_v17 = vadd.f32 %v723_v12, %v722_v10  ;;  %v727_v24 = vsel %vm665_vm2, %v1105_v14, 0.0  ;;  %v770_v10 = vsel %vm665_vm2, %v1584_v33, 0.0  ;;  %v774_v14 = vsel %vm665_vm2, %v1590_v43, 0.0 }
 0x115   :  { %v725_v18 = vsel %vm665_vm2, %v496_v16, 0.0  ;;  %v780_v33 = vsel %vm665_vm2, %v1594_v51, 0.0  ;;  %v784_v43 = vsel %vm665_vm2, %v1600_v62, 0.0 }
 0x116   :  { %v726_v20 = vadd.f32 %v725_v18, %v724_v17  ;;  %v1619_v35 = vpop.f32.mrb[28].mxu1  ;;  %v778_v17 = vsel %vm665_vm2, %v1596_v54, 0.0  ;;  %v788_v54 = vsel %vm665_vm2, %v1606_v9, 0.0 }
 0x117   :  { %v1108_v26 = vpop.f32.mrb[32].mxu0  ;;  %v656_v38 = vpop.f32.mrb[29].mxu1 }
 0x118   :  { %v728_v27 = vadd.f32 %v727_v24, %v726_v20  ;;  %v736_v28 = vsel %vm665_vm2, %v1108_v26, 0.0  ;;  %v506_v30 = vpop.f32.mrb[33].mxu0  ;;  %v782_v20 = vsel %vm665_vm2, %v1602_v1, 0.0  ;;  %v786_v26 = vsel %vm665_vm2, %v1608_v11, 0.0 }
 0x119   :  { %v735_v32 = vsel %vm665_vm2, %v506_v30, 0.0  ;;  %v792_v1 = vsel %vm665_vm2, %v1612_v19, 0.0  ;;  %v796_v11 = vsel %vm665_vm2, %v1619_v35, 0.0  ;;  %v980_v35 = vld [vmem:[%s1696_s3] ss:$0 sm:$0xff] }
 0x11a   :  { %v737_v37 = vadd.f32 %v736_v28, %v735_v32  ;;  %v729_v28 = vrot.slane %v728_v27, 4  ;;  %v790_v32 = vsel %vm665_vm2, %v646_v22, 0.0 }
 0x11c   :  { %v739_v40 = vadd.f32 %v738_v34, %v737_v37  ;;  %v730_v34 = vadd.f32 %v729_v28, %v728_v27 }
 0x11e   :  { %v741_v46 = vadd.f32 %v740_v42, %v739_v40  ;;  %v794_v40 = vsel %vm665_vm2, %v656_v38, 0.0  ;;  %v731_v42 = vrot.slane %v730_v34, 2 }
 0x120   :  { %v743_v48 = vadd.f32 %v742_v44, %v741_v46 }
 0x122   :  { %v745_v29 = vadd.f32 %v744_v49, %v743_v48  ;;  %v732_v48 = vadd.f32 %v731_v42, %v730_v34 }
 0x124   :  { %v747_v52 = vadd.f32 %v746_v50, %v745_v29  ;;  %v733_v50 = vrot.slane %v732_v48, 1 }
 0x126   :  { %v749_v25 = vadd.f32 %v748_v56, %v747_v52  ;;  %v734_v27 = vadd.f32 %v733_v50, %v732_v48 }
 0x128   :  { %v751_v58 = vadd.f32 %v750_v57, %v749_v25  ;;  %v805_v19 = vmul.f32 0.00390625, %v734_v27 }
 0x12a   :  { %v753_v36 = vadd.f32 %v752_v39, %v751_v58 }
 0x12c   :  { %v755_v60 = vadd.f32 %v754_v59, %v753_v36 }
 0x12e   :  { %v757_v45 = vadd.f32 %v756_v47, %v755_v60 }
 0x130   :  { %v759_v2 = vadd.f32 %v758_v0, %v757_v45 }
 0x132   :  { %v761_v53 = vadd.f32 %v760_v55, %v759_v2 }
 0x134   :  { %v763_v4 = vadd.f32 %v762_v3, %v761_v53 }
 0x136   :  { %v765_v61 = vadd.f32 %v764_v63, %v763_v4 }
 0x138   :  { %v767_v8 = vadd.f32 %v766_v6, %v765_v61 }
 0x13a   :  { %v769_v5 = vadd.f32 %v768_v7, %v767_v8 }
 0x13c   :  { %v771_v12 = vadd.f32 %v770_v10, %v769_v5 }
 0x13e   :  { %v773_v13 = vadd.f32 %v772_v15, %v771_v12 }
 0x140   :  { %v775_v16 = vadd.f32 %v774_v14, %v773_v13 }
 0x142   :  { %v777_v21 = vadd.f32 %v776_v23, %v775_v16 }
 0x144   :  { %v779_v18 = vadd.f32 %v778_v17, %v777_v21 }
 0x146   :  { %v781_v31 = vadd.f32 %v780_v33, %v779_v18 }
 0x148   :  { %v783_v24 = vadd.f32 %v782_v20, %v781_v31 }
 0x14a   :  { %v785_v41 = vadd.f32 %v784_v43, %v783_v24 }
 0x14c   :  { %v787_v30 = vadd.f32 %v786_v26, %v785_v41 }
 0x14e   :  { %v789_v51 = vadd.f32 %v788_v54, %v787_v30 }
 0x150   :  { %v791_v37 = vadd.f32 %v790_v32, %v789_v51 }
 0x152   :  { %v793_v62 = vadd.f32 %v792_v1, %v791_v37 }
 0x154   :  { %v795_v44 = vadd.f32 %v794_v40, %v793_v62 }
 0x156   :  { %v797_v46 = vadd.f32 %v796_v11, %v795_v44 }
 0x158   :  { %v798_v49 = vrot.slane %v797_v46, 4 }
 0x15a   :  { %v799_v9 = vadd.f32 %v798_v49, %v797_v46 }
 0x15c   :  { %v800_v22 = vrot.slane %v799_v9, 2 }
 0x15e   :  { %v801_v29 = vadd.f32 %v800_v22, %v799_v9 }
 0x160   :  { %v802_v52 = vrot.slane %v801_v29, 1 }
 0x162   :  { %v803_v56 = vadd.f32 %v802_v52, %v801_v29 }
 0x164   :  { %v806_v57 = vmul.f32 0.00390625, %v803_v56 }
 0x166   :  { %v825_v38 = vsel %vm824_vm4, %v806_v57, %v805_v19 }
 0x167   :  { %1171 = vmatmul.mubr.msk.f32.vlgmr.msra.gmra.mrb[30].mxu1 %vm665_vm2, %v825_v38 }
 0x23a   :  { %v894_v25 = vpop.f32.mrb[30].mxu1 }
 0x23b   :  { %v895_v58 = vadd.f32 %v980_v35, %v894_v25  ;;  %v1172_v39 = vpop.f32.mrb[31].mxu1 }
 0x23d   :  { %1191 = vtanh.f32 %v895_v58 }
 0x247   :  { %v1192_v59 = vpop.eup %1191 }
 0x248   :  { %900 = vst.msk [vmem:[#allocation2] sm:$0x3] %vm899_vm5, %v1192_v59 }
 0x249   :  { %1204 = shalt.err (!%p1201_p4)
}
 0x24a   :  { %s1205_s3 = scalar_lea.hbm %s1697_s4, 32 }
 0x24b   :  { %p1206_p5 = scmp.ne.s32.totalorder %s1697_s4, %s1205_s3  ;;  %p1209_p6 = scmp.lt.u32.totalorder %s1205_s3, %s1697_s4 }
 0x24d   :  { %p1211_p7 = pnand %p1209_p6, %p1206_p5 }
 0x24f   :  { %1214 = shalt.err (!%p1211_p7)
}
 0x250   :  { %910 = dma.vmem_to_hbm [thread:$0]  %s908_s26, 32, %s1697_s4, [#allocation3]  }
 0x251   :  { %1215 = dma.done.wait [#allocation3], 32  }
 0x252   :  { %1216 = vsyncadd [#allocation3], 4294967264 }
 0x253   :  { %914 = vsyncpa [#allocation3], 1 }

// kernel: joint_embedding.2
= control target key start
LH: loop header
LB: loop body
LE: loop exit
PB: predicated region body
PF: predicated region fallthrough
CT: control target
= control target key end

     0   :  { %s18671_s6 = smov 1   ;;  %s18672_s10 = smov 2   ;;  %s21173_s0 = inlined_call_operand.smem [shape: u32[33], index: -1, kind: input, shape index: {}] }
   0x1   :  { %s18728_s5 = sld [smem:[%s21173_s0]]   ;;  %s18673_s14 = smov 3  }
   0x2   :  { %s18733_s9 = sld [smem:[%s21173_s0 + %s18671_s6]]   ;;  %s18674_s18 = smov 4  }
   0x3   :  { %s18738_s13 = sld [smem:[%s21173_s0 + %s18672_s10]]   ;;  %s18675_s22 = smov 5  }
   0x4   :  { %s18743_s17 = sld [smem:[%s21173_s0 + %s18673_s14]]   ;;  %s18676_s26 = smov 6  }
   0x5   :  { %s18748_s21 = sld [smem:[%s21173_s0 + %s18674_s18]]   ;;  %s18677_s30 = smov 7  }
   0x6   :  { %s18753_s25 = sld [smem:[%s21173_s0 + %s18675_s22]]   ;;  %s18678_s4 = smov 8  }
   0x7   :  { %s18758_s29 = sld [smem:[%s21173_s0 + %s18676_s26]]   ;;  %s18679_s10 = smov 9  }
   0x8   :  { %s18763_s3 = sld [smem:[%s21173_s0 + %s18677_s30]]   ;;  %s18680_s15 = smov 10  }
   0x9   :  { %21188 = sst [smem:[#allocation5_spill]] %s18738_s13  ;;  %s18681_s20 = smov 11  }
   0xa   :  { %s18768_s8 = sld [smem:[%s21173_s0 + %s18678_s4]]   ;;  %s18682_s26 = smov 12  }
   0xb   :  { %s18773_s14 = sld [smem:[%s21173_s0 + %s18679_s10]]   ;;  %s18683_s1 = smov 13  }
   0xc   :  { %21189 = sst [smem:[#allocation6_spill]] %s18753_s25  ;;  %s18684_s7 = smov 14  }
   0xd   :  { %s18778_s19 = sld [smem:[%s21173_s0 + %s18680_s15]]   ;;  %s18685_s15 = smov 15  }
   0xe   :  { %s18783_s24 = sld [smem:[%s21173_s0 + %s18681_s20]]   ;;  %s18686_s22 = smov 16  }
   0xf   :  { %s18788_s30 = sld [smem:[%s21173_s0 + %s18682_s26]]   ;;  %s18687_s28 = smov 17  }
  0x10   :  { %s18793_s6 = sld [smem:[%s21173_s0 + %s18683_s1]]  }
  0x11   :  { %s18798_s12 = sld [smem:[%s21173_s0 + %s18684_s7]]   ;;  %s18688_s7 = smov 18  }
  0x12   :  { %s18803_s20 = sld [smem:[%s21173_s0 + %s18685_s15]]   ;;  %s18689_s15 = smov 19  }
  0x13   :  { %s18808_s27 = sld [smem:[%s21173_s0 + %s18686_s22]]   ;;  %s18690_s22 = smov 20  }
  0x14   :  { %s18813_s4 = sld [smem:[%s21173_s0 + %s18687_s28]]   ;;  %s18691_s28 = smov 21  }
  0x15   :  { %s18818_s13 = sld [smem:[%s21173_s0 + %s18688_s7]]   ;;  %s18692_s7 = smov 22  }
  0x16   :  { %s18823_s25 = sld [smem:[%s21173_s0 + %s18689_s15]]   ;;  %s18693_s15 = smov 23  }
  0x19   :  { %21190 = sst [smem:[#allocation7_spill]] %s18808_s27 }
  0x1a   :  { %21191 = sst [smem:[#allocation8_spill]] %s18813_s4 }
  0x1b   :  { %21192 = sst [smem:[#allocation9_spill]] %s18818_s13 }
  0x1c   :  { %21193 = sst [smem:[#allocation10_spill]] %s18823_s25 }
  0x1d   :  { %s18828_s27 = sld [smem:[%s21173_s0 + %s18690_s22]]   ;;  %s18694_s22 = smov 24  }
  0x1e   :  { %s18833_s4 = sld [smem:[%s21173_s0 + %s18691_s28]]   ;;  %s18695_s28 = smov 25  }
  0x1f   :  { %s18838_s13 = sld [smem:[%s21173_s0 + %s18692_s7]]   ;;  %s18696_s7 = smov 26  }
  0x20   :  { %s18843_s25 = sld [smem:[%s21173_s0 + %s18693_s15]]   ;;  %s18697_s15 = smov 27  }
  0x23   :  { %21194 = sst [smem:[#allocation11_spill]] %s18828_s27 }
  0x24   :  { %21195 = sst [smem:[#allocation12_spill]] %s18833_s4 }
  0x25   :  { %21196 = sst [smem:[#allocation13_spill]] %s18838_s13 }
  0x26   :  { %21197 = sst [smem:[#allocation14_spill]] %s18843_s25 }
  0x27   :  { %s18848_s27 = sld [smem:[%s21173_s0 + %s18694_s22]]   ;;  %s18698_s22 = smov 28  }
  0x28   :  { %s18853_s4 = sld [smem:[%s21173_s0 + %s18695_s28]]   ;;  %s18699_s28 = smov 29  }
  0x29   :  { %s18858_s13 = sld [smem:[%s21173_s0 + %s18696_s7]]   ;;  %s18700_s7 = smov 30  }
  0x2a   :  { %s18863_s25 = sld [smem:[%s21173_s0 + %s18697_s15]]   ;;  %s18701_s15 = smov 31  }
  0x2d   :  { %21198 = sst [smem:[#allocation15_spill]] %s18848_s27 }
  0x2e   :  { %21199 = sst [smem:[#allocation16_spill]] %s18853_s4 }
  0x2f   :  { %21200 = sst [smem:[#allocation17_spill]] %s18858_s13 }
  0x30   :  { %21201 = sst [smem:[#allocation18_spill]] %s18863_s25 }
  0x31   :  { %s18868_s27 = sld [smem:[%s21173_s0 + %s18698_s22]]   ;;  %s18702_s22 = smov 32  }
  0x32   :  { %s18873_s4 = sld [smem:[%s21173_s0 + %s18699_s28]]  }
  0x33   :  { %s18878_s13 = sld [smem:[%s21173_s0 + %s18700_s7]]  }
  0x34   :  { %s18883_s25 = sld [smem:[%s21173_s0 + %s18701_s15]]  }
  0x37   :  { %21202 = sst [smem:[#allocation19_spill]] %s18868_s27 }
  0x38   :  { %s18888_s27 = sld [smem:[%s21173_s0 + %s18702_s22]]  }
  0x39   :  { %v135_v0 = vld [vmem:[%s18728_s5] sm:$0xff]  ;;  %v137_v1 = vld [vmem:[%s18728_s5 + $0x10] sm:$0xff]  ;;  %v18703_v2 = vmov 0   ;;  %v180_v4 = vld [vmem:[%s18743_s17 + $0x8] sm:$0xff] }
  0x3a   :  { %18323 = vset.pattern.permute.xlu0 %v18703_v2  ;;  %18324 = vset.pattern.permute.xlu1 %v18703_v2  ;;  %v179_v3 = vld [vmem:[%s18743_s17] sm:$0xff]  ;;  %v181_v5 = vld [vmem:[%s18743_s17 + $0x10] sm:$0xff]  ;;  %v136_v6 = vld [vmem:[%s18728_s5 + $0x8] sm:$0xff] }
  0x3b   :  { %144 = vperm.xlu0 %18323, %v135_v0   ;;  %150 = vperm.xlu1 %18324, %v137_v1   ;;  %v138_v7 = vld [vmem:[%s18728_s5 + $0x18] sm:$0xff]  ;;  %v18104_v8 = vpack.c.bf16 %v180_v4, %v179_v3  ;;  %v183_v11 = vld [vmem:[%s18743_s17 + $0x20] sm:$0xff]  ;;  %v184_v12 = vld [vmem:[%s18743_s17 + $0x28] sm:$0xff] }
  0x3c   :  { %v182_v9 = vld [vmem:[%s18743_s17 + $0x18] sm:$0xff] }
  0x3d   :  { %v18108_v10 = vpack.c.bf16 %v182_v9, %v181_v5  ;;  %18105 = vmatprep.subr.bf16.mxu0 %v18104_v8 }
  0x3e   :  { %70 = vsyncpa [#allocation3], 0  ;;  %v139_v13 = vld [vmem:[%s18728_s5 + $0x20] sm:$0xff]  ;;  %v140_v14 = vld [vmem:[%s18728_s5 + $0x28] sm:$0xff]  ;;  %18107 = vmatpush3.bf16.msra.mxu0 %v18104_v8  ;;  %v18112_v15 = vpack.c.bf16 %v184_v12, %v183_v11  ;;  %v18704_v22 = vmov 0.0   ;;  %v141_v23 = vlaneseq  ;;  %vm187_vm0 = vcmask 523264  }
  0x3f   :  { %147 = vperm.xlu0 %18323, %v136_v6   ;;  %153 = vperm.xlu1 %18324, %v138_v7   ;;  %v185_v16 = vld [vmem:[%s18743_s17 + $0x30] sm:$0xff]  ;;  %v186_v17 = vld [vmem:[%s18743_s17 + $0x38] sm:$0xff]  ;;  %v309_v19 = vld [vmem:[%s18758_s29] sm:$0xff]  ;;  %vm320_vm7 = vcmask 261120   ;;  %vm18705_vm8 = vmmov 0   ;;  %s18706_s0 = smov 96  }
  0x40   :  { %18109 = vmatprep.subr.bf16.mxu0 %v18108_v10  ;;  %v18116_v18 = vpack.c.bf16 %v186_v17, %v185_v16  ;;  %v310_v20 = vld [vmem:[%s18758_s29 + $0x8] sm:$0xff]  ;;  %v142_v24 = vand.u32 127, %v141_v23  ;;  %v311_v37 = vld [vmem:[%s18758_s29 + $0x10] sm:$0xff]  ;;  %v312_v38 = vld [vmem:[%s18758_s29 + $0x18] sm:$0xff]  ;;  %vm501_vm9 = vcmask 64512   ;;  %v19016_v12 = vshrl.u32 %v141_v23, 7 }
  0x41   :  { %v18120_v21 = vpack.c.bf16 %v310_v20, %v309_v19  ;;  %v18124_v39 = vpack.c.bf16 %v312_v38, %v311_v37  ;;  %v302_v40 = vld [vmem:[%s18748_s21] sm:$0xff]  ;;  %v18707_v9 = vmov 1966171168   ;;  %s18708_s5 = smov 64   ;;  %s18709_s17 = smov 88  }
  0x42   :  { %18111 = vmatpush3.bf16.msra.mxu0 %v18108_v10  ;;  %v16251_v53 = vld [vmem:[%s18763_s3] ss:$0 sm:$0xff]  ;;  %v441_v10 = vunpack.c.l.s4 %v18707_v9  ;;  %s18710_s21 = smov 120   ;;  %s18711_s28 = smov 56  }
  0x43   :  { %156 = vperm.xlu0 %18323, %v139_v13   ;;  %159 = vperm.xlu1 %18324, %v140_v14   ;;  %v301_v14 = vld [vmem:[%s18733_s9] sm:$0x3f]  ;;  %s18712_s1 = smov 80   ;;  %s18713_s2 = smov 112  }
  0x44   :  { %18113 = vmatprep.subr.bf16.mxu0 %v18112_v15  ;;  %18121 = vmatprep.subr.bf16.mxu1 %v18120_v21  ;;  %v442_v11 = vunpack.c.0.s8 %v441_v10  ;;  %v439_v17 = vcombine.high %v301_v14, %v301_v14  ;;  %s18714_s7 = smov 48   ;;  %s18715_s10 = smov 104  }
  0x45   :  { %18123 = vmatpush3.bf16.msra.mxu1 %v18120_v21  ;;  %s18716_s11 = smov 72   ;;  %s18717_s15 = smov 40  }
  0x46   :  { %18115 = vmatpush3.bf16.msra.mxu0 %v18112_v15  ;;  %18125 = vmatprep.subr.bf16.mxu1 %v18124_v39  ;;  %v19019_v13 = vsub.s32 %v442_v11, %v19016_v12  ;;  %s21216_s16 = sld [smem:[#allocation8_spill]]  ;;  %s21232_s22 = sld [smem:[#allocation18_spill]] }
  0x47   :  { %18117 = vmatprep.subr.bf16.mxu0 %v18116_v18  ;;  %s21231_s18 = sld [smem:[#allocation16_spill]]  ;;  %s21233_s23 = sld [smem:[#allocation19_spill]] }
  0x48   :  { %v19023_v15 = vrot.slane %v301_v14, %v19019_v13  ;;  %v19029_v19 = vrot.slane %v439_v17, %v19019_v13 }
  0x49   :  { %18127 = vmatpush3.bf16.msra.mxu1 %v18124_v39 }
  0x4a   :  { %18119 = vmatpush3.bf16.msra.mxu0 %v18116_v18  ;;  %17142 = vmatprep.subr.mxu1 %v18704_v22  ;;  %v454_v16 = vcombine.high %v19023_v15, %v19023_v15  ;;  %v455_v21 = vcombine.high %v19029_v19, %v19029_v19 }
  0x4b   :  { %17152 = vmatprep.subr.mxu0 %v18704_v22 }
  0x4c   :  { %v476_v18 = vrot.slane %v454_v16, %v19019_v13 }
  0x4e   :  { %vm493_vm10 = vcmp.gt.f32.partialorder %v476_v18, 0.5  ;;  %v485_v20 = vcombine.high %v476_v18, %v476_v18 }
  0x4f   :  { %v968_v23 = vsel %vm493_vm10, 1, %v18703_v2  ;;  %vm10591_vm10 = vcmask 62464  }
  0x50   :  { %vm495_vm11 = vcmp.gt.f32.partialorder %v485_v20, 0.5 }
  0xba   :  { %v145_v25 = vpop.permute.xlu0 %144  ;;  %v151_v26 = vpop.permute.xlu1 %150 }
  0xbb   :  { %vm161_vm1 = vcmp.eq.s32.totalorder %v142_v24, %v145_v25  ;;  %vm163_vm2 = vcmp.eq.s32.totalorder %v142_v24, %v151_v26  ;;  %v483_v25 = vrot.slane %v455_v21, %v19019_v13 }
  0xbc   :  { %v16239_v27 = vsel %vm161_vm1, 1.0, %v18704_v22  ;;  %v16241_v30 = vsel %vm163_vm2, 1.0, %v18704_v22 }
  0xbd   :  { %17116 = vmatprep.mubr.msk.f32.mxu0 %vm187_vm0, %v16239_v27  ;;  %vm497_vm12 = vcmp.gt.f32.partialorder %v483_v25, 0.5 }
  0xbe   :  { %v148_v28 = vpop.permute.xlu0 %147  ;;  %v154_v29 = vpop.permute.xlu1 %153 }
  0xbf   :  { %vm162_vm3 = vcmp.eq.s32.totalorder %v142_v24, %v148_v28  ;;  %vm164_vm4 = vcmp.eq.s32.totalorder %v142_v24, %v154_v29  ;;  %v970_v29 = vsel %vm495_vm11, 1, %v18703_v2  ;;  %vm10720_vm11 = vcmask 1041409  }
  0xc0   :  { %v16240_v31 = vsel %vm162_vm3, 1.0, %v18704_v22  ;;  %v16242_v32 = vsel %vm164_vm4, 1.0, %v18704_v22 }
  0xc1   :  { %17117 = vmatmul.mubr.msk.f32.vlgmr.msra.gmra.mrb[0].mxu0 %vm187_vm0, %v16240_v31 }
  0xc2   :  { %v157_v33 = vpop.permute.xlu0 %156  ;;  %17119 = vmatprep.mubr.msk.f32.mxu0 %vm187_vm0, %v16241_v30  ;;  %v160_v34 = vpop.permute.xlu1 %159 }
  0xc3   :  { %vm165_vm5 = vcmp.eq.s32.totalorder %v142_v24, %v157_v33  ;;  %vm166_vm6 = vcmp.eq.s32.totalorder %v142_v24, %v160_v34  ;;  %v19035_v24 = vsub.s32 0, %v19016_v12 }
  0xc4   :  { %v16243_v35 = vsel %vm165_vm5, 1.0, %v18704_v22  ;;  %v16244_v36 = vsel %vm166_vm6, 1.0, %v18704_v22 }
  0xc5   :  { %17120 = vmatmul.mubr.msk.f32.gmra.mrb[2].mxu0 %vm187_vm0, %v16242_v32  ;;  %v980_v27 = vrot.slane %v968_v23, %v19035_v24  ;;  %v988_v32 = vrot.slane %v970_v29, %v19035_v24  ;;  %v462_v23 = vrot.slane %v19023_v15, %v19019_v13 }
  0xc6   :  { %17122 = vmatprep.mubr.msk.f32.mxu0 %vm187_vm0, %v16243_v35  ;;  %v972_v35 = vsel %vm497_vm12, 1, %v18703_v2  ;;  %vm10723_vm12 = vcmask 1042434  }
  0xc7   :  { %vm19042_vm13 = vcmp.eq.s32.totalorder %v980_v27, 1  ;;  %vm19053_vm14 = vcmp.eq.s32.totalorder %v988_v32, 1  ;;  %vm492_vm1 = vcmp.gt.f32.partialorder %v462_v23, 0.5 }
  0xc8   :  { %v967_v27 = vsel %vm492_vm1, 1, %v18703_v2 }
  0xc9   :  { %17123 = vmatmul.mubr.msk.f32.gmra.mrb[4].mxu0 %vm187_vm0, %v16244_v36  ;;  %v976_v29 = vrot.slane %v967_v27, %v19035_v24 }
  0xca   :  { %17154 = vmatprep.mubr.msk.f32.mxu0 %vm18705_vm8, %v18704_v22 }
  0xcb   :  { %vm19091_vm2 = vcmp.eq.s32.totalorder %v976_v29, 1 }
 0x194   :  { %v17118_v41 = vpop.f32.mrb[0].mxu0 }
 0x195   :  { %v272_v42 = vpop.f32.mrb[1].mxu0  ;;  %v18928_v44 = vadd.f32 %v17118_v41, %v302_v40  ;;  %v996_v41 = vrot.slane %v972_v35, %v19035_v24 }
 0x196   :  { %v18926_v43 = vadd.f32 %v302_v40, %v272_v42 }
 0x197   :  { %vm19063_vm15 = vcmp.eq.s32.totalorder %v996_v41, 1 }
 0x198   :  { %17133 = vmatprep.mubr.msk.f32.mxu1 %vm320_vm7, %v18926_v43  ;;  %v17121_v45 = vpop.f32.mrb[2].mxu0 }
 0x199   :  { %v18932_v46 = vadd.f32 %v17121_v45, %v302_v40  ;;  %17134 = vmatmul.mubr.msk.f32.vlgmr.msra.gmra.mrb[0].mxu1 %vm320_vm7, %v18928_v44  ;;  %v282_v47 = vpop.f32.mrb[3].mxu0 }
 0x19a   :  { %v18936_v48 = vadd.f32 %v302_v40, %v282_v47 }
 0x19c   :  { %v17124_v49 = vpop.f32.mrb[4].mxu0  ;;  %17136 = vmatprep.mubr.msk.f32.mxu1 %vm320_vm7, %v18936_v48 }
 0x19d   :  { %v18940_v50 = vadd.f32 %v17124_v49, %v302_v40  ;;  %v292_v51 = vpop.f32.mrb[5].mxu0  ;;  %17137 = vmatmul.mubr.msk.f32.gmra.mrb[2].mxu1 %vm320_vm7, %v18932_v46 }
 0x19e   :  { %v18944_v52 = vadd.f32 %v302_v40, %v292_v51 }
 0x1a0   :  { %17139 = vmatprep.mubr.msk.f32.mxu1 %vm320_vm7, %v18944_v52 }
 0x1a1   :  { %17140 = vmatmul.mubr.msk.f32.gmra.mrb[4].mxu1 %vm320_vm7, %v18940_v50 }
 0x1a2   :  { %17144 = vmatprep.mubr.msk.f32.mxu1 %vm18705_vm8, %v18704_v22 }
 0x26c   :  { %v17135_v54 = vpop.f32.mrb[0].mxu1 }
 0x26d   :  { %v18955_v55 = vadd.f32 %v17135_v54, %v16251_v53  ;;  %v405_v56 = vpop.f32.mrb[1].mxu1 }
 0x26e   :  { %v18957_v57 = vadd.f32 %v16251_v53, %v405_v56 }
 0x26f   :  { %577 = vrot.lane.b32.xlu1 %v18955_v55, %s18706_s0 }
 0x270   :  { %499 = vrot.lane.b32.xlu0 %v18957_v57, %s18706_s0  ;;  %v17138_v58 = vpop.f32.mrb[2].mxu1 }
 0x271   :  { %v18963_v59 = vadd.f32 %v17138_v58, %v16251_v53  ;;  %v415_v60 = vpop.f32.mrb[3].mxu1 }
 0x272   :  { %v18967_v61 = vadd.f32 %v16251_v53, %v415_v60 }
 0x274   :  { %731 = vrot.lane.b32.xlu0 %v18963_v59, %s18706_s0  ;;  %v17141_v62 = vpop.f32.mrb[4].mxu1 }
 0x275   :  { %v18969_v63 = vadd.f32 %v17141_v62, %v16251_v53  ;;  %v425_v0 = vpop.f32.mrb[5].mxu1 }
 0x276   :  { %v18973_v1 = vadd.f32 %v16251_v53, %v425_v0 }
 0x277   :  { %885 = vrot.lane.b32.xlu1 %v18969_v63, %s18706_s0 }
 0x278   :  { %654 = vrot.lane.b32.xlu0 %v18967_v61, %s18706_s0 }
 0x27b   :  { %808 = vrot.lane.b32.xlu1 %v18973_v1, %s18706_s0 }
 0x2e1   :  { %v578_v4 = vpop.permute.xlu1 %577 }
 0x2e2   :  { %v500_v3 = vpop.permute.xlu0 %499 }
 0x2e3   :  { %17143 = vmatpush3.xpose.msk.msra.mxu1 %vm501_vm9, %v500_v3 }
 0x2e4   :  { %17147 = vmatprep.subr.mxu1 %v18704_v22 }
 0x2e6   :  { %17145 = vmatmul.mubr.msk.f32.vlgmr.msra.gmra.mrb[6].mxu1 %vm501_vm9, %v18957_v57  ;;  %v732_v5 = vpop.permute.xlu0 %731 }
 0x2e7   :  { %17148 = vmatpush3.xpose.msk.msra.mxu1 %vm501_vm9, %v578_v4  ;;  %17149 = vmatprep.mubr.msk.f32.mxu1 %vm18705_vm8, %v18704_v22 }
 0x2e8   :  { %17157 = vmatprep.subr.mxu1 %v18704_v22 }
 0x2e9   :  { %v886_v6 = vpop.permute.xlu1 %885 }
 0x2ea   :  { %17150 = vmatmul.mubr.msk.f32.vlgmr.msra.gmra.mrb[8].mxu1 %vm501_vm9, %v18955_v55  ;;  %v655_v7 = vpop.permute.xlu0 %654 }
 0x2eb   :  { %17153 = vmatpush3.xpose.msk.msra.mxu0 %vm501_vm9, %v655_v7  ;;  %17158 = vmatpush3.xpose.msk.msra.mxu1 %vm501_vm9, %v732_v5 }
 0x2ec   :  { %17159 = vmatprep.mubr.msk.f32.mxu1 %vm18705_vm8, %v18704_v22  ;;  %17162 = vmatprep.subr.mxu0 %v18704_v22 }
 0x2ed   :  { %v809_v8 = vpop.permute.xlu1 %808  ;;  %17167 = vmatprep.subr.mxu1 %v18704_v22 }
 0x2ee   :  { %17155 = vmatmul.mubr.msk.f32.vlgmr.msra.gmra.mrb[6].mxu0 %vm501_vm9, %v18967_v61  ;;  %17160 = vmatmul.mubr.msk.f32.vlgmr.msra.gmra.mrb[10].mxu1 %vm501_vm9, %v18963_v59 }
 0x2ef   :  { %17163 = vmatpush3.xpose.msk.msra.mxu0 %vm501_vm9, %v809_v8  ;;  %17168 = vmatpush3.xpose.msk.msra.mxu1 %vm501_vm9, %v886_v6 }
 0x2f0   :  { %17164 = vmatprep.mubr.msk.f32.mxu0 %vm18705_vm8, %v18704_v22  ;;  %17169 = vmatprep.mubr.msk.f32.mxu1 %vm18705_vm8, %v18704_v22 }
 0x2f1   :  { %17177 = vmatprep.subr.mxu1 %v18704_v22  ;;  %17172 = vmatprep.subr.mxu0 %v18704_v22 }
 0x2f2   :  { %17165 = vmatmul.mubr.msk.f32.vlgmr.msra.gmra.mrb[8].mxu0 %vm501_vm9, %v18973_v1  ;;  %17170 = vmatmul.mubr.msk.f32.vlgmr.msra.gmra.mrb[12].mxu1 %vm501_vm9, %v18969_v63 }
 0x2f3   :  { %17179 = vmatprep.mubr.msk.f32.mxu1 %vm18705_vm8, %v18704_v22  ;;  %17174 = vmatprep.mubr.msk.f32.mxu0 %vm18705_vm8, %v18704_v22 }
 0x3b9   :  { %v19038_v26 = vpop.f32.mrb[6].mxu1 }
 0x3ba   :  { %v17146_v28 = vpop.f32.mrb[7].mxu1 }
 0x3bd   :  { %v649_v30 = vpop.f32.mrb[8].mxu1 }
 0x3be   :  { %v962_v33 = vmul.f32 0.35355338, %v649_v30  ;;  %v17151_v34 = vpop.f32.mrb[9].mxu1  ;;  %v961_v30 = vmul.f32 0.35355338, %v19038_v26  ;;  %v484_v26 = vcombine.high %v462_v23, %v462_v23 }
 0x3bf   :  { %v469_v34 = vrot.slane %v19029_v19, %v19019_v13 }
 0x3c0   :  { %v1004_v36 = vsel %vm19042_vm13, -1e+09, %v962_v33  ;;  %v1003_v33 = vsel %vm19091_vm2, -1e+09, %v961_v30  ;;  %vm494_vm3 = vcmp.gt.f32.partialorder %v484_v26, 0.5 }
 0x3c1   :  { %v19050_v37 = vpop.f32.mrb[6].mxu0  ;;  %v803_v38 = vpop.f32.mrb[10].mxu1  ;;  %v1012_v39 = vsel %vm501_vm9, %v1004_v36, -inf  ;;  %v1009_v15 = vsel %vm501_vm9, %v1003_v33, -inf  ;;  %v969_v35 = vsel %vm494_vm3, 1, %v18703_v2  ;;  %vm496_vm4 = vcmp.gt.f32.partialorder %v469_v34, 0.5 }
 0x3c2   :  { %v964_v42 = vmul.f32 0.35355338, %v803_v38  ;;  %1013 = vmax.xlane.f32.xlu0 %v1012_v39  ;;  %v17156_v45 = vpop.f32.mrb[7].mxu0  ;;  %v17161_v47 = vpop.f32.mrb[11].mxu1  ;;  %v971_v38 = vsel %vm496_vm4, 1, %v18703_v2  ;;  %vm11099_vm4 = vcmask 18432  }
 0x3c3   :  { %v963_v39 = vmul.f32 0.35355338, %v19050_v37 }
 0x3c4   :  { %v1006_v49 = vsel %vm19053_vm14, -1e+09, %v964_v42  ;;  %v992_v42 = vrot.slane %v971_v38, %v19035_v24 }
 0x3c5   :  { %v19060_v51 = vpop.f32.mrb[8].mxu0  ;;  %v957_v53 = vpop.f32.mrb[12].mxu1  ;;  %v1018_v54 = vsel %vm501_vm9, %v1006_v49, -inf }
 0x3c6   :  { %v966_v58 = vmul.f32 0.35355338, %v957_v53  ;;  %1019 = vmax.xlane.f32.xlu1 %v1018_v54  ;;  %v17166_v60 = vpop.f32.mrb[9].mxu0  ;;  %v17171_v62 = vpop.f32.mrb[13].mxu1  ;;  %v965_v45 = vmul.f32 0.35355338, %v19060_v51 }
 0x3c7   :  { %vm19118_vm6 = vcmp.eq.s32.totalorder %v992_v42, 1 }
 0x3c8   :  { %v1008_v0 = vsel %vm19063_vm15, -1e+09, %v966_v58  ;;  %v1007_v37 = vsel %vm19118_vm6, -1e+09, %v965_v45 }
 0x3c9   :  { %v1024_v3 = vsel %vm501_vm9, %v1008_v0, -inf  ;;  %v1021_v53 = vsel %vm501_vm9, %v1007_v37, -inf }
 0x3ca   :  { %1025 = vmax.xlane.f32.xlu0 %v1024_v3 }
 0x3d7   :  { %1151 = vrot.lane.b32.xlu1 %v18955_v55, %s18708_s5 }
 0x3db   :  { %1455 = vrot.lane.b32.xlu1 %v18969_v63, %s18708_s5 }
 0x44f   :  { %v1014_v4 = vpop.xlane.xlu0 %1013 }
 0x450   :  { %v1028_v5 = vsub.f32 %v1004_v36, %v1014_v4  ;;  %v984_v36 = vrot.slane %v969_v35, %v19035_v24 }
 0x452   :  { %v1035_v6 = vmul.f32 1.442695, %v1028_v5  ;;  %vm19110_vm5 = vcmp.eq.s32.totalorder %v984_v36, 1 }
 0x453   :  { %v1020_v7 = vpop.xlane.xlu1 %1019  ;;  %v1005_v19 = vsel %vm19110_vm5, -1e+09, %v963_v39 }
 0x454   :  { %18326 = vpow2.f32 %v1035_v6  ;;  %v1030_v8 = vsub.f32 %v1006_v49, %v1020_v7  ;;  %v1015_v49 = vsel %vm501_vm9, %v1005_v19, -inf }
 0x456   :  { %v1039_v9 = vmul.f32 1.442695, %v1030_v8 }
 0x457   :  { %v1152_v10 = vpop.permute.xlu1 %1151  ;;  %v1026_v18 = vpop.xlane.xlu0 %1025 }
 0x458   :  { %18328 = vpow2.f32 %v1039_v9  ;;  %17178 = vmatpush3.msra.mxu1 %v1152_v10  ;;  %v1032_v20 = vsub.f32 %v1008_v0, %v1026_v18 }
 0x459   :  { %17187 = vmatprep.subr.mxu1 %v18704_v22 }
 0x45a   :  { %v1043_v21 = vmul.f32 1.442695, %v1032_v20 }
 0x45b   :  { %v1456_v54 = vpop.permute.xlu1 %1455 }
 0x45c   :  { %18330 = vpow2.f32 %v1043_v21 }
 0x45e   :  { %v18327_v11 = vpop.eup %18326 }
 0x45f   :  { %v1048_v14 = vsel %vm501_vm9, %v18327_v11, 0.0 }
 0x460   :  { %1049 = vadd.xlane.f32.xlu0 %v1048_v14 }
 0x462   :  { %v18329_v16 = vpop.eup %18328 }
 0x463   :  { %v1054_v17 = vsel %vm501_vm9, %v18329_v16, 0.0 }
 0x464   :  { %1055 = vadd.xlane.f32.xlu1 %v1054_v17 }
 0x466   :  { %v18331_v25 = vpop.eup %18330 }
 0x467   :  { %v1060_v28 = vsel %vm501_vm9, %v18331_v25, 0.0 }
 0x475   :  { %1611 = vrot.lane.b32.xlu1 %v18955_v55, %s18709_s17 }
 0x476   :  { %1303 = vrot.lane.b32.xlu0 %v18963_v59, %s18708_s5 }
 0x479   :  { %1767 = vrot.lane.b32.xlu1 %v18963_v59, %s18709_s17 }
 0x47d   :  { %1923 = vrot.lane.b32.xlu1 %v18969_v63, %s18709_s17 }
 0x495   :  { %1061 = vadd.xlane.f32.xlu0 %v1060_v28 }
 0x4a1   :  { %1010 = vmax.xlane.f32.xlu1 %v1009_v15 }
 0x4ab   :  { %1609 = vrot.lane.b32.xlu0 %v18955_v55, %s18710_s21 }
 0x4af   :  { %1765 = vrot.lane.b32.xlu0 %v18963_v59, %s18710_s21 }
 0x4b3   :  { %1921 = vrot.lane.b32.xlu0 %v18969_v63, %s18710_s21 }
 0x4d2   :  { %1016 = vmax.xlane.f32.xlu0 %v1015_v49 }
 0x4d6   :  { %1022 = vmax.xlane.f32.xlu0 %v1021_v53 }
 0x4ed   :  { %v1050_v58 = vpop.xlane.xlu0 %1049 }
 0x4ee   :  { %18332 = vrcp.f32 %v1050_v58 }
 0x4f1   :  { %v1056_v51 = vpop.xlane.xlu1 %1055  ;;  %v1304_v0 = vpop.permute.xlu0 %1303 }
 0x4f2   :  { %18334 = vrcp.f32 %v1056_v51 }
 0x4f5   :  { %v1612_v5 = vpop.permute.xlu1 %1611 }
 0x4f8   :  { %v18333_v60 = vpop.eup %18332 }
 0x4f9   :  { %v1070_v62 = vmul.f32 %v18333_v60, %v18327_v11  ;;  %v1768_v7 = vpop.permute.xlu1 %1767 }
 0x4fb   :  { %17180 = vmatmul.mubr.msk.f32.vlgmr.msra.gmra.mrb[14].mxu1 %vm501_vm9, %v1070_v62 }
 0x4fc   :  { %v18335_v3 = vpop.eup %18334  ;;  %17188 = vmatpush3.msra.mxu1 %v1304_v0  ;;  %17189 = vmatprep.mubr.msk.f32.mxu1 %vm18705_vm8, %v18704_v22 }
 0x4fd   :  { %17197 = vmatprep.subr.mxu1 %v18704_v22  ;;  %v1072_v4 = vmul.f32 %v18335_v3, %v18329_v16  ;;  %v1924_v8 = vpop.permute.xlu1 %1923 }
 0x4ff   :  { %17190 = vmatmul.mubr.msk.f32.vlgmr.msra.gmra.mrb[16].mxu1 %vm501_vm9, %v1072_v4 }
 0x500   :  { %17198 = vmatpush3.msra.mxu1 %v1456_v54  ;;  %17199 = vmatprep.mubr.msk.f32.mxu1 %vm18705_vm8, %v18704_v22 }
 0x501   :  { %17207 = vmatprep.subr.mxu1 %v18704_v22 }
 0x522   :  { %v1062_v6 = vpop.xlane.xlu0 %1061 }
 0x523   :  { %18336 = vrcp.f32 %v1062_v6 }
 0x526   :  { %v1610_v14 = vpop.permute.xlu0 %1609 }
 0x52a   :  { %v1766_v18 = vpop.permute.xlu0 %1765 }
 0x52d   :  { %v18337_v9 = vpop.eup %18336 }
 0x52e   :  { %v1011_v10 = vpop.xlane.xlu1 %1010  ;;  %v1074_v11 = vmul.f32 %v18337_v9, %v18331_v25  ;;  %v1922_v20 = vpop.permute.xlu0 %1921 }
 0x52f   :  { %v1027_v17 = vsub.f32 %v1003_v33, %v1011_v10 }
 0x530   :  { %17200 = vmatmul.mubr.msk.f32.vlgmr.msra.gmra.mrb[18].mxu1 %vm501_vm9, %v1074_v11 }
 0x531   :  { %v1033_v16 = vmul.f32 1.442695, %v1027_v17  ;;  %17208 = vmatpush3.xpose.msk.msra.mxu1 %vm501_vm9, %v1612_v5  ;;  %17209 = vmatprep.mubr.msk.f32.mxu1 %vm18705_vm8, %v18704_v22 }
 0x532   :  { %17217 = vmatprep.subr.mxu1 %v18704_v22 }
 0x533   :  { %18338 = vpow2.f32 %v1033_v16 }
 0x534   :  { %17210 = vmatmul.mubr.msk.f32.vlgmr.msra.gmra.mrb[20].mxu1 %vm501_vm9, %v1610_v14 }
 0x535   :  { %17218 = vmatpush3.xpose.msk.msra.mxu1 %vm501_vm9, %v1768_v7  ;;  %17219 = vmatprep.mubr.msk.f32.mxu1 %vm18705_vm8, %v18704_v22 }
 0x536   :  { %17227 = vmatprep.subr.mxu1 %v18704_v22 }
 0x538   :  { %17220 = vmatmul.mubr.msk.f32.vlgmr.msra.gmra.mrb[22].mxu1 %vm501_vm9, %v1766_v18 }
 0x539   :  { %17228 = vmatpush3.xpose.msk.msra.mxu1 %vm501_vm9, %v1924_v8  ;;  %17229 = vmatprep.mubr.msk.f32.mxu1 %vm18705_vm8, %v18704_v22 }
 0x53a   :  { %17237 = vmatprep.subr.mxu1 %v18704_v22 }
 0x53c   :  { %17230 = vmatmul.mubr.msk.f32.vlgmr.msra.gmra.mrb[24].mxu1 %vm501_vm9, %v1922_v20 }
 0x53d   :  { %v18339_v21 = vpop.eup %18338  ;;  %17239 = vmatprep.mubr.msk.f32.mxu1 %vm18705_vm8, %v18704_v22 }
 0x53e   :  { %v1045_v23 = vsel %vm501_vm9, %v18339_v21, 0.0 }
 0x53f   :  { %1046 = vadd.xlane.f32.xlu1 %v1045_v23 }
 0x55f   :  { %v1017_v25 = vpop.xlane.xlu0 %1016 }
 0x560   :  { %v1029_v27 = vsub.f32 %v1005_v19, %v1017_v25 }
 0x562   :  { %v1037_v28 = vmul.f32 1.442695, %v1029_v27 }
 0x563   :  { %v1023_v29 = vpop.xlane.xlu0 %1022 }
 0x564   :  { %18340 = vpow2.f32 %v1037_v28  ;;  %v1031_v30 = vsub.f32 %v1007_v37, %v1023_v29 }
 0x566   :  { %v1041_v33 = vmul.f32 1.442695, %v1031_v30 }
 0x568   :  { %18342 = vpow2.f32 %v1041_v33 }
 0x56e   :  { %v18341_v15 = vpop.eup %18340 }
 0x56f   :  { %v1051_v26 = vsel %vm501_vm9, %v18341_v15, 0.0 }
 0x570   :  { %1052 = vadd.xlane.f32.xlu0 %v1051_v26 }
 0x572   :  { %v18343_v34 = vpop.eup %18342 }
 0x573   :  { %v1057_v35 = vsel %vm501_vm9, %v18343_v34, 0.0 }
 0x574   :  { %1058 = vadd.xlane.f32.xlu1 %v1057_v35 }
 0x585   :  { %1227 = vrot.lane.b32.xlu1 %v18967_v61, %s18708_s5 }
 0x586   :  { %1075 = vrot.lane.b32.xlu0 %v18957_v57, %s18708_s5 }
 0x589   :  { %1379 = vrot.lane.b32.xlu1 %v18973_v1, %s18708_s5 }
 0x58a   :  { %1533 = vrot.lane.b32.xlu0 %v18957_v57, %s18709_s17 }
 0x58d   :  { %1531 = vrot.lane.b32.xlu1 %v18957_v57, %s18710_s21 }
 0x58e   :  { %1689 = vrot.lane.b32.xlu0 %v18967_v61, %s18709_s17 }
 0x591   :  { %1687 = vrot.lane.b32.xlu1 %v18967_v61, %s18710_s21 }
 0x592   :  { %1845 = vrot.lane.b32.xlu0 %v18973_v1, %s18709_s17 }
 0x595   :  { %1843 = vrot.lane.b32.xlu1 %v18973_v1, %s18710_s21 }
 0x5cc   :  { %v1047_v45 = vpop.xlane.xlu1 %1046 }
 0x5cd   :  { %18344 = vrcp.f32 %v1047_v45 }
 0x5ce   :  { %v19173_v36 = vpop.f32.mrb[14].mxu1 }
 0x5cf   :  { %v17181_v38 = vpop.f32.mrb[15].mxu1 }
 0x5d2   :  { %v19175_v39 = vpop.f32.mrb[16].mxu1 }
 0x5d3   :  { %v17191_v42 = vpop.f32.mrb[17].mxu1 }
 0x5d7   :  { %v18345_v49 = vpop.eup %18344 }
 0x5d8   :  { %v1069_v54 = vmul.f32 %v18345_v49, %v18339_v21 }
 0x5fd   :  { %v1053_v19 = vpop.xlane.xlu0 %1052 }
 0x5fe   :  { %18346 = vrcp.f32 %v1053_v19 }
 0x601   :  { %v1059_v37 = vpop.xlane.xlu1 %1058  ;;  %v1076_v53 = vpop.permute.xlu0 %1075 }
 0x602   :  { %18348 = vrcp.f32 %v1059_v37  ;;  %17173 = vmatpush3.msra.mxu0 %v1076_v53 }
 0x603   :  { %17175 = vmatmul.mubr.msk.f32.vlgmr.msra.gmra.mrb[10].mxu0 %vm501_vm9, %v1069_v54  ;;  %v19178_v58 = vpop.f32.mrb[18].mxu1  ;;  %17182 = vmatprep.subr.mxu0 %v18704_v22 }
 0x604   :  { %v17201_v51 = vpop.f32.mrb[19].mxu1  ;;  %17184 = vmatprep.mubr.msk.f32.mxu0 %vm18705_vm8, %v18704_v22 }
 0x605   :  { %v1228_v60 = vpop.permute.xlu1 %1227  ;;  %v1534_v16 = vpop.permute.xlu0 %1533 }
 0x606   :  { %17183 = vmatpush3.msra.mxu0 %v1228_v60 }
 0x607   :  { %v1683_v62 = vpop.f32.mrb[20].mxu1  ;;  %17192 = vmatprep.subr.mxu0 %v18704_v22 }
 0x608   :  { %v18347_v0 = vpop.eup %18346  ;;  %v2000_v3 = vmul.f32 0.35355338, %v1683_v62  ;;  %v17211_v4 = vpop.f32.mrb[21].mxu1 }
 0x609   :  { %v1380_v5 = vpop.permute.xlu1 %1379  ;;  %v1071_v6 = vmul.f32 %v18347_v0, %v18341_v15  ;;  %v1690_v30 = vpop.permute.xlu0 %1689 }
 0x60a   :  { %v2006_v7 = vsel %vm19042_vm13, -1e+09, %v2000_v3 }
 0x60b   :  { %17185 = vmatmul.mubr.msk.f32.vlgmr.msra.gmra.mrb[12].mxu0 %vm501_vm9, %v1071_v6  ;;  %v1839_v8 = vpop.f32.mrb[22].mxu1  ;;  %v2014_v9 = vsel %vm501_vm9, %v2006_v7, -inf }
 0x60c   :  { %v18349_v10 = vpop.eup %18348  ;;  %17193 = vmatpush3.msra.mxu0 %v1380_v5  ;;  %v2002_v11 = vmul.f32 0.35355338, %v1839_v8  ;;  %v17221_v14 = vpop.f32.mrb[23].mxu1  ;;  %2015 = vmax.xlane.f32.xlu0 %v2014_v9 }
 0x60d   :  { %17194 = vmatprep.mubr.msk.f32.mxu0 %vm18705_vm8, %v18704_v22  ;;  %v1073_v17 = vmul.f32 %v18349_v10, %v18343_v34  ;;  %17202 = vmatprep.subr.mxu0 %v18704_v22  ;;  %v1532_v27 = vpop.permute.xlu1 %1531  ;;  %v1846_v15 = vpop.permute.xlu0 %1845 }
 0x60e   :  { %v2008_v18 = vsel %vm19053_vm14, -1e+09, %v2002_v11 }
 0x60f   :  { %17195 = vmatmul.mubr.msk.f32.vlgmr.msra.gmra.mrb[14].mxu0 %vm501_vm9, %v1073_v17  ;;  %v1995_v20 = vpop.f32.mrb[24].mxu1  ;;  %v2020_v21 = vsel %vm501_vm9, %v2008_v18, -inf }
 0x610   :  { %v2004_v23 = vmul.f32 0.35355338, %v1995_v20  ;;  %v17231_v25 = vpop.f32.mrb[25].mxu1  ;;  %2021 = vmax.xlane.f32.xlu1 %v2020_v21  ;;  %17204 = vmatprep.mubr.msk.f32.mxu0 %vm18705_vm8, %v18704_v22 }
 0x611   :  { %v1688_v33 = vpop.permute.xlu1 %1687 }
 0x612   :  { %v2010_v28 = vsel %vm19063_vm15, -1e+09, %v2004_v23 }
 0x613   :  { %17203 = vmatpush3.xpose.msk.msra.mxu0 %vm501_vm9, %v1534_v16  ;;  %v2026_v29 = vsel %vm501_vm9, %v2010_v28, -inf }
 0x614   :  { %2027 = vmax.xlane.f32.xlu0 %v2026_v29  ;;  %17212 = vmatprep.subr.mxu0 %v18704_v22 }
 0x615   :  { %v1844_v26 = vpop.permute.xlu1 %1843 }
 0x616   :  { %17205 = vmatmul.mubr.msk.f32.vlgmr.msra.gmra.mrb[16].mxu0 %vm501_vm9, %v1532_v27 }
 0x617   :  { %17213 = vmatpush3.xpose.msk.msra.mxu0 %vm501_vm9, %v1690_v30  ;;  %17214 = vmatprep.mubr.msk.f32.mxu0 %vm18705_vm8, %v18704_v22 }
 0x618   :  { %17222 = vmatprep.subr.mxu0 %v18704_v22 }
 0x61a   :  { %17215 = vmatmul.mubr.msk.f32.vlgmr.msra.gmra.mrb[18].mxu0 %vm501_vm9, %v1688_v33 }
 0x61b   :  { %17223 = vmatpush3.xpose.msk.msra.mxu0 %vm501_vm9, %v1846_v15  ;;  %17224 = vmatprep.mubr.msk.f32.mxu0 %vm18705_vm8, %v18704_v22 }
 0x61c   :  { %17232 = vmatprep.subr.mxu0 %v18704_v22 }
 0x61e   :  { %17225 = vmatmul.mubr.msk.f32.vlgmr.msra.gmra.mrb[20].mxu0 %vm501_vm9, %v1844_v26 }
 0x61f   :  { %17234 = vmatprep.mubr.msk.f32.mxu0 %vm18705_vm8, %v18704_v22 }
 0x621   :  { %2153 = vrot.lane.b32.xlu1 %v18955_v55, %s18711_s28 }
 0x625   :  { %2457 = vrot.lane.b32.xlu1 %v18969_v63, %s18711_s28 }
 0x699   :  { %v2016_v34 = vpop.xlane.xlu0 %2015 }
 0x69a   :  { %v2030_v35 = vsub.f32 %v2006_v7, %v2016_v34 }
 0x69c   :  { %v2037_v38 = vmul.f32 1.442695, %v2030_v35 }
 0x69d   :  { %v2022_v42 = vpop.xlane.xlu1 %2021 }
 0x69e   :  { %18350 = vpow2.f32 %v2037_v38  ;;  %v2032_v45 = vsub.f32 %v2008_v18, %v2022_v42 }
 0x6a0   :  { %v2041_v19 = vmul.f32 1.442695, %v2032_v45 }
 0x6a1   :  { %v2154_v49 = vpop.permute.xlu1 %2153  ;;  %v2028_v60 = vpop.xlane.xlu0 %2027 }
 0x6a2   :  { %18352 = vpow2.f32 %v2041_v19  ;;  %17238 = vmatpush3.msra.mxu1 %v2154_v49  ;;  %v2034_v62 = vsub.f32 %v2010_v28, %v2028_v60 }
 0x6a3   :  { %17247 = vmatprep.subr.mxu1 %v18704_v22 }
 0x6a4   :  { %v2045_v0 = vmul.f32 1.442695, %v2034_v62 }
 0x6a5   :  { %v2458_v26 = vpop.permute.xlu1 %2457 }
 0x6a6   :  { %18354 = vpow2.f32 %v2045_v0 }
 0x6a8   :  { %v18351_v37 = vpop.eup %18350 }
 0x6a9   :  { %v2050_v53 = vsel %vm501_vm9, %v18351_v37, 0.0 }
 0x6aa   :  { %2051 = vadd.xlane.f32.xlu0 %v2050_v53 }
 0x6ac   :  { %v18353_v54 = vpop.eup %18352 }
 0x6ad   :  { %v2056_v51 = vsel %vm501_vm9, %v18353_v54, 0.0 }
 0x6ae   :  { %2057 = vadd.xlane.f32.xlu1 %v2056_v51 }
 0x6b0   :  { %v18355_v5 = vpop.eup %18354 }
 0x6b1   :  { %v2062_v7 = vsel %vm501_vm9, %v18355_v5, 0.0 }
 0x6bf   :  { %2761 = vrot.lane.b32.xlu1 %v18957_v57, %s18712_s1 }
 0x6c0   :  { %2305 = vrot.lane.b32.xlu0 %v18963_v59, %s18711_s28 }
 0x6c3   :  { %2839 = vrot.lane.b32.xlu1 %v18955_v55, %s18712_s1 }
 0x6c7   :  { %2917 = vrot.lane.b32.xlu1 %v18967_v61, %s18712_s1 }
 0x6cb   :  { %2995 = vrot.lane.b32.xlu1 %v18963_v59, %s18712_s1 }
 0x6cf   :  { %3073 = vrot.lane.b32.xlu1 %v18973_v1, %s18712_s1 }
 0x6d3   :  { %3151 = vrot.lane.b32.xlu1 %v18969_v63, %s18712_s1 }
 0x6d6   :  { %v19236_v3 = vpop.f32.mrb[10].mxu0 }
 0x6d7   :  { %v17176_v4 = vpop.f32.mrb[11].mxu0 }
 0x6de   :  { %v19238_v6 = vpop.f32.mrb[12].mxu0 }
 0x6df   :  { %v17186_v8 = vpop.f32.mrb[13].mxu0  ;;  %2063 = vadd.xlane.f32.xlu0 %v2062_v7 }
 0x6e2   :  { %v19241_v9 = vpop.f32.mrb[14].mxu0 }
 0x6e3   :  { %v17196_v10 = vpop.f32.mrb[15].mxu0 }
 0x6e9   :  { %v1605_v11 = vpop.f32.mrb[16].mxu0 }
 0x6ea   :  { %v17206_v14 = vpop.f32.mrb[17].mxu0  ;;  %v1999_v18 = vmul.f32 0.35355338, %v1605_v11 }
 0x6ec   :  { %v19245_v23 = vsel %vm19091_vm2, -1e+09, %v1999_v18 }
 0x6ed   :  { %v1761_v17 = vpop.f32.mrb[18].mxu0  ;;  %v2011_v25 = vsel %vm501_vm9, %v19245_v23, -inf }
 0x6ee   :  { %v17216_v16 = vpop.f32.mrb[19].mxu0  ;;  %v2001_v27 = vmul.f32 0.35355338, %v1761_v17 }
 0x6f0   :  { %v19263_v29 = vsel %vm19110_vm5, -1e+09, %v2001_v27 }
 0x6f1   :  { %v1917_v20 = vpop.f32.mrb[20].mxu0  ;;  %v2017_v30 = vsel %vm501_vm9, %v19263_v29, -inf }
 0x6f2   :  { %v17226_v21 = vpop.f32.mrb[21].mxu0  ;;  %v2003_v28 = vmul.f32 0.35355338, %v1917_v20 }
 0x6f4   :  { %v19269_v33 = vsel %vm19118_vm6, -1e+09, %v2003_v28 }
 0x6f5   :  { %2759 = vrot.lane.b32.xlu0 %v18957_v57, %s18713_s2  ;;  %v2023_v15 = vsel %vm501_vm9, %v19269_v33, -inf }
 0x6f7   :  { %2012 = vmax.xlane.f32.xlu1 %v2011_v25 }
 0x6f9   :  { %2837 = vrot.lane.b32.xlu0 %v18955_v55, %s18713_s2 }
 0x6fd   :  { %2915 = vrot.lane.b32.xlu0 %v18967_v61, %s18713_s2 }
 0x701   :  { %2993 = vrot.lane.b32.xlu0 %v18963_v59, %s18713_s2 }
 0x705   :  { %3071 = vrot.lane.b32.xlu0 %v18973_v1, %s18713_s2 }
 0x709   :  { %3149 = vrot.lane.b32.xlu0 %v18969_v63, %s18713_s2 }
 0x728   :  { %2018 = vmax.xlane.f32.xlu0 %v2017_v30 }
 0x72c   :  { %2024 = vmax.xlane.f32.xlu0 %v2023_v15 }
 0x737   :  { %v2052_v34 = vpop.xlane.xlu0 %2051 }
 0x738   :  { %18356 = vrcp.f32 %v2052_v34 }
 0x73b   :  { %v2058_v35 = vpop.xlane.xlu1 %2057  ;;  %v2306_v45 = vpop.permute.xlu0 %2305 }
 0x73c   :  { %18358 = vrcp.f32 %v2058_v35 }
 0x742   :  { %v18357_v38 = vpop.eup %18356 }
 0x743   :  { %v2072_v42 = vmul.f32 %v18357_v38, %v18351_v37  ;;  %v2762_v37 = vpop.permute.xlu1 %2761 }
 0x745   :  { %17240 = vmatmul.mubr.msk.f32.vlgmr.msra.gmra.mrb[26].mxu1 %vm501_vm9, %v2072_v42 }
 0x746   :  { %v18359_v19 = vpop.eup %18358  ;;  %17248 = vmatpush3.msra.mxu1 %v2306_v45  ;;  %17249 = vmatprep.mubr.msk.f32.mxu1 %vm18705_vm8, %v18704_v22 }
 0x747   :  { %17257 = vmatprep.subr.mxu1 %v18704_v22  ;;  %v2074_v49 = vmul.f32 %v18359_v19, %v18353_v54  ;;  %v2840_v53 = vpop.permute.xlu1 %2839 }
 0x749   :  { %17250 = vmatmul.mubr.msk.f32.vlgmr.msra.gmra.mrb[28].mxu1 %vm501_vm9, %v2074_v49 }
 0x74a   :  { %17258 = vmatpush3.msra.mxu1 %v2458_v26  ;;  %17259 = vmatprep.mubr.msk.f32.mxu1 %vm18705_vm8, %v18704_v22 }
 0x74b   :  { %17284 = vmatprep.subr.mxu1 %v18704_v22  ;;  %v2918_v60 = vpop.permute.xlu1 %2917 }
 0x74f   :  { %v2996_v0 = vpop.permute.xlu1 %2995 }
 0x753   :  { %v3074_v10 = vpop.permute.xlu1 %3073 }
 0x76c   :  { %v2064_v51 = vpop.xlane.xlu0 %2063 }
 0x76d   :  { %18360 = vrcp.f32 %v2064_v51 }
 0x770   :  { %v2760_v62 = vpop.permute.xlu0 %2759 }
 0x774   :  { %v2838_v8 = vpop.permute.xlu0 %2837 }
 0x777   :  { %v18361_v4 = vpop.eup %18360 }
 0x778   :  { %v2076_v7 = vmul.f32 %v18361_v4, %v18355_v5  ;;  %v2916_v54 = vpop.permute.xlu0 %2915  ;;  %v3152_v5 = vpop.permute.xlu1 %3151 }
 0x77a   :  { %17260 = vmatmul.mubr.msk.f32.vlgmr.msra.gmra.mrb[30].mxu1 %vm501_vm9, %v2076_v7 }
 0x77b   :  { %17285 = vmatpush3.xpose.msk.msra.mxu1 %vm501_vm9, %v2762_v37  ;;  %17286 = vmatprep.mubr.msk.f32.mxu1 %vm18705_vm8, %v18704_v22 }
 0x77c   :  { %17289 = vmatprep.subr.mxu1 %v18704_v22  ;;  %v2994_v14 = vpop.permute.xlu0 %2993 }
 0x77e   :  { %17287 = vmatmul.mubr.msk.f32.vlgmr.msra.gmra.mrb[32].mxu1 %vm501_vm9, %v2760_v62 }
 0x77f   :  { %17290 = vmatpush3.xpose.msk.msra.mxu1 %vm501_vm9, %v2840_v53  ;;  %17291 = vmatprep.mubr.msk.f32.mxu1 %vm18705_vm8, %v18704_v22 }
 0x780   :  { %17294 = vmatprep.subr.mxu1 %v18704_v22  ;;  %v3072_v18 = vpop.permute.xlu0 %3071 }
 0x782   :  { %17292 = vmatmul.mubr.msk.f32.vlgmr.msra.gmra.mrb[34].mxu1 %vm501_vm9, %v2838_v8 }
 0x783   :  { %17295 = vmatpush3.xpose.msk.msra.mxu1 %vm501_vm9, %v2918_v60  ;;  %17296 = vmatprep.mubr.msk.f32.mxu1 %vm18705_vm8, %v18704_v22 }
 0x784   :  { %v2013_v11 = vpop.xlane.xlu1 %2012  ;;  %17299 = vmatprep.subr.mxu1 %v18704_v22  ;;  %v3150_v20 = vpop.permute.xlu0 %3149 }
 0x785   :  { %v2029_v17 = vsub.f32 %v19245_v23, %v2013_v11 }
 0x786   :  { %17297 = vmatmul.mubr.msk.f32.vlgmr.msra.gmra.mrb[36].mxu1 %vm501_vm9, %v2916_v54 }
 0x787   :  { %v2035_v16 = vmul.f32 1.442695, %v2029_v17  ;;  %17300 = vmatpush3.xpose.msk.msra.mxu1 %vm501_vm9, %v2996_v0  ;;  %17301 = vmatprep.mubr.msk.f32.mxu1 %vm18705_vm8, %v18704_v22 }
 0x788   :  { %17304 = vmatprep.subr.mxu1 %v18704_v22 }
 0x789   :  { %18362 = vpow2.f32 %v2035_v16 }
 0x78a   :  { %17302 = vmatmul.mubr.msk.f32.vlgmr.msra.gmra.mrb[38].mxu1 %vm501_vm9, %v2994_v14 }
 0x78b   :  { %17305 = vmatpush3.xpose.msk.msra.mxu1 %vm501_vm9, %v3074_v10  ;;  %17306 = vmatprep.mubr.msk.f32.mxu1 %vm18705_vm8, %v18704_v22 }
 0x78c   :  { %17309 = vmatprep.subr.mxu1 %v18704_v22 }
 0x78e   :  { %17307 = vmatmul.mubr.msk.f32.vlgmr.msra.gmra.mrb[40].mxu1 %vm501_vm9, %v3072_v18 }
 0x78f   :  { %17310 = vmatpush3.xpose.msk.msra.mxu1 %vm501_vm9, %v3152_v5  ;;  %17311 = vmatprep.mubr.msk.f32.mxu1 %vm18705_vm8, %v18704_v22 }
 0x790   :  { %17319 = vmatprep.subr.mxu1 %v18704_v22 }
 0x792   :  { %17312 = vmatmul.mubr.msk.f32.vlgmr.msra.gmra.mrb[42].mxu1 %vm501_vm9, %v3150_v20 }
 0x793   :  { %v18363_v21 = vpop.eup %18362  ;;  %17321 = vmatprep.mubr.msk.f32.mxu1 %vm18705_vm8, %v18704_v22 }
 0x794   :  { %v2047_v23 = vsel %vm501_vm9, %v18363_v21, 0.0 }
 0x795   :  { %2048 = vadd.xlane.f32.xlu1 %v2047_v23 }
 0x7b5   :  { %v2019_v25 = vpop.xlane.xlu0 %2018 }
 0x7b6   :  { %v2031_v27 = vsub.f32 %v19263_v29, %v2019_v25 }
 0x7b8   :  { %v2039_v28 = vmul.f32 1.442695, %v2031_v27 }
 0x7b9   :  { %v2025_v30 = vpop.xlane.xlu0 %2024 }
 0x7ba   :  { %18364 = vpow2.f32 %v2039_v28  ;;  %v2033_v15 = vsub.f32 %v19269_v33, %v2025_v30 }
 0x7bc   :  { %v2043_v26 = vmul.f32 1.442695, %v2033_v15 }
 0x7be   :  { %18366 = vpow2.f32 %v2043_v26 }
 0x7c4   :  { %v18365_v34 = vpop.eup %18364 }
 0x7c5   :  { %v2053_v35 = vsel %vm501_vm9, %v18365_v34, 0.0 }
 0x7c6   :  { %2054 = vadd.xlane.f32.xlu0 %v2053_v35 }
 0x7c8   :  { %v18367_v38 = vpop.eup %18366 }
 0x7c9   :  { %v2059_v42 = vsel %vm501_vm9, %v18367_v38, 0.0 }
 0x7ca   :  { %2060 = vadd.xlane.f32.xlu1 %v2059_v42 }
 0x7db   :  { %2229 = vrot.lane.b32.xlu1 %v18967_v61, %s18711_s28 }
 0x7dc   :  { %2077 = vrot.lane.b32.xlu0 %v18957_v57, %s18711_s28 }
 0x7df   :  { %2381 = vrot.lane.b32.xlu1 %v18973_v1, %s18711_s28 }
 0x818   :  { %v19326_v29 = vpop.f32.mrb[26].mxu1 }
 0x819   :  { %v17241_v33 = vpop.f32.mrb[27].mxu1 }
 0x81c   :  { %v19328_v45 = vpop.f32.mrb[28].mxu1 }
 0x81d   :  { %v17251_v19 = vpop.f32.mrb[29].mxu1 }
 0x822   :  { %v2049_v49 = vpop.xlane.xlu1 %2048 }
 0x823   :  { %18368 = vrcp.f32 %v2049_v49 }
 0x82d   :  { %v18369_v4 = vpop.eup %18368 }
 0x82e   :  { %v2071_v17 = vmul.f32 %v18369_v4, %v18363_v21 }
 0x84d   :  { %v19330_v37 = vpop.f32.mrb[30].mxu1 }
 0x84e   :  { %v17261_v53 = vpop.f32.mrb[31].mxu1 }
 0x851   :  { %v2833_v51 = vpop.f32.mrb[32].mxu1 }
 0x852   :  { %v3227_v60 = vmul.f32 0.35355338, %v2833_v51  ;;  %v17288_v62 = vpop.f32.mrb[33].mxu1 }
 0x853   :  { %v2055_v0 = vpop.xlane.xlu0 %2054 }
 0x854   :  { %18370 = vrcp.f32 %v2055_v0  ;;  %v19334_v7 = vsel %vm19091_vm2, -1e+09, %v3227_v60 }
 0x855   :  { %v2911_v8 = vpop.f32.mrb[34].mxu1  ;;  %v3239_v10 = vsel %vm501_vm9, %v19334_v7, -inf }
 0x856   :  { %v3228_v54 = vmul.f32 0.35355338, %v2911_v8  ;;  %v17293_v5 = vpop.f32.mrb[35].mxu1  ;;  %3240 = vmax.xlane.f32.xlu0 %v3239_v10 }
 0x857   :  { %v2061_v11 = vpop.xlane.xlu1 %2060  ;;  %v2078_v14 = vpop.permute.xlu0 %2077 }
 0x858   :  { %18372 = vrcp.f32 %v2061_v11  ;;  %17233 = vmatpush3.msra.mxu0 %v2078_v14  ;;  %v3234_v16 = vsel %vm19042_vm13, -1e+09, %v3228_v54  ;;  %v19372_v14 = vld [vmem:[%s18768_s8] sm:$0xff] }
 0x859   :  { %17235 = vmatmul.mubr.msk.f32.vlgmr.msra.gmra.mrb[22].mxu0 %vm501_vm9, %v2071_v17  ;;  %v2989_v18 = vpop.f32.mrb[36].mxu1  ;;  %v3242_v20 = vsel %vm501_vm9, %v3234_v16, -inf  ;;  %17242 = vmatprep.subr.mxu0 %v18704_v22 }
 0x85a   :  { %v3229_v23 = vmul.f32 0.35355338, %v2989_v18  ;;  %v17298_v25 = vpop.f32.mrb[37].mxu1  ;;  %3243 = vmax.xlane.f32.xlu1 %v3242_v20  ;;  %17244 = vmatprep.mubr.msk.f32.mxu0 %vm18705_vm8, %v18704_v22 }
 0x85b   :  { %v2230_v27 = vpop.permute.xlu1 %2229 }
 0x85c   :  { %17243 = vmatpush3.msra.mxu0 %v2230_v27  ;;  %v3235_v21 = vsel %vm19110_vm5, -1e+09, %v3229_v23 }
 0x85d   :  { %v3067_v28 = vpop.f32.mrb[38].mxu1  ;;  %v3245_v30 = vsel %vm501_vm9, %v3235_v21, -inf  ;;  %17252 = vmatprep.subr.mxu0 %v18704_v22 }
 0x85e   :  { %v18371_v15 = vpop.eup %18370  ;;  %v3230_v26 = vmul.f32 0.35355338, %v3067_v28  ;;  %v17303_v35 = vpop.f32.mrb[39].mxu1  ;;  %3246 = vmax.xlane.f32.xlu0 %v3245_v30 }
 0x85f   :  { %v2382_v42 = vpop.permute.xlu1 %2381  ;;  %v2073_v33 = vmul.f32 %v18371_v15, %v18365_v34 }
 0x860   :  { %v3236_v19 = vsel %vm19053_vm14, -1e+09, %v3230_v26 }
 0x861   :  { %17245 = vmatmul.mubr.msk.f32.vlgmr.msra.gmra.mrb[24].mxu0 %vm501_vm9, %v2073_v33  ;;  %v3145_v49 = vpop.f32.mrb[40].mxu1  ;;  %v3248_v53 = vsel %vm501_vm9, %v3236_v19, -inf }
 0x862   :  { %v18373_v51 = vpop.eup %18372  ;;  %17253 = vmatpush3.msra.mxu0 %v2382_v42  ;;  %v3231_v60 = vmul.f32 0.35355338, %v3145_v49  ;;  %v17308_v62 = vpop.f32.mrb[41].mxu1  ;;  %3249 = vmax.xlane.f32.xlu0 %v3248_v53 }
 0x863   :  { %17254 = vmatprep.mubr.msk.f32.mxu0 %vm18705_vm8, %v18704_v22  ;;  %v2075_v0 = vmul.f32 %v18373_v51, %v18367_v38  ;;  %v435_v38 = vld [vmem:[%s18768_s8 + $0x8] sm:$0xff] }
 0x864   :  { %v3237_v34 = vsel %vm19118_vm6, -1e+09, %v3231_v60  ;;  %17262 = vmatprep.subr.mxu0 %v435_v38 }
 0x865   :  { %17255 = vmatmul.mubr.msk.f32.vlgmr.msra.gmra.mrb[26].mxu0 %vm501_vm9, %v2075_v0  ;;  %v3223_v4 = vpop.f32.mrb[42].mxu1  ;;  %v3251_v8 = vsel %vm501_vm9, %v3237_v34, -inf }
 0x866   :  { %v3232_v10 = vmul.f32 0.35355338, %v3223_v4  ;;  %v17313_v54 = vpop.f32.mrb[43].mxu1  ;;  %3252 = vmax.xlane.f32.xlu1 %v3251_v8  ;;  %17263 = vmatpush3.msra.mxu0 %v435_v38 }
 0x867   :  { %17273 = vmatprep.subr.mxu0 %v19372_v14 }
 0x868   :  { %v3238_v5 = vsel %vm19063_vm15, -1e+09, %v3232_v10 }
 0x869   :  { %v3254_v11 = vsel %vm501_vm9, %v3238_v5, -inf }
 0x86a   :  { %3255 = vmax.xlane.f32.xlu0 %v3254_v11 }
 0x877   :  { %3305 = vrot.lane.b32.xlu1 %v18957_v57, %s18714_s7 }
 0x87b   :  { %3457 = vrot.lane.b32.xlu1 %v18967_v61, %s18714_s7 }
 0x87f   :  { %3533 = vrot.lane.b32.xlu1 %v18963_v59, %s18714_s7 }
 0x880   :  { %3381 = vrot.lane.b32.xlu0 %v18955_v55, %s18714_s7 }
 0x8e3   :  { %v3241_v17 = vpop.xlane.xlu0 %3240 }
 0x8e4   :  { %v3257_v18 = vsub.f32 %v19334_v7, %v3241_v17 }
 0x8e6   :  { %v3263_v20 = vmul.f32 1.442695, %v3257_v18 }
 0x8e7   :  { %v3244_v23 = vpop.xlane.xlu1 %3243 }
 0x8e8   :  { %18374 = vpow2.f32 %v3263_v20  ;;  %v3258_v25 = vsub.f32 %v3234_v16, %v3244_v23 }
 0x8ea   :  { %v3265_v27 = vmul.f32 1.442695, %v3258_v25 }
 0x8eb   :  { %v3247_v28 = vpop.xlane.xlu0 %3246 }
 0x8ec   :  { %18376 = vpow2.f32 %v3265_v27  ;;  %v3259_v30 = vsub.f32 %v3235_v21, %v3247_v28 }
 0x8ee   :  { %v3267_v15 = vmul.f32 1.442695, %v3259_v30 }
 0x8ef   :  { %v3250_v26 = vpop.xlane.xlu0 %3249 }
 0x8f0   :  { %18378 = vpow2.f32 %v3267_v15  ;;  %v3260_v35 = vsub.f32 %v3236_v19, %v3250_v26 }
 0x8f2   :  { %v19376_v42 = vpop.eup %18374  ;;  %v3269_v33 = vmul.f32 1.442695, %v3260_v35 }
 0x8f3   :  { %v3253_v49 = vpop.xlane.xlu1 %3252  ;;  %v3275_v53 = vsel %vm501_vm9, %v19376_v42, 0.0 }
 0x8f4   :  { %18380 = vpow2.f32 %v3269_v33  ;;  %v3261_v7 = vsub.f32 %v3237_v34, %v3253_v49  ;;  %3276 = vadd.xlane.f32.xlu1 %v3275_v53  ;;  %v436_v33 = vld [vmem:[%s18768_s8 + $0x10] sm:$0xff] }
 0x8f6   :  { %v19380_v51 = vpop.eup %18376  ;;  %v3271_v16 = vmul.f32 1.442695, %v3261_v7 }
 0x8f7   :  { %v3256_v60 = vpop.xlane.xlu0 %3255  ;;  %v3278_v21 = vsel %vm501_vm9, %v19380_v51, 0.0 }
 0x8f8   :  { %18382 = vpow2.f32 %v3271_v16  ;;  %v3262_v62 = vsub.f32 %v3238_v5, %v3256_v60  ;;  %3279 = vadd.xlane.f32.xlu0 %v3278_v21 }
 0x8fa   :  { %v19384_v19 = vpop.eup %18378  ;;  %v3273_v0 = vmul.f32 1.442695, %v3262_v62 }
 0x8fb   :  { %v3382_v4 = vpop.permute.xlu0 %3381  ;;  %v3281_v8 = vsel %vm501_vm9, %v19384_v19, 0.0 }
 0x8fc   :  { %18384 = vpow2.f32 %v3273_v0  ;;  %3282 = vadd.xlane.f32.xlu1 %v3281_v8  ;;  %17320 = vmatpush3.msra.mxu1 %v3382_v4 }
 0x8fd   :  { %17329 = vmatprep.subr.mxu1 %v18704_v22 }
 0x8fe   :  { %v19389_v34 = vpop.eup %18380 }
 0x8ff   :  { %v3284_v10 = vsel %vm501_vm9, %v19389_v34, 0.0 }
 0x900   :  { %3285 = vadd.xlane.f32.xlu0 %v3284_v10 }
 0x902   :  { %v19393_v54 = vpop.eup %18382 }
 0x903   :  { %v3287_v5 = vsel %vm501_vm9, %v19393_v54, 0.0 }
 0x904   :  { %3288 = vadd.xlane.f32.xlu1 %v3287_v5 }
 0x906   :  { %v19397_v11 = vpop.eup %18384 }
 0x907   :  { %v3290_v38 = vsel %vm501_vm9, %v19397_v11, 0.0 }
 0x908   :  { %3291 = vadd.xlane.f32.xlu0 %v3290_v38 }
 0x915   :  { %3685 = vrot.lane.b32.xlu1 %v18969_v63, %s18714_s7 }
 0x919   :  { %3880 = vrot.lane.b32.xlu1 %v18957_v57, %s18715_s10 }
 0x91d   :  { %3958 = vrot.lane.b32.xlu1 %v18955_v55, %s18715_s10 }
 0x91e   :  { %3609 = vrot.lane.b32.xlu0 %v18973_v1, %s18714_s7 }
 0x921   :  { %4116 = vrot.lane.b32.xlu1 %v18963_v59, %s18716_s11 }
 0x922   :  { %3882 = vrot.lane.b32.xlu0 %v18957_v57, %s18716_s11 }
 0x925   :  { %4114 = vrot.lane.b32.xlu1 %v18963_v59, %s18715_s10 }
 0x926   :  { %3960 = vrot.lane.b32.xlu0 %v18955_v55, %s18716_s11 }
 0x929   :  { %4272 = vrot.lane.b32.xlu1 %v18969_v63, %s18716_s11 }
 0x92a   :  { %4038 = vrot.lane.b32.xlu0 %v18967_v61, %s18716_s11 }
 0x92c   :  { %v2149_v17 = vpop.f32.mrb[22].mxu0 }
 0x92d   :  { %v17236_v18 = vpop.f32.mrb[23].mxu0  ;;  %17264 = vmatprep.mubr.msk.f32.mxu0 %vm501_vm9, %v2149_v17  ;;  %4270 = vrot.lane.b32.xlu1 %v18969_v63, %s18715_s10 }
 0x92e   :  { %17265 = vmatmul.mubr.msk.f32.vlgmr.msra.gmra.mrb[28].mxu0 %vm501_vm9, %v19326_v29  ;;  %4036 = vrot.lane.b32.xlu0 %v18967_v61, %s18715_s10 }
 0x92f   :  { %17274 = vmatpush3.msra.mxu0 %v19372_v14  ;;  %v3306_v14 = vpop.permute.xlu1 %3305 }
 0x930   :  { %17314 = vmatprep.subr.mxu0 %v18704_v22 }
 0x932   :  { %4194 = vrot.lane.b32.xlu0 %v18973_v1, %s18716_s11 }
 0x934   :  { %v2301_v20 = vpop.f32.mrb[24].mxu0 }
 0x935   :  { %v17246_v23 = vpop.f32.mrb[25].mxu0  ;;  %17267 = vmatprep.mubr.msk.f32.mxu0 %vm501_vm9, %v2301_v20 }
 0x936   :  { %17268 = vmatmul.mubr.msk.f32.gmra.mrb[30].mxu0 %vm501_vm9, %v19328_v45  ;;  %4192 = vrot.lane.b32.xlu0 %v18973_v1, %s18715_s10 }
 0x938   :  { %v2453_v29 = vpop.f32.mrb[26].mxu0 }
 0x939   :  { %v17256_v25 = vpop.f32.mrb[27].mxu0  ;;  %17270 = vmatprep.mubr.msk.f32.mxu0 %vm501_vm9, %v2453_v29 }
 0x93a   :  { %17271 = vmatmul.mubr.msk.f32.gmra.mrb[32].mxu0 %vm501_vm9, %v19330_v37 }
 0x93b   :  { %17275 = vmatprep.mubr.msk.f32.mxu0 %vm501_vm9, %v19236_v3  ;;  %v3458_v3 = vpop.permute.xlu1 %3457 }
 0x93e   :  { %17276 = vmatmul.mubr.msk.f32.vlgmr.msra.gmra.mrb[28].mxu0 %vm501_vm9, %v19173_v36 }
 0x93f   :  { %17315 = vmatpush3.msra.mxu0 %v3306_v14  ;;  %17278 = vmatprep.mubr.msk.f32.mxu0 %vm501_vm9, %v19238_v6  ;;  %v3534_v36 = vpop.permute.xlu1 %3533 }
 0x940   :  { %17324 = vmatprep.subr.mxu0 %v18704_v22 }
 0x942   :  { %17279 = vmatmul.mubr.msk.f32.gmra.mrb[30].mxu0 %vm501_vm9, %v19175_v39 }
 0x943   :  { %17281 = vmatprep.mubr.msk.f32.mxu0 %vm501_vm9, %v19241_v9 }
 0x946   :  { %17282 = vmatmul.mubr.msk.f32.gmra.mrb[32].mxu0 %vm501_vm9, %v19178_v58 }
 0x947   :  { %17316 = vmatprep.mubr.msk.f32.mxu0 %vm18705_vm8, %v18704_v22 }
 0x981   :  { %v3277_v45 = vpop.xlane.xlu1 %3276 }
 0x982   :  { %18386 = vrcp.f32 %v3277_v45 }
 0x985   :  { %v3280_v37 = vpop.xlane.xlu0 %3279 }
 0x986   :  { %18388 = vrcp.f32 %v3280_v37 }
 0x989   :  { %v3283_v6 = vpop.xlane.xlu1 %3282 }
 0x98a   :  { %18390 = vrcp.f32 %v3283_v6 }
 0x98c   :  { %v18387_v27 = vpop.eup %18386 }
 0x98d   :  { %v3299_v39 = vmul.f32 %v18387_v27, %v19376_v42  ;;  %v3286_v28 = vpop.xlane.xlu0 %3285 }
 0x98e   :  { %18392 = vrcp.f32 %v3286_v28 }
 0x98f   :  { %17317 = vmatmul.mubr.msk.f32.vlgmr.msra.gmra.mrb[34].mxu0 %vm501_vm9, %v3299_v39 }
 0x990   :  { %v18389_v9 = vpop.eup %18388  ;;  %17325 = vmatpush3.msra.mxu0 %v3458_v3  ;;  %17326 = vmatprep.mubr.msk.f32.mxu0 %vm18705_vm8, %v18704_v22 }
 0x991   :  { %v3289_v58 = vpop.xlane.xlu1 %3288  ;;  %v3300_v30 = vmul.f32 %v18389_v9, %v19380_v51  ;;  %17334 = vmatprep.subr.mxu0 %v18704_v22 }
 0x992   :  { %18394 = vrcp.f32 %v3289_v58 }
 0x993   :  { %17322 = vmatmul.mubr.msk.f32.vlgmr.msra.gmra.mrb[44].mxu1 %vm501_vm9, %v3300_v30 }
 0x994   :  { %v18391_v15 = vpop.eup %18390  ;;  %17330 = vmatpush3.msra.mxu1 %v3534_v36  ;;  %17331 = vmatprep.mubr.msk.f32.mxu1 %vm18705_vm8, %v18704_v22 }
 0x995   :  { %v3292_v26 = vpop.xlane.xlu0 %3291  ;;  %v3301_v35 = vmul.f32 %v18391_v15, %v19384_v19  ;;  %17339 = vmatprep.subr.mxu1 %v18704_v22  ;;  %v3686_v7 = vpop.permute.xlu1 %3685 }
 0x996   :  { %18396 = vrcp.f32 %v3292_v26 }
 0x997   :  { %17327 = vmatmul.mubr.msk.f32.vlgmr.msra.gmra.mrb[36].mxu0 %vm501_vm9, %v3301_v35 }
 0x998   :  { %v18393_v42 = vpop.eup %18392  ;;  %17336 = vmatprep.mubr.msk.f32.mxu0 %vm18705_vm8, %v18704_v22 }
 0x999   :  { %v3610_v49 = vpop.permute.xlu0 %3609  ;;  %v3302_v53 = vmul.f32 %v18393_v42, %v19389_v34  ;;  %v3881_v0 = vpop.permute.xlu1 %3880 }
 0x99a   :  { %17335 = vmatpush3.msra.mxu0 %v3610_v49 }
 0x99b   :  { %17332 = vmatmul.mubr.msk.f32.vlgmr.msra.gmra.mrb[46].mxu1 %vm501_vm9, %v3302_v53  ;;  %17344 = vmatprep.subr.mxu0 %v436_v33 }
 0x99c   :  { %v18395_v51 = vpop.eup %18394  ;;  %17340 = vmatpush3.msra.mxu1 %v3686_v7  ;;  %17341 = vmatprep.mubr.msk.f32.mxu1 %vm18705_vm8, %v18704_v22 }
 0x99d   :  { %v3883_v16 = vpop.permute.xlu0 %3882  ;;  %v3303_v60 = vmul.f32 %v18395_v51, %v19393_v54  ;;  %17355 = vmatprep.subr.mxu1 %v18704_v22  ;;  %v3959_v34 = vpop.permute.xlu1 %3958 }
 0x99f   :  { %17337 = vmatmul.mubr.msk.f32.vlgmr.msra.gmra.mrb[38].mxu0 %vm501_vm9, %v3303_v60 }
 0x9a0   :  { %v18397_v21 = vpop.eup %18396  ;;  %17345 = vmatpush3.msra.mxu0 %v436_v33 }
 0x9a1   :  { %v3961_v62 = vpop.permute.xlu0 %3960  ;;  %v3304_v19 = vmul.f32 %v18397_v21, %v19397_v11  ;;  %17370 = vmatprep.subr.mxu0 %v18704_v22  ;;  %v4117_v17 = vpop.permute.xlu1 %4116 }
 0x9a3   :  { %17342 = vmatmul.mubr.msk.f32.vlgmr.msra.gmra.mrb[48].mxu1 %vm501_vm9, %v3304_v19 }
 0x9a4   :  { %17356 = vmatpush3.xpose.msk.msra.mxu1 %vm501_vm9, %v3883_v16  ;;  %17357 = vmatprep.mubr.msk.f32.mxu1 %vm18705_vm8, %v18704_v22 }
 0x9a5   :  { %v4039_v4 = vpop.permute.xlu0 %4038  ;;  %17360 = vmatprep.subr.mxu1 %v18704_v22  ;;  %v4115_v14 = vpop.permute.xlu1 %4114 }
 0x9a7   :  { %17358 = vmatmul.mubr.msk.f32.vlgmr.msra.gmra.mrb[50].mxu1 %vm501_vm9, %v3881_v0 }
 0x9a8   :  { %17361 = vmatpush3.xpose.msk.msra.mxu1 %vm501_vm9, %v3961_v62  ;;  %17362 = vmatprep.mubr.msk.f32.mxu1 %vm18705_vm8, %v18704_v22 }
 0x9a9   :  { %v4037_v8 = vpop.permute.xlu0 %4036  ;;  %17365 = vmatprep.subr.mxu1 %v18704_v22  ;;  %v4273_v6 = vpop.permute.xlu1 %4272 }
 0x9ab   :  { %17363 = vmatmul.mubr.msk.f32.vlgmr.msra.gmra.mrb[52].mxu1 %vm501_vm9, %v3959_v34 }
 0x9ac   :  { %17366 = vmatpush3.xpose.msk.msra.mxu1 %vm501_vm9, %v4039_v4  ;;  %17367 = vmatprep.mubr.msk.f32.mxu1 %vm18705_vm8, %v18704_v22 }
 0x9ad   :  { %v4195_v10 = vpop.permute.xlu0 %4194  ;;  %17375 = vmatprep.subr.mxu1 %v18704_v22  ;;  %v4271_v58 = vpop.permute.xlu1 %4270 }
 0x9af   :  { %17368 = vmatmul.mubr.msk.f32.vlgmr.msra.gmra.mrb[54].mxu1 %vm501_vm9, %v4037_v8 }
 0x9b0   :  { %17376 = vmatpush3.xpose.msk.msra.mxu1 %vm501_vm9, %v4195_v10  ;;  %17377 = vmatprep.mubr.msk.f32.mxu1 %vm18705_vm8, %v18704_v22 }
 0x9b1   :  { %v4193_v54 = vpop.permute.xlu0 %4192  ;;  %17385 = vmatprep.subr.mxu1 %v18704_v22 }
 0x9b3   :  { %17378 = vmatmul.mubr.msk.f32.vlgmr.msra.gmra.mrb[56].mxu1 %vm501_vm9, %v4193_v54 }
 0x9b4   :  { %17387 = vmatprep.mubr.msk.f32.mxu1 %vm18705_vm8, %v18704_v22 }
 0xa62   :  { %v3377_v5 = vpop.f32.mrb[34].mxu0 }
 0xa63   :  { %v17318_v11 = vpop.f32.mrb[35].mxu0  ;;  %17346 = vmatprep.mubr.msk.f32.mxu0 %vm501_vm9, %v3377_v5 }
 0xa66   :  { %v3453_v38 = vpop.f32.mrb[44].mxu1 }
 0xa67   :  { %v17323_v18 = vpop.f32.mrb[45].mxu1  ;;  %17347 = vmatmul.mubr.msk.f32.vlgmr.msra.gmra.mrb[28].mxu0 %vm501_vm9, %v3453_v38 }
 0xa68   :  { %17371 = vmatpush3.xpose.msk.msra.mxu0 %vm501_vm9, %v4117_v17 }
 0xa69   :  { %17380 = vmatprep.subr.mxu0 %v18704_v22 }
 0xa6a   :  { %v3529_v20 = vpop.f32.mrb[36].mxu0 }
 0xa6b   :  { %v17328_v23 = vpop.f32.mrb[37].mxu0  ;;  %17349 = vmatprep.mubr.msk.f32.mxu0 %vm501_vm9, %v3529_v20 }
 0xa6e   :  { %v3605_v29 = vpop.f32.mrb[46].mxu1 }
 0xa6f   :  { %v17333_v25 = vpop.f32.mrb[47].mxu1  ;;  %17350 = vmatmul.mubr.msk.f32.gmra.mrb[30].mxu0 %vm501_vm9, %v3605_v29 }
 0xa72   :  { %v3681_v3 = vpop.f32.mrb[38].mxu0 }
 0xa73   :  { %v17338_v36 = vpop.f32.mrb[39].mxu0  ;;  %17352 = vmatprep.mubr.msk.f32.mxu0 %vm501_vm9, %v3681_v3 }
 0xa76   :  { %v3757_v45 = vpop.f32.mrb[48].mxu1 }
 0xa77   :  { %v17343_v37 = vpop.f32.mrb[49].mxu1  ;;  %17353 = vmatmul.mubr.msk.f32.gmra.mrb[32].mxu0 %vm501_vm9, %v3757_v45 }
 0xa78   :  { %17372 = vmatprep.mubr.msk.f32.mxu0 %vm18705_vm8, %v18704_v22 }
 0xa7a   :  { %v3954_v27 = vpop.f32.mrb[50].mxu1 }
 0xa7b   :  { %v4348_v39 = vmul.f32 0.35355338, %v3954_v27  ;;  %v17359_v28 = vpop.f32.mrb[51].mxu1  ;;  %17373 = vmatmul.mubr.msk.f32.vlgmr.msra.gmra.mrb[40].mxu0 %vm501_vm9, %v4115_v14 }
 0xa7c   :  { %17381 = vmatpush3.xpose.msk.msra.mxu0 %vm501_vm9, %v4273_v6  ;;  %17382 = vmatprep.mubr.msk.f32.mxu0 %vm18705_vm8, %v18704_v22 }
 0xa7d   :  { %v4354_v9 = vsel %vm19091_vm2, -1e+09, %v4348_v39  ;;  %17390 = vmatprep.subr.mxu0 %v18704_v22 }
 0xa7e   :  { %v4032_v30 = vpop.f32.mrb[52].mxu1  ;;  %v4360_v15 = vsel %vm501_vm9, %v4354_v9, -inf }
 0xa7f   :  { %v4349_v26 = vmul.f32 0.35355338, %v4032_v30  ;;  %17383 = vmatmul.mubr.msk.f32.vlgmr.msra.gmra.mrb[42].mxu0 %vm501_vm9, %v4271_v58  ;;  %4361 = vmax.xlane.f32.xlu0 %v4360_v15  ;;  %v17364_v35 = vpop.f32.mrb[53].mxu1 }
 0xa80   :  { %17392 = vmatprep.mubr.msk.f32.mxu0 %vm18705_vm8, %v18704_v22 }
 0xa81   :  { %v4355_v42 = vsel %vm19042_vm13, -1e+09, %v4349_v26 }
 0xa82   :  { %v4110_v33 = vpop.f32.mrb[54].mxu1  ;;  %v4363_v49 = vsel %vm501_vm9, %v4355_v42, -inf }
 0xa83   :  { %v4350_v53 = vmul.f32 0.35355338, %v4110_v33  ;;  %4364 = vmax.xlane.f32.xlu1 %v4363_v49  ;;  %v17369_v7 = vpop.f32.mrb[55].mxu1 }
 0xa85   :  { %v4356_v51 = vsel %vm19110_vm5, -1e+09, %v4350_v53 }
 0xa86   :  { %v4266_v16 = vpop.f32.mrb[56].mxu1  ;;  %v4366_v60 = vsel %vm501_vm9, %v4356_v51, -inf }
 0xa87   :  { %v4352_v21 = vmul.f32 0.35355338, %v4266_v16  ;;  %4367 = vmax.xlane.f32.xlu0 %v4366_v60  ;;  %v17379_v62 = vpop.f32.mrb[57].mxu1 }
 0xa89   :  { %v4358_v19 = vsel %vm19118_vm6, -1e+09, %v4352_v21 }
 0xa8a   :  { %v4372_v0 = vsel %vm501_vm9, %v4358_v19, -inf }
 0xa8b   :  { %4373 = vmax.xlane.f32.xlu1 %v4372_v0 }
 0xb0c   :  { %v4362_v4 = vpop.xlane.xlu0 %4361 }
 0xb0d   :  { %v4378_v8 = vsub.f32 %v4354_v9, %v4362_v4 }
 0xb0f   :  { %v4384_v34 = vmul.f32 1.442695, %v4378_v8 }
 0xb10   :  { %v4365_v10 = vpop.xlane.xlu1 %4364 }
 0xb11   :  { %18398 = vpow2.f32 %v4384_v34  ;;  %v4379_v36 = vsub.f32 %v4355_v42, %v4365_v10 }
 0xb13   :  { %v4386_v45 = vmul.f32 1.442695, %v4379_v36  ;;  %v437_v36 = vld [vmem:[%s18768_s8 + $0x18] sm:$0xff] }
 0xb14   :  { %v4368_v54 = vpop.xlane.xlu0 %4367 }
 0xb15   :  { %v4380_v5 = vsub.f32 %v4356_v51, %v4368_v54 }
 0xb17   :  { %v4388_v11 = vmul.f32 1.442695, %v4380_v5 }
 0xb18   :  { %v4374_v38 = vpop.xlane.xlu1 %4373 }
 0xb19   :  { %18400 = vpow2.f32 %v4388_v11  ;;  %v4382_v17 = vsub.f32 %v4358_v19, %v4374_v38 }
 0xb1b   :  { %v18399_v18 = vpop.eup %18398  ;;  %v4392_v20 = vmul.f32 1.442695, %v4382_v17 }
 0xb1c   :  { %v4396_v23 = vsel %vm501_vm9, %v18399_v18, 0.0 }
 0xb1d   :  { %18402 = vpow2.f32 %v4392_v20  ;;  %4397 = vadd.xlane.f32.xlu1 %v4396_v23 }
 0xb1e   :  { %18404 = vpow2.f32 %v4386_v45 }
 0xb23   :  { %v18401_v29 = vpop.eup %18400 }
 0xb24   :  { %v4402_v25 = vsel %vm501_vm9, %v18401_v29, 0.0 }
 0xb25   :  { %4403 = vadd.xlane.f32.xlu1 %v4402_v25 }
 0xb27   :  { %v19534_v14 = vpop.eup %18402 }
 0xb28   :  { %v4408_v3 = vsel %vm501_vm9, %v19534_v14, 0.0 }
 0xb29   :  { %4409 = vadd.xlane.f32.xlu1 %v4408_v3 }
 0xb3a   :  { %4426 = vrot.lane.b32.xlu1 %v18957_v57, %s18717_s15 }
 0xb3e   :  { %4578 = vrot.lane.b32.xlu1 %v18967_v61, %s18717_s15 }
 0xb42   :  { %4654 = vrot.lane.b32.xlu1 %v18963_v59, %s18717_s15 }
 0xb46   :  { %4806 = vrot.lane.b32.xlu1 %v18969_v63, %s18717_s15  ;;  %v18405_v63 = vpop.eup %18404 }
 0xb47   :  { %v4399_v30 = vsel %vm501_vm9, %v18405_v63, 0.0 }
 0xb4e   :  { %v4188_v37 = vpop.f32.mrb[40].mxu0 }
 0xb4f   :  { %v4351_v6 = vmul.f32 0.35355338, %v4188_v37  ;;  %v17374_v27 = vpop.f32.mrb[41].mxu0 }
 0xb51   :  { %v4357_v39 = vsel %vm19053_vm14, -1e+09, %v4351_v6 }
 0xb52   :  { %v4344_v28 = vpop.f32.mrb[42].mxu0  ;;  %v4369_v57 = vsel %vm501_vm9, %v4357_v39, -inf }
 0xb53   :  { %v4353_v9 = vmul.f32 0.35355338, %v4344_v28  ;;  %v17384_v61 = vpop.f32.mrb[43].mxu0  ;;  %4370 = vmax.xlane.f32.xlu0 %v4369_v57 }
 0xb55   :  { %v4359_v59 = vsel %vm19063_vm15, -1e+09, %v4353_v9 }
 0xb56   :  { %v4375_v58 = vsel %vm501_vm9, %v4359_v59, -inf }
 0xb57   :  { %4376 = vmax.xlane.f32.xlu0 %v4375_v58 }
 0xb5b   :  { %4400 = vadd.xlane.f32.xlu0 %v4399_v30 }
 0xb71   :  { %4502 = vrot.lane.b32.xlu0 %v18955_v55, %s18717_s15 }
 0xbaa   :  { %v4398_v15 = vpop.xlane.xlu1 %4397 }
 0xbab   :  { %18406 = vrcp.f32 %v4398_v15  ;;  %v16354_v15 = vld [vmem:[%s18773_s14] ss:$0 sm:$0xff] }
 0xbb2   :  { %v4404_v26 = vpop.xlane.xlu1 %4403 }
 0xbb3   :  { %18408 = vrcp.f32 %v4404_v26 }
 0xbb5   :  { %v18407_v42 = vpop.eup %18406 }
 0xbb6   :  { %v4410_v35 = vpop.xlane.xlu1 %4409  ;;  %v4420_v49 = vmul.f32 %v18407_v42, %v18399_v18 }
 0xbba   :  { %v4427_v33 = vpop.permute.xlu1 %4426 }
 0xbbb   :  { %17386 = vmatpush3.msra.mxu1 %v4427_v33 }
 0xbbc   :  { %17388 = vmatmul.mubr.msk.f32.vlgmr.msra.gmra.mrb[58].mxu1 %vm501_vm9, %v4420_v49  ;;  %17395 = vmatprep.subr.mxu1 %v18704_v22 }
 0xbbd   :  { %v18409_v53 = vpop.eup %18408  ;;  %17397 = vmatprep.mubr.msk.f32.mxu1 %vm18705_vm8, %v18704_v22 }
 0xbbe   :  { %v4579_v7 = vpop.permute.xlu1 %4578  ;;  %v4422_v51 = vmul.f32 %v18409_v53, %v18401_v29 }
 0xbbf   :  { %17396 = vmatpush3.msra.mxu1 %v4579_v7 }
 0xbc0   :  { %17398 = vmatmul.mubr.msk.f32.vlgmr.msra.gmra.mrb[60].mxu1 %vm501_vm9, %v4422_v51  ;;  %17405 = vmatprep.subr.mxu1 %v18704_v22 }
 0xbc1   :  { %17407 = vmatprep.mubr.msk.f32.mxu1 %vm18705_vm8, %v18704_v22 }
 0xbc2   :  { %v4655_v38 = vpop.permute.xlu1 %4654 }
 0xbc6   :  { %v4807_v45 = vpop.permute.xlu1 %4806 }
 0xbe0   :  { %v4371_v55 = vpop.xlane.xlu0 %4370 }
 0xbe1   :  { %v4381_v16 = vsub.f32 %v4357_v39, %v4371_v55 }
 0xbe3   :  { %v4390_v60 = vmul.f32 1.442695, %v4381_v16 }
 0xbe4   :  { %v4377_v21 = vpop.xlane.xlu0 %4376 }
 0xbe5   :  { %18410 = vpow2.f32 %v4390_v60  ;;  %v4383_v62 = vsub.f32 %v4359_v59, %v4377_v21 }
 0xbe7   :  { %v4394_v19 = vmul.f32 1.442695, %v4383_v62 }
 0xbe8   :  { %v4401_v0 = vpop.xlane.xlu0 %4400 }
 0xbe9   :  { %18412 = vpow2.f32 %v4394_v19 }
 0xbea   :  { %18414 = vrcp.f32 %v4401_v0 }
 0xbeb   :  { %18416 = vrcp.f32 %v4410_v35 }
 0xbec   :  { %v4503_v4 = vpop.permute.xlu0 %4502 }
 0xbed   :  { %17391 = vmatpush3.msra.mxu0 %v4503_v4 }
 0xbee   :  { %17400 = vmatprep.subr.mxu0 %v18704_v22 }
 0xbef   :  { %v18411_v8 = vpop.eup %18410 }
 0xbf0   :  { %v4405_v34 = vsel %vm501_vm9, %v18411_v8, 0.0 }
 0xbf1   :  { %4406 = vadd.xlane.f32.xlu0 %v4405_v34 }
 0xbf3   :  { %v18413_v10 = vpop.eup %18412 }
 0xbf4   :  { %v18415_v54 = vpop.eup %18414  ;;  %v4411_v5 = vsel %vm501_vm9, %v18413_v10, 0.0 }
 0xbf5   :  { %4412 = vadd.xlane.f32.xlu0 %v4411_v5  ;;  %v4421_v11 = vmul.f32 %v18415_v54, %v18405_v63  ;;  %v18417_v20 = vpop.eup %18416 }
 0xbf6   :  { %v4424_v29 = vmul.f32 %v18417_v20, %v19534_v14 }
 0xbf7   :  { %17393 = vmatmul.mubr.msk.f32.vlgmr.msra.gmra.mrb[44].mxu0 %vm501_vm9, %v4421_v11 }
 0xbf8   :  { %17401 = vmatpush3.msra.mxu0 %v4655_v38  ;;  %17402 = vmatprep.mubr.msk.f32.mxu0 %vm18705_vm8, %v18704_v22 }
 0xbf9   :  { %17410 = vmatprep.subr.mxu0 %v18704_v22 }
 0xc0b   :  { %4730 = vrot.lane.b32.xlu0 %v18973_v1, %s18717_s15 }
 0xc7e   :  { %v4407_v17 = vpop.xlane.xlu0 %4406 }
 0xc7f   :  { %18418 = vrcp.f32 %v4407_v17 }
 0xc82   :  { %v4413_v18 = vpop.xlane.xlu0 %4412 }
 0xc83   :  { %18420 = vrcp.f32 %v4413_v18 }
 0xc86   :  { %v4731_v23 = vpop.permute.xlu0 %4730 }
 0xc87   :  { %17406 = vmatpush3.msra.mxu1 %v4731_v23 }
 0xc88   :  { %17408 = vmatmul.mubr.msk.f32.vlgmr.msra.gmra.mrb[62].mxu1 %vm501_vm9, %v4424_v29 }
 0xc89   :  { %v18419_v25 = vpop.eup %18418 }
 0xc8a   :  { %v4423_v3 = vmul.f32 %v18419_v25, %v18411_v8  ;;  %v5125_v25 = vld [vmem:[%s18788_s30] sm:$0xff] }
 0xc8c   :  { %17403 = vmatmul.mubr.msk.f32.vlgmr.msra.gmra.mrb[46].mxu0 %vm501_vm9, %v4423_v3  ;;  %v5126_v3 = vld [vmem:[%s18788_s30 + $0x8] sm:$0xff] }
 0xc8d   :  { %v18421_v37 = vpop.eup %18420  ;;  %17411 = vmatpush3.msra.mxu0 %v4807_v45  ;;  %17412 = vmatprep.mubr.msk.f32.mxu0 %vm18705_vm8, %v18704_v22  ;;  %v5127_v45 = vld [vmem:[%s18788_s30 + $0x10] sm:$0xff] }
 0xc8e   :  { %v4425_v1 = vmul.f32 %v18421_v37, %v18413_v10  ;;  %17415 = vmatprep.subr.mxu0 %v437_v36  ;;  %v5128_v37 = vld [vmem:[%s18788_s30 + $0x18] sm:$0xff] }
 0xc8f   :  { %v4498_v6 = vpop.f32.mrb[58].mxu1 }
 0xc90   :  { %v17389_v27 = vpop.f32.mrb[59].mxu1  ;;  %17413 = vmatmul.mubr.msk.f32.vlgmr.msra.gmra.mrb[48].mxu0 %vm501_vm9, %v4425_v1  ;;  %v18132_v1 = vpack.c.bf16 %v5128_v37, %v5127_v45 }
 0xc91   :  { %17417 = vmatprep.mubr.msk.f32.mxu0 %vm501_vm9, %v4498_v6  ;;  %17416 = vmatpush3.msra.mxu0 %v437_v36  ;;  %v18128_v36 = vpack.c.bf16 %v5126_v3, %v5125_v25 }
 0xc93   :  { %v4650_v14 = vpop.f32.mrb[60].mxu1  ;;  %18129 = vmatprep.subr.bf16.mxu1 %v18128_v36 }
 0xc94   :  { %v17399_v39 = vpop.f32.mrb[61].mxu1  ;;  %18131 = vmatpush3.bf16.msra.mxu1 %v18128_v36 }
 0xc95   :  { %18133 = vmatprep.subr.bf16.mxu1 %v18132_v1 }
 0xc98   :  { %18135 = vmatpush3.bf16.msra.mxu1 %v18132_v1 }
 0xcca   :  { %v4574_v28 = vpop.f32.mrb[44].mxu0 }
 0xccb   :  { %v17394_v57 = vpop.f32.mrb[45].mxu0  ;;  %17418 = vmatmul.mubr.msk.f32.vlgmr.msra.gmra.mrb[28].mxu0 %vm501_vm9, %v4574_v28 }
 0xccc   :  { %17420 = vmatprep.mubr.msk.f32.mxu0 %vm501_vm9, %v4650_v14 }
 0xd5b   :  { %v4802_v9 = vpop.f32.mrb[62].mxu1 }
 0xd5c   :  { %v17409_v61 = vpop.f32.mrb[63].mxu1 }
 0xd5f   :  { %v4726_v59 = vpop.f32.mrb[46].mxu0 }
 0xd60   :  { %v17404_v58 = vpop.f32.mrb[47].mxu0  ;;  %17421 = vmatmul.mubr.msk.f32.gmra.mrb[30].mxu0 %vm501_vm9, %v4726_v59 }
 0xd61   :  { %17423 = vmatprep.mubr.msk.f32.mxu0 %vm501_vm9, %v4802_v9 }
 0xd63   :  { %v4878_v63 = vpop.f32.mrb[48].mxu0 }
 0xd64   :  { %v17414_v30 = vpop.f32.mrb[49].mxu0  ;;  %17424 = vmatmul.mubr.msk.f32.gmra.mrb[32].mxu0 %vm501_vm9, %v4878_v63 }
 0xd9e   :  { %v17419_v26 = vpop.f32.mrb[28].mxu0 }
 0xd9f   :  { %v5009_v35 = vadd.f32 %v17419_v26, %v16354_v15  ;;  %v4966_v42 = vpop.f32.mrb[29].mxu0 }
 0xda0   :  { %v5008_v33 = vadd.f32 %v16354_v15, %v4966_v42 }
 0xda1   :  { %v5015_v49 = vadd.f32 %v5009_v35, %v18928_v44 }
 0xda2   :  { %v5014_v53 = vadd.f32 %v5008_v33, %v18926_v43 }
 0xda3   :  { %v5025_v7 = vsel %vm320_vm7, %v5015_v49, 0.0 }
 0xda4   :  { %5026 = vadd.xlane.f32.xlu1 %v5025_v7  ;;  %v5022_v51 = vsel %vm320_vm7, %v5014_v53, 0.0 }
 0xda5   :  { %5023 = vadd.xlane.f32.xlu0 %v5022_v51 }
 0xe31   :  { %v5027_v62 = vpop.xlane.xlu1 %5026 }
 0xe32   :  { %v5024_v55 = vpop.xlane.xlu0 %5023  ;;  %v5042_v34 = vmul.f32 0.03125, %v5027_v62 }
 0xe33   :  { %v17422_v16 = vpop.f32.mrb[30].mxu0  ;;  %v5041_v60 = vmul.f32 0.03125, %v5024_v55 }
 0xe34   :  { %v4976_v21 = vpop.f32.mrb[31].mxu0  ;;  %v5011_v19 = vadd.f32 %v17422_v16, %v16354_v15  ;;  %v5048_v17 = vsub.f32 %v5015_v49, %v5042_v34 }
 0xe35   :  { %v5010_v0 = vadd.f32 %v16354_v15, %v4976_v21  ;;  %v19591_v44 = vsub.f32 %v5014_v53, %v5041_v60 }
 0xe36   :  { %v5017_v10 = vadd.f32 %v5011_v19, %v18932_v46 }
 0xe37   :  { %v5016_v4 = vadd.f32 %v5010_v0, %v18936_v48  ;;  %v17425_v8 = vpop.f32.mrb[32].mxu0  ;;  %v5053_v46 = vmul.f32 %v19591_v44, %v19591_v44  ;;  %v19629_v0 = vld [vmem:[%s18778_s19] ss:$0 sm:$0xff] }
 0xe38   :  { %v4986_v43 = vpop.f32.mrb[33].mxu0  ;;  %v5013_v54 = vadd.f32 %v17425_v8, %v16354_v15  ;;  %v5031_v48 = vsel %vm320_vm7, %v5017_v10, 0.0  ;;  %v19633_v8 = vld [vmem:[%s18783_s24] ss:$0 sm:$0xff] }
 0xe39   :  { %v5012_v5 = vadd.f32 %v16354_v15, %v4986_v43  ;;  %v5028_v11 = vsel %vm320_vm7, %v5016_v4, 0.0  ;;  %v5059_v29 = vsel %vm320_vm7, %v5053_v46, 0.0  ;;  %v5259_v46 = vld [vmem:[%s18798_s12 + $0x20] sm:$0xff] }
 0xe3a   :  { %5029 = vadd.xlane.f32.xlu0 %v5028_v11  ;;  %v5019_v18 = vadd.f32 %v5013_v54, %v18940_v50 }
 0xe3b   :  { %v5018_v38 = vadd.f32 %v5012_v5, %v18944_v52  ;;  %v5054_v52 = vmul.f32 %v5048_v17, %v5048_v17 }
 0xe3c   :  { %v5037_v23 = vsel %vm320_vm7, %v5019_v18, 0.0 }
 0xe3d   :  { %v5034_v20 = vsel %vm320_vm7, %v5018_v38, 0.0  ;;  %v5062_v50 = vsel %vm320_vm7, %v5054_v52, 0.0  ;;  %v5261_v52 = vld [vmem:[%s18798_s12 + $0x30] sm:$0xff] }
 0xe3e   :  { %5032 = vadd.xlane.f32.xlu0 %v5031_v48  ;;  %5035 = vadd.xlane.f32.xlu1 %v5034_v20  ;;  %v5258_v48 = vld [vmem:[%s18798_s12 + $0x18] sm:$0xff] }
 0xe42   :  { %5038 = vadd.xlane.f32.xlu0 %v5037_v23  ;;  %5060 = vadd.xlane.f32.xlu1 %v5059_v29  ;;  %v5260_v23 = vld [vmem:[%s18798_s12 + $0x28] sm:$0xff] }
 0xe43   :  { %v18144_v29 = vpack.c.bf16 %v5260_v23, %v5259_v46 }
 0xe46   :  { %5063 = vadd.xlane.f32.xlu0 %v5062_v50  ;;  %v5262_v50 = vld [vmem:[%s18798_s12 + $0x38] sm:$0xff] }
 0xe47   :  { %v18148_v25 = vpack.c.bf16 %v5262_v50, %v5261_v52 }
 0xec7   :  { %v5030_v6 = vpop.xlane.xlu0 %5029 }
 0xec8   :  { %v5043_v27 = vmul.f32 0.03125, %v5030_v6 }
 0xeca   :  { %v19608_v14 = vsub.f32 %v5016_v4, %v5043_v27 }
 0xecb   :  { %v5036_v39 = vpop.xlane.xlu1 %5035  ;;  %v5033_v28 = vpop.xlane.xlu0 %5032 }
 0xecc   :  { %v5045_v57 = vmul.f32 0.03125, %v5036_v39  ;;  %v5044_v9 = vmul.f32 0.03125, %v5033_v28  ;;  %v5055_v61 = vmul.f32 %v19608_v14, %v19608_v14 }
 0xece   :  { %v19612_v59 = vsub.f32 %v5018_v38, %v5045_v57  ;;  %v19614_v58 = vsub.f32 %v5017_v10, %v5044_v9  ;;  %v5065_v63 = vsel %vm320_vm7, %v5055_v61, 0.0  ;;  %v5256_v38 = vld [vmem:[%s18798_s12 + $0x8] sm:$0xff] }
 0xecf   :  { %v5061_v30 = vpop.xlane.xlu1 %5060  ;;  %5066 = vadd.xlane.f32.xlu1 %v5065_v63  ;;  %v5039_v15 = vpop.xlane.xlu0 %5038 }
 0xed0   :  { %v5077_v26 = vmul.f32 0.03125, %v5061_v30  ;;  %v5046_v35 = vmul.f32 0.03125, %v5039_v15  ;;  %v5057_v42 = vmul.f32 %v19612_v59, %v19612_v59  ;;  %v5056_v33 = vmul.f32 %v19614_v58, %v19614_v58 }
 0xed2   :  { %v5083_v49 = vadd.f32 1e-05, %v5077_v26  ;;  %v19621_v53 = vsub.f32 %v5019_v18, %v5046_v35  ;;  %v5071_v7 = vsel %vm320_vm7, %v5057_v42, 0.0  ;;  %v5068_v51 = vsel %vm320_vm7, %v5056_v33, 0.0  ;;  %v5257_v18 = vld [vmem:[%s18798_s12 + $0x10] sm:$0xff] }
 0xed3   :  { %5072 = vadd.xlane.f32.xlu1 %v5071_v7  ;;  %5069 = vadd.xlane.f32.xlu0 %v5068_v51  ;;  %v5064_v55 = vpop.xlane.xlu0 %5063  ;;  %v18140_v20 = vpack.c.bf16 %v5258_v48, %v5257_v18 }
 0xed4   :  { %18422 = vrsqrt.f32 %v5083_v49  ;;  %v5078_v16 = vmul.f32 0.03125, %v5064_v55  ;;  %v5058_v60 = vmul.f32 %v19621_v53, %v19621_v53 }
 0xed6   :  { %v5084_v21 = vadd.f32 1e-05, %v5078_v16  ;;  %v5074_v62 = vsel %vm320_vm7, %v5058_v60, 0.0 }
 0xed7   :  { %5075 = vadd.xlane.f32.xlu0 %v5074_v62 }
 0xed8   :  { %18424 = vrsqrt.f32 %v5084_v21 }
 0xede   :  { %v18423_v19 = vpop.eup %18422 }
 0xedf   :  { %v5095_v4 = vmul.f32 %v18423_v19, %v19591_v44  ;;  %v5255_v44 = vld [vmem:[%s18798_s12] sm:$0xff] }
 0xee1   :  { %v5107_v34 = vmul.f32 %v19629_v0, %v5095_v4 }
 0xee2   :  { %v18425_v43 = vpop.eup %18424 }
 0xee3   :  { %v5096_v10 = vmul.f32 %v18425_v43, %v5048_v17  ;;  %v19637_v54 = vadd.f32 %v19633_v8, %v5107_v34  ;;  %v18136_v17 = vpack.c.bf16 %v5256_v38, %v5255_v44 }
 0xee5   :  { %17434 = vmatprep.mubr.msk.f32.mxu1 %vm320_vm7, %v19637_v54  ;;  %v5108_v5 = vmul.f32 %v19629_v0, %v5096_v10  ;;  %18137 = vmatprep.subr.bf16.mxu0 %v18136_v17 }
 0xee6   :  { %18139 = vmatpush3.bf16.msra.mxu0 %v18136_v17 }
 0xee7   :  { %v19643_v11 = vadd.f32 %v19633_v8, %v5108_v5  ;;  %18141 = vmatprep.subr.bf16.mxu0 %v18140_v20 }
 0xee9   :  { %17435 = vmatmul.mubr.msk.f32.vlgmr.msra.gmra.mrb[64].mxu1 %vm320_vm7, %v19643_v11 }
 0xeea   :  { %18143 = vmatpush3.bf16.msra.mxu0 %v18140_v20 }
 0xeeb   :  { %18145 = vmatprep.subr.bf16.mxu0 %v18144_v29 }
 0xeee   :  { %18147 = vmatpush3.bf16.msra.mxu0 %v18144_v29  ;;  %v16364_v29 = vld [vmem:[%s18803_s20] ss:$0 sm:$0xff] }
 0xeef   :  { %18149 = vmatprep.subr.bf16.mxu0 %v18148_v25 }
 0xef2   :  { %18151 = vmatpush3.bf16.msra.mxu0 %v18148_v25 }
 0xef3   :  { %17490 = vmatprep.subr.mxu0 %v18704_v22 }
 0xf5c   :  { %v5067_v3 = vpop.xlane.xlu1 %5066 }
 0xf5d   :  { %v5079_v36 = vmul.f32 0.03125, %v5067_v3 }
 0xf5f   :  { %v5085_v45 = vadd.f32 1e-05, %v5079_v36 }
 0xf60   :  { %v5073_v37 = vpop.xlane.xlu1 %5072  ;;  %v5070_v1 = vpop.xlane.xlu0 %5069 }
 0xf61   :  { %18426 = vrsqrt.f32 %v5085_v45  ;;  %v5081_v6 = vmul.f32 0.03125, %v5073_v37  ;;  %v5080_v27 = vmul.f32 0.03125, %v5070_v1 }
 0xf63   :  { %v5087_v39 = vadd.f32 1e-05, %v5081_v6  ;;  %v5086_v28 = vadd.f32 1e-05, %v5080_v27 }
 0xf64   :  { %v5076_v57 = vpop.xlane.xlu0 %5075 }
 0xf65   :  { %18428 = vrsqrt.f32 %v5087_v39  ;;  %v5082_v9 = vmul.f32 0.03125, %v5076_v57 }
 0xf66   :  { %18430 = vrsqrt.f32 %v5086_v28 }
 0xf67   :  { %v5088_v61 = vadd.f32 1e-05, %v5082_v9 }
 0xf69   :  { %18432 = vrsqrt.f32 %v5088_v61 }
 0xf6b   :  { %v18427_v63 = vpop.eup %18426 }
 0xf6c   :  { %v5097_v30 = vmul.f32 %v18427_v63, %v19608_v14 }
 0xf6e   :  { %v5109_v15 = vmul.f32 %v19629_v0, %v5097_v30 }
 0xf6f   :  { %v18429_v26 = vpop.eup %18428 }
 0xf70   :  { %v18431_v35 = vpop.eup %18430  ;;  %v5121_v42 = vadd.f32 %v19633_v8, %v5109_v15  ;;  %v5099_v33 = vmul.f32 %v18429_v26, %v19612_v59 }
 0xf71   :  { %v5098_v49 = vmul.f32 %v18431_v35, %v19614_v58  ;;  %v16357_v58 = vld [vmem:[%s18793_s6] ss:$0 sm:$0xff] }
 0xf72   :  { %17437 = vmatprep.mubr.msk.f32.mxu1 %vm320_vm7, %v5121_v42  ;;  %v5111_v7 = vmul.f32 %v19629_v0, %v5099_v33 }
 0xf73   :  { %v18433_v51 = vpop.eup %18432  ;;  %v5110_v55 = vmul.f32 %v19629_v0, %v5098_v49 }
 0xf74   :  { %v19665_v14 = vadd.f32 %v19633_v8, %v5111_v7  ;;  %v5100_v16 = vmul.f32 %v18433_v51, %v19621_v53 }
 0xf75   :  { %v5122_v60 = vadd.f32 %v19633_v8, %v5110_v55 }
 0xf76   :  { %v5112_v21 = vmul.f32 %v19629_v0, %v5100_v16 }
 0xf77   :  { %17438 = vmatmul.mubr.msk.f32.gmra.mrb[66].mxu1 %vm320_vm7, %v5122_v60 }
 0xf78   :  { %17440 = vmatprep.mubr.msk.f32.mxu1 %vm320_vm7, %v19665_v14  ;;  %v5124_v59 = vadd.f32 %v19633_v8, %v5112_v21 }
 0xf7b   :  { %17441 = vmatmul.mubr.msk.f32.gmra.mrb[68].mxu1 %vm320_vm7, %v5124_v59 }
 0xfbc   :  { %v17436_v62 = vpop.f32.mrb[64].mxu1 }
 0xfbd   :  { %v5226_v19 = vadd.f32 %v17436_v62, %v16357_v58  ;;  %v5220_v4 = vpop.f32.mrb[65].mxu1 }
 0xfbe   :  { %v5221_v34 = vadd.f32 %v16357_v58, %v5220_v4 }
 0xfbf   :  { %v5250_v53 = vmax.f32 %v5226_v19, 0.0  ;;  %v16373_v19 = vld [vmem:[%s18758_s29 + $0x20] sm:$0xff] }
 0xfc0   :  { %v5249_v43 = vmax.f32 %v5221_v34, 0.0  ;;  %v16375_v34 = vld [vmem:[%s18758_s29 + $0x30] sm:$0xff] }
 0xfc2   :  { %17459 = vmatprep.mubr.msk.f32.mxu0 %vm187_vm0, %v5249_v43  ;;  %v16376_v43 = vld [vmem:[%s18758_s29 + $0x38] sm:$0xff] }
 0xfc3   :  { %17460 = vmatmul.mubr.msk.f32.vlgmr.msra.gmra.mrb[50].mxu0 %vm187_vm0, %v5250_v53  ;;  %v18156_v53 = vpack.c.bf16 %v16376_v43, %v16375_v34 }
0x104a   :  { %v17439_v0 = vpop.f32.mrb[66].mxu1 }
0x104b   :  { %v5236_v10 = vadd.f32 %v17439_v0, %v16357_v58  ;;  %v5230_v5 = vpop.f32.mrb[67].mxu1 }
0x104c   :  { %v5231_v44 = vadd.f32 %v16357_v58, %v5230_v5 }
0x104d   :  { %v5252_v18 = vmax.f32 %v5236_v10, 0.0 }
0x104e   :  { %v5251_v38 = vmax.f32 %v5231_v44, 0.0  ;;  %v17442_v8 = vpop.f32.mrb[68].mxu1 }
0x104f   :  { %v5246_v17 = vadd.f32 %v17442_v8, %v16357_v58  ;;  %v5240_v48 = vpop.f32.mrb[69].mxu1 }
0x1050   :  { %v5241_v20 = vadd.f32 %v16357_v58, %v5240_v48  ;;  %17462 = vmatprep.mubr.msk.f32.mxu0 %vm187_vm0, %v5251_v38 }
0x1051   :  { %17463 = vmatmul.mubr.msk.f32.gmra.mrb[52].mxu0 %vm187_vm0, %v5252_v18  ;;  %v5254_v23 = vmax.f32 %v5246_v17, 0.0 }
0x1052   :  { %v5253_v46 = vmax.f32 %v5241_v20, 0.0 }
0x1054   :  { %17465 = vmatprep.mubr.msk.f32.mxu0 %vm187_vm0, %v5253_v46 }
0x1055   :  { %17466 = vmatmul.mubr.msk.f32.gmra.mrb[54].mxu0 %vm187_vm0, %v5254_v23 }
0x1056   :  { %17492 = vmatprep.mubr.msk.f32.mxu0 %vm18705_vm8, %v18704_v22 }
0x1096   :  { %v17461_v52 = vpop.f32.mrb[50].mxu0 }
0x1097   :  { %v5360_v50 = vadd.f32 %v17461_v52, %v16364_v29  ;;  %v5354_v25 = vpop.f32.mrb[51].mxu0 }
0x1098   :  { %v5355_v3 = vadd.f32 %v16364_v29, %v5354_v25 }
0x1099   :  { %v5384_v36 = vadd.f32 %v5360_v50, %v19643_v11 }
0x109a   :  { %v5383_v45 = vadd.f32 %v5355_v3, %v19637_v54 }
0x109b   :  { %v5394_v37 = vsel %vm320_vm7, %v5384_v36, 0.0 }
0x109c   :  { %5395 = vadd.xlane.f32.xlu0 %v5394_v37  ;;  %v5391_v1 = vsel %vm320_vm7, %v5383_v45, 0.0 }
0x109d   :  { %5392 = vadd.xlane.f32.xlu1 %v5391_v1 }
0x1124   :  { %v17464_v6 = vpop.f32.mrb[52].mxu0 }
0x1125   :  { %v5370_v27 = vadd.f32 %v17464_v6, %v16364_v29  ;;  %v5364_v39 = vpop.f32.mrb[53].mxu0 }
0x1126   :  { %v5365_v28 = vadd.f32 %v16364_v29, %v5364_v39 }
0x1127   :  { %v5386_v57 = vadd.f32 %v5370_v27, %v5122_v60 }
0x1128   :  { %v5385_v9 = vadd.f32 %v5365_v28, %v5121_v42  ;;  %v17467_v61 = vpop.f32.mrb[54].mxu0 }
0x1129   :  { %v5380_v63 = vadd.f32 %v17467_v61, %v16364_v29  ;;  %v5374_v30 = vpop.f32.mrb[55].mxu0  ;;  %v5400_v15 = vsel %vm320_vm7, %v5386_v57, 0.0  ;;  %v5396_v11 = vpop.xlane.xlu0 %5395 }
0x112a   :  { %v5375_v26 = vadd.f32 %v16364_v29, %v5374_v30  ;;  %5401 = vadd.xlane.f32.xlu0 %v5400_v15  ;;  %v5410_v54 = vmul.f32 0.03125, %v5396_v11  ;;  %v5393_v35 = vpop.xlane.xlu1 %5392  ;;  %v5397_v33 = vsel %vm320_vm7, %v5385_v9, 0.0 }
0x112b   :  { %v5388_v49 = vadd.f32 %v5380_v63, %v5124_v59  ;;  %v5409_v7 = vmul.f32 0.03125, %v5393_v35  ;;  %5398 = vadd.xlane.f32.xlu1 %v5397_v33 }
0x112c   :  { %v5387_v51 = vadd.f32 %v5375_v26, %v19665_v14  ;;  %v5416_v42 = vsub.f32 %v5384_v36, %v5410_v54  ;;  %v16374_v14 = vld [vmem:[%s18758_s29 + $0x28] sm:$0xff]  ;;  %s21215_s29 = sld [smem:[#allocation7_spill]]  ;;  %v16372_v26 = vld [vmem:[%s21216_s16] ss:$0 sm:$0xff] }
0x112d   :  { %v5415_v55 = vsub.f32 %v5383_v45, %v5409_v7  ;;  %v5406_v16 = vsel %vm320_vm7, %v5388_v49, 0.0  ;;  %v18152_v4 = vpack.c.bf16 %v16374_v14, %v16373_v19 }
0x112e   :  { %5407 = vadd.xlane.f32.xlu0 %v5406_v16  ;;  %v5403_v60 = vsel %vm320_vm7, %v5387_v51, 0.0  ;;  %v5422_v21 = vmul.f32 %v5416_v42, %v5416_v42 }
0x112f   :  { %5404 = vadd.xlane.f32.xlu1 %v5403_v60  ;;  %v5421_v58 = vmul.f32 %v5415_v55, %v5415_v55  ;;  %18153 = vmatprep.subr.bf16.mxu1 %v18152_v4 }
0x1130   :  { %v5430_v59 = vsel %vm320_vm7, %v5422_v21, 0.0  ;;  %18155 = vmatpush3.bf16.msra.mxu1 %v18152_v4 }
0x1131   :  { %v5427_v62 = vsel %vm320_vm7, %v5421_v58, 0.0  ;;  %18157 = vmatprep.subr.bf16.mxu1 %v18156_v53 }
0x1132   :  { %5431 = vadd.xlane.f32.xlu0 %v5430_v59  ;;  %v16371_v61 = vld [vmem:[%s21215_s29] ss:$0 sm:$0xff] }
0x1133   :  { %5428 = vadd.xlane.f32.xlu1 %v5427_v62 }
0x1134   :  { %18159 = vmatpush3.bf16.msra.mxu1 %v18156_v53 }
0x1135   :  { %17485 = vmatprep.subr.mxu1 %v18704_v22 }
0x11b7   :  { %v5402_v0 = vpop.xlane.xlu0 %5401 }
0x11b8   :  { %v5412_v10 = vmul.f32 0.03125, %v5402_v0  ;;  %v5399_v5 = vpop.xlane.xlu1 %5398 }
0x11b9   :  { %v5411_v44 = vmul.f32 0.03125, %v5399_v5 }
0x11ba   :  { %v5418_v38 = vsub.f32 %v5386_v57, %v5412_v10 }
0x11bb   :  { %v5417_v8 = vsub.f32 %v5385_v9, %v5411_v44  ;;  %v5408_v18 = vpop.xlane.xlu0 %5407 }
0x11bc   :  { %v5414_v17 = vmul.f32 0.03125, %v5408_v18  ;;  %v5405_v48 = vpop.xlane.xlu1 %5404  ;;  %v5424_v20 = vmul.f32 %v5418_v38, %v5418_v38 }
0x11bd   :  { %v5413_v46 = vmul.f32 0.03125, %v5405_v48  ;;  %v5423_v23 = vmul.f32 %v5417_v8, %v5417_v8 }
0x11be   :  { %v5420_v29 = vsub.f32 %v5388_v49, %v5414_v17  ;;  %v5436_v52 = vsel %vm320_vm7, %v5424_v20, 0.0 }
0x11bf   :  { %v5419_v50 = vsub.f32 %v5387_v51, %v5413_v46  ;;  %5437 = vadd.xlane.f32.xlu0 %v5436_v52  ;;  %v5432_v25 = vpop.xlane.xlu0 %5431  ;;  %v5433_v3 = vsel %vm320_vm7, %v5423_v23, 0.0  ;;  %v16378_v23 = vld [vmem:[%s18763_s3 + $0x1] ss:$0 sm:$0xff]  ;;  %s21218_s3 = sld [smem:[#allocation6_spill]] }
0x11c0   :  { %v5446_v36 = vmul.f32 0.03125, %v5432_v25  ;;  %5434 = vadd.xlane.f32.xlu1 %v5433_v3  ;;  %v5429_v45 = vpop.xlane.xlu1 %5428  ;;  %v5426_v37 = vmul.f32 %v5420_v29, %v5420_v29 }
0x11c1   :  { %v5445_v1 = vmul.f32 0.03125, %v5429_v45  ;;  %v5425_v6 = vmul.f32 %v5419_v50, %v5419_v50 }
0x11c2   :  { %v5452_v27 = vadd.f32 1e-05, %v5446_v36  ;;  %v5442_v39 = vsel %vm320_vm7, %v5426_v37, 0.0 }
0x11c3   :  { %v5451_v28 = vadd.f32 1e-05, %v5445_v1  ;;  %5443 = vadd.xlane.f32.xlu0 %v5442_v39  ;;  %v5439_v57 = vsel %vm320_vm7, %v5425_v6, 0.0 }
0x11c4   :  { %18434 = vrsqrt.f32 %v5452_v27  ;;  %5440 = vadd.xlane.f32.xlu1 %v5439_v57 }
0x11c5   :  { %18436 = vrsqrt.f32 %v5451_v28 }
0x11ce   :  { %v18435_v9 = vpop.eup %18434 }
0x11cf   :  { %v18437_v63 = vpop.eup %18436  ;;  %v5464_v30 = vmul.f32 %v18435_v9, %v5416_v42 }
0x11d0   :  { %v5463_v15 = vmul.f32 %v18437_v63, %v5415_v55 }
0x11d1   :  { %v5476_v11 = vmul.f32 %v16371_v61, %v5464_v30 }
0x11d2   :  { %v5475_v54 = vmul.f32 %v16371_v61, %v5463_v15 }
0x11d3   :  { %v19709_v33 = vadd.f32 %v16372_v26, %v5476_v11 }
0x11d4   :  { %v19707_v35 = vadd.f32 %v16372_v26, %v5475_v54 }
0x11d6   :  { %17476 = vmatprep.mubr.msk.f32.mxu1 %vm320_vm7, %v19707_v35 }
0x11d7   :  { %17477 = vmatmul.mubr.msk.f32.vlgmr.msra.gmra.mrb[70].mxu1 %vm320_vm7, %v19709_v33 }
0x124c   :  { %v5438_v49 = vpop.xlane.xlu0 %5437 }
0x124d   :  { %v5448_v7 = vmul.f32 0.03125, %v5438_v49  ;;  %v5435_v51 = vpop.xlane.xlu1 %5434 }
0x124e   :  { %v5447_v16 = vmul.f32 0.03125, %v5435_v51 }
0x124f   :  { %v5454_v60 = vadd.f32 1e-05, %v5448_v7 }
0x1250   :  { %v5453_v42 = vadd.f32 1e-05, %v5447_v16  ;;  %v5444_v55 = vpop.xlane.xlu0 %5443 }
0x1251   :  { %18438 = vrsqrt.f32 %v5454_v60  ;;  %v5450_v21 = vmul.f32 0.03125, %v5444_v55  ;;  %v5441_v58 = vpop.xlane.xlu1 %5440 }
0x1252   :  { %18440 = vrsqrt.f32 %v5453_v42  ;;  %v5449_v59 = vmul.f32 0.03125, %v5441_v58 }
0x1253   :  { %v5456_v62 = vadd.f32 1e-05, %v5450_v21 }
0x1254   :  { %v5455_v19 = vadd.f32 1e-05, %v5449_v59 }
0x1255   :  { %18442 = vrsqrt.f32 %v5456_v62 }
0x1256   :  { %18444 = vrsqrt.f32 %v5455_v19 }
0x125b   :  { %v18439_v14 = vpop.eup %18438 }
0x125c   :  { %v18441_v4 = vpop.eup %18440  ;;  %v5466_v34 = vmul.f32 %v18439_v14, %v5418_v38 }
0x125d   :  { %v5465_v43 = vmul.f32 %v18441_v4, %v5417_v8 }
0x125e   :  { %v5478_v53 = vmul.f32 %v16371_v61, %v5466_v34 }
0x125f   :  { %v18443_v0 = vpop.eup %18442  ;;  %v5477_v10 = vmul.f32 %v16371_v61, %v5465_v43 }
0x1260   :  { %v18445_v5 = vpop.eup %18444  ;;  %v5468_v44 = vmul.f32 %v18443_v0, %v5420_v29  ;;  %v19717_v48 = vadd.f32 %v16372_v26, %v5478_v53 }
0x1261   :  { %v19715_v18 = vadd.f32 %v16372_v26, %v5477_v10  ;;  %v5467_v17 = vmul.f32 %v18445_v5, %v5419_v50 }
0x1262   :  { %v5480_v20 = vmul.f32 %v16371_v61, %v5468_v44 }
0x1263   :  { %17479 = vmatprep.mubr.msk.f32.mxu1 %vm320_vm7, %v19715_v18  ;;  %v5479_v46 = vmul.f32 %v16371_v61, %v5467_v17 }
0x1264   :  { %17480 = vmatmul.mubr.msk.f32.gmra.mrb[72].mxu1 %vm320_vm7, %v19717_v48  ;;  %v19725_v8 = vadd.f32 %v16372_v26, %v5480_v20 }
0x1265   :  { %v19723_v38 = vadd.f32 %v16372_v26, %v5479_v46 }
0x1267   :  { %17482 = vmatprep.mubr.msk.f32.mxu1 %vm320_vm7, %v19723_v38 }
0x1268   :  { %17483 = vmatmul.mubr.msk.f32.gmra.mrb[74].mxu1 %vm320_vm7, %v19725_v8 }
0x1269   :  { %17487 = vmatprep.mubr.msk.f32.mxu1 %vm18705_vm8, %v18704_v22 }
0x12aa   :  { %v17478_v29 = vpop.f32.mrb[70].mxu1 }
0x12ab   :  { %v19734_v52 = vadd.f32 %v17478_v29, %v16378_v23  ;;  %v5590_v50 = vpop.f32.mrb[71].mxu1 }
0x12ac   :  { %v19756_v39 = vadd.f32 %v16378_v23, %v5590_v50 }
0x12ad   :  { %5702 = vrot.lane.b32.xlu1 %v19734_v52, %s18706_s0 }
0x131f   :  { %v5703_v25 = vpop.permute.xlu1 %5702 }
0x1320   :  { %17491 = vmatpush3.xpose.msk.msra.mxu0 %vm501_vm9, %v5703_v25 }
0x1321   :  { %17500 = vmatprep.subr.mxu0 %v18704_v22 }
0x1323   :  { %17493 = vmatmul.mubr.msk.f32.vlgmr.msra.gmra.mrb[56].mxu0 %vm501_vm9, %v19734_v52 }
0x1324   :  { %17502 = vmatprep.mubr.msk.f32.mxu0 %vm18705_vm8, %v18704_v22 }
0x1337   :  { %v17481_v3 = vpop.f32.mrb[72].mxu1 }
0x1338   :  { %v19744_v36 = vadd.f32 %v17481_v3, %v16378_v23  ;;  %v5600_v45 = vpop.f32.mrb[73].mxu1 }
0x1339   :  { %v19748_v1 = vadd.f32 %v16378_v23, %v5600_v45 }
0x133a   :  { %5856 = vrot.lane.b32.xlu0 %v19744_v36, %s18706_s0 }
0x133b   :  { %v17484_v37 = vpop.f32.mrb[74].mxu1 }
0x133c   :  { %v19750_v6 = vadd.f32 %v17484_v37, %v16378_v23  ;;  %v5610_v27 = vpop.f32.mrb[75].mxu1 }
0x133d   :  { %v19760_v28 = vadd.f32 %v16378_v23, %v5610_v27 }
0x133e   :  { %5779 = vrot.lane.b32.xlu0 %v19748_v1, %s18706_s0  ;;  %6010 = vrot.lane.b32.xlu1 %v19750_v6, %s18706_s0 }
0x1342   :  { %5625 = vrot.lane.b32.xlu1 %v19756_v39, %s18706_s0 }
0x1346   :  { %5933 = vrot.lane.b32.xlu1 %v19760_v28, %s18706_s0 }
0x13ac   :  { %v5857_v57 = vpop.permute.xlu0 %5856 }
0x13ad   :  { %17501 = vmatpush3.xpose.msk.msra.mxu0 %vm501_vm9, %v5857_v57 }
0x13ae   :  { %17510 = vmatprep.subr.mxu0 %v18704_v22 }
0x13b0   :  { %v6011_v9 = vpop.permute.xlu1 %6010  ;;  %17503 = vmatmul.mubr.msk.f32.vlgmr.msra.gmra.mrb[58].mxu0 %vm501_vm9, %v19744_v36  ;;  %v5780_v63 = vpop.permute.xlu0 %5779 }
0x13b1   :  { %17511 = vmatpush3.xpose.msk.msra.mxu0 %vm501_vm9, %v6011_v9  ;;  %17512 = vmatprep.mubr.msk.f32.mxu0 %vm18705_vm8, %v18704_v22 }
0x13b2   :  { %17520 = vmatprep.subr.mxu0 %v18704_v22 }
0x13b4   :  { %v5626_v61 = vpop.permute.xlu1 %5625  ;;  %17513 = vmatmul.mubr.msk.f32.vlgmr.msra.gmra.mrb[60].mxu0 %vm501_vm9, %v19750_v6 }
0x13b5   :  { %17486 = vmatpush3.xpose.msk.msra.mxu1 %vm501_vm9, %v5626_v61  ;;  %17522 = vmatprep.mubr.msk.f32.mxu0 %vm18705_vm8, %v18704_v22 }
0x13b6   :  { %17495 = vmatprep.subr.mxu1 %v18704_v22 }
0x13b8   :  { %17488 = vmatmul.mubr.msk.f32.vlgmr.msra.gmra.mrb[76].mxu1 %vm501_vm9, %v19756_v39  ;;  %v5934_v30 = vpop.permute.xlu1 %5933 }
0x13b9   :  { %17496 = vmatpush3.xpose.msk.msra.mxu1 %vm501_vm9, %v5780_v63  ;;  %17497 = vmatprep.mubr.msk.f32.mxu1 %vm18705_vm8, %v18704_v22 }
0x13ba   :  { %17505 = vmatprep.subr.mxu1 %v18704_v22 }
0x13bc   :  { %17498 = vmatmul.mubr.msk.f32.vlgmr.msra.gmra.mrb[78].mxu1 %vm501_vm9, %v19748_v1 }
0x13bd   :  { %17506 = vmatpush3.xpose.msk.msra.mxu1 %vm501_vm9, %v5934_v30  ;;  %17507 = vmatprep.mubr.msk.f32.mxu1 %vm18705_vm8, %v18704_v22 }
0x13be   :  { %17515 = vmatprep.subr.mxu1 %v18704_v22 }
0x13c0   :  { %17508 = vmatmul.mubr.msk.f32.vlgmr.msra.gmra.mrb[80].mxu1 %vm501_vm9, %v19760_v28 }
0x13c1   :  { %17517 = vmatprep.mubr.msk.f32.mxu1 %vm18705_vm8, %v18704_v22 }
0x13f6   :  { %v5774_v15 = vpop.f32.mrb[56].mxu0 }
0x13f7   :  { %v6087_v11 = vmul.f32 0.35355338, %v5774_v15  ;;  %v17494_v26 = vpop.f32.mrb[57].mxu0 }
0x13f9   :  { %v6093_v54 = vsel %vm19042_vm13, -1e+09, %v6087_v11 }
0x13fa   :  { %v6101_v49 = vsel %vm501_vm9, %v6093_v54, -inf }
0x13fb   :  { %6102 = vmax.xlane.f32.xlu0 %v6101_v49 }
0x1483   :  { %v5928_v7 = vpop.f32.mrb[58].mxu0 }
0x1484   :  { %v6089_v51 = vmul.f32 0.35355338, %v5928_v7  ;;  %v17504_v16 = vpop.f32.mrb[59].mxu0 }
0x1486   :  { %v6095_v60 = vsel %vm19053_vm14, -1e+09, %v6089_v51 }
0x1487   :  { %v6082_v42 = vpop.f32.mrb[60].mxu0  ;;  %v6107_v55 = vsel %vm501_vm9, %v6095_v60, -inf }
0x1488   :  { %v6091_v21 = vmul.f32 0.35355338, %v6082_v42  ;;  %6108 = vmax.xlane.f32.xlu1 %v6107_v55  ;;  %v17514_v58 = vpop.f32.mrb[61].mxu0  ;;  %v6103_v59 = vpop.xlane.xlu0 %6102 }
0x1489   :  { %v6117_v62 = vsub.f32 %v6093_v54, %v6103_v59 }
0x148a   :  { %v6097_v19 = vsel %vm19063_vm15, -1e+09, %v6091_v21 }
0x148b   :  { %v6124_v14 = vmul.f32 1.442695, %v6117_v62  ;;  %v5697_v4 = vpop.f32.mrb[76].mxu1  ;;  %v6113_v34 = vsel %vm501_vm9, %v6097_v19, -inf }
0x148c   :  { %v17489_v43 = vpop.f32.mrb[77].mxu1  ;;  %6114 = vmax.xlane.f32.xlu0 %v6113_v34  ;;  %v6086_v15 = vmul.f32 0.35355338, %v5697_v4 }
0x148d   :  { %18446 = vpow2.f32 %v6124_v14 }
0x148e   :  { %v6092_v11 = vsel %vm19091_vm2, -1e+09, %v6086_v15 }
0x148f   :  { %v5851_v53 = vpop.f32.mrb[78].mxu1  ;;  %v6098_v54 = vsel %vm501_vm9, %v6092_v11, -inf }
0x1490   :  { %v17499_v0 = vpop.f32.mrb[79].mxu1  ;;  %v6088_v26 = vmul.f32 0.35355338, %v5851_v53 }
0x1492   :  { %v6094_v49 = vsel %vm19110_vm5, -1e+09, %v6088_v26 }
0x1493   :  { %v6005_v10 = vpop.f32.mrb[80].mxu1  ;;  %v6104_v51 = vsel %vm501_vm9, %v6094_v49, -inf }
0x1494   :  { %v17509_v5 = vpop.f32.mrb[81].mxu1  ;;  %v6090_v7 = vmul.f32 0.35355338, %v6005_v10 }
0x1496   :  { %v6096_v16 = vsel %vm19118_vm6, -1e+09, %v6090_v7 }
0x1497   :  { %v18447_v44 = vpop.eup %18446 }
0x1498   :  { %v6137_v17 = vsel %vm501_vm9, %v18447_v44, 0.0 }
0x1499   :  { %6240 = vrot.lane.b32.xlu1 %v19734_v52, %s18708_s5  ;;  %6138 = vadd.xlane.f32.xlu0 %v6137_v17 }
0x149d   :  { %6544 = vrot.lane.b32.xlu1 %v19750_v6, %s18708_s5 }
0x14af   :  { %6392 = vrot.lane.b32.xlu0 %v19744_v36, %s18708_s5 }
0x1515   :  { %v6109_v20 = vpop.xlane.xlu1 %6108 }
0x1516   :  { %v6119_v46 = vsub.f32 %v6095_v60, %v6109_v20  ;;  %v6110_v60 = vsel %vm501_vm9, %v6096_v16, -inf }
0x1518   :  { %v6128_v23 = vmul.f32 1.442695, %v6119_v46 }
0x1519   :  { %v6241_v29 = vpop.permute.xlu1 %6240  ;;  %v6115_v50 = vpop.xlane.xlu0 %6114 }
0x151a   :  { %18448 = vpow2.f32 %v6128_v23  ;;  %v6121_v25 = vsub.f32 %v6097_v19, %v6115_v50  ;;  %17521 = vmatpush3.msra.mxu0 %v6241_v29 }
0x151b   :  { %17530 = vmatprep.subr.mxu0 %v18704_v22 }
0x151c   :  { %v6132_v3 = vmul.f32 1.442695, %v6121_v25 }
0x151d   :  { %v6545_v42 = vpop.permute.xlu1 %6544 }
0x151e   :  { %18450 = vpow2.f32 %v6132_v3 }
0x1524   :  { %v18449_v45 = vpop.eup %18448 }
0x1525   :  { %v6143_v37 = vsel %vm501_vm9, %v18449_v45, 0.0 }
0x1526   :  { %6144 = vadd.xlane.f32.xlu1 %v6143_v37  ;;  %v6139_v27 = vpop.xlane.xlu0 %6138 }
0x1527   :  { %18452 = vrcp.f32 %v6139_v27 }
0x1528   :  { %v18451_v57 = vpop.eup %18450 }
0x1529   :  { %v6149_v9 = vsel %vm501_vm9, %v18451_v57, 0.0 }
0x152a   :  { %6150 = vadd.xlane.f32.xlu0 %v6149_v9  ;;  %v6393_v30 = vpop.permute.xlu0 %6392 }
0x1531   :  { %v18453_v61 = vpop.eup %18452 }
0x1532   :  { %v6159_v63 = vmul.f32 %v18453_v61, %v18447_v44 }
0x1534   :  { %17523 = vmatmul.mubr.msk.f32.vlgmr.msra.gmra.mrb[62].mxu0 %vm501_vm9, %v6159_v63 }
0x1535   :  { %17531 = vmatpush3.msra.mxu0 %v6393_v30  ;;  %17532 = vmatprep.mubr.msk.f32.mxu0 %vm18705_vm8, %v18704_v22 }
0x1536   :  { %17540 = vmatprep.subr.mxu0 %v18704_v22 }
0x1537   :  { %6700 = vrot.lane.b32.xlu1 %v19734_v52, %s18709_s17 }
0x153b   :  { %6856 = vrot.lane.b32.xlu1 %v19744_v36, %s18709_s17 }
0x153f   :  { %7012 = vrot.lane.b32.xlu1 %v19750_v6, %s18709_s17 }
0x1540   :  { %6698 = vrot.lane.b32.xlu0 %v19734_v52, %s18710_s21 }
0x1544   :  { %6854 = vrot.lane.b32.xlu0 %v19744_v36, %s18710_s21 }
0x1548   :  { %7010 = vrot.lane.b32.xlu0 %v19750_v6, %s18710_s21 }
0x1563   :  { %6099 = vmax.xlane.f32.xlu1 %v6098_v54 }
0x1567   :  { %6105 = vmax.xlane.f32.xlu0 %v6104_v51 }
0x156b   :  { %6111 = vmax.xlane.f32.xlu0 %v6110_v60 }
0x15b3   :  { %v6145_v55 = vpop.xlane.xlu1 %6144 }
0x15b4   :  { %18454 = vrcp.f32 %v6145_v55 }
0x15b7   :  { %v6151_v21 = vpop.xlane.xlu0 %6150  ;;  %v6701_v14 = vpop.permute.xlu1 %6700 }
0x15b8   :  { %18456 = vrcp.f32 %v6151_v21 }
0x15bb   :  { %v6699_v4 = vpop.permute.xlu0 %6698  ;;  %v6857_v34 = vpop.permute.xlu1 %6856 }
0x15be   :  { %v18455_v58 = vpop.eup %18454 }
0x15bf   :  { %v6161_v59 = vmul.f32 %v18455_v58, %v18449_v45  ;;  %v6855_v43 = vpop.permute.xlu0 %6854  ;;  %v7013_v53 = vpop.permute.xlu1 %7012 }
0x15c1   :  { %17533 = vmatmul.mubr.msk.f32.vlgmr.msra.gmra.mrb[64].mxu0 %vm501_vm9, %v6161_v59 }
0x15c2   :  { %v18457_v62 = vpop.eup %18456  ;;  %17541 = vmatpush3.msra.mxu0 %v6545_v42  ;;  %17542 = vmatprep.mubr.msk.f32.mxu0 %vm18705_vm8, %v18704_v22 }
0x15c3   :  { %v6163_v19 = vmul.f32 %v18457_v62, %v18451_v57  ;;  %17550 = vmatprep.subr.mxu0 %v18704_v22  ;;  %v7011_v0 = vpop.permute.xlu0 %7010 }
0x15c5   :  { %17543 = vmatmul.mubr.msk.f32.vlgmr.msra.gmra.mrb[66].mxu0 %vm501_vm9, %v6163_v19 }
0x15c6   :  { %17552 = vmatprep.mubr.msk.f32.mxu0 %vm18705_vm8, %v18704_v22 }
0x15c9   :  { %17551 = vmatpush3.xpose.msk.msra.mxu0 %vm501_vm9, %v6701_v14 }
0x15ca   :  { %17560 = vmatprep.subr.mxu0 %v18704_v22 }
0x15cc   :  { %17553 = vmatmul.mubr.msk.f32.vlgmr.msra.gmra.mrb[68].mxu0 %vm501_vm9, %v6699_v4 }
0x15cd   :  { %17561 = vmatpush3.xpose.msk.msra.mxu0 %vm501_vm9, %v6857_v34  ;;  %17562 = vmatprep.mubr.msk.f32.mxu0 %vm18705_vm8, %v18704_v22 }
0x15ce   :  { %17570 = vmatprep.subr.mxu0 %v18704_v22 }
0x15d0   :  { %17563 = vmatmul.mubr.msk.f32.vlgmr.msra.gmra.mrb[70].mxu0 %vm501_vm9, %v6855_v43 }
0x15d1   :  { %17571 = vmatpush3.xpose.msk.msra.mxu0 %vm501_vm9, %v7013_v53  ;;  %17572 = vmatprep.mubr.msk.f32.mxu0 %vm18705_vm8, %v18704_v22 }
0x15d2   :  { %17580 = vmatprep.subr.mxu0 %v18704_v22 }
0x15d4   :  { %17573 = vmatmul.mubr.msk.f32.vlgmr.msra.gmra.mrb[72].mxu0 %vm501_vm9, %v7011_v0 }
0x15d5   :  { %17582 = vmatprep.mubr.msk.f32.mxu0 %vm18705_vm8, %v18704_v22 }
0x15f0   :  { %v6100_v10 = vpop.xlane.xlu1 %6099 }
0x15f1   :  { %v6116_v5 = vsub.f32 %v6092_v11, %v6100_v10 }
0x15f3   :  { %v6122_v44 = vmul.f32 1.442695, %v6116_v5 }
0x15f4   :  { %v6106_v17 = vpop.xlane.xlu0 %6105 }
0x15f5   :  { %18458 = vpow2.f32 %v6122_v44  ;;  %v6118_v20 = vsub.f32 %v6094_v49, %v6106_v17 }
0x15f7   :  { %v6126_v46 = vmul.f32 1.442695, %v6118_v20 }
0x15f8   :  { %v6112_v37 = vpop.xlane.xlu0 %6111 }
0x15f9   :  { %18460 = vpow2.f32 %v6126_v46  ;;  %v6120_v27 = vsub.f32 %v6096_v16, %v6112_v37 }
0x15fb   :  { %v6130_v57 = vmul.f32 1.442695, %v6120_v27 }
0x15fd   :  { %18462 = vpow2.f32 %v6130_v57 }
0x15ff   :  { %v18459_v23 = vpop.eup %18458 }
0x1600   :  { %v6134_v29 = vsel %vm501_vm9, %v18459_v23, 0.0 }
0x1601   :  { %6135 = vadd.xlane.f32.xlu1 %v6134_v29 }
0x1603   :  { %v18461_v50 = vpop.eup %18460 }
0x1604   :  { %v6140_v25 = vsel %vm501_vm9, %v18461_v50, 0.0 }
0x1605   :  { %6141 = vadd.xlane.f32.xlu0 %v6140_v25 }
0x1607   :  { %v19862_v3 = vpop.f32.mrb[62].mxu0  ;;  %v18463_v9 = vpop.eup %18462 }
0x1608   :  { %v17524_v45 = vpop.f32.mrb[63].mxu0  ;;  %v6146_v61 = vsel %vm501_vm9, %v18463_v9, 0.0 }
0x1612   :  { %6316 = vrot.lane.b32.xlu1 %v19748_v1, %s18708_s5 }
0x1616   :  { %6468 = vrot.lane.b32.xlu1 %v19760_v28, %s18708_s5 }
0x161a   :  { %6620 = vrot.lane.b32.xlu1 %v19756_v39, %s18710_s21 }
0x161b   :  { %6164 = vrot.lane.b32.xlu0 %v19756_v39, %s18708_s5 }
0x161f   :  { %6622 = vrot.lane.b32.xlu0 %v19756_v39, %s18709_s17 }
0x1623   :  { %6778 = vrot.lane.b32.xlu0 %v19748_v1, %s18709_s17 }
0x1627   :  { %6934 = vrot.lane.b32.xlu0 %v19760_v28, %s18709_s17 }
0x163e   :  { %6147 = vadd.xlane.f32.xlu1 %v6146_v61 }
0x164f   :  { %6776 = vrot.lane.b32.xlu1 %v19748_v1, %s18710_s21 }
0x1653   :  { %6932 = vrot.lane.b32.xlu1 %v19760_v28, %s18710_s21 }
0x168e   :  { %v6136_v63 = vpop.xlane.xlu1 %6135 }
0x168f   :  { %18464 = vrcp.f32 %v6136_v63 }
0x1692   :  { %v6142_v30 = vpop.xlane.xlu0 %6141  ;;  %v6317_v51 = vpop.permute.xlu1 %6316 }
0x1693   :  { %18466 = vrcp.f32 %v6142_v30 }
0x1694   :  { %v19883_v15 = vpop.f32.mrb[64].mxu0 }
0x1695   :  { %v17534_v11 = vpop.f32.mrb[65].mxu0 }
0x1696   :  { %v6165_v26 = vpop.permute.xlu0 %6164  ;;  %v6469_v21 = vpop.permute.xlu1 %6468 }
0x1697   :  { %17516 = vmatpush3.msra.mxu1 %v6165_v26 }
0x1698   :  { %v19885_v54 = vpop.f32.mrb[66].mxu0  ;;  %17525 = vmatprep.subr.mxu1 %v18704_v22 }
0x1699   :  { %v18465_v49 = vpop.eup %18464  ;;  %v17544_v7 = vpop.f32.mrb[67].mxu0 }
0x169a   :  { %v6158_v16 = vmul.f32 %v18465_v49, %v18459_v23  ;;  %v6621_v20 = vpop.permute.xlu1 %6620  ;;  %v6623_v23 = vpop.permute.xlu0 %6622 }
0x169c   :  { %17518 = vmatmul.mubr.msk.f32.vlgmr.msra.gmra.mrb[82].mxu1 %vm501_vm9, %v6158_v16 }
0x169d   :  { %v18467_v60 = vpop.eup %18466  ;;  %17526 = vmatpush3.msra.mxu1 %v6317_v51  ;;  %17527 = vmatprep.mubr.msk.f32.mxu1 %vm18705_vm8, %v18704_v22 }
0x169e   :  { %17535 = vmatprep.subr.mxu1 %v18704_v22  ;;  %v6160_v42 = vmul.f32 %v18467_v60, %v18461_v50  ;;  %v6779_v25 = vpop.permute.xlu0 %6778 }
0x169f   :  { %v6772_v55 = vpop.f32.mrb[68].mxu0 }
0x16a0   :  { %v7089_v58 = vmul.f32 0.35355338, %v6772_v55  ;;  %v17554_v59 = vpop.f32.mrb[69].mxu0  ;;  %17528 = vmatmul.mubr.msk.f32.vlgmr.msra.gmra.mrb[84].mxu1 %vm501_vm9, %v6160_v42 }
0x16a1   :  { %17536 = vmatpush3.msra.mxu1 %v6469_v21  ;;  %17537 = vmatprep.mubr.msk.f32.mxu1 %vm18705_vm8, %v18704_v22 }
0x16a2   :  { %v7095_v62 = vsel %vm19042_vm13, -1e+09, %v7089_v58  ;;  %17545 = vmatprep.subr.mxu1 %v18704_v22  ;;  %v6935_v37 = vpop.permute.xlu0 %6934 }
0x16a3   :  { %v6928_v19 = vpop.f32.mrb[70].mxu0  ;;  %v7103_v14 = vsel %vm501_vm9, %v7095_v62, -inf }
0x16a4   :  { %v7091_v4 = vmul.f32 0.35355338, %v6928_v19  ;;  %v17564_v34 = vpop.f32.mrb[71].mxu0  ;;  %7104 = vmax.xlane.f32.xlu0 %v7103_v14 }
0x16a6   :  { %v7097_v43 = vsel %vm19053_vm14, -1e+09, %v7091_v4 }
0x16a7   :  { %v7084_v53 = vpop.f32.mrb[72].mxu0  ;;  %v7109_v0 = vsel %vm501_vm9, %v7097_v43, -inf }
0x16a8   :  { %v7093_v10 = vmul.f32 0.35355338, %v7084_v53  ;;  %v17574_v5 = vpop.f32.mrb[73].mxu0  ;;  %7110 = vmax.xlane.f32.xlu1 %v7109_v0 }
0x16aa   :  { %v7099_v44 = vsel %vm19063_vm15, -1e+09, %v7093_v10 }
0x16ab   :  { %v7115_v17 = vsel %vm501_vm9, %v7099_v44, -inf }
0x16ac   :  { %7116 = vmax.xlane.f32.xlu0 %v7115_v17 }
0x16b9   :  { %7242 = vrot.lane.b32.xlu1 %v19734_v52, %s18711_s28 }
0x16bd   :  { %7546 = vrot.lane.b32.xlu1 %v19750_v6, %s18711_s28 }
0x16cb   :  { %v6148_v46 = vpop.xlane.xlu1 %6147 }
0x16cc   :  { %18468 = vrcp.f32 %v6148_v46 }
0x16cf   :  { %v6777_v45 = vpop.permute.xlu1 %6776 }
0x16d3   :  { %v6933_v27 = vpop.permute.xlu1 %6932 }
0x16d6   :  { %v18469_v29 = vpop.eup %18468 }
0x16d7   :  { %v6162_v50 = vmul.f32 %v18469_v29, %v18463_v9 }
0x16d9   :  { %17538 = vmatmul.mubr.msk.f32.vlgmr.msra.gmra.mrb[86].mxu1 %vm501_vm9, %v6162_v50 }
0x16da   :  { %17546 = vmatpush3.xpose.msk.msra.mxu1 %vm501_vm9, %v6623_v23  ;;  %17547 = vmatprep.mubr.msk.f32.mxu1 %vm18705_vm8, %v18704_v22 }
0x16db   :  { %17555 = vmatprep.subr.mxu1 %v18704_v22 }
0x16dd   :  { %17548 = vmatmul.mubr.msk.f32.vlgmr.msra.gmra.mrb[88].mxu1 %vm501_vm9, %v6621_v20 }
0x16de   :  { %17556 = vmatpush3.xpose.msk.msra.mxu1 %vm501_vm9, %v6779_v25  ;;  %17557 = vmatprep.mubr.msk.f32.mxu1 %vm18705_vm8, %v18704_v22 }
0x16df   :  { %17565 = vmatprep.subr.mxu1 %v18704_v22 }
0x16e1   :  { %17558 = vmatmul.mubr.msk.f32.vlgmr.msra.gmra.mrb[90].mxu1 %vm501_vm9, %v6777_v45 }
0x16e2   :  { %17566 = vmatpush3.xpose.msk.msra.mxu1 %vm501_vm9, %v6935_v37  ;;  %17567 = vmatprep.mubr.msk.f32.mxu1 %vm18705_vm8, %v18704_v22 }
0x16e3   :  { %17575 = vmatprep.subr.mxu1 %v18704_v22 }
0x16e5   :  { %17568 = vmatmul.mubr.msk.f32.vlgmr.msra.gmra.mrb[92].mxu1 %vm501_vm9, %v6933_v27 }
0x16e6   :  { %17577 = vmatprep.mubr.msk.f32.mxu1 %vm18705_vm8, %v18704_v22 }
0x1731   :  { %v7105_v57 = vpop.xlane.xlu0 %7104 }
0x1732   :  { %v7119_v9 = vsub.f32 %v7095_v62, %v7105_v57 }
0x1734   :  { %v7126_v61 = vmul.f32 1.442695, %v7119_v9 }
0x1735   :  { %v7111_v63 = vpop.xlane.xlu1 %7110 }
0x1736   :  { %18470 = vpow2.f32 %v7126_v61  ;;  %v7121_v30 = vsub.f32 %v7097_v43, %v7111_v63 }
0x1738   :  { %v7130_v11 = vmul.f32 1.442695, %v7121_v30 }
0x1739   :  { %v7243_v26 = vpop.permute.xlu1 %7242  ;;  %v7117_v60 = vpop.xlane.xlu0 %7116 }
0x173a   :  { %18472 = vpow2.f32 %v7130_v11  ;;  %17581 = vmatpush3.msra.mxu0 %v7243_v26  ;;  %v7123_v42 = vsub.f32 %v7099_v44, %v7117_v60 }
0x173b   :  { %17590 = vmatprep.subr.mxu0 %v18704_v22 }
0x173c   :  { %v7134_v55 = vmul.f32 1.442695, %v7123_v42 }
0x173d   :  { %v7547_v27 = vpop.permute.xlu1 %7546 }
0x173e   :  { %18474 = vpow2.f32 %v7134_v55 }
0x1740   :  { %v18471_v49 = vpop.eup %18470 }
0x1741   :  { %v7139_v7 = vsel %vm501_vm9, %v18471_v49, 0.0 }
0x1742   :  { %7140 = vadd.xlane.f32.xlu0 %v7139_v7 }
0x1744   :  { %v18473_v51 = vpop.eup %18472 }
0x1745   :  { %v7145_v16 = vsel %vm501_vm9, %v18473_v51, 0.0 }
0x1746   :  { %7146 = vadd.xlane.f32.xlu1 %v7145_v16 }
0x1748   :  { %v18475_v59 = vpop.eup %18474 }
0x1749   :  { %v7151_v14 = vsel %vm501_vm9, %v18475_v59, 0.0 }
0x1757   :  { %7850 = vrot.lane.b32.xlu1 %v19756_v39, %s18712_s1 }
0x1758   :  { %7394 = vrot.lane.b32.xlu0 %v19744_v36, %s18711_s28 }
0x175b   :  { %7928 = vrot.lane.b32.xlu1 %v19734_v52, %s18712_s1 }
0x175f   :  { %8006 = vrot.lane.b32.xlu1 %v19748_v1, %s18712_s1 }
0x1763   :  { %8084 = vrot.lane.b32.xlu1 %v19744_v36, %s18712_s1 }
0x1767   :  { %8162 = vrot.lane.b32.xlu1 %v19760_v28, %s18712_s1 }
0x176b   :  { %8240 = vrot.lane.b32.xlu1 %v19750_v6, %s18712_s1 }
0x176f   :  { %v19944_v21 = vpop.f32.mrb[82].mxu1 }
0x1770   :  { %v17519_v58 = vpop.f32.mrb[83].mxu1 }
0x1773   :  { %v19946_v62 = vpop.f32.mrb[84].mxu1 }
0x1774   :  { %v17529_v19 = vpop.f32.mrb[85].mxu1 }
0x1777   :  { %7152 = vadd.xlane.f32.xlu0 %v7151_v14 }
0x178d   :  { %7848 = vrot.lane.b32.xlu0 %v19756_v39, %s18713_s2 }
0x1791   :  { %7926 = vrot.lane.b32.xlu0 %v19734_v52, %s18713_s2 }
0x1795   :  { %8004 = vrot.lane.b32.xlu0 %v19748_v1, %s18713_s2 }
0x1799   :  { %8082 = vrot.lane.b32.xlu0 %v19744_v36, %s18713_s2 }
0x179d   :  { %8160 = vrot.lane.b32.xlu0 %v19760_v28, %s18713_s2 }
0x17a1   :  { %8238 = vrot.lane.b32.xlu0 %v19750_v6, %s18713_s2 }
0x17ac   :  { %v19961_v4 = vpop.f32.mrb[86].mxu1 }
0x17ad   :  { %v17539_v34 = vpop.f32.mrb[87].mxu1 }
0x17b0   :  { %v6694_v43 = vpop.f32.mrb[88].mxu1 }
0x17b1   :  { %v7088_v53 = vmul.f32 0.35355338, %v6694_v43  ;;  %v17549_v0 = vpop.f32.mrb[89].mxu1 }
0x17b3   :  { %v19965_v10 = vsel %vm19091_vm2, -1e+09, %v7088_v53 }
0x17b4   :  { %v6850_v5 = vpop.f32.mrb[90].mxu1  ;;  %v7100_v44 = vsel %vm501_vm9, %v19965_v10, -inf }
0x17b5   :  { %7101 = vmax.xlane.f32.xlu1 %v7100_v44  ;;  %v17559_v17 = vpop.f32.mrb[91].mxu1  ;;  %v7090_v20 = vmul.f32 0.35355338, %v6850_v5 }
0x17b7   :  { %v19971_v29 = vsel %vm19110_vm5, -1e+09, %v7090_v20 }
0x17b8   :  { %v7006_v46 = vpop.f32.mrb[92].mxu1  ;;  %v7106_v25 = vsel %vm501_vm9, %v19971_v29, -inf }
0x17b9   :  { %v17569_v23 = vpop.f32.mrb[93].mxu1  ;;  %v7092_v50 = vmul.f32 0.35355338, %v7006_v46 }
0x17bb   :  { %v19977_v45 = vsel %vm19118_vm6, -1e+09, %v7092_v50 }
0x17bc   :  { %v7112_v37 = vsel %vm501_vm9, %v19977_v45, -inf }
0x17c0   :  { %7107 = vmax.xlane.f32.xlu0 %v7106_v25 }
0x17c4   :  { %7113 = vmax.xlane.f32.xlu0 %v7112_v37 }
0x17cf   :  { %v7141_v57 = vpop.xlane.xlu0 %7140 }
0x17d0   :  { %18476 = vrcp.f32 %v7141_v57 }
0x17d3   :  { %v7147_v9 = vpop.xlane.xlu1 %7146  ;;  %v7395_v30 = vpop.permute.xlu0 %7394 }
0x17d4   :  { %18478 = vrcp.f32 %v7147_v9 }
0x17d7   :  { %v7851_v7 = vpop.permute.xlu1 %7850 }
0x17da   :  { %v18477_v61 = vpop.eup %18476 }
0x17db   :  { %v7161_v63 = vmul.f32 %v18477_v61, %v18471_v49  ;;  %v7929_v60 = vpop.permute.xlu1 %7928 }
0x17dd   :  { %17583 = vmatmul.mubr.msk.f32.vlgmr.msra.gmra.mrb[74].mxu0 %vm501_vm9, %v7161_v63 }
0x17de   :  { %v18479_v11 = vpop.eup %18478  ;;  %17591 = vmatpush3.msra.mxu0 %v7395_v30  ;;  %17592 = vmatprep.mubr.msk.f32.mxu0 %vm18705_vm8, %v18704_v22 }
0x17df   :  { %17600 = vmatprep.subr.mxu0 %v18704_v22  ;;  %v7163_v26 = vmul.f32 %v18479_v11, %v18473_v51  ;;  %v8007_v51 = vpop.permute.xlu1 %8006 }
0x17e1   :  { %17593 = vmatmul.mubr.msk.f32.vlgmr.msra.gmra.mrb[76].mxu0 %vm501_vm9, %v7163_v26 }
0x17e2   :  { %17601 = vmatpush3.msra.mxu0 %v7547_v27  ;;  %17602 = vmatprep.mubr.msk.f32.mxu0 %vm18705_vm8, %v18704_v22 }
0x17e3   :  { %17627 = vmatprep.subr.mxu0 %v18704_v22 }
0x1804   :  { %v7153_v49 = vpop.xlane.xlu0 %7152 }
0x1805   :  { %18480 = vrcp.f32 %v7153_v49 }
0x1808   :  { %v7849_v16 = vpop.permute.xlu0 %7848 }
0x180c   :  { %v7927_v58 = vpop.permute.xlu0 %7926 }
0x180f   :  { %v18481_v42 = vpop.eup %18480 }
0x1810   :  { %v7165_v55 = vmul.f32 %v18481_v42, %v18475_v59  ;;  %v8005_v19 = vpop.permute.xlu0 %8004  ;;  %v8085_v59 = vpop.permute.xlu1 %8084 }
0x1812   :  { %17603 = vmatmul.mubr.msk.f32.vlgmr.msra.gmra.mrb[78].mxu0 %vm501_vm9, %v7165_v55 }
0x1813   :  { %17628 = vmatpush3.xpose.msk.msra.mxu0 %vm501_vm9, %v7851_v7  ;;  %17629 = vmatprep.mubr.msk.f32.mxu0 %vm18705_vm8, %v18704_v22 }
0x1814   :  { %17632 = vmatprep.subr.mxu0 %v18704_v22  ;;  %v8083_v14 = vpop.permute.xlu0 %8082  ;;  %v8163_v34 = vpop.permute.xlu1 %8162 }
0x1816   :  { %17630 = vmatmul.mubr.msk.f32.vlgmr.msra.gmra.mrb[80].mxu0 %vm501_vm9, %v7849_v16 }
0x1817   :  { %17633 = vmatpush3.xpose.msk.msra.mxu0 %vm501_vm9, %v7929_v60  ;;  %17634 = vmatprep.mubr.msk.f32.mxu0 %vm18705_vm8, %v18704_v22 }
0x1818   :  { %17637 = vmatprep.subr.mxu0 %v18704_v22  ;;  %v8161_v43 = vpop.permute.xlu0 %8160  ;;  %v8241_v53 = vpop.permute.xlu1 %8240 }
0x181a   :  { %17635 = vmatmul.mubr.msk.f32.vlgmr.msra.gmra.mrb[82].mxu0 %vm501_vm9, %v7927_v58 }
0x181b   :  { %17638 = vmatpush3.xpose.msk.msra.mxu0 %vm501_vm9, %v8007_v51  ;;  %17639 = vmatprep.mubr.msk.f32.mxu0 %vm18705_vm8, %v18704_v22 }
0x181c   :  { %17642 = vmatprep.subr.mxu0 %v18704_v22  ;;  %v8239_v0 = vpop.permute.xlu0 %8238 }
0x181e   :  { %17640 = vmatmul.mubr.msk.f32.vlgmr.msra.gmra.mrb[84].mxu0 %vm501_vm9, %v8005_v19 }
0x181f   :  { %17643 = vmatpush3.xpose.msk.msra.mxu0 %vm501_vm9, %v8085_v59  ;;  %17644 = vmatprep.mubr.msk.f32.mxu0 %vm18705_vm8, %v18704_v22 }
0x1820   :  { %17647 = vmatprep.subr.mxu0 %v18704_v22 }
0x1822   :  { %17645 = vmatmul.mubr.msk.f32.vlgmr.msra.gmra.mrb[86].mxu0 %vm501_vm9, %v8083_v14 }
0x1823   :  { %17648 = vmatpush3.xpose.msk.msra.mxu0 %vm501_vm9, %v8163_v34  ;;  %17649 = vmatprep.mubr.msk.f32.mxu0 %vm18705_vm8, %v18704_v22 }
0x1824   :  { %17652 = vmatprep.subr.mxu0 %v18704_v22 }
0x1826   :  { %17650 = vmatmul.mubr.msk.f32.vlgmr.msra.gmra.mrb[88].mxu0 %vm501_vm9, %v8161_v43 }
0x1827   :  { %17653 = vmatpush3.xpose.msk.msra.mxu0 %vm501_vm9, %v8241_v53  ;;  %17654 = vmatprep.mubr.msk.f32.mxu0 %vm18705_vm8, %v18704_v22 }
0x1828   :  { %17662 = vmatprep.subr.mxu0 %v18704_v22 }
0x182a   :  { %17655 = vmatmul.mubr.msk.f32.vlgmr.msra.gmra.mrb[90].mxu0 %vm501_vm9, %v8239_v0 }
0x182b   :  { %17664 = vmatprep.mubr.msk.f32.mxu0 %vm18705_vm8, %v18704_v22 }
0x1842   :  { %v7102_v5 = vpop.xlane.xlu1 %7101 }
0x1843   :  { %v7118_v44 = vsub.f32 %v19965_v10, %v7102_v5 }
0x1845   :  { %v7124_v17 = vmul.f32 1.442695, %v7118_v44 }
0x1847   :  { %18482 = vpow2.f32 %v7124_v17 }
0x184d   :  { %v7108_v20 = vpop.xlane.xlu0 %7107 }
0x184e   :  { %v7120_v46 = vsub.f32 %v19971_v29, %v7108_v20 }
0x1850   :  { %v7128_v23 = vmul.f32 1.442695, %v7120_v46 }
0x1851   :  { %v18483_v50 = vpop.eup %18482  ;;  %v7114_v57 = vpop.xlane.xlu0 %7113 }
0x1852   :  { %18484 = vpow2.f32 %v7128_v23  ;;  %v7136_v25 = vsel %vm501_vm9, %v18483_v50, 0.0  ;;  %v7122_v10 = vsub.f32 %v19977_v45, %v7114_v57 }
0x1853   :  { %7137 = vadd.xlane.f32.xlu1 %v7136_v25 }
0x1854   :  { %v7132_v29 = vmul.f32 1.442695, %v7122_v10 }
0x1856   :  { %18486 = vpow2.f32 %v7132_v29 }
0x185c   :  { %v18485_v37 = vpop.eup %18484 }
0x185d   :  { %v7142_v27 = vsel %vm501_vm9, %v18485_v37, 0.0 }
0x185e   :  { %7143 = vadd.xlane.f32.xlu0 %v7142_v27 }
0x1860   :  { %v20031_v9 = vpop.eup %18486 }
0x1861   :  { %v7148_v61 = vsel %vm501_vm9, %v20031_v9, 0.0 }
0x1864   :  { %7318 = vrot.lane.b32.xlu1 %v19748_v1, %s18711_s28 }
0x1874   :  { %7166 = vrot.lane.b32.xlu0 %v19756_v39, %s18711_s28 }
0x1888   :  { %7149 = vadd.xlane.f32.xlu1 %v7148_v61 }
0x1899   :  { %7470 = vrot.lane.b32.xlu1 %v19760_v28, %s18711_s28 }
0x18b0   :  { %v20037_v63 = vpop.f32.mrb[74].mxu0 }
0x18b1   :  { %v17584_v30 = vpop.f32.mrb[75].mxu0 }
0x18b4   :  { %v20039_v11 = vpop.f32.mrb[76].mxu0 }
0x18b5   :  { %v17594_v45 = vpop.f32.mrb[77].mxu0 }
0x18e0   :  { %v7138_v26 = vpop.xlane.xlu1 %7137 }
0x18e1   :  { %18488 = vrcp.f32 %v7138_v26 }
0x18e4   :  { %v7319_v5 = vpop.permute.xlu1 %7318 }
0x18e5   :  { %v20041_v49 = vpop.f32.mrb[78].mxu0 }
0x18e6   :  { %v17604_v7 = vpop.f32.mrb[79].mxu0 }
0x18e9   :  { %v7922_v16 = vpop.f32.mrb[80].mxu0 }
0x18ea   :  { %v8316_v60 = vmul.f32 0.35355338, %v7922_v16  ;;  %v17631_v42 = vpop.f32.mrb[81].mxu0 }
0x18eb   :  { %v7144_v55 = vpop.xlane.xlu0 %7143  ;;  %v18489_v58 = vpop.eup %18488 }
0x18ec   :  { %v20045_v51 = vsel %vm19091_vm2, -1e+09, %v8316_v60  ;;  %18490 = vrcp.f32 %v7144_v55  ;;  %v7160_v53 = vmul.f32 %v18489_v58, %v18483_v50 }
0x18ed   :  { %v8000_v19 = vpop.f32.mrb[82].mxu0  ;;  %v8328_v59 = vsel %vm501_vm9, %v20045_v51, -inf }
0x18ee   :  { %v8317_v14 = vmul.f32 0.35355338, %v8000_v19  ;;  %v17636_v34 = vpop.f32.mrb[83].mxu0  ;;  %8329 = vmax.xlane.f32.xlu0 %v8328_v59 }
0x18ef   :  { %v7167_v43 = vpop.permute.xlu0 %7166 }
0x18f0   :  { %v8323_v0 = vsel %vm19042_vm13, -1e+09, %v8317_v14  ;;  %17576 = vmatpush3.msra.mxu1 %v7167_v43 }
0x18f1   :  { %17578 = vmatmul.mubr.msk.f32.vlgmr.msra.gmra.mrb[94].mxu1 %vm501_vm9, %v7160_v53  ;;  %17585 = vmatprep.subr.mxu1 %v18704_v22  ;;  %v8078_v44 = vpop.f32.mrb[84].mxu0  ;;  %v8331_v17 = vsel %vm501_vm9, %v8323_v0, -inf  ;;  %v16386_v53 = vld [vmem:[%s18768_s8 + $0x28] sm:$0xff] }
0x18f2   :  { %v8318_v20 = vmul.f32 0.35355338, %v8078_v44  ;;  %v17641_v46 = vpop.f32.mrb[85].mxu0  ;;  %8332 = vmax.xlane.f32.xlu1 %v8331_v17  ;;  %17586 = vmatpush3.msra.mxu1 %v7319_v5  ;;  %v16385_v5 = vld [vmem:[%s18768_s8 + $0x20] sm:$0xff] }
0x18f3   :  { %17587 = vmatprep.mubr.msk.f32.mxu1 %vm18705_vm8, %v18704_v22  ;;  %17595 = vmatprep.subr.mxu1 %v18704_v22 }
0x18f4   :  { %v8324_v23 = vsel %vm19110_vm5, -1e+09, %v8318_v20 }
0x18f5   :  { %v8156_v50 = vpop.f32.mrb[86].mxu0  ;;  %v8334_v25 = vsel %vm501_vm9, %v8324_v23, -inf }
0x18f6   :  { %v18491_v27 = vpop.eup %18490  ;;  %v8319_v57 = vmul.f32 0.35355338, %v8156_v50  ;;  %v17646_v10 = vpop.f32.mrb[87].mxu0  ;;  %8335 = vmax.xlane.f32.xlu0 %v8334_v25 }
0x18f7   :  { %v7162_v29 = vmul.f32 %v18491_v27, %v18485_v37 }
0x18f8   :  { %v8325_v61 = vsel %vm19053_vm14, -1e+09, %v8319_v57 }
0x18f9   :  { %17588 = vmatmul.mubr.msk.f32.vlgmr.msra.gmra.mrb[96].mxu1 %vm501_vm9, %v7162_v29  ;;  %v8234_v30 = vpop.f32.mrb[88].mxu0  ;;  %v8337_v45 = vsel %vm501_vm9, %v8325_v61, -inf }
0x18fa   :  { %v8320_v26 = vmul.f32 0.35355338, %v8234_v30  ;;  %v17651_v7 = vpop.f32.mrb[89].mxu0  ;;  %8338 = vmax.xlane.f32.xlu0 %v8337_v45  ;;  %17597 = vmatprep.mubr.msk.f32.mxu1 %vm18705_vm8, %v18704_v22 }
0x18fc   :  { %v8326_v16 = vsel %vm19118_vm6, -1e+09, %v8320_v26 }
0x18fd   :  { %v8312_v60 = vpop.f32.mrb[90].mxu0  ;;  %v8340_v37 = vsel %vm501_vm9, %v8326_v16, -inf }
0x18fe   :  { %v8321_v42 = vmul.f32 0.35355338, %v8312_v60  ;;  %v17656_v55 = vpop.f32.mrb[91].mxu0  ;;  %8341 = vmax.xlane.f32.xlu1 %v8340_v37 }
0x1900   :  { %v8327_v58 = vsel %vm19063_vm15, -1e+09, %v8321_v42 }
0x1901   :  { %v8343_v19 = vsel %vm501_vm9, %v8327_v58, -inf }
0x1902   :  { %8344 = vmax.xlane.f32.xlu0 %v8343_v19 }
0x190f   :  { %8394 = vrot.lane.b32.xlu1 %v19756_v39, %s18714_s7 }
0x1913   :  { %8546 = vrot.lane.b32.xlu1 %v19748_v1, %s18714_s7 }
0x1915   :  { %v7150_v59 = vpop.xlane.xlu1 %7149 }
0x1916   :  { %18492 = vrcp.f32 %v7150_v59 }
0x1917   :  { %8622 = vrot.lane.b32.xlu1 %v19744_v36, %s18714_s7 }
0x1918   :  { %8470 = vrot.lane.b32.xlu0 %v19734_v52, %s18714_s7 }
0x1919   :  { %v7471_v14 = vpop.permute.xlu1 %7470 }
0x191a   :  { %17596 = vmatpush3.msra.mxu1 %v7471_v14 }
0x191b   :  { %17605 = vmatprep.subr.mxu1 %v16386_v53 }
0x1920   :  { %v18493_v34 = vpop.eup %18492 }
0x1921   :  { %v7164_v43 = vmul.f32 %v18493_v34, %v20031_v9 }
0x1923   :  { %17598 = vmatmul.mubr.msk.f32.vlgmr.msra.gmra.mrb[98].mxu1 %vm501_vm9, %v7164_v43 }
0x1924   :  { %17606 = vmatpush3.msra.mxu1 %v16386_v53 }
0x1925   :  { %17616 = vmatprep.subr.mxu1 %v16385_v5 }
0x197b   :  { %v8330_v44 = vpop.xlane.xlu0 %8329 }
0x197c   :  { %v8346_v17 = vsub.f32 %v20045_v51, %v8330_v44 }
0x197e   :  { %v8352_v20 = vmul.f32 1.442695, %v8346_v17 }
0x197f   :  { %v8333_v46 = vpop.xlane.xlu1 %8332 }
0x1980   :  { %18494 = vpow2.f32 %v8352_v20  ;;  %v8347_v50 = vsub.f32 %v8323_v0, %v8333_v46 }
0x1982   :  { %v8354_v25 = vmul.f32 1.442695, %v8347_v50 }
0x1983   :  { %v8336_v27 = vpop.xlane.xlu0 %8335 }
0x1984   :  { %18496 = vpow2.f32 %v8354_v25  ;;  %v8348_v57 = vsub.f32 %v8324_v23, %v8336_v27 }
0x1986   :  { %v8356_v10 = vmul.f32 1.442695, %v8348_v57 }
0x1987   :  { %v8339_v9 = vpop.xlane.xlu0 %8338 }
0x1988   :  { %18498 = vpow2.f32 %v8356_v10  ;;  %v8349_v29 = vsub.f32 %v8325_v61, %v8339_v9 }
0x198a   :  { %v20085_v30 = vpop.eup %18494  ;;  %v8358_v45 = vmul.f32 1.442695, %v8349_v29 }
0x198b   :  { %v8342_v26 = vpop.xlane.xlu1 %8341  ;;  %v8364_v7 = vsel %vm501_vm9, %v20085_v30, 0.0 }
0x198c   :  { %18500 = vpow2.f32 %v8358_v45  ;;  %v8350_v51 = vsub.f32 %v8326_v16, %v8342_v26  ;;  %8365 = vadd.xlane.f32.xlu1 %v8364_v7  ;;  %v16387_v45 = vld [vmem:[%s18768_s8 + $0x30] sm:$0xff] }
0x198e   :  { %v20089_v60 = vpop.eup %18496  ;;  %v8360_v0 = vmul.f32 1.442695, %v8350_v51 }
0x198f   :  { %v8345_v37 = vpop.xlane.xlu0 %8344  ;;  %v8367_v23 = vsel %vm501_vm9, %v20089_v60, 0.0 }
0x1990   :  { %18502 = vpow2.f32 %v8360_v0  ;;  %v8351_v42 = vsub.f32 %v8327_v58, %v8345_v37  ;;  %8368 = vadd.xlane.f32.xlu0 %v8367_v23 }
0x1992   :  { %v20093_v61 = vpop.eup %18498  ;;  %v8362_v55 = vmul.f32 1.442695, %v8351_v42 }
0x1993   :  { %v8471_v19 = vpop.permute.xlu0 %8470  ;;  %v8370_v59 = vsel %vm501_vm9, %v20093_v61, 0.0 }
0x1994   :  { %18504 = vpow2.f32 %v8362_v55  ;;  %8371 = vadd.xlane.f32.xlu1 %v8370_v59  ;;  %17663 = vmatpush3.msra.mxu0 %v8471_v19 }
0x1995   :  { %17672 = vmatprep.subr.mxu0 %v18704_v22 }
0x1996   :  { %v20098_v16 = vpop.eup %18500 }
0x1997   :  { %v8373_v14 = vsel %vm501_vm9, %v20098_v16, 0.0 }
0x1998   :  { %8374 = vadd.xlane.f32.xlu0 %v8373_v14 }
0x199a   :  { %v20102_v58 = vpop.eup %18502 }
0x199b   :  { %v8376_v34 = vsel %vm501_vm9, %v20102_v58, 0.0 }
0x199c   :  { %8377 = vadd.xlane.f32.xlu1 %v8376_v34 }
0x199e   :  { %v20106_v43 = vpop.eup %18504 }
0x199f   :  { %v8379_v53 = vsel %vm501_vm9, %v20106_v43, 0.0 }
0x19a0   :  { %8380 = vadd.xlane.f32.xlu0 %v8379_v53 }
0x19ad   :  { %8774 = vrot.lane.b32.xlu1 %v19750_v6, %s18714_s7 }
0x19b1   :  { %8969 = vrot.lane.b32.xlu1 %v19756_v39, %s18715_s10 }
0x19b5   :  { %9047 = vrot.lane.b32.xlu1 %v19734_v52, %s18715_s10 }
0x19b6   :  { %8698 = vrot.lane.b32.xlu0 %v19760_v28, %s18714_s7 }
0x19b9   :  { %9205 = vrot.lane.b32.xlu1 %v19744_v36, %s18716_s11 }
0x19ba   :  { %8971 = vrot.lane.b32.xlu0 %v19756_v39, %s18716_s11 }
0x19bd   :  { %9203 = vrot.lane.b32.xlu1 %v19744_v36, %s18715_s10 }
0x19be   :  { %9049 = vrot.lane.b32.xlu0 %v19734_v52, %s18716_s11 }
0x19c1   :  { %9361 = vrot.lane.b32.xlu1 %v19750_v6, %s18716_s11 }
0x19c2   :  { %9127 = vrot.lane.b32.xlu0 %v19748_v1, %s18716_s11 }
0x19c4   :  { %v7238_v44 = vpop.f32.mrb[94].mxu1 }
0x19c5   :  { %v17579_v17 = vpop.f32.mrb[95].mxu1  ;;  %17607 = vmatprep.mubr.msk.f32.mxu1 %vm501_vm9, %v7238_v44  ;;  %9359 = vrot.lane.b32.xlu1 %v19750_v6, %s18715_s10 }
0x19c6   :  { %17608 = vmatmul.mubr.msk.f32.vlgmr.msra.gmra.mrb[100].mxu1 %vm501_vm9, %v20037_v63  ;;  %9125 = vrot.lane.b32.xlu0 %v19748_v1, %s18715_s10 }
0x19c7   :  { %17617 = vmatpush3.msra.mxu1 %v16385_v5  ;;  %v8395_v5 = vpop.permute.xlu1 %8394 }
0x19c8   :  { %17657 = vmatprep.subr.mxu1 %v18704_v22 }
0x19ca   :  { %9283 = vrot.lane.b32.xlu0 %v19760_v28, %s18716_s11 }
0x19cc   :  { %v7390_v20 = vpop.f32.mrb[96].mxu1 }
0x19cd   :  { %v17589_v46 = vpop.f32.mrb[97].mxu1  ;;  %17610 = vmatprep.mubr.msk.f32.mxu1 %vm501_vm9, %v7390_v20 }
0x19ce   :  { %17611 = vmatmul.mubr.msk.f32.gmra.mrb[102].mxu1 %vm501_vm9, %v20039_v11  ;;  %9281 = vrot.lane.b32.xlu0 %v19760_v28, %s18715_s10 }
0x19f6   :  { %v7542_v63 = vpop.f32.mrb[98].mxu1 }
0x19f7   :  { %v17599_v50 = vpop.f32.mrb[99].mxu1  ;;  %17613 = vmatprep.mubr.msk.f32.mxu1 %vm501_vm9, %v7542_v63 }
0x19f8   :  { %17614 = vmatmul.mubr.msk.f32.gmra.mrb[104].mxu1 %vm501_vm9, %v20041_v49 }
0x19f9   :  { %17618 = vmatprep.mubr.msk.f32.mxu1 %vm501_vm9, %v19944_v21  ;;  %v8547_v21 = vpop.permute.xlu1 %8546 }
0x19fc   :  { %17619 = vmatmul.mubr.msk.f32.vlgmr.msra.gmra.mrb[100].mxu1 %vm501_vm9, %v19862_v3 }
0x19fd   :  { %17658 = vmatpush3.msra.mxu1 %v8395_v5  ;;  %17621 = vmatprep.mubr.msk.f32.mxu1 %vm501_vm9, %v19946_v62  ;;  %v8623_v3 = vpop.permute.xlu1 %8622 }
0x19fe   :  { %17667 = vmatprep.subr.mxu1 %v18704_v22 }
0x1a00   :  { %17622 = vmatmul.mubr.msk.f32.gmra.mrb[102].mxu1 %vm501_vm9, %v19883_v15 }
0x1a01   :  { %17624 = vmatprep.mubr.msk.f32.mxu1 %vm501_vm9, %v19961_v4 }
0x1a04   :  { %17625 = vmatmul.mubr.msk.f32.gmra.mrb[104].mxu1 %vm501_vm9, %v19885_v54 }
0x1a05   :  { %17659 = vmatprep.mubr.msk.f32.mxu1 %vm18705_vm8, %v18704_v22 }
0x1a19   :  { %v8366_v11 = vpop.xlane.xlu1 %8365 }
0x1a1a   :  { %18506 = vrcp.f32 %v8366_v11 }
0x1a1d   :  { %v8369_v49 = vpop.xlane.xlu0 %8368 }
0x1a1e   :  { %18508 = vrcp.f32 %v8369_v49 }
0x1a21   :  { %v8372_v62 = vpop.xlane.xlu1 %8371 }
0x1a22   :  { %18510 = vrcp.f32 %v8372_v62 }
0x1a24   :  { %v18507_v25 = vpop.eup %18506 }
0x1a25   :  { %v8388_v15 = vmul.f32 %v18507_v25, %v20085_v30  ;;  %v8375_v27 = vpop.xlane.xlu0 %8374 }
0x1a26   :  { %18512 = vrcp.f32 %v8375_v27 }
0x1a27   :  { %17660 = vmatmul.mubr.msk.f32.vlgmr.msra.gmra.mrb[106].mxu1 %vm501_vm9, %v8388_v15 }
0x1a28   :  { %v18509_v4 = vpop.eup %18508  ;;  %17668 = vmatpush3.msra.mxu1 %v8547_v21  ;;  %17669 = vmatprep.mubr.msk.f32.mxu1 %vm18705_vm8, %v18704_v22 }
0x1a29   :  { %v8378_v54 = vpop.xlane.xlu1 %8377  ;;  %v8389_v57 = vmul.f32 %v18509_v4, %v20089_v60  ;;  %17677 = vmatprep.subr.mxu1 %v18704_v22 }
0x1a2a   :  { %18514 = vrcp.f32 %v8378_v54 }
0x1a2b   :  { %17665 = vmatmul.mubr.msk.f32.vlgmr.msra.gmra.mrb[92].mxu0 %vm501_vm9, %v8389_v57 }
0x1a2c   :  { %v18511_v10 = vpop.eup %18510  ;;  %17673 = vmatpush3.msra.mxu0 %v8623_v3  ;;  %17674 = vmatprep.mubr.msk.f32.mxu0 %vm18705_vm8, %v18704_v22 }
0x1a2d   :  { %v8381_v9 = vpop.xlane.xlu0 %8380  ;;  %v8390_v29 = vmul.f32 %v18511_v10, %v20093_v61  ;;  %17682 = vmatprep.subr.mxu0 %v18704_v22  ;;  %v8775_v51 = vpop.permute.xlu1 %8774 }
0x1a2e   :  { %18516 = vrcp.f32 %v8381_v9 }
0x1a2f   :  { %17670 = vmatmul.mubr.msk.f32.vlgmr.msra.gmra.mrb[108].mxu1 %vm501_vm9, %v8390_v29 }
0x1a30   :  { %v18513_v30 = vpop.eup %18512  ;;  %17679 = vmatprep.mubr.msk.f32.mxu1 %vm18705_vm8, %v18704_v22 }
0x1a31   :  { %v8699_v26 = vpop.permute.xlu0 %8698  ;;  %v8391_v7 = vmul.f32 %v18513_v30, %v20098_v16  ;;  %v8970_v55 = vpop.permute.xlu1 %8969 }
0x1a32   :  { %17678 = vmatpush3.msra.mxu1 %v8699_v26 }
0x1a33   :  { %17675 = vmatmul.mubr.msk.f32.vlgmr.msra.gmra.mrb[94].mxu0 %vm501_vm9, %v8391_v7  ;;  %17687 = vmatprep.subr.mxu1 %v16387_v45 }
0x1a34   :  { %v18515_v60 = vpop.eup %18514  ;;  %17683 = vmatpush3.msra.mxu0 %v8775_v51  ;;  %17684 = vmatprep.mubr.msk.f32.mxu0 %vm18705_vm8, %v18704_v22 }
0x1a35   :  { %v8972_v0 = vpop.permute.xlu0 %8971  ;;  %v8392_v37 = vmul.f32 %v18515_v60, %v20102_v58  ;;  %17698 = vmatprep.subr.mxu0 %v18704_v22  ;;  %v9048_v16 = vpop.permute.xlu1 %9047 }
0x1a37   :  { %17680 = vmatmul.mubr.msk.f32.vlgmr.msra.gmra.mrb[110].mxu1 %vm501_vm9, %v8392_v37 }
0x1a38   :  { %v18517_v23 = vpop.eup %18516  ;;  %17688 = vmatpush3.msra.mxu1 %v16387_v45 }
0x1a39   :  { %v9050_v42 = vpop.permute.xlu0 %9049  ;;  %v8393_v61 = vmul.f32 %v18517_v23, %v20106_v43  ;;  %17713 = vmatprep.subr.mxu1 %v18704_v22  ;;  %v9206_v44 = vpop.permute.xlu1 %9205 }
0x1a3b   :  { %17685 = vmatmul.mubr.msk.f32.vlgmr.msra.gmra.mrb[96].mxu0 %vm501_vm9, %v8393_v61 }
0x1a3c   :  { %17699 = vmatpush3.xpose.msk.msra.mxu0 %vm501_vm9, %v8972_v0  ;;  %17700 = vmatprep.mubr.msk.f32.mxu0 %vm18705_vm8, %v18704_v22 }
0x1a3d   :  { %v9128_v19 = vpop.permute.xlu0 %9127  ;;  %17703 = vmatprep.subr.mxu0 %v18704_v22  ;;  %v9204_v5 = vpop.permute.xlu1 %9203 }
0x1a3f   :  { %17701 = vmatmul.mubr.msk.f32.vlgmr.msra.gmra.mrb[98].mxu0 %vm501_vm9, %v8970_v55 }
0x1a40   :  { %17704 = vmatpush3.xpose.msk.msra.mxu0 %vm501_vm9, %v9050_v42  ;;  %17705 = vmatprep.mubr.msk.f32.mxu0 %vm18705_vm8, %v18704_v22 }
0x1a41   :  { %v9126_v59 = vpop.permute.xlu0 %9125  ;;  %17708 = vmatprep.subr.mxu0 %v18704_v22  ;;  %v9362_v62 = vpop.permute.xlu1 %9361 }
0x1a43   :  { %17706 = vmatmul.mubr.msk.f32.vlgmr.msra.gmra.mrb[100].mxu0 %vm501_vm9, %v9048_v16 }
0x1a44   :  { %17709 = vmatpush3.xpose.msk.msra.mxu0 %vm501_vm9, %v9128_v19  ;;  %17710 = vmatprep.mubr.msk.f32.mxu0 %vm18705_vm8, %v18704_v22 }
0x1a45   :  { %v9284_v14 = vpop.permute.xlu0 %9283  ;;  %17718 = vmatprep.subr.mxu0 %v18704_v22  ;;  %v9360_v54 = vpop.permute.xlu1 %9359 }
0x1a47   :  { %17711 = vmatmul.mubr.msk.f32.vlgmr.msra.gmra.mrb[102].mxu0 %vm501_vm9, %v9126_v59 }
0x1a48   :  { %17719 = vmatpush3.xpose.msk.msra.mxu0 %vm501_vm9, %v9284_v14  ;;  %17720 = vmatprep.mubr.msk.f32.mxu0 %vm18705_vm8, %v18704_v22 }
0x1a49   :  { %v9282_v58 = vpop.permute.xlu0 %9281  ;;  %17728 = vmatprep.subr.mxu0 %v18704_v22 }
0x1a4b   :  { %17721 = vmatmul.mubr.msk.f32.vlgmr.msra.gmra.mrb[104].mxu0 %vm501_vm9, %v9282_v58 }
0x1a4c   :  { %17730 = vmatprep.mubr.msk.f32.mxu0 %vm18705_vm8, %v18704_v22 }
0x1afa   :  { %v8466_v34 = vpop.f32.mrb[106].mxu1 }
0x1afb   :  { %v17661_v43 = vpop.f32.mrb[107].mxu1  ;;  %17689 = vmatprep.mubr.msk.f32.mxu1 %vm501_vm9, %v8466_v34 }
0x1afe   :  { %v8542_v53 = vpop.f32.mrb[92].mxu0 }
0x1aff   :  { %v17666_v17 = vpop.f32.mrb[93].mxu0  ;;  %17690 = vmatmul.mubr.msk.f32.vlgmr.msra.gmra.mrb[100].mxu1 %vm501_vm9, %v8542_v53 }
0x1b00   :  { %17714 = vmatpush3.xpose.msk.msra.mxu1 %vm501_vm9, %v9206_v44 }
0x1b01   :  { %17723 = vmatprep.subr.mxu1 %v18704_v22 }
0x1b02   :  { %v8618_v20 = vpop.f32.mrb[108].mxu1 }
0x1b03   :  { %v17671_v46 = vpop.f32.mrb[109].mxu1  ;;  %17692 = vmatprep.mubr.msk.f32.mxu1 %vm501_vm9, %v8618_v20 }
0x1b06   :  { %v8694_v63 = vpop.f32.mrb[94].mxu0 }
0x1b07   :  { %v17676_v50 = vpop.f32.mrb[95].mxu0  ;;  %17693 = vmatmul.mubr.msk.f32.gmra.mrb[102].mxu1 %vm501_vm9, %v8694_v63 }
0x1b0a   :  { %v8770_v21 = vpop.f32.mrb[110].mxu1 }
0x1b0b   :  { %v17681_v3 = vpop.f32.mrb[111].mxu1  ;;  %17695 = vmatprep.mubr.msk.f32.mxu1 %vm501_vm9, %v8770_v21 }
0x1b0e   :  { %v8846_v11 = vpop.f32.mrb[96].mxu0 }
0x1b0f   :  { %v17686_v49 = vpop.f32.mrb[97].mxu0  ;;  %17696 = vmatmul.mubr.msk.f32.gmra.mrb[104].mxu1 %vm501_vm9, %v8846_v11 }
0x1b10   :  { %17715 = vmatprep.mubr.msk.f32.mxu1 %vm18705_vm8, %v18704_v22 }
0x1b12   :  { %v9043_v25 = vpop.f32.mrb[98].mxu0 }
0x1b13   :  { %v9437_v15 = vmul.f32 0.35355338, %v9043_v25  ;;  %v17702_v27 = vpop.f32.mrb[99].mxu0  ;;  %17716 = vmatmul.mubr.msk.f32.vlgmr.msra.gmra.mrb[112].mxu1 %vm501_vm9, %v9204_v5 }
0x1b14   :  { %17724 = vmatpush3.xpose.msk.msra.mxu1 %vm501_vm9, %v9362_v62  ;;  %17725 = vmatprep.mubr.msk.f32.mxu1 %vm18705_vm8, %v18704_v22 }
0x1b15   :  { %v9443_v4 = vsel %vm19091_vm2, -1e+09, %v9437_v15  ;;  %17733 = vmatprep.subr.mxu1 %v18704_v22 }
0x1b16   :  { %v9121_v57 = vpop.f32.mrb[100].mxu0  ;;  %v9449_v10 = vsel %vm501_vm9, %v9443_v4, -inf }
0x1b17   :  { %v9438_v9 = vmul.f32 0.35355338, %v9121_v57  ;;  %17726 = vmatmul.mubr.msk.f32.vlgmr.msra.gmra.mrb[114].mxu1 %vm501_vm9, %v9360_v54  ;;  %9450 = vmax.xlane.f32.xlu0 %v9449_v10  ;;  %v17707_v29 = vpop.f32.mrb[101].mxu0 }
0x1b18   :  { %17735 = vmatprep.mubr.msk.f32.mxu1 %vm18705_vm8, %v18704_v22 }
0x1b19   :  { %v9444_v30 = vsel %vm19042_vm13, -1e+09, %v9438_v9  ;;  %vm10726_vm13 = vcmask 1043459  }
0x1b1a   :  { %v9199_v45 = vpop.f32.mrb[102].mxu0  ;;  %v9452_v32 = vsel %vm501_vm9, %v9444_v30, -inf }
0x1b1b   :  { %v9439_v26 = vmul.f32 0.35355338, %v9199_v45  ;;  %9453 = vmax.xlane.f32.xlu1 %v9452_v32  ;;  %v17712_v7 = vpop.f32.mrb[103].mxu0 }
0x1b1d   :  { %v9445_v51 = vsel %vm19110_vm5, -1e+09, %v9439_v26 }
0x1b1e   :  { %v9355_v60 = vpop.f32.mrb[104].mxu0  ;;  %v9455_v0 = vsel %vm501_vm9, %v9445_v51, -inf }
0x1b1f   :  { %v9441_v37 = vmul.f32 0.35355338, %v9355_v60  ;;  %9456 = vmax.xlane.f32.xlu0 %v9455_v0  ;;  %v17722_v23 = vpop.f32.mrb[105].mxu0 }
0x1b21   :  { %v9447_v42 = vsel %vm19118_vm6, -1e+09, %v9441_v37  ;;  %vm11128_vm6 = vcmask 1042432  }
0x1b22   :  { %v9461_v31 = vsel %vm501_vm9, %v9447_v42, -inf }
0x1b23   :  { %9462 = vmax.xlane.f32.xlu1 %v9461_v31 }
0x1ba4   :  { %v9451_v61 = vpop.xlane.xlu0 %9450 }
0x1ba5   :  { %v9467_v55 = vsub.f32 %v9443_v4, %v9451_v61 }
0x1ba7   :  { %v9473_v19 = vmul.f32 1.442695, %v9467_v55 }
0x1ba8   :  { %v9454_v59 = vpop.xlane.xlu1 %9453 }
0x1ba9   :  { %18518 = vpow2.f32 %v9473_v19  ;;  %v9468_v63 = vsub.f32 %v9444_v30, %v9454_v59 }
0x1bab   :  { %v9475_v50 = vmul.f32 1.442695, %v9468_v63 }
0x1bac   :  { %v9457_v16 = vpop.xlane.xlu0 %9456 }
0x1bad   :  { %v9469_v41 = vsub.f32 %v9445_v51, %v9457_v16 }
0x1baf   :  { %v9477_v14 = vmul.f32 1.442695, %v9469_v41 }
0x1bb0   :  { %v9463_v58 = vpop.xlane.xlu1 %9462 }
0x1bb1   :  { %18520 = vpow2.f32 %v9477_v14  ;;  %v9471_v34 = vsub.f32 %v9447_v42, %v9463_v58 }
0x1bb3   :  { %v18519_v43 = vpop.eup %18518  ;;  %v9481_v53 = vmul.f32 1.442695, %v9471_v34 }
0x1bb4   :  { %v9485_v44 = vsel %vm501_vm9, %v18519_v43, 0.0 }
0x1bb5   :  { %18522 = vpow2.f32 %v9481_v53  ;;  %9486 = vadd.xlane.f32.xlu1 %v9485_v44 }
0x1bb6   :  { %18524 = vpow2.f32 %v9475_v50 }
0x1bbb   :  { %v18521_v47 = vpop.eup %18520 }
0x1bbc   :  { %v9491_v17 = vsel %vm501_vm9, %v18521_v47, 0.0 }
0x1bbd   :  { %9492 = vadd.xlane.f32.xlu1 %v9491_v17 }
0x1bbf   :  { %v20242_v20 = vpop.eup %18522 }
0x1bc0   :  { %v9497_v46 = vsel %vm501_vm9, %v20242_v20, 0.0 }
0x1bc1   :  { %9498 = vadd.xlane.f32.xlu1 %v9497_v46 }
0x1bd2   :  { %9515 = vrot.lane.b32.xlu1 %v19756_v39, %s18717_s15 }
0x1bd6   :  { %9667 = vrot.lane.b32.xlu1 %v19748_v1, %s18717_s15 }
0x1bda   :  { %9743 = vrot.lane.b32.xlu1 %v19744_v36, %s18717_s15 }
0x1bde   :  { %9895 = vrot.lane.b32.xlu1 %v19750_v6, %s18717_s15  ;;  %v18525_v6 = vpop.eup %18524 }
0x1bdf   :  { %v9488_v15 = vsel %vm501_vm9, %v18525_v6, 0.0 }
0x1be6   :  { %v9277_v5 = vpop.f32.mrb[112].mxu1 }
0x1be7   :  { %v9440_v21 = vmul.f32 0.35355338, %v9277_v5  ;;  %v17717_v3 = vpop.f32.mrb[113].mxu1 }
0x1be9   :  { %v9446_v11 = vsel %vm19053_vm14, -1e+09, %v9440_v21  ;;  %vm10729_vm14 = vcmask 1044484  }
0x1bea   :  { %v9433_v49 = vpop.f32.mrb[114].mxu1  ;;  %v9458_v39 = vsel %vm501_vm9, %v9446_v11, -inf }
0x1beb   :  { %v9442_v62 = vmul.f32 0.35355338, %v9433_v49  ;;  %v17727_v1 = vpop.f32.mrb[115].mxu1  ;;  %9459 = vmax.xlane.f32.xlu0 %v9458_v39 }
0x1bed   :  { %v9448_v36 = vsel %vm19063_vm15, -1e+09, %v9442_v62  ;;  %v16486_v62 = vld [vmem:[%s18773_s14 + $0x1] ss:$0 sm:$0xff]  ;;  %vm10732_vm15 = vcmask 1045509   ;;  %s21220_s14 = sld [smem:[#allocation5_spill]] }
0x1bee   :  { %v9464_v25 = vsel %vm501_vm9, %v9448_v36, -inf }
0x1bef   :  { %9465 = vmax.xlane.f32.xlu0 %v9464_v25 }
0x1bf3   :  { %9489 = vadd.xlane.f32.xlu0 %v9488_v15 }
0x1c09   :  { %9591 = vrot.lane.b32.xlu0 %v19734_v52, %s18717_s15 }
0x1c42   :  { %v9487_v40 = vpop.xlane.xlu1 %9486 }
0x1c43   :  { %18526 = vrcp.f32 %v9487_v40 }
0x1c4a   :  { %v9493_v27 = vpop.xlane.xlu1 %9492 }
0x1c4b   :  { %18528 = vrcp.f32 %v9493_v27 }
0x1c4d   :  { %v18527_v54 = vpop.eup %18526 }
0x1c4e   :  { %v9499_v4 = vpop.xlane.xlu1 %9498  ;;  %v9509_v10 = vmul.f32 %v18527_v54, %v18519_v43  ;;  %v16388_v43 = vld [vmem:[%s18768_s8 + $0x38] sm:$0xff]  ;;  %s21219_s8 = sld [smem:[#allocation10_spill]] }
0x1c52   :  { %v9516_v57 = vpop.permute.xlu1 %9515 }
0x1c53   :  { %17729 = vmatpush3.msra.mxu0 %v9516_v57 }
0x1c54   :  { %17731 = vmatmul.mubr.msk.f32.vlgmr.msra.gmra.mrb[106].mxu0 %vm501_vm9, %v9509_v10  ;;  %17738 = vmatprep.subr.mxu0 %v18704_v22 }
0x1c55   :  { %v18529_v56 = vpop.eup %18528  ;;  %17740 = vmatprep.mubr.msk.f32.mxu0 %vm18705_vm8, %v18704_v22 }
0x1c56   :  { %v9668_v9 = vpop.permute.xlu1 %9667  ;;  %v9511_v29 = vmul.f32 %v18529_v56, %v18521_v47 }
0x1c57   :  { %17739 = vmatpush3.msra.mxu0 %v9668_v9 }
0x1c58   :  { %17741 = vmatmul.mubr.msk.f32.vlgmr.msra.gmra.mrb[108].mxu0 %vm501_vm9, %v9511_v29  ;;  %17748 = vmatprep.subr.mxu0 %v18704_v22 }
0x1c59   :  { %17750 = vmatprep.mubr.msk.f32.mxu0 %vm18705_vm8, %v18704_v22 }
0x1c5a   :  { %v9744_v55 = vpop.permute.xlu1 %9743 }
0x1c5e   :  { %v9896_v53 = vpop.permute.xlu1 %9895 }
0x1c78   :  { %v9460_v52 = vpop.xlane.xlu0 %9459 }
0x1c79   :  { %v9470_v30 = vsub.f32 %v9446_v11, %v9460_v52 }
0x1c7b   :  { %v9479_v45 = vmul.f32 1.442695, %v9470_v30 }
0x1c7c   :  { %v9466_v32 = vpop.xlane.xlu0 %9465 }
0x1c7d   :  { %18530 = vpow2.f32 %v9479_v45  ;;  %v9472_v26 = vsub.f32 %v9448_v36, %v9466_v32 }
0x1c7f   :  { %v9483_v7 = vmul.f32 1.442695, %v9472_v26 }
0x1c80   :  { %v9490_v51 = vpop.xlane.xlu0 %9489 }
0x1c81   :  { %18532 = vpow2.f32 %v9483_v7 }
0x1c82   :  { %18534 = vrcp.f32 %v9490_v51 }
0x1c83   :  { %18536 = vrcp.f32 %v9499_v4 }
0x1c84   :  { %v9592_v60 = vpop.permute.xlu0 %9591 }
0x1c85   :  { %17734 = vmatpush3.msra.mxu1 %v9592_v60 }
0x1c86   :  { %17743 = vmatprep.subr.mxu1 %v18704_v22 }
0x1c87   :  { %v18531_v0 = vpop.eup %18530 }
0x1c88   :  { %v9494_v37 = vsel %vm501_vm9, %v18531_v0, 0.0 }
0x1c89   :  { %9495 = vadd.xlane.f32.xlu0 %v9494_v37 }
0x1c8b   :  { %v18533_v23 = vpop.eup %18532 }
0x1c8c   :  { %v18535_v42 = vpop.eup %18534  ;;  %v9500_v31 = vsel %vm501_vm9, %v18533_v23, 0.0 }
0x1c8d   :  { %9501 = vadd.xlane.f32.xlu0 %v9500_v31  ;;  %v9510_v61 = vmul.f32 %v18535_v42, %v18525_v6  ;;  %v18537_v16 = vpop.eup %18536 }
0x1c8e   :  { %v9513_v14 = vmul.f32 %v18537_v16, %v20242_v20  ;;  %v16493_v16 = vld [vmem:[%s18788_s30 + $0x30] sm:$0xff] }
0x1c8f   :  { %17736 = vmatmul.mubr.msk.f32.vlgmr.msra.gmra.mrb[116].mxu1 %vm501_vm9, %v9510_v61 }
0x1c90   :  { %17744 = vmatpush3.msra.mxu1 %v9744_v55  ;;  %17745 = vmatprep.mubr.msk.f32.mxu1 %vm18705_vm8, %v18704_v22  ;;  %v16491_v55 = vld [vmem:[%s18788_s30 + $0x20] sm:$0xff] }
0x1c91   :  { %17753 = vmatprep.subr.mxu1 %v18704_v22 }
0x1ca3   :  { %9819 = vrot.lane.b32.xlu0 %v19760_v28, %s18717_s15 }
0x1d16   :  { %v9496_v19 = vpop.xlane.xlu0 %9495 }
0x1d17   :  { %18538 = vrcp.f32 %v9496_v19  ;;  %v16492_v19 = vld [vmem:[%s18788_s30 + $0x28] sm:$0xff] }
0x1d1a   :  { %v9502_v59 = vpop.xlane.xlu0 %9501 }
0x1d1b   :  { %18540 = vrcp.f32 %v9502_v59  ;;  %v18160_v59 = vpack.c.bf16 %v16492_v19, %v16491_v55 }
0x1d1e   :  { %v9820_v41 = vpop.permute.xlu0 %9819 }
0x1d1f   :  { %17749 = vmatpush3.msra.mxu0 %v9820_v41  ;;  %v16494_v41 = vld [vmem:[%s18788_s30 + $0x38] sm:$0xff]  ;;  %s21227_s30 = sld [smem:[#allocation15_spill]] }
0x1d20   :  { %17751 = vmatmul.mubr.msk.f32.vlgmr.msra.gmra.mrb[110].mxu0 %vm501_vm9, %v9513_v14  ;;  %18161 = vmatprep.subr.bf16.mxu0 %v18160_v59  ;;  %v18164_v14 = vpack.c.bf16 %v16494_v41, %v16493_v16 }
0x1d21   :  { %v18539_v58 = vpop.eup %18538  ;;  %18163 = vmatpush3.bf16.msra.mxu0 %v18160_v59 }
0x1d22   :  { %v9512_v34 = vmul.f32 %v18539_v58, %v18531_v0  ;;  %18165 = vmatprep.subr.bf16.mxu0 %v18164_v14 }
0x1d24   :  { %17746 = vmatmul.mubr.msk.f32.vlgmr.msra.gmra.mrb[118].mxu1 %vm501_vm9, %v9512_v34 }
0x1d25   :  { %v18541_v44 = vpop.eup %18540  ;;  %17754 = vmatpush3.msra.mxu1 %v9896_v53  ;;  %17755 = vmatprep.mubr.msk.f32.mxu1 %vm18705_vm8, %v18704_v22 }
0x1d26   :  { %v9514_v28 = vmul.f32 %v18541_v44, %v18533_v23  ;;  %17758 = vmatprep.subr.mxu1 %v16388_v43  ;;  %18167 = vmatpush3.bf16.msra.mxu0 %v18164_v14 }
0x1d27   :  { %v9587_v47 = vpop.f32.mrb[106].mxu0 }
0x1d28   :  { %v17732_v17 = vpop.f32.mrb[107].mxu0  ;;  %17756 = vmatmul.mubr.msk.f32.vlgmr.msra.gmra.mrb[120].mxu1 %vm501_vm9, %v9514_v28 }
0x1d29   :  { %17760 = vmatprep.mubr.msk.f32.mxu1 %vm501_vm9, %v9587_v47  ;;  %17759 = vmatpush3.msra.mxu1 %v16388_v43 }
0x1d2b   :  { %v9739_v20 = vpop.f32.mrb[108].mxu0 }
0x1d2c   :  { %v17742_v46 = vpop.f32.mrb[109].mxu0 }
0x1d62   :  { %v9663_v63 = vpop.f32.mrb[116].mxu1 }
0x1d63   :  { %v17737_v50 = vpop.f32.mrb[117].mxu1  ;;  %17761 = vmatmul.mubr.msk.f32.vlgmr.msra.gmra.mrb[100].mxu1 %vm501_vm9, %v9663_v63 }
0x1d64   :  { %17763 = vmatprep.mubr.msk.f32.mxu1 %vm501_vm9, %v9739_v20 }
0x1df3   :  { %v9891_v5 = vpop.f32.mrb[110].mxu0 }
0x1df4   :  { %v17752_v21 = vpop.f32.mrb[111].mxu0 }
0x1df7   :  { %v9815_v3 = vpop.f32.mrb[118].mxu1 }
0x1df8   :  { %v17747_v11 = vpop.f32.mrb[119].mxu1  ;;  %17764 = vmatmul.mubr.msk.f32.gmra.mrb[102].mxu1 %vm501_vm9, %v9815_v3 }
0x1df9   :  { %17766 = vmatprep.mubr.msk.f32.mxu1 %vm501_vm9, %v9891_v5 }
0x1dfb   :  { %v9967_v49 = vpop.f32.mrb[120].mxu1 }
0x1dfc   :  { %v17757_v39 = vpop.f32.mrb[121].mxu1  ;;  %17767 = vmatmul.mubr.msk.f32.gmra.mrb[104].mxu1 %vm501_vm9, %v9967_v49 }
0x1e36   :  { %v17762_v1 = vpop.f32.mrb[100].mxu1 }
0x1e37   :  { %v10099_v36 = vadd.f32 %v17762_v1, %v16486_v62  ;;  %v10055_v25 = vpop.f32.mrb[101].mxu1 }
0x1e38   :  { %v10098_v6 = vadd.f32 %v16486_v62, %v10055_v25 }
0x1e39   :  { %v10105_v15 = vadd.f32 %v10099_v36, %v19709_v33 }
0x1e3a   :  { %v10104_v40 = vadd.f32 %v10098_v6, %v19707_v35 }
0x1e3b   :  { %v10117_v27 = vsel %vm320_vm7, %v10105_v15, 0.0 }
0x1e3c   :  { %10118 = vadd.xlane.f32.xlu1 %v10117_v27  ;;  %v10114_v4 = vsel %vm320_vm7, %v10104_v40, 0.0 }
0x1e3d   :  { %10115 = vadd.xlane.f32.xlu0 %v10114_v4 }
0x1ec9   :  { %v10119_v9 = vpop.xlane.xlu1 %10118 }
0x1eca   :  { %v10116_v54 = vpop.xlane.xlu0 %10115  ;;  %v10133_v32 = vmul.f32 0.03125, %v10119_v9 }
0x1ecb   :  { %v17765_v57 = vpop.f32.mrb[102].mxu1  ;;  %v10132_v10 = vmul.f32 0.03125, %v10116_v54  ;;  %v20337_v54 = vld [vmem:[%s18778_s19 + $0x1] ss:$0 sm:$0xff]  ;;  %s21225_s19 = sld [smem:[#allocation11_spill]] }
0x1ecc   :  { %v10065_v56 = vpop.f32.mrb[103].mxu1  ;;  %v10101_v29 = vadd.f32 %v17765_v57, %v16486_v62  ;;  %v10139_v37 = vsub.f32 %v10105_v15, %v10133_v32  ;;  %v16503_v32 = vld [vmem:[%s18798_s12 + $0x40] sm:$0xff] }
0x1ecd   :  { %v10100_v52 = vadd.f32 %v16486_v62, %v10065_v56  ;;  %v20299_v33 = vsub.f32 %v10104_v40, %v10132_v10  ;;  %v20341_v10 = vld [vmem:[%s18783_s24 + $0x1] ss:$0 sm:$0xff]  ;;  %s21226_s24 = sld [smem:[#allocation12_spill]] }
0x1ece   :  { %v10107_v26 = vadd.f32 %v10101_v29, %v19717_v48 }
0x1ecf   :  { %v10106_v30 = vadd.f32 %v10100_v52, %v19715_v18  ;;  %v17768_v45 = vpop.f32.mrb[104].mxu1  ;;  %v10144_v48 = vmul.f32 %v20299_v33, %v20299_v33 }
0x1ed0   :  { %v10075_v35 = vpop.f32.mrb[105].mxu1  ;;  %v10103_v7 = vadd.f32 %v17768_v45, %v16486_v62  ;;  %v10123_v18 = vsel %vm320_vm7, %v10107_v26, 0.0 }
0x1ed1   :  { %v10102_v51 = vadd.f32 %v16486_v62, %v10075_v35  ;;  %v10120_v60 = vsel %vm320_vm7, %v10106_v30, 0.0  ;;  %v10150_v61 = vsel %vm320_vm7, %v10144_v48, 0.0  ;;  %v16505_v35 = vld [vmem:[%s18798_s12 + $0x50] sm:$0xff] }
0x1ed2   :  { %10121 = vadd.xlane.f32.xlu0 %v10120_v60  ;;  %v10109_v23 = vadd.f32 %v10103_v7, %v19725_v8  ;;  %v16506_v7 = vld [vmem:[%s18798_s12 + $0x58] sm:$0xff]  ;;  %v16507_v60 = vld [vmem:[%s18798_s12 + $0x60] sm:$0xff] }
0x1ed3   :  { %v10108_v0 = vadd.f32 %v10102_v51, %v19723_v38  ;;  %v10145_v38 = vmul.f32 %v10139_v37, %v10139_v37  ;;  %v18172_v51 = vpack.c.bf16 %v16506_v7, %v16505_v35  ;;  %v16512_v35 = vld [vmem:[%s18803_s20 + $0x1] ss:$0 sm:$0xff]  ;;  %s21230_s20 = sld [smem:[#allocation14_spill]] }
0x1ed4   :  { %v10129_v31 = vsel %vm320_vm7, %v10109_v23, 0.0 }
0x1ed5   :  { %v10126_v42 = vsel %vm320_vm7, %v10108_v0, 0.0  ;;  %v10153_v8 = vsel %vm320_vm7, %v10145_v38, 0.0 }
0x1ed6   :  { %10124 = vadd.xlane.f32.xlu0 %v10123_v18  ;;  %10127 = vadd.xlane.f32.xlu1 %v10126_v42  ;;  %v16510_v18 = vld [vmem:[%s18798_s12 + $0x78] sm:$0xff] }
0x1eda   :  { %10130 = vadd.xlane.f32.xlu0 %v10129_v31  ;;  %10151 = vadd.xlane.f32.xlu1 %v10150_v61 }
0x1ede   :  { %10154 = vadd.xlane.f32.xlu0 %v10153_v8 }
0x1f5f   :  { %v10122_v58 = vpop.xlane.xlu0 %10121 }
0x1f60   :  { %v10134_v34 = vmul.f32 0.03125, %v10122_v58 }
0x1f62   :  { %v20316_v43 = vsub.f32 %v10106_v30, %v10134_v34 }
0x1f63   :  { %v10128_v53 = vpop.xlane.xlu1 %10127  ;;  %v10125_v44 = vpop.xlane.xlu0 %10124 }
0x1f64   :  { %v10136_v28 = vmul.f32 0.03125, %v10128_v53  ;;  %v10135_v47 = vmul.f32 0.03125, %v10125_v44  ;;  %v10146_v17 = vmul.f32 %v20316_v43, %v20316_v43 }
0x1f66   :  { %v20320_v20 = vsub.f32 %v10108_v0, %v10136_v28  ;;  %v20322_v46 = vsub.f32 %v10107_v26, %v10135_v47  ;;  %v10156_v63 = vsel %vm320_vm7, %v10146_v17, 0.0  ;;  %v16508_v0 = vld [vmem:[%s18798_s12 + $0x68] sm:$0xff] }
0x1f67   :  { %v10152_v50 = vpop.xlane.xlu1 %10151  ;;  %10157 = vadd.xlane.f32.xlu1 %v10156_v63  ;;  %v10131_v5 = vpop.xlane.xlu0 %10130 }
0x1f68   :  { %v10168_v21 = vmul.f32 0.03125, %v10152_v50  ;;  %v10137_v3 = vmul.f32 0.03125, %v10131_v5  ;;  %v10148_v11 = vmul.f32 %v20320_v20, %v20320_v20  ;;  %v10147_v49 = vmul.f32 %v20322_v46, %v20322_v46 }
0x1f6a   :  { %v10174_v39 = vadd.f32 1e-05, %v10168_v21  ;;  %v20329_v62 = vsub.f32 %v10109_v23, %v10137_v3  ;;  %v10162_v1 = vsel %vm320_vm7, %v10148_v11, 0.0  ;;  %v10159_v36 = vsel %vm320_vm7, %v10147_v49, 0.0  ;;  %v16509_v23 = vld [vmem:[%s18798_s12 + $0x70] sm:$0xff] }
0x1f6b   :  { %10163 = vadd.xlane.f32.xlu1 %v10162_v1  ;;  %10160 = vadd.xlane.f32.xlu0 %v10159_v36  ;;  %v10155_v25 = vpop.xlane.xlu0 %10154  ;;  %v18180_v42 = vpack.c.bf16 %v16510_v18, %v16509_v23 }
0x1f6c   :  { %18542 = vrsqrt.f32 %v10174_v39  ;;  %v10169_v6 = vmul.f32 0.03125, %v10155_v25  ;;  %v10149_v15 = vmul.f32 %v20329_v62, %v20329_v62 }
0x1f6e   :  { %v10175_v40 = vadd.f32 1e-05, %v10169_v6  ;;  %v10165_v27 = vsel %vm320_vm7, %v10149_v15, 0.0 }
0x1f6f   :  { %10166 = vadd.xlane.f32.xlu0 %v10165_v27 }
0x1f70   :  { %18544 = vrsqrt.f32 %v10175_v40 }
0x1f76   :  { %v18543_v4 = vpop.eup %18542 }
0x1f77   :  { %v10186_v57 = vmul.f32 %v18543_v4, %v20299_v33  ;;  %v16504_v33 = vld [vmem:[%s18798_s12 + $0x48] sm:$0xff]  ;;  %s21229_s12 = sld [smem:[#allocation13_spill]] }
0x1f78   :  { %v18168_v26 = vpack.c.bf16 %v16504_v33, %v16503_v32 }
0x1f79   :  { %v10198_v56 = vmul.f32 %v20337_v54, %v10186_v57 }
0x1f7a   :  { %v18545_v9 = vpop.eup %18544  ;;  %18169 = vmatprep.subr.bf16.mxu1 %v18168_v26 }
0x1f7b   :  { %v10187_v29 = vmul.f32 %v18545_v9, %v10139_v37  ;;  %v20345_v52 = vadd.f32 %v20341_v10, %v10198_v56  ;;  %18171 = vmatpush3.bf16.msra.mxu1 %v18168_v26  ;;  %v18176_v37 = vpack.c.bf16 %v16508_v0, %v16507_v60 }
0x1f7c   :  { %18173 = vmatprep.subr.bf16.mxu1 %v18172_v51 }
0x1f7d   :  { %17777 = vmatprep.mubr.msk.f32.mxu0 %vm320_vm7, %v20345_v52  ;;  %v10199_v30 = vmul.f32 %v20337_v54, %v10187_v29 }
0x1f7f   :  { %v20351_v45 = vadd.f32 %v20341_v10, %v10199_v30  ;;  %18175 = vmatpush3.bf16.msra.mxu1 %v18172_v51 }
0x1f80   :  { %18177 = vmatprep.subr.bf16.mxu1 %v18176_v37 }
0x1f81   :  { %17778 = vmatmul.mubr.msk.f32.vlgmr.msra.gmra.mrb[112].mxu0 %vm320_vm7, %v20351_v45 }
0x1f83   :  { %18179 = vmatpush3.bf16.msra.mxu1 %v18176_v37 }
0x1f84   :  { %18181 = vmatprep.subr.bf16.mxu1 %v18180_v42 }
0x1f87   :  { %18183 = vmatpush3.bf16.msra.mxu1 %v18180_v42 }
0x1f88   :  { %17837 = vmatprep.subr.mxu1 %v18704_v22 }
0x1ff4   :  { %v10158_v48 = vpop.xlane.xlu1 %10157 }
0x1ff5   :  { %v10170_v31 = vmul.f32 0.03125, %v10158_v48 }
0x1ff7   :  { %v10176_v61 = vadd.f32 1e-05, %v10170_v31 }
0x1ff8   :  { %v10164_v38 = vpop.xlane.xlu1 %10163  ;;  %v10161_v8 = vpop.xlane.xlu0 %10160 }
0x1ff9   :  { %18546 = vrsqrt.f32 %v10176_v61  ;;  %v10172_v55 = vmul.f32 0.03125, %v10164_v38  ;;  %v10171_v19 = vmul.f32 0.03125, %v10161_v8 }
0x1ffb   :  { %v10178_v59 = vadd.f32 1e-05, %v10172_v55  ;;  %v10177_v16 = vadd.f32 1e-05, %v10171_v19 }
0x1ffc   :  { %v10167_v41 = vpop.xlane.xlu0 %10166 }
0x1ffd   :  { %18548 = vrsqrt.f32 %v10178_v59  ;;  %v10173_v14 = vmul.f32 0.03125, %v10167_v41 }
0x1ffe   :  { %18550 = vrsqrt.f32 %v10177_v16 }
0x1fff   :  { %v10179_v58 = vadd.f32 1e-05, %v10173_v14 }
0x2001   :  { %18552 = vrsqrt.f32 %v10179_v58  ;;  %v18644_v58 = vld [vmem:[%s18733_s9] sm:$0x3f]  ;;  %s21217_s9 = sld [smem:[#allocation9_spill]] }
0x2003   :  { %v18547_v34 = vpop.eup %18546 }
0x2004   :  { %v10188_v53 = vmul.f32 %v18547_v34, %v20316_v43  ;;  %v10590_v34 = vsub.f32 1.0, %v18644_v58 }
0x2006   :  { %v10200_v44 = vmul.f32 %v20337_v54, %v10188_v53 }
0x2007   :  { %v18549_v28 = vpop.eup %18548 }
0x2008   :  { %v18551_v47 = vpop.eup %18550  ;;  %v10212_v17 = vadd.f32 %v20341_v10, %v10200_v44  ;;  %v10190_v63 = vmul.f32 %v18549_v28, %v20320_v20 }
0x2009   :  { %v10189_v50 = vmul.f32 %v18551_v47, %v20322_v46  ;;  %v16496_v46 = vld [vmem:[%s18793_s6 + $0x1] ss:$0 sm:$0xff]  ;;  %s21228_s6 = sld [smem:[#allocation17_spill]] }
0x200a   :  { %17780 = vmatprep.mubr.msk.f32.mxu0 %vm320_vm7, %v10212_v17  ;;  %v10202_v5 = vmul.f32 %v20337_v54, %v10190_v63 }
0x200b   :  { %v18553_v21 = vpop.eup %18552  ;;  %v10201_v3 = vmul.f32 %v20337_v54, %v10189_v50  ;;  %v10592_v50 = vsel %vm10591_vm10, %v10590_v34, 0.0  ;;  %vm11124_vm10 = vcmask 23552  }
0x200c   :  { %v10214_v43 = vadd.f32 %v20341_v10, %v10202_v5  ;;  %v10191_v11 = vmul.f32 %v18553_v21, %v20329_v62 }
0x200d   :  { %v10213_v49 = vadd.f32 %v20341_v10, %v10201_v3 }
0x200e   :  { %v10203_v39 = vmul.f32 %v20337_v54, %v10191_v11 }
0x200f   :  { %17781 = vmatmul.mubr.msk.f32.gmra.mrb[114].mxu0 %vm320_vm7, %v10213_v49 }
0x2010   :  { %17783 = vmatprep.mubr.msk.f32.mxu0 %vm320_vm7, %v10214_v43  ;;  %v10215_v20 = vadd.f32 %v20341_v10, %v10203_v39 }
0x2013   :  { %17784 = vmatmul.mubr.msk.f32.gmra.mrb[116].mxu0 %vm320_vm7, %v10215_v20 }
0x2014   :  { %17819 = vmatprep.mubr.msk.f32.mxu0 %vm18705_vm8, %v18704_v22 }
0x2054   :  { %v17779_v1 = vpop.f32.mrb[112].mxu0 }
0x2055   :  { %v10319_v36 = vadd.f32 %v17779_v1, %v16496_v46  ;;  %v10313_v25 = vpop.f32.mrb[113].mxu0 }
0x2056   :  { %v10314_v62 = vadd.f32 %v16496_v46, %v10313_v25 }
0x2057   :  { %v10343_v15 = vmax.f32 %v10319_v36, 0.0 }
0x2058   :  { %v10342_v6 = vmax.f32 %v10314_v62, 0.0 }
0x205a   :  { %17802 = vmatprep.mubr.msk.f32.mxu1 %vm187_vm0, %v10342_v6 }
0x205b   :  { %17803 = vmatmul.mubr.msk.f32.vlgmr.msra.gmra.mrb[122].mxu1 %vm187_vm0, %v10343_v15 }
0x20e2   :  { %v17782_v40 = vpop.f32.mrb[114].mxu0 }
0x20e3   :  { %v10329_v27 = vadd.f32 %v17782_v40, %v16496_v46  ;;  %v10323_v4 = vpop.f32.mrb[115].mxu0 }
0x20e4   :  { %v10324_v54 = vadd.f32 %v16496_v46, %v10323_v4 }
0x20e5   :  { %v10345_v56 = vmax.f32 %v10329_v27, 0.0 }
0x20e6   :  { %v10344_v57 = vmax.f32 %v10324_v54, 0.0  ;;  %v17785_v10 = vpop.f32.mrb[116].mxu0 }
0x20e7   :  { %v10339_v9 = vadd.f32 %v17785_v10, %v16496_v46  ;;  %v10333_v29 = vpop.f32.mrb[117].mxu0 }
0x20e8   :  { %v10334_v30 = vadd.f32 %v16496_v46, %v10333_v29  ;;  %17805 = vmatprep.mubr.msk.f32.mxu1 %vm187_vm0, %v10344_v57 }
0x20e9   :  { %17806 = vmatmul.mubr.msk.f32.gmra.mrb[124].mxu1 %vm187_vm0, %v10345_v56  ;;  %v10347_v33 = vmax.f32 %v10339_v9, 0.0 }
0x20ea   :  { %v10346_v32 = vmax.f32 %v10334_v30, 0.0 }
0x20ec   :  { %17808 = vmatprep.mubr.msk.f32.mxu1 %vm187_vm0, %v10346_v32 }
0x20ed   :  { %17809 = vmatmul.mubr.msk.f32.gmra.mrb[126].mxu1 %vm187_vm0, %v10347_v33 }
0x20ee   :  { %17839 = vmatprep.mubr.msk.f32.mxu1 %vm18705_vm8, %v18704_v22 }
0x212e   :  { %v17804_v26 = vpop.f32.mrb[122].mxu1 }
0x212f   :  { %v10455_v7 = vadd.f32 %v17804_v26, %v16512_v35  ;;  %v10449_v51 = vpop.f32.mrb[123].mxu1 }
0x2130   :  { %v10450_v60 = vadd.f32 %v16512_v35, %v10449_v51 }
0x2131   :  { %v10479_v0 = vadd.f32 %v10455_v7, %v20351_v45  ;;  %v10614_v7 = vsub.s32 2, %v19016_v12 }
0x2132   :  { %v10478_v37 = vadd.f32 %v10450_v60, %v20345_v52  ;;  %v10607_v60 = vsub.s32 1, %v19016_v12 }
0x2133   :  { %v10491_v23 = vsel %vm320_vm7, %v10479_v0, 0.0 }
0x2134   :  { %10492 = vadd.xlane.f32.xlu1 %v10491_v23  ;;  %v10488_v18 = vsel %vm320_vm7, %v10478_v37, 0.0  ;;  %v10621_v23 = vsub.s32 3, %v19016_v12 }
0x2138   :  { %10489 = vadd.xlane.f32.xlu1 %v10488_v18 }
0x21bc   :  { %v17807_v42 = vpop.f32.mrb[124].mxu1 }
0x21bd   :  { %v10465_v48 = vadd.f32 %v17807_v42, %v16512_v35  ;;  %v10459_v31 = vpop.f32.mrb[125].mxu1  ;;  %v10628_v42 = vsub.s32 4, %v19016_v12 }
0x21be   :  { %v10460_v61 = vadd.f32 %v16512_v35, %v10459_v31  ;;  %v10635_v31 = vsub.s32 5, %v19016_v12 }
0x21bf   :  { %v10481_v38 = vadd.f32 %v10465_v48, %v10213_v49 }
0x21c0   :  { %v17810_v8 = vpop.f32.mrb[126].mxu1  ;;  %v10480_v55 = vadd.f32 %v10460_v61, %v10212_v17 }
0x21c1   :  { %v10475_v19 = vadd.f32 %v17810_v8, %v16512_v35  ;;  %v10469_v59 = vpop.f32.mrb[127].mxu1  ;;  %v10493_v16 = vpop.xlane.xlu1 %10492  ;;  %v10497_v45 = vsel %vm320_vm7, %v10481_v38, 0.0  ;;  %v10702_v8 = vld [vmem:[%s21217_s9] sm:$0xff] }
0x21c2   :  { %v10470_v52 = vadd.f32 %v16512_v35, %v10469_v59  ;;  %v10507_v41 = vmul.f32 0.03125, %v10493_v16  ;;  %10498 = vadd.xlane.f32.xlu0 %v10497_v45  ;;  %v10494_v47 = vsel %vm320_vm7, %v10480_v55, 0.0  ;;  %v18718_v59 = vmov 0.0|0.0   ;;  %v10704_v16 = vld [vmem:[%s21217_s9 + $0x10] sm:$0xff]  ;;  %v10705_v45 = vld [vmem:[%s21217_s9 + $0x18] sm:$0xff] }
0x21c3   :  { %v10483_v53 = vadd.f32 %v10475_v19, %v10215_v20  ;;  %18184 = vmatprep.subr.bf16.mxu0 %v18718_v59 }
0x21c4   :  { %v10482_v14 = vadd.f32 %v10470_v52, %v10214_v43  ;;  %v20398_v44 = vsub.f32 %v10479_v0, %v10507_v41  ;;  %v18188_v52 = vpack.c.bf16 %v10705_v45, %v10704_v16 }
0x21c5   :  { %v10490_v28 = vpop.xlane.xlu1 %10489  ;;  %v10503_v21 = vsel %vm320_vm7, %v10483_v53, 0.0 }
0x21c6   :  { %v10506_v63 = vmul.f32 0.03125, %v10490_v28  ;;  %10495 = vadd.xlane.f32.xlu0 %v10494_v47  ;;  %v10500_v17 = vsel %vm320_vm7, %v10482_v14, 0.0  ;;  %v10519_v3 = vmul.f32 %v20398_v44, %v20398_v44 }
0x21c7   :  { %10501 = vadd.xlane.f32.xlu1 %v10500_v17 }
0x21c8   :  { %v20402_v5 = vsub.f32 %v10478_v37, %v10506_v63  ;;  %v10527_v43 = vsel %vm320_vm7, %v10519_v3, 0.0 }
0x21ca   :  { %10504 = vadd.xlane.f32.xlu0 %v10503_v21  ;;  %v10518_v11 = vmul.f32 %v20402_v5, %v20402_v5  ;;  %v16521_v21 = vld [vmem:[%s21215_s29 + $0x1] ss:$0 sm:$0xff] }
0x21cb   :  { %10593 = vadd.xlane.f32.xlu1 %v10592_v50 }
0x21cc   :  { %v10524_v49 = vsel %vm320_vm7, %v10518_v11, 0.0 }
0x21ce   :  { %10528 = vadd.xlane.f32.xlu0 %v10527_v43 }
0x21d2   :  { %10525 = vadd.xlane.f32.xlu0 %v10524_v49 }
0x224f   :  { %v10499_v39 = vpop.xlane.xlu0 %10498 }
0x2250   :  { %v10509_v20 = vmul.f32 0.03125, %v10499_v39 }
0x2252   :  { %v20411_v46 = vsub.f32 %v10481_v38, %v10509_v20 }
0x2253   :  { %v10496_v1 = vpop.xlane.xlu0 %10495 }
0x2254   :  { %v10508_v36 = vmul.f32 0.03125, %v10496_v1  ;;  %v10502_v25 = vpop.xlane.xlu1 %10501  ;;  %v10521_v62 = vmul.f32 %v20411_v46, %v20411_v46  ;;  %v16522_v1 = vld [vmem:[%s21216_s16 + $0x1] ss:$0 sm:$0xff] }
0x2255   :  { %v10510_v6 = vmul.f32 0.03125, %v10502_v25 }
0x2256   :  { %v20415_v15 = vsub.f32 %v10480_v55, %v10508_v36  ;;  %v10533_v40 = vsel %vm320_vm7, %v10521_v62, 0.0  ;;  %v10703_v55 = vld [vmem:[%s21217_s9 + $0x8] sm:$0xff] }
0x2257   :  { %v20418_v27 = vsub.f32 %v10482_v14, %v10510_v6  ;;  %10534 = vadd.xlane.f32.xlu1 %v10533_v40  ;;  %v10505_v4 = vpop.xlane.xlu0 %10504  ;;  %v18185_v19 = vpack.c.bf16 %v10703_v55, %v10702_v8 }
0x2258   :  { %v10511_v54 = vmul.f32 0.03125, %v10505_v4  ;;  %v10520_v57 = vmul.f32 %v20415_v15, %v20415_v15  ;;  %v10594_v10 = vpop.xlane.xlu1 %10593 }
0x2259   :  { %v10522_v56 = vmul.f32 %v20418_v27, %v20418_v27  ;;  %v10595_v9 = vadd.f32 1e-12, %v10594_v10  ;;  %18186 = vmatpush3.bf16.msra.mxu0 %v18185_v19 }
0x225a   :  { %v20424_v29 = vsub.f32 %v10483_v53, %v10511_v54  ;;  %v10530_v30 = vsel %vm320_vm7, %v10520_v57, 0.0  ;;  %18187 = vmatprep.subr.bf16.mxu0 %v18718_v59 }
0x225b   :  { %10531 = vadd.xlane.f32.xlu1 %v10530_v30  ;;  %v10536_v32 = vsel %vm320_vm7, %v10522_v56, 0.0  ;;  %18554 = vrcp.f32 %v10595_v9  ;;  %v10529_v41 = vpop.xlane.xlu0 %10528 }
0x225c   :  { %10537 = vadd.xlane.f32.xlu0 %v10536_v32  ;;  %v10523_v33 = vmul.f32 %v20424_v29, %v20424_v29  ;;  %v10543_v14 = vmul.f32 0.03125, %v10529_v41 }
0x225d   :  { %18189 = vmatpush3.bf16.msra.mxu0 %v18188_v52 }
0x225e   :  { %v10539_v35 = vsel %vm320_vm7, %v10523_v33, 0.0  ;;  %17822 = vmatprep.subr.mxu0 %v18704_v22  ;;  %v10549_v58 = vadd.f32 1e-05, %v10543_v14 }
0x225f   :  { %10540 = vadd.xlane.f32.xlu1 %v10539_v35 }
0x2260   :  { %18556 = vrsqrt.f32 %v10549_v58 }
0x2265   :  { %v18555_v26 = vpop.eup %18554 }
0x2266   :  { %v10597_v51 = vmul.f32 %v18555_v26, %v10590_v34  ;;  %v10526_v34 = vpop.xlane.xlu0 %10525 }
0x2267   :  { %v10542_v53 = vmul.f32 0.03125, %v10526_v34 }
0x2268   :  { %v10615_v0 = vrot.slane %v10597_v51, %v10614_v7  ;;  %v10608_v37 = vrot.slane %v10597_v51, %v10607_v60  ;;  %v10601_v18 = vrot.slane %v10597_v51, %v19035_v24  ;;  %v10622_v48 = vrot.slane %v10597_v51, %v10621_v23 }
0x2269   :  { %v10629_v61 = vrot.slane %v10597_v51, %v10628_v42  ;;  %v10636_v38 = vrot.slane %v10597_v51, %v10635_v31  ;;  %v10548_v28 = vadd.f32 1e-05, %v10542_v53 }
0x226a   :  { %v18557_v47 = vpop.eup %18556 }
0x226b   :  { %18558 = vrsqrt.f32 %v10548_v28  ;;  %v10561_v17 = vmul.f32 %v18557_v47, %v20398_v44 }
0x226d   :  { %v10573_v49 = vmul.f32 %v16521_v21, %v10561_v17 }
0x226f   :  { %v10585_v4 = vadd.f32 %v16522_v1, %v10573_v49 }
0x2270   :  { %10617 = vbcast.lane.b32.xlu1 %v10615_v0, 256 }
0x2272   :  { %10610 = vbcast.lane.b32.xlu0 %v10608_v37, 256 }
0x2274   :  { %10603 = vbcast.lane.b32.xlu1 %v10601_v18, 256 }
0x2275   :  { %v18559_v43 = vpop.eup %18558 }
0x2276   :  { %10624 = vbcast.lane.b32.xlu0 %v10622_v48, 256  ;;  %v10560_v62 = vmul.f32 %v18559_v43, %v20402_v5 }
0x2278   :  { %10631 = vbcast.lane.b32.xlu1 %v10629_v61, 256  ;;  %v10572_v56 = vmul.f32 %v16521_v21, %v10560_v62  ;;  %v10689_v62 = vld [vmem:[%s21218_s3] sm:$0x7] }
0x227a   :  { %10638 = vbcast.lane.b32.xlu0 %v10636_v38, 256  ;;  %v10584_v35 = vadd.f32 %v16522_v1, %v10572_v56  ;;  %v10691_v56 = vrot.slane %v10689_v62, 1 }
0x22e4   :  { %v10535_v63 = vpop.xlane.xlu1 %10534 }
0x22e5   :  { %v10545_v50 = vmul.f32 0.03125, %v10535_v63 }
0x22e7   :  { %v10551_v3 = vadd.f32 1e-05, %v10545_v50 }
0x22e8   :  { %v10532_v11 = vpop.xlane.xlu1 %10531 }
0x22e9   :  { %18560 = vrsqrt.f32 %v10551_v3  ;;  %v10544_v39 = vmul.f32 0.03125, %v10532_v11  ;;  %v10538_v20 = vpop.xlane.xlu0 %10537 }
0x22ea   :  { %v10546_v36 = vmul.f32 0.03125, %v10538_v20 }
0x22eb   :  { %v10550_v25 = vadd.f32 1e-05, %v10544_v39 }
0x22ec   :  { %v10552_v6 = vadd.f32 1e-05, %v10546_v36  ;;  %v10541_v40 = vpop.xlane.xlu1 %10540 }
0x22ed   :  { %18562 = vrsqrt.f32 %v10550_v25  ;;  %v10547_v54 = vmul.f32 0.03125, %v10541_v40  ;;  %v10611_v44 = vpop.permute.xlu0 %10610 }
0x22ee   :  { %18564 = vrsqrt.f32 %v10552_v6  ;;  %v10641_v57 = vmul.f32 %v10611_v44, %v10585_v4 }
0x22ef   :  { %v10553_v10 = vadd.f32 1e-05, %v10547_v54 }
0x22f0   :  { %v10653_v9 = vsel %vm320_vm7, %v10641_v57, 0.0  ;;  %v10618_v30 = vpop.permute.xlu1 %10617 }
0x22f1   :  { %18566 = vrsqrt.f32 %v10553_v10  ;;  %v10654_v32 = vrot.slane %v10653_v9, 4  ;;  %v10625_v61 = vpop.permute.xlu0 %10624 }
0x22f3   :  { %v18561_v33 = vpop.eup %18560  ;;  %v10655_v51 = vadd.f32 %v10654_v32, %v10653_v9 }
0x22f4   :  { %v10604_v26 = vpop.permute.xlu1 %10603  ;;  %v10563_v5 = vmul.f32 %v18561_v33, %v20411_v46 }
0x22f5   :  { %v10640_v7 = vmul.f32 %v10604_v26, %v10584_v35  ;;  %v10656_v8 = vrot.slane %v10655_v51, 2  ;;  %v10639_v20 = vpop.permute.xlu0 %10638 }
0x22f6   :  { %v10575_v0 = vmul.f32 %v16521_v21, %v10563_v5  ;;  %v10692_v5 = vrot.slane %v10689_v62, 2 }
0x22f7   :  { %v18563_v37 = vpop.eup %18562  ;;  %v10646_v23 = vsel %vm320_vm7, %v10640_v7, 0.0 }
0x22f8   :  { %v18565_v18 = vpop.eup %18564  ;;  %v10562_v42 = vmul.f32 %v18563_v37, %v20415_v15  ;;  %v10647_v48 = vrot.slane %v10646_v23, 4  ;;  %v10587_v31 = vadd.f32 %v16522_v1, %v10575_v0  ;;  %v10657_v15 = vadd.f32 %v10656_v8, %v10655_v51  ;;  %v10632_v47 = vpop.permute.xlu1 %10631 }
0x22f9   :  { %v10564_v38 = vmul.f32 %v18565_v18, %v20418_v27 }
0x22fa   :  { %v10574_v55 = vmul.f32 %v16521_v21, %v10562_v42  ;;  %v10648_v19 = vadd.f32 %v10647_v48, %v10646_v23  ;;  %v10643_v16 = vmul.f32 %v10625_v61, %v10587_v31  ;;  %v10658_v36 = vrot.slane %v10657_v15, 1 }
0x22fb   :  { %v18567_v45 = vpop.eup %18566  ;;  %v10576_v46 = vmul.f32 %v16521_v21, %v10564_v38 }
0x22fc   :  { %v10586_v52 = vadd.f32 %v16522_v1, %v10574_v55  ;;  %v10649_v41 = vrot.slane %v10648_v19, 2  ;;  %v10667_v14 = vsel %vm320_vm7, %v10643_v16, 0.0  ;;  %v10565_v58 = vmul.f32 %v18567_v45, %v20424_v29 }
0x22fd   :  { %v10668_v34 = vrot.slane %v10667_v14, 4  ;;  %v10588_v53 = vadd.f32 %v16522_v1, %v10576_v46 }
0x22fe   :  { %v10642_v28 = vmul.f32 %v10618_v30, %v10586_v52  ;;  %v10577_v63 = vmul.f32 %v16521_v21, %v10565_v58  ;;  %v10650_v3 = vadd.f32 %v10649_v41, %v10648_v19 }
0x22ff   :  { %v10669_v27 = vadd.f32 %v10668_v34, %v10667_v14  ;;  %v10644_v17 = vmul.f32 %v10632_v47, %v10588_v53 }
0x2300   :  { %v10660_v50 = vsel %vm320_vm7, %v10642_v28, 0.0  ;;  %v10589_v43 = vadd.f32 %v16522_v1, %v10577_v63  ;;  %v10651_v4 = vrot.slane %v10650_v3, 1  ;;  %v10659_v1 = vadd.f32 %v10658_v36, %v10657_v15  ;;  %v16523_v28 = vld [vmem:[%s21219_s8] ss:$0 sm:$0xff] }
0x2301   :  { %v10661_v11 = vrot.slane %v10660_v50, 4  ;;  %v10670_v49 = vrot.slane %v10669_v27, 2  ;;  %v10674_v39 = vsel %vm320_vm7, %v10644_v17, 0.0 }
0x2302   :  { %v10675_v29 = vrot.slane %v10674_v39, 4  ;;  %v10645_v25 = vmul.f32 %v10639_v20, %v10589_v43  ;;  %v10652_v33 = vadd.f32 %v10651_v4, %v10650_v3  ;;  %v20461_v0 = vadd.f32 %v10691_v56, %v10659_v1 }
0x2303   :  { %v10662_v6 = vadd.f32 %v10661_v11, %v10660_v50  ;;  %v10671_v40 = vadd.f32 %v10670_v49, %v10669_v27 }
0x2304   :  { %v10676_v54 = vadd.f32 %v10675_v29, %v10674_v39  ;;  %v10681_v21 = vsel %vm320_vm7, %v10645_v25, 0.0  ;;  %v20463_v42 = vadd.f32 %v10689_v62, %v10652_v33  ;;  %v10719_v8 = vrot.slane %v20461_v0, 7 }
0x2305   :  { %v10663_v44 = vrot.slane %v10662_v6, 2  ;;  %v10672_v57 = vrot.slane %v10671_v40, 1  ;;  %v10682_v10 = vrot.slane %v10681_v21, 4 }
0x2306   :  { %v10677_v9 = vrot.slane %v10676_v54, 2  ;;  %v10721_v45 = vsel %vm10720_vm11, %v10719_v8, %v20463_v42 }
0x2307   :  { %v10664_v30 = vadd.f32 %v10663_v44, %v10662_v6  ;;  %v10683_v32 = vadd.f32 %v10682_v10, %v10681_v21  ;;  %v10673_v35 = vadd.f32 %v10672_v57, %v10671_v40 }
0x2308   :  { %v10678_v26 = vadd.f32 %v10677_v9, %v10676_v54 }
0x2309   :  { %v10665_v7 = vrot.slane %v10664_v30, 1  ;;  %v10684_v51 = vrot.slane %v10683_v32, 2  ;;  %v20465_v48 = vadd.f32 %v10689_v62, %v10673_v35 }
0x230a   :  { %v10679_v37 = vrot.slane %v10678_v26, 1 }
0x230b   :  { %v10666_v23 = vadd.f32 %v10665_v7, %v10664_v30  ;;  %v10685_v18 = vadd.f32 %v10684_v51, %v10683_v32  ;;  %v10725_v46 = vrot.slane %v20465_v48, 5  ;;  %v18646_v30 = vld.sshfl [vmem:[%s21220_s14] sm:$0x11 pattern:$0x75316420] }
0x230c   :  { %v10680_v31 = vadd.f32 %v10679_v37, %v10678_v26  ;;  %v10873_v32 = vrot.slane %v18646_v30, %v19019_v13  ;;  %v10866_v33 = vcombine.high %v18646_v30, %v18646_v30 }
0x230d   :  { %v20467_v61 = vadd.f32 %v10692_v5, %v10666_v23  ;;  %v10686_v38 = vrot.slane %v10685_v18, 1 }
0x230e   :  { %v20470_v55 = vadd.f32 %v10691_v56, %v10680_v31  ;;  %vm10883_vm1 = vcmp.gt.f32.partialorder %v10873_v32, 0.5  ;;  %v10880_v35 = vrot.slane %v10866_v33, %v19019_v13 }
0x230f   :  { %v10722_v19 = vrot.slane %v20467_v61, 6  ;;  %v10687_v16 = vadd.f32 %v10686_v38, %v10685_v18  ;;  %v11085_v26 = vsel %vm10883_vm1, 1, %v18703_v2  ;;  %vm12973_vm1 = vcmask 259072  }
0x2310   :  { %v10728_v52 = vrot.slane %v20470_v55, 4  ;;  %vm10884_vm2 = vcmp.gt.f32.partialorder %v10880_v35, 0.5 }
0x2311   :  { %v20477_v41 = vadd.f32 %v10692_v5, %v10687_v16  ;;  %v10724_v14 = vsel %vm10723_vm12, %v10722_v19, %v10721_v45  ;;  %v11090_v5 = vrot.slane %v11085_v26, %v19035_v24  ;;  %v11086_v7 = vsel %vm10884_vm2, 1, %v18703_v2 }
0x2312   :  { %v10727_v58 = vsel %vm10726_vm13, %v10725_v46, %v10724_v14  ;;  %v11094_v23 = vrot.slane %v11086_v7, %v19035_v24 }
0x2313   :  { %v10731_v34 = vrot.slane %v20477_v41, 3  ;;  %v10730_v53 = vsel %vm10729_vm14, %v10728_v52, %v10727_v58  ;;  %vm20526_vm3 = vcmp.eq.s32.totalorder %v11090_v5, 1 }
0x2314   :  { %vm20533_vm5 = vcmp.eq.s32.totalorder %v11094_v23, 1 }
0x2315   :  { %v10733_v15 = vsel %vm10732_vm15, %v10731_v34, %v10730_v53 }
0x2316   :  { %17820 = vmatmul.mubr.msk.f32.vlgmr.msra.gmra.mrb[118].mxu0 %vm320_vm7, %v10733_v15 }
0x2317   :  { %17824 = vmatprep.mubr.msk.f32.mxu0 %vm18705_vm8, %v18704_v22 }
0x23e9   :  { %v10802_v47 = vpop.f32.mrb[118].mxu0 }
0x23ea   :  { %v10803_v63 = vadd.f32 %v16523_v28, %v10802_v47  ;;  %v17821_v27 = vpop.f32.mrb[119].mxu0 }
0x23ec   :  { %v10807_v17 = vcombine.high %v10803_v63, %v10803_v63  ;;  %v10814_v50 = vrot.slane %v10803_v63, %v19019_v13 }
0x23ee   :  { %v10821_v3 = vrot.slane %v10807_v17, %v19019_v13  ;;  %v10822_v43 = vcombine.high %v10814_v50, %v10814_v50  ;;  %v10830_v11 = vrot.slane %v10814_v50, %v19019_v13 }
0x23f0   :  { %v10823_v49 = vcombine.high %v10821_v3, %v10821_v3  ;;  %v10844_v39 = vrot.slane %v10822_v43, %v19019_v13  ;;  %v10852_v20 = vcombine.high %v10830_v11, %v10830_v11  ;;  %v10837_v36 = vrot.slane %v10821_v3, %v19019_v13 }
0x23f2   :  { %v10851_v29 = vrot.slane %v10823_v49, %v19019_v13  ;;  %v10853_v25 = vcombine.high %v10844_v39, %v10844_v39  ;;  %v10885_v62 = vcombine.low %v10830_v11, %v10844_v39  ;;  %v10899_v40 = vrot.slane %v10852_v20, %v19019_v13 }
0x23f4   :  { %v10892_v6 = vrot.slane %v10885_v62, %v19019_v13  ;;  %v10984_v4 = vcombine.low %v10853_v25, %v10837_v36  ;;  %v10998_v44 = vrot.slane %v10851_v29, %v19019_v13 }
0x23f6   :  { %v10900_v54 = vcombine.low %v10892_v6, %v10899_v40  ;;  %v10991_v21 = vrot.slane %v10984_v4, %v19019_v13 }
0x23f8   :  { %v20499_v57 = vrot.slane %v10900_v54, %v19019_v13  ;;  %v10999_v10 = vcombine.low %v10991_v21, %v10998_v44 }
0x23fa   :  { %v20502_v56 = vrot.slane %v10999_v10, %v19019_v13  ;;  %10908 = vrot.lane.b32.xlu1 %v20499_v57, %s18706_s0 }
0x23fc   :  { %11007 = vrot.lane.b32.xlu0 %v20502_v56, %s18706_s0 }
0x246c   :  { %v10909_v1 = vpop.permute.xlu1 %10908 }
0x246d   :  { %17823 = vmatpush3.xpose.msk.msra.mxu0 %vm501_vm9, %v10909_v1 }
0x246e   :  { %17827 = vmatprep.subr.mxu0 %v18704_v22  ;;  %v11008_v9 = vpop.permute.xlu0 %11007 }
0x2470   :  { %17825 = vmatmul.mubr.msk.f32.vlgmr.msra.gmra.mrb[120].mxu0 %vm501_vm9, %v20499_v57 }
0x2471   :  { %17828 = vmatpush3.xpose.msk.msra.mxu0 %vm501_vm9, %v11008_v9  ;;  %17829 = vmatprep.mubr.msk.f32.mxu0 %vm18705_vm8, %v18704_v22 }
0x2472   :  { %17832 = vmatprep.subr.mxu0 %v18704_v22 }
0x2474   :  { %17830 = vmatmul.mubr.msk.f32.vlgmr.msra.gmra.mrb[122].mxu0 %vm501_vm9, %v20502_v56 }
0x2475   :  { %17834 = vmatprep.mubr.msk.f32.mxu0 %vm18705_vm8, %v18704_v22 }
0x2543   :  { %v10980_v51 = vpop.f32.mrb[120].mxu0 }
0x2544   :  { %v11083_v18 = vmul.f32 0.35355338, %v10980_v51  ;;  %v17826_v31 = vpop.f32.mrb[121].mxu0 }
0x2546   :  { %v11097_v38 = vsel %vm20526_vm3, -1e+09, %v11083_v18 }
0x2547   :  { %v11079_v8 = vpop.f32.mrb[122].mxu0  ;;  %v11100_v2 = vsel %vm11099_vm4, %v11097_v38, -inf }
0x2548   :  { %v11084_v16 = vmul.f32 0.35355338, %v11079_v8  ;;  %11101 = vmax.xlane.f32.xlu1 %v11100_v2  ;;  %v17831_v45 = vpop.f32.mrb[123].mxu0 }
0x254a   :  { %v11098_v46 = vsel %vm20533_vm5, -1e+09, %v11084_v16 }
0x254b   :  { %v11103_v52 = vsel %vm11099_vm4, %v11098_v46, -inf }
0x254c   :  { %11104 = vmax.xlane.f32.xlu0 %v11103_v52 }
0x2559   :  { %11201 = vrot.lane.b32.xlu1 %v20502_v56, %s18708_s5 }
0x255d   :  { %11328 = vrot.lane.b32.xlu1 %v20499_v57, %s18709_s17 }
0x2562   :  { %11122 = vrot.lane.b32.xlu0 %v20499_v57, %s18708_s5 }
0x25d5   :  { %v11102_v14 = vpop.xlane.xlu1 %11101 }
0x25d6   :  { %v11106_v58 = vsub.f32 %v11097_v38, %v11102_v14 }
0x25d8   :  { %v11108_v34 = vmul.f32 1.442695, %v11106_v58 }
0x25d9   :  { %v11202_v53 = vpop.permute.xlu1 %11201  ;;  %v11105_v15 = vpop.xlane.xlu0 %11104 }
0x25da   :  { %18568 = vpow2.f32 %v11108_v34  ;;  %v11107_v28 = vsub.f32 %v11098_v46, %v11105_v15  ;;  %17838 = vmatpush3.msk.msra.mxu1 %vm11128_vm6, %v11202_v53 }
0x25db   :  { %17847 = vmatprep.subr.mxu1 %v18704_v22 }
0x25dc   :  { %v11110_v47 = vmul.f32 1.442695, %v11107_v28 }
0x25dd   :  { %v11123_v63 = vpop.permute.xlu0 %11122  ;;  %v11329_v43 = vpop.permute.xlu1 %11328 }
0x25de   :  { %18570 = vpow2.f32 %v11110_v47  ;;  %17833 = vmatpush3.msk.msra.mxu0 %vm11128_vm6, %v11123_v63 }
0x25df   :  { %17842 = vmatprep.subr.mxu0 %v18704_v22 }
0x25e4   :  { %v18569_v27 = vpop.eup %18568 }
0x25e5   :  { %v11112_v17 = vsel %vm11099_vm4, %v18569_v27, 0.0 }
0x25e6   :  { %11113 = vadd.xlane.f32.xlu0 %v11112_v17 }
0x25e8   :  { %v18571_v50 = vpop.eup %18570 }
0x25e9   :  { %v11115_v3 = vsel %vm11099_vm4, %v18571_v50, 0.0 }
0x25ea   :  { %11116 = vadd.xlane.f32.xlu1 %v11115_v3 }
0x25fb   :  { %11326 = vrot.lane.b32.xlu1 %v20499_v57, %s18710_s21 }
0x25fc   :  { %11406 = vrot.lane.b32.xlu0 %v20502_v56, %s18709_s17 }
0x2600   :  { %11404 = vrot.lane.b32.xlu0 %v20502_v56, %s18710_s21 }
0x2673   :  { %v11114_v11 = vpop.xlane.xlu0 %11113 }
0x2674   :  { %18572 = vrcp.f32 %v11114_v11 }
0x2677   :  { %v11117_v49 = vpop.xlane.xlu1 %11116  ;;  %v11407_v29 = vpop.permute.xlu0 %11406 }
0x2678   :  { %18574 = vrcp.f32 %v11117_v49 }
0x267b   :  { %v11327_v62 = vpop.permute.xlu1 %11326  ;;  %v11405_v6 = vpop.permute.xlu0 %11404 }
0x267e   :  { %v18573_v39 = vpop.eup %18572 }
0x267f   :  { %v11120_v20 = vmul.f32 %v18573_v39, %v18569_v27 }
0x2681   :  { %17835 = vmatmul.mubr.msk.f32.vlgmr.msra.gmra.mrb[124].mxu0 %vm11124_vm10, %v11120_v20 }
0x2682   :  { %v18575_v36 = vpop.eup %18574  ;;  %17843 = vmatpush3.xpose.msk.msra.mxu0 %vm501_vm9, %v11329_v43  ;;  %17844 = vmatprep.mubr.msk.f32.mxu0 %vm18705_vm8, %v18704_v22 }
0x2683   :  { %v11121_v25 = vmul.f32 %v18575_v36, %v18571_v50  ;;  %17852 = vmatprep.subr.mxu0 %v18704_v22 }
0x2685   :  { %17840 = vmatmul.mubr.msk.f32.vlgmr.msra.gmra.mrb[128].mxu1 %vm11124_vm10, %v11121_v25  ;;  %17845 = vmatmul.mubr.msk.f32.vlgmr.msra.gmra.mrb[126].mxu0 %vm501_vm9, %v11327_v62 }
0x2686   :  { %17848 = vmatpush3.xpose.msk.msra.mxu1 %vm501_vm9, %v11407_v29  ;;  %17849 = vmatprep.mubr.msk.f32.mxu1 %vm18705_vm8, %v18704_v22 }
0x2687   :  { %17857 = vmatprep.subr.mxu1 %v18704_v22  ;;  %17854 = vmatprep.mubr.msk.f32.mxu0 %vm18705_vm8, %v18704_v22 }
0x2689   :  { %17850 = vmatmul.mubr.msk.f32.vlgmr.msra.gmra.mrb[130].mxu1 %vm501_vm9, %v11405_v6 }
0x268a   :  { %17859 = vmatprep.mubr.msk.f32.mxu1 %vm18705_vm8, %v18704_v22 }
0x2754   :  { %v11197_v40 = vpop.f32.mrb[124].mxu0 }
0x2755   :  { %v11286_v4 = vrot.slane %v11197_v40, %v19019_v13  ;;  %v17836_v54 = vpop.f32.mrb[125].mxu0 }
0x2757   :  { %v11287_v21 = vcombine.high %v11286_v4, %v11286_v4  ;;  %v11294_v44 = vrot.slane %v11286_v4, %v19019_v13 }
0x2758   :  { %v11274_v10 = vpop.f32.mrb[128].mxu1  ;;  %v11400_v1 = vpop.f32.mrb[126].mxu0 }
0x2759   :  { %v11301_v9 = vrot.slane %v11287_v21, %v19019_v13  ;;  %v11309_v30 = vrot.slane %v11274_v10, %v19019_v13  ;;  %v11482_v32 = vmul.f32 0.35355338, %v11400_v1  ;;  %v17841_v33 = vpop.f32.mrb[129].mxu1  ;;  %v17846_v35 = vpop.f32.mrb[127].mxu0  ;;  %v11302_v26 = vcombine.high %v11294_v44, %v11294_v44 }
0x275b   :  { %v11822_v5 = vcombine.low %v11294_v44, %v11301_v9  ;;  %v11310_v7 = vcombine.high %v11309_v30, %v11309_v30  ;;  %v11317_v51 = vrot.slane %v11309_v30, %v19019_v13  ;;  %v11484_v23 = vsel %vm20526_vm3, -1e+09, %v11482_v32  ;;  %v10854_v44 = vld [vmem:[%s21225_s19] sm:$0xff]  ;;  %v10855_v9 = vld [vmem:[%s21225_s19 + $0x8] sm:$0xff] }
0x275c   :  { %v11478_v18 = vpop.f32.mrb[130].mxu1  ;;  %v11486_v31 = vsel %vm11099_vm4, %v11484_v23, -inf }
0x275d   :  { %v11324_v38 = vrot.slane %v11310_v7, %v19019_v13  ;;  %v11325_v8 = vcombine.high %v11317_v51, %v11317_v51  ;;  %v11823_v2 = vcombine.low %v11302_v26, %v11317_v51  ;;  %v17851_v16 = vpop.f32.mrb[131].mxu1  ;;  %11487 = vmax.xlane.f32.xlu1 %v11486_v31  ;;  %v11483_v45 = vmul.f32 0.35355338, %v11478_v18 }
0x275e   :  { %v11831_v46 = vrot.slane %v11822_v5, %v19019_v13 }
0x275f   :  { %v11824_v52 = vcombine.low %v11324_v38, %v11325_v8  ;;  %v11838_v14 = vrot.slane %v11823_v2, %v19019_v13  ;;  %v11485_v58 = vsel %vm20533_vm5, -1e+09, %v11483_v45 }
0x2760   :  { %v11489_v15 = vsel %vm11099_vm4, %v11485_v58, -inf }
0x2761   :  { %v11845_v34 = vrot.slane %v11824_v52, %v19019_v13  ;;  %v11846_v53 = vcombine.low %v11831_v46, %v11838_v14  ;;  %11490 = vmax.xlane.f32.xlu0 %v11489_v15 }
0x2763   :  { %v11853_v28 = vrot.slane %v11846_v53, %v19019_v13  ;;  %v11860_v47 = vrot.slane %v11845_v34, %v19019_v13 }
0x2765   :  { %v11861_v63 = vcombine.low %v11853_v28, %v11860_v47 }
0x27ea   :  { %v11488_v27 = vpop.xlane.xlu1 %11487 }
0x27eb   :  { %v11492_v17 = vsub.f32 %v11484_v23, %v11488_v27 }
0x27ed   :  { %v11494_v50 = vmul.f32 1.442695, %v11492_v17 }
0x27ee   :  { %v11491_v3 = vpop.xlane.xlu0 %11490 }
0x27ef   :  { %18576 = vpow2.f32 %v11494_v50  ;;  %v11493_v43 = vsub.f32 %v11485_v58, %v11491_v3 }
0x27f1   :  { %v11496_v11 = vmul.f32 1.442695, %v11493_v43 }
0x27f3   :  { %18578 = vpow2.f32 %v11496_v11 }
0x27f9   :  { %v18577_v49 = vpop.eup %18576 }
0x27fa   :  { %v11498_v39 = vsel %vm11099_vm4, %v18577_v49, 0.0 }
0x27fb   :  { %11499 = vadd.xlane.f32.xlu0 %v11498_v39 }
0x27fd   :  { %v18579_v20 = vpop.eup %18578 }
0x27fe   :  { %v11501_v36 = vsel %vm11099_vm4, %v18579_v20, 0.0 }
0x27ff   :  { %11502 = vadd.xlane.f32.xlu1 %v11501_v36 }
0x2810   :  { %11585 = vrot.lane.b32.xlu1 %v20502_v56, %s18711_s28 }
0x2811   :  { %11508 = vrot.lane.b32.xlu0 %v20499_v57, %s18711_s28 }
0x2814   :  { %11936 = vrot.lane.b32.xlu1 %v20499_v57, %s18712_s1 }
0x2815   :  { %12014 = vrot.lane.b32.xlu0 %v20502_v56, %s18712_s1 }
0x2818   :  { %11934 = vrot.lane.b32.xlu1 %v20499_v57, %s18713_s2 }
0x2819   :  { %12012 = vrot.lane.b32.xlu0 %v20502_v56, %s18713_s2 }
0x2888   :  { %v11500_v29 = vpop.xlane.xlu0 %11499 }
0x2889   :  { %18580 = vrcp.f32 %v11500_v29 }
0x288c   :  { %v11509_v25 = vpop.permute.xlu0 %11508  ;;  %v11503_v62 = vpop.xlane.xlu1 %11502 }
0x288d   :  { %17853 = vmatpush3.msk.msra.mxu0 %vm11128_vm6, %v11509_v25  ;;  %18582 = vrcp.f32 %v11503_v62 }
0x288e   :  { %17862 = vmatprep.subr.mxu0 %v18704_v22 }
0x2890   :  { %v11586_v6 = vpop.permute.xlu1 %11585  ;;  %v12015_v10 = vpop.permute.xlu0 %12014 }
0x2891   :  { %17858 = vmatpush3.msk.msra.mxu1 %vm11128_vm6, %v11586_v6 }
0x2892   :  { %17867 = vmatprep.subr.mxu1 %v18704_v22 }
0x2893   :  { %v18581_v40 = vpop.eup %18580 }
0x2894   :  { %v11506_v4 = vmul.f32 %v18581_v40, %v18577_v49  ;;  %v12013_v1 = vpop.permute.xlu0 %12012  ;;  %v11937_v27 = vpop.permute.xlu1 %11936 }
0x2896   :  { %17855 = vmatmul.mubr.msk.f32.vlgmr.msra.gmra.mrb[128].mxu0 %vm11124_vm10, %v11506_v4 }
0x2897   :  { %17864 = vmatprep.mubr.msk.f32.mxu0 %vm18705_vm8, %v18704_v22  ;;  %v18583_v54 = vpop.eup %18582  ;;  %17863 = vmatpush3.msra.mxu0 %v10855_v9 }
0x2898   :  { %v11507_v21 = vmul.f32 %v18583_v54, %v18579_v20  ;;  %17872 = vmatprep.subr.mxu0 %v18704_v22  ;;  %v11935_v49 = vpop.permute.xlu1 %11934 }
0x289a   :  { %17860 = vmatmul.mubr.msk.f32.vlgmr.msra.gmra.mrb[132].mxu1 %vm11124_vm10, %v11507_v21 }
0x289b   :  { %17868 = vmatpush3.msra.mxu1 %v10854_v44  ;;  %17869 = vmatprep.mubr.msk.f32.mxu1 %vm18705_vm8, %v18704_v22 }
0x289c   :  { %17877 = vmatprep.subr.mxu1 %v18704_v22 }
0x289e   :  { %17870 = vmatmul.mubr.msk.f32.vlgmr.msra.gmra.mrb[134].mxu1 %vm501_vm9, %v11861_v63 }
0x289f   :  { %17879 = vmatprep.mubr.msk.f32.mxu1 %vm18705_vm8, %v18704_v22 }
0x28a2   :  { %17878 = vmatpush3.xpose.msk.msra.mxu1 %vm501_vm9, %v12015_v10 }
0x28a3   :  { %17887 = vmatprep.subr.mxu1 %v18704_v22 }
0x28a5   :  { %17880 = vmatmul.mubr.msk.f32.vlgmr.msra.gmra.mrb[136].mxu1 %vm501_vm9, %v12013_v1 }
0x28a6   :  { %17889 = vmatprep.mubr.msk.f32.mxu1 %vm18705_vm8, %v18704_v22 }
0x2969   :  { %v11581_v30 = vpop.f32.mrb[128].mxu0 }
0x296a   :  { %v11670_v32 = vrot.slane %v11581_v30, %v19019_v13  ;;  %v17856_v33 = vpop.f32.mrb[129].mxu0 }
0x296c   :  { %v11671_v35 = vcombine.high %v11670_v32, %v11670_v32  ;;  %v11678_v26 = vrot.slane %v11670_v32, %v19019_v13 }
0x296d   :  { %v11658_v7 = vpop.f32.mrb[132].mxu1 }
0x296e   :  { %v11685_v5 = vrot.slane %v11671_v35, %v19019_v13  ;;  %v11693_v51 = vrot.slane %v11658_v7, %v19019_v13  ;;  %v17861_v23 = vpop.f32.mrb[133].mxu1  ;;  %v11686_v18 = vcombine.high %v11678_v26, %v11678_v26 }
0x2970   :  { %v11710_v31 = vcombine.low %v11678_v26, %v11685_v5  ;;  %v11694_v38 = vcombine.high %v11693_v51, %v11693_v51  ;;  %v11701_v8 = vrot.slane %v11693_v51, %v19019_v13 }
0x2971   :  { %v11930_v2 = vpop.f32.mrb[134].mxu1 }
0x2972   :  { %v11708_v16 = vrot.slane %v11694_v38, %v19019_v13  ;;  %v11709_v45 = vcombine.high %v11701_v8, %v11701_v8  ;;  %v11711_v46 = vcombine.low %v11686_v18, %v11701_v8  ;;  %v17871_v52 = vpop.f32.mrb[135].mxu1  ;;  %v11719_v14 = vrot.slane %v11710_v31, %v19019_v13 }
0x2974   :  { %v11712_v58 = vcombine.low %v11708_v16, %v11709_v45  ;;  %v11726_v34 = vrot.slane %v11711_v46, %v19019_v13 }
0x2976   :  { %v11733_v53 = vrot.slane %v11712_v58, %v19019_v13  ;;  %v11734_v15 = vcombine.low %v11719_v14, %v11726_v34  ;;  %v10856_v34 = vld [vmem:[%s21225_s19 + $0x10] sm:$0xff] }
0x2978   :  { %v11741_v28 = vrot.slane %v11734_v15, %v19019_v13  ;;  %v11748_v47 = vrot.slane %v11733_v53, %v19019_v13  ;;  %v12086_v63 = vpop.f32.mrb[136].mxu1 }
0x2979   :  { %v12091_v17 = vmul.f32 0.35355338, %v12086_v63  ;;  %v17881_v50 = vpop.f32.mrb[137].mxu1 }
0x297a   :  { %v11749_v3 = vcombine.low %v11741_v28, %v11748_v47 }
0x297b   :  { %v12093_v43 = vsel %vm20533_vm5, -1e+09, %v12091_v17 }
0x297c   :  { %v12097_v11 = vsel %vm11099_vm4, %v12093_v43, -inf  ;;  %17865 = vmatmul.mubr.msk.f32.vlgmr.msra.gmra.mrb[130].mxu0 %vm501_vm9, %v11749_v3 }
0x297d   :  { %12098 = vmax.xlane.f32.xlu0 %v12097_v11  ;;  %17873 = vmatpush3.xpose.msk.msra.mxu0 %vm501_vm9, %v11937_v27 }
0x297e   :  { %17874 = vmatprep.mubr.msk.f32.mxu0 %vm18705_vm8, %v18704_v22  ;;  %17882 = vmatprep.subr.mxu0 %v18704_v22 }
0x2980   :  { %17875 = vmatmul.mubr.msk.f32.vlgmr.msra.gmra.mrb[132].mxu0 %vm501_vm9, %v11935_v49 }
0x2981   :  { %17884 = vmatprep.mubr.msk.f32.mxu0 %vm18705_vm8, %v18704_v22 }
0x2a0a   :  { %v12099_v39 = vpop.xlane.xlu0 %12098 }
0x2a0b   :  { %v12101_v20 = vsub.f32 %v12093_v43, %v12099_v39 }
0x2a0d   :  { %v12104_v36 = vmul.f32 1.442695, %v12101_v20 }
0x2a0f   :  { %18584 = vpow2.f32 %v12104_v36 }
0x2a19   :  { %v18585_v44 = vpop.eup %18584 }
0x2a1a   :  { %v12109_v10 = vsel %vm11099_vm4, %v18585_v44, 0.0 }
0x2a4f   :  { %v11818_v29 = vpop.f32.mrb[130].mxu0 }
0x2a50   :  { %v20650_v25 = vadd.f32 %v11930_v2, %v11818_v29  ;;  %v17866_v62 = vpop.f32.mrb[131].mxu0 }
0x2a53   :  { %v12008_v6 = vpop.f32.mrb[132].mxu0 }
0x2a54   :  { %v12090_v40 = vmul.f32 0.35355338, %v12008_v6  ;;  %v17876_v4 = vpop.f32.mrb[133].mxu0 }
0x2a56   :  { %v12092_v54 = vsel %vm20526_vm3, -1e+09, %v12090_v40 }
0x2a57   :  { %v12094_v21 = vsel %vm11099_vm4, %v12092_v54, -inf }
0x2a58   :  { %12095 = vmax.xlane.f32.xlu1 %v12094_v21 }
0x2a5c   :  { %12110 = vadd.xlane.f32.xlu1 %v12109_v10 }
0x2a6d   :  { %12193 = vrot.lane.b32.xlu1 %v20502_v56, %s18714_s7 }
0x2a71   :  { %12433 = vrot.lane.b32.xlu1 %v20499_v57, %s18716_s11 }
0x2a75   :  { %12431 = vrot.lane.b32.xlu1 %v20499_v57, %s18715_s10 }
0x2ae5   :  { %v12096_v1 = vpop.xlane.xlu1 %12095 }
0x2ae6   :  { %v12100_v9 = vsub.f32 %v12092_v54, %v12096_v1 }
0x2ae8   :  { %v12102_v30 = vmul.f32 1.442695, %v12100_v9 }
0x2ae9   :  { %v12111_v32 = vpop.xlane.xlu1 %12110 }
0x2aea   :  { %18586 = vpow2.f32 %v12102_v30 }
0x2aeb   :  { %18588 = vrcp.f32 %v12111_v32 }
0x2aed   :  { %v12194_v33 = vpop.permute.xlu1 %12193 }
0x2aee   :  { %17888 = vmatpush3.msk.msra.mxu1 %vm11128_vm6, %v12194_v33 }
0x2aef   :  { %17897 = vmatprep.subr.mxu1 %v18704_v22 }
0x2af1   :  { %v12434_v5 = vpop.permute.xlu1 %12433 }
0x2af4   :  { %v18587_v35 = vpop.eup %18586 }
0x2af5   :  { %v18589_v26 = vpop.eup %18588  ;;  %v12106_v7 = vsel %vm11099_vm4, %v18587_v35, 0.0  ;;  %v12432_v23 = vpop.permute.xlu1 %12431 }
0x2af6   :  { %v12115_v51 = vmul.f32 %v18589_v26, %v18585_v44  ;;  %12107 = vadd.xlane.f32.xlu0 %v12106_v7 }
0x2af8   :  { %17890 = vmatmul.mubr.msk.f32.vlgmr.msra.gmra.mrb[138].mxu1 %vm11124_vm10, %v12115_v51 }
0x2af9   :  { %17898 = vmatpush3.xpose.msk.msra.mxu1 %vm501_vm9, %v12434_v5  ;;  %17899 = vmatprep.mubr.msk.f32.mxu1 %vm18705_vm8, %v18704_v22 }
0x2afa   :  { %17907 = vmatprep.subr.mxu1 %v18704_v22 }
0x2afc   :  { %17900 = vmatmul.mubr.msk.f32.vlgmr.msra.gmra.mrb[140].mxu1 %vm501_vm9, %v12432_v23 }
0x2afd   :  { %17909 = vmatprep.mubr.msk.f32.mxu1 %vm18705_vm8, %v18704_v22 }
0x2b0c   :  { %12116 = vrot.lane.b32.xlu0 %v20499_v57, %s18714_s7 }
0x2b10   :  { %12511 = vrot.lane.b32.xlu0 %v20502_v56, %s18716_s11 }
0x2b14   :  { %12509 = vrot.lane.b32.xlu0 %v20502_v56, %s18715_s10 }
0x2b83   :  { %v12108_v18 = vpop.xlane.xlu0 %12107 }
0x2b84   :  { %18590 = vrcp.f32 %v12108_v18 }
0x2b87   :  { %v12117_v31 = vpop.permute.xlu0 %12116 }
0x2b88   :  { %17883 = vmatpush3.msk.msra.mxu0 %vm11128_vm6, %v12117_v31 }
0x2b89   :  { %17892 = vmatprep.subr.mxu0 %v18704_v22 }
0x2b8b   :  { %v12512_v21 = vpop.permute.xlu0 %12511 }
0x2b8e   :  { %v18591_v38 = vpop.eup %18590 }
0x2b8f   :  { %v12114_v8 = vmul.f32 %v18591_v38, %v18587_v35  ;;  %v12510_v10 = vpop.permute.xlu0 %12509 }
0x2b91   :  { %17885 = vmatmul.mubr.msk.f32.vlgmr.msra.gmra.mrb[134].mxu0 %vm11124_vm10, %v12114_v8 }
0x2b92   :  { %17894 = vmatprep.mubr.msk.f32.mxu0 %vm18705_vm8, %v18704_v22  ;;  %17893 = vmatpush3.msra.mxu0 %v10856_v34 }
0x2b93   :  { %17902 = vmatprep.subr.mxu0 %v18704_v22 }
0x2bcb   :  { %v12266_v2 = vpop.f32.mrb[138].mxu1 }
0x2bcc   :  { %v17891_v16 = vpop.f32.mrb[139].mxu1  ;;  %v12301_v53 = vrot.slane %v12266_v2, %v19019_v13 }
0x2bce   :  { %v12302_v15 = vcombine.high %v12301_v53, %v12301_v53  ;;  %v12309_v28 = vrot.slane %v12301_v53, %v19019_v13 }
0x2bcf   :  { %v12505_v45 = vpop.f32.mrb[140].mxu1 }
0x2bd0   :  { %v12587_v46 = vmul.f32 0.35355338, %v12505_v45  ;;  %v17901_v52 = vpop.f32.mrb[141].mxu1  ;;  %v12316_v63 = vrot.slane %v12302_v15, %v19019_v13  ;;  %v12317_v27 = vcombine.high %v12309_v28, %v12309_v28 }
0x2bd2   :  { %v12589_v14 = vsel %vm20526_vm3, -1e+09, %v12587_v46  ;;  %v12320_v11 = vcombine.low %v12316_v63, %v12317_v27 }
0x2bd3   :  { %v12591_v58 = vsel %vm11099_vm4, %v12589_v14, -inf }
0x2bd4   :  { %12592 = vmax.xlane.f32.xlu1 %v12591_v58  ;;  %v12341_v29 = vrot.slane %v12320_v11, %v19019_v13 }
0x2bd6   :  { %v12356_v4 = vrot.slane %v12341_v29, %v19019_v13 }
0x2c61   :  { %v12593_v1 = vpop.xlane.xlu1 %12592 }
0x2c62   :  { %v12597_v9 = vsub.f32 %v12589_v14, %v12593_v1 }
0x2c64   :  { %v12189_v47 = vpop.f32.mrb[134].mxu0  ;;  %v12599_v30 = vmul.f32 1.442695, %v12597_v9 }
0x2c65   :  { %v12278_v17 = vrot.slane %v12189_v47, %v19019_v13  ;;  %v17886_v50 = vpop.f32.mrb[135].mxu0  ;;  %v10857_v47 = vld [vmem:[%s21225_s19 + $0x18] sm:$0xff] }
0x2c66   :  { %18592 = vpow2.f32 %v12599_v30  ;;  %v16561_v30 = vld [vmem:[%s21226_s24] ss:$0 sm:$0xff] }
0x2c67   :  { %v12279_v3 = vcombine.high %v12278_v17, %v12278_v17  ;;  %v12286_v43 = vrot.slane %v12278_v17, %v19019_v13 }
0x2c69   :  { %v12293_v49 = vrot.slane %v12279_v3, %v19019_v13  ;;  %v12294_v39 = vcombine.high %v12286_v43, %v12286_v43 }
0x2c6b   :  { %v12318_v20 = vcombine.low %v12286_v43, %v12293_v49  ;;  %v12319_v36 = vcombine.low %v12294_v39, %v12309_v28 }
0x2c6d   :  { %v12327_v62 = vrot.slane %v12318_v20, %v19019_v13  ;;  %v12334_v6 = vrot.slane %v12319_v36, %v19019_v13 }
0x2c6f   :  { %v12342_v40 = vcombine.low %v12327_v62, %v12334_v6 }
0x2c70   :  { %v18593_v18 = vpop.eup %18592 }
0x2c71   :  { %v12349_v54 = vrot.slane %v12342_v40, %v19019_v13  ;;  %v12603_v31 = vsel %vm11099_vm4, %v18593_v18, 0.0 }
0x2c73   :  { %v12357_v44 = vcombine.low %v12349_v54, %v12356_v4 }
0x2c75   :  { %17895 = vmatmul.mubr.msk.f32.vlgmr.msra.gmra.mrb[136].mxu0 %vm501_vm9, %v12357_v44 }
0x2c76   :  { %17903 = vmatpush3.xpose.msk.msra.mxu0 %vm501_vm9, %v12512_v21  ;;  %17904 = vmatprep.mubr.msk.f32.mxu0 %vm18705_vm8, %v18704_v22 }
0x2c77   :  { %17912 = vmatprep.subr.mxu0 %v18704_v22 }
0x2c79   :  { %17905 = vmatmul.mubr.msk.f32.vlgmr.msra.gmra.mrb[138].mxu0 %vm501_vm9, %v12510_v10 }
0x2c7a   :  { %17914 = vmatprep.mubr.msk.f32.mxu0 %vm18705_vm8, %v18704_v22 }
0x2d48   :  { %v12426_v32 = vpop.f32.mrb[136].mxu0 }
0x2d49   :  { %v20709_v33 = vadd.f32 %v12426_v32, %v20650_v25  ;;  %v17896_v35 = vpop.f32.mrb[137].mxu0 }
0x2d4c   :  { %v12583_v26 = vpop.f32.mrb[138].mxu0 }
0x2d4d   :  { %v12588_v5 = vmul.f32 0.35355338, %v12583_v26  ;;  %v17906_v7 = vpop.f32.mrb[139].mxu0 }
0x2d4f   :  { %v12590_v51 = vsel %vm20533_vm5, -1e+09, %v12588_v5 }
0x2d50   :  { %v12594_v23 = vsel %vm11099_vm4, %v12590_v51, -inf }
0x2d51   :  { %12595 = vmax.xlane.f32.xlu0 %v12594_v23 }
0x2d55   :  { %12604 = vadd.xlane.f32.xlu0 %v12603_v31 }
0x2d6b   :  { %12613 = vrot.lane.b32.xlu0 %v20499_v57, %s18717_s15 }
0x2dde   :  { %v12596_v38 = vpop.xlane.xlu0 %12595 }
0x2ddf   :  { %v12598_v25 = vsub.f32 %v12590_v51, %v12596_v38 }
0x2de1   :  { %v12601_v8 = vmul.f32 1.442695, %v12598_v25 }
0x2de2   :  { %v12605_v2 = vpop.xlane.xlu0 %12604 }
0x2de3   :  { %18594 = vpow2.f32 %v12601_v8 }
0x2de4   :  { %18596 = vrcp.f32 %v12605_v2 }
0x2de6   :  { %v12614_v16 = vpop.permute.xlu0 %12613 }
0x2de7   :  { %17908 = vmatpush3.msk.msra.mxu1 %vm11128_vm6, %v12614_v16 }
0x2de8   :  { %17917 = vmatprep.subr.mxu1 %v18704_v22 }
0x2ded   :  { %v18595_v45 = vpop.eup %18594 }
0x2dee   :  { %v18597_v46 = vpop.eup %18596  ;;  %v12606_v52 = vsel %vm11099_vm4, %v18595_v45, 0.0 }
0x2def   :  { %v12611_v14 = vmul.f32 %v18597_v46, %v18593_v18  ;;  %12607 = vadd.xlane.f32.xlu1 %v12606_v52 }
0x2df1   :  { %17910 = vmatmul.mubr.msk.f32.vlgmr.msra.gmra.mrb[142].mxu1 %vm11124_vm10, %v12611_v14 }
0x2df2   :  { %17919 = vmatprep.mubr.msk.f32.mxu1 %vm18705_vm8, %v18704_v22  ;;  %17918 = vmatpush3.msra.mxu1 %v10857_v47 }
0x2df3   :  { %18196 = vmatprep.subr.bf16.mxu1 %v18718_v59 }
0x2e00   :  { %12690 = vrot.lane.b32.xlu1 %v20502_v56, %s18717_s15 }
0x2e7c   :  { %v12608_v57 = vpop.xlane.xlu1 %12607 }
0x2e7d   :  { %18598 = vrcp.f32 %v12608_v57 }
0x2e80   :  { %v12691_v58 = vpop.permute.xlu1 %12690 }
0x2e81   :  { %17913 = vmatpush3.msk.msra.mxu0 %vm11128_vm6, %v12691_v58 }
0x2e82   :  { %18190 = vmatprep.subr.bf16.mxu0 %v18718_v59 }
0x2e87   :  { %v18599_v34 = vpop.eup %18598 }
0x2e88   :  { %v12612_v53 = vmul.f32 %v18599_v34, %v18595_v45 }
0x2e8a   :  { %17915 = vmatmul.mubr.msk.f32.vlgmr.msra.gmra.mrb[140].mxu0 %vm11124_vm10, %v12612_v53 }
0x2e8b   :  { %17930 = vmatprep.mubr.msk.f32.mxu0 %vm18705_vm8, %v18704_v22 }
0x2ec4   :  { %v12686_v15 = vpop.f32.mrb[142].mxu1 }
0x2ec5   :  { %v17911_v28 = vpop.f32.mrb[143].mxu1  ;;  %v12775_v56 = vrot.slane %v12686_v15, %v19019_v13 }
0x2ec7   :  { %v12776_v63 = vcombine.high %v12775_v56, %v12775_v56  ;;  %v12783_v27 = vrot.slane %v12775_v56, %v19019_v13 }
0x2ec9   :  { %v12790_v17 = vrot.slane %v12776_v63, %v19019_v13  ;;  %v12791_v11 = vcombine.high %v12783_v27, %v12783_v27 }
0x2ecb   :  { %v12815_v49 = vcombine.low %v12783_v27, %v12790_v17 }
0x2ecd   :  { %v12824_v6 = vrot.slane %v12815_v49, %v19019_v13 }
0x2f5d   :  { %v12763_v50 = vpop.f32.mrb[140].mxu0 }
0x2f5e   :  { %v12798_v3 = vrot.slane %v12763_v50, %v19019_v13  ;;  %v17916_v43 = vpop.f32.mrb[141].mxu0 }
0x2f60   :  { %v12799_v39 = vcombine.high %v12798_v3, %v12798_v3  ;;  %v12806_v20 = vrot.slane %v12798_v3, %v19019_v13 }
0x2f62   :  { %v12813_v36 = vrot.slane %v12799_v39, %v19019_v13  ;;  %v12814_v29 = vcombine.high %v12806_v20, %v12806_v20  ;;  %v12816_v62 = vcombine.low %v12791_v11, %v12806_v20 }
0x2f64   :  { %v12817_v40 = vcombine.low %v12813_v36, %v12814_v29  ;;  %v12831_v4 = vrot.slane %v12816_v62, %v19019_v13 }
0x2f66   :  { %v12838_v54 = vrot.slane %v12817_v40, %v19019_v13  ;;  %v12839_v21 = vcombine.low %v12824_v6, %v12831_v4 }
0x2f68   :  { %v12846_v44 = vrot.slane %v12839_v21, %v19019_v13  ;;  %v12853_v10 = vrot.slane %v12838_v54, %v19019_v13 }
0x2f6a   :  { %v12854_v1 = vcombine.low %v12846_v44, %v12853_v10 }
0x2f6c   :  { %17920 = vmatmul.mubr.msk.f32.vlgmr.msra.gmra.mrb[144].mxu1 %vm501_vm9, %v12854_v1 }
0x2f6d   :  { %17949 = vmatprep.mubr.msk.f32.mxu1 %vm18705_vm8, %v18704_v22 }
0x303f   :  { %v12923_v9 = vpop.f32.mrb[144].mxu1 }
0x3040   :  { %v12927_v32 = vadd.f32 %v12923_v9, %v20709_v33  ;;  %v17921_v35 = vpop.f32.mrb[145].mxu1 }
0x3041   :  { %v13069_v35 = vld [vmem:[%s21227_s30 + $0x10] sm:$0xff] }
0x3042   :  { %v12935_v26 = vadd.f32 %v16561_v30, %v12927_v32  ;;  %v13067_v30 = vld [vmem:[%s21227_s30] sm:$0xff]  ;;  %v13068_v32 = vld [vmem:[%s21227_s30 + $0x8] sm:$0xff] }
0x3044   :  { %v12937_v5 = vrot.slane %v12935_v26, 1  ;;  %v12938_v7 = vrot.slane %v12935_v26, 2  ;;  %v12939_v51 = vrot.slane %v12935_v26, 3  ;;  %v12940_v23 = vrot.slane %v12935_v26, 4 }
0x3045   :  { %v12941_v18 = vrot.slane %v12935_v26, 5  ;;  %v12948_v2 = vadd.f32 %v12935_v26, %v20463_v42  ;;  %v18191_v26 = vpack.c.bf16 %v13068_v32, %v13067_v30  ;;  %v16564_v32 = vld [vmem:[%s21231_s18] ss:$0 sm:$0xff] }
0x3046   :  { %v12949_v31 = vadd.f32 %v12937_v5, %v20461_v0  ;;  %v12950_v38 = vadd.f32 %v12938_v7, %v20467_v61  ;;  %v12951_v25 = vadd.f32 %v12939_v51, %v20465_v48  ;;  %v12952_v8 = vadd.f32 %v12940_v23, %v20470_v55  ;;  %v13070_v5 = vld [vmem:[%s21227_s30 + $0x18] sm:$0xff]  ;;  %v13167_v51 = vld [vmem:[%s21228_s6] sm:$0xff]  ;;  %v13168_v23 = vld [vmem:[%s21228_s6 + $0x8] sm:$0xff] }
0x3047   :  { %v12953_v16 = vadd.f32 %v12941_v18, %v20477_v41  ;;  %18192 = vmatpush3.bf16.msra.mxu0 %v18191_v26  ;;  %v18194_v7 = vpack.c.bf16 %v13070_v5, %v13069_v35  ;;  %v13169_v18 = vld [vmem:[%s21228_s6 + $0x10] sm:$0xff] }
0x3048   :  { %v12962_v33 = vrot.slane %v12949_v31, 7  ;;  %v12964_v45 = vrot.slane %v12950_v38, 6  ;;  %v12966_v52 = vrot.slane %v12951_v25, 5  ;;  %v12968_v57 = vrot.slane %v12952_v8, 4  ;;  %18193 = vmatprep.subr.bf16.mxu0 %v18718_v59 }
0x3049   :  { %v12970_v58 = vrot.slane %v12953_v16, 3 }
0x304a   :  { %v12963_v46 = vsel %vm10720_vm11, %v12962_v33, %v12948_v2 }
0x304b   :  { %v12965_v14 = vsel %vm10723_vm12, %v12964_v45, %v12963_v46  ;;  %18195 = vmatpush3.bf16.msra.mxu0 %v18194_v7 }
0x304c   :  { %v12967_v0 = vsel %vm10726_vm13, %v12966_v52, %v12965_v14  ;;  %18208 = vmatprep.subr.bf16.mxu0 %v18718_v59  ;;  %v16562_v14 = vld [vmem:[%s21229_s12] ss:$0 sm:$0xff] }
0x304d   :  { %v12969_v48 = vsel %vm10729_vm14, %v12968_v57, %v12967_v0 }
0x304e   :  { %v12971_v61 = vsel %vm10732_vm15, %v12970_v58, %v12969_v48 }
0x304f   :  { %v12974_v42 = vsel %vm12973_vm1, %v12971_v61, 0.0 }
0x3050   :  { %12975 = vadd.xlane.f32.xlu1 %v12974_v42 }
0x30dd   :  { %v12976_v55 = vpop.xlane.xlu1 %12975 }
0x30de   :  { %v12977_v41 = vmul.f32 0.03125, %v12976_v55 }
0x30e0   :  { %v12979_v34 = vrot.slane %v12977_v41, 1  ;;  %v12980_v53 = vrot.slane %v12977_v41, 2  ;;  %v12981_v15 = vrot.slane %v12977_v41, 3  ;;  %v12982_v28 = vrot.slane %v12977_v41, 4 }
0x30e1   :  { %v12983_v47 = vrot.slane %v12977_v41, 5  ;;  %v12990_v56 = vsub.f32 %v12948_v2, %v12977_v41  ;;  %v13172_v2 = vld [vmem:[%s21228_s6 + $0x28] sm:$0xff] }
0x30e2   :  { %v12991_v63 = vsub.f32 %v12949_v31, %v12979_v34  ;;  %v12992_v27 = vsub.f32 %v12950_v38, %v12980_v53  ;;  %v12993_v17 = vsub.f32 %v12951_v25, %v12981_v15  ;;  %v12994_v50 = vsub.f32 %v12952_v8, %v12982_v28  ;;  %v13170_v38 = vld [vmem:[%s21228_s6 + $0x18] sm:$0xff]  ;;  %v13171_v8 = vld [vmem:[%s21228_s6 + $0x20] sm:$0xff] }
0x30e3   :  { %v12995_v3 = vsub.f32 %v12953_v16, %v12983_v47  ;;  %v12996_v20 = vmul.f32 %v12990_v56, %v12990_v56  ;;  %v18197_v31 = vpack.c.bf16 %v13168_v23, %v13167_v51  ;;  %v18200_v25 = vpack.c.bf16 %v13170_v38, %v13169_v18  ;;  %v16566_v51 = vld [vmem:[%s21232_s22] ss:$0 sm:$0xff] }
0x30e4   :  { %v12997_v43 = vmul.f32 %v12991_v63, %v12991_v63  ;;  %v12998_v11 = vmul.f32 %v12992_v27, %v12992_v27  ;;  %v12999_v49 = vmul.f32 %v12993_v17, %v12993_v17  ;;  %v13000_v39 = vmul.f32 %v12994_v50, %v12994_v50 }
0x30e5   :  { %v13001_v36 = vmul.f32 %v12995_v3, %v12995_v3  ;;  %18198 = vmatpush3.bf16.msra.mxu1 %v18197_v31  ;;  %v18203_v16 = vpack.c.bf16 %v13172_v2, %v13171_v8 }
0x30e6   :  { %v13008_v29 = vrot.slane %v12997_v43, 7  ;;  %v13010_v62 = vrot.slane %v12998_v11, 6  ;;  %v13012_v40 = vrot.slane %v12999_v49, 5  ;;  %v13014_v54 = vrot.slane %v13000_v39, 4  ;;  %18199 = vmatprep.subr.bf16.mxu1 %v18718_v59  ;;  %v16563_v39 = vld [vmem:[%s21230_s20] ss:$0 sm:$0xff] }
0x30e7   :  { %v13016_v44 = vrot.slane %v13001_v36, 3 }
0x30e8   :  { %v13009_v6 = vsel %vm10720_vm11, %v13008_v29, %v12996_v20 }
0x30e9   :  { %v13011_v4 = vsel %vm10723_vm12, %v13010_v62, %v13009_v6  ;;  %18201 = vmatpush3.bf16.msra.mxu1 %v18200_v25 }
0x30ea   :  { %v13013_v21 = vsel %vm10726_vm13, %v13012_v40, %v13011_v4  ;;  %18202 = vmatprep.subr.bf16.mxu1 %v18718_v59 }
0x30eb   :  { %v13015_v10 = vsel %vm10729_vm14, %v13014_v54, %v13013_v21 }
0x30ec   :  { %v13017_v1 = vsel %vm10732_vm15, %v13016_v44, %v13015_v10 }
0x30ed   :  { %v13019_v9 = vsel %vm12973_vm1, %v13017_v1, 0.0  ;;  %18204 = vmatpush3.bf16.msra.mxu1 %v18203_v16  ;;  %v13173_v1 = vld [vmem:[%s21228_s6 + $0x30] sm:$0xff] }
0x30ee   :  { %13020 = vadd.xlane.f32.xlu0 %v13019_v9  ;;  %18205 = vmatprep.subr.bf16.mxu1 %v18718_v59  ;;  %v13174_v9 = vld [vmem:[%s21228_s6 + $0x38] sm:$0xff] }
0x30ef   :  { %v18206_v30 = vpack.c.bf16 %v13174_v9, %v13173_v1 }
0x30f1   :  { %18207 = vmatpush3.bf16.msra.mxu1 %v18206_v30 }
0x30f2   :  { %17968 = vmatprep.subr.mxu1 %v18704_v22 }
0x317b   :  { %v13021_v33 = vpop.xlane.xlu0 %13020 }
0x317c   :  { %v13022_v45 = vmul.f32 0.03125, %v13021_v33 }
0x317e   :  { %v13023_v46 = vadd.f32 1e-05, %v13022_v45 }
0x3180   :  { %18600 = vrsqrt.f32 %v13023_v46 }
0x318a   :  { %v18601_v52 = vpop.eup %18600 }
0x318b   :  { %v13026_v57 = vrot.slane %v18601_v52, 1  ;;  %v13027_v0 = vrot.slane %v18601_v52, 2  ;;  %v13028_v58 = vrot.slane %v18601_v52, 3  ;;  %v13029_v48 = vrot.slane %v18601_v52, 4 }
0x318c   :  { %v13030_v61 = vrot.slane %v18601_v52, 5  ;;  %v13037_v42 = vmul.f32 %v18601_v52, %v12990_v56 }
0x318d   :  { %v13038_v55 = vmul.f32 %v13026_v57, %v12991_v63  ;;  %v13039_v41 = vmul.f32 %v13027_v0, %v12992_v27  ;;  %v13040_v34 = vmul.f32 %v13028_v58, %v12993_v17  ;;  %v13041_v53 = vmul.f32 %v13029_v48, %v12994_v50 }
0x318e   :  { %v13042_v15 = vmul.f32 %v13030_v61, %v12995_v3  ;;  %v13049_v28 = vmul.f32 %v16562_v14, %v13037_v42 }
0x318f   :  { %v13050_v47 = vmul.f32 %v16562_v14, %v13038_v55  ;;  %v13051_v43 = vmul.f32 %v16562_v14, %v13039_v41  ;;  %v13052_v11 = vmul.f32 %v16562_v14, %v13040_v34  ;;  %v13053_v49 = vmul.f32 %v16562_v14, %v13041_v53 }
0x3190   :  { %v13054_v20 = vmul.f32 %v16562_v14, %v13042_v15  ;;  %v13061_v40 = vadd.f32 %v16563_v39, %v13049_v28 }
0x3191   :  { %v13062_v36 = vadd.f32 %v16563_v39, %v13050_v47  ;;  %v13063_v29 = vadd.f32 %v16563_v39, %v13051_v43  ;;  %v13064_v62 = vadd.f32 %v16563_v39, %v13052_v11  ;;  %v13065_v6 = vadd.f32 %v16563_v39, %v13053_v49 }
0x3192   :  { %v13066_v56 = vadd.f32 %v16563_v39, %v13054_v20 }
0x3193   :  { %v13084_v63 = vrot.slane %v13062_v36, 7  ;;  %v13086_v27 = vrot.slane %v13063_v29, 6  ;;  %v13088_v50 = vrot.slane %v13064_v62, 5  ;;  %v13090_v4 = vrot.slane %v13065_v6, 4 }
0x3194   :  { %v13092_v21 = vrot.slane %v13066_v56, 3 }
0x3195   :  { %v13085_v17 = vsel %vm10720_vm11, %v13084_v63, %v13061_v40 }
0x3196   :  { %v13087_v3 = vsel %vm10723_vm12, %v13086_v27, %v13085_v17 }
0x3197   :  { %v13089_v54 = vsel %vm10726_vm13, %v13088_v50, %v13087_v3 }
0x3198   :  { %v13091_v44 = vsel %vm10729_vm14, %v13090_v4, %v13089_v54 }
0x3199   :  { %v13093_v10 = vsel %vm10732_vm15, %v13092_v21, %v13091_v44 }
0x319a   :  { %17931 = vmatmul.mubr.msk.f32.vlgmr.msra.gmra.mrb[142].mxu0 %vm320_vm7, %v13093_v10 }
0x319b   :  { %17960 = vmatprep.mubr.msk.f32.mxu0 %vm18705_vm8, %v18704_v22 }
0x326d   :  { %v13162_v35 = vpop.f32.mrb[142].mxu0 }
0x326e   :  { %v13163_v26 = vadd.f32 %v16564_v32, %v13162_v35  ;;  %v17932_v5 = vpop.f32.mrb[143].mxu0 }
0x3270   :  { %v13166_v7 = vmax.f32 %v13163_v26, 0.0 }
0x3272   :  { %17950 = vmatmul.mubr.msk.f32.vlgmr.msra.gmra.mrb[146].mxu1 %vm187_vm0, %v13166_v7 }
0x3273   :  { %17970 = vmatprep.mubr.msk.f32.mxu1 %vm18705_vm8, %v18704_v22 }
0x3345   :  { %v13251_v23 = vpop.f32.mrb[146].mxu1 }
0x3346   :  { %v13252_v18 = vadd.f32 %v16566_v51, %v13251_v23  ;;  %v17951_v31 = vpop.f32.mrb[147].mxu1  ;;  %v16570_v51 = vld [vmem:[%s21217_s9 + $0x20] sm:$0xff]  ;;  %v16571_v23 = vld [vmem:[%s21217_s9 + $0x28] sm:$0xff] }
0x3347   :  { %v18209_v31 = vpack.c.bf16 %v16571_v23, %v16570_v51 }
0x3348   :  { %v13256_v38 = vrot.slane %v13252_v18, 1  ;;  %v13257_v25 = vrot.slane %v13252_v18, 2  ;;  %v13258_v8 = vrot.slane %v13252_v18, 3  ;;  %v13259_v2 = vrot.slane %v13252_v18, 4 }
0x3349   :  { %v13260_v16 = vrot.slane %v13252_v18, 5  ;;  %v13267_v14 = vadd.f32 %v13252_v18, %v13061_v40  ;;  %v16572_v18 = vld [vmem:[%s21217_s9 + $0x30] sm:$0xff]  ;;  %18210 = vmatpush3.bf16.msra.mxu0 %v18209_v31 }
0x334a   :  { %v13268_v33 = vadd.f32 %v13256_v38, %v13062_v36  ;;  %v13269_v45 = vadd.f32 %v13257_v25, %v13063_v29  ;;  %v13270_v46 = vadd.f32 %v13258_v8, %v13064_v62  ;;  %v13271_v52 = vadd.f32 %v13259_v2, %v13065_v6  ;;  %v16573_v38 = vld [vmem:[%s21217_s9 + $0x38] sm:$0xff]  ;;  %18211 = vmatprep.subr.bf16.mxu0 %v18718_v59 }
0x334b   :  { %v13272_v57 = vadd.f32 %v13260_v16, %v13066_v56  ;;  %v18212_v25 = vpack.c.bf16 %v16573_v38, %v16572_v18 }
0x334c   :  { %v13281_v0 = vrot.slane %v13268_v33, 7  ;;  %v13283_v58 = vrot.slane %v13269_v45, 6  ;;  %v13285_v61 = vrot.slane %v13270_v46, 5  ;;  %v13287_v55 = vrot.slane %v13271_v52, 4 }
0x334d   :  { %v13289_v34 = vrot.slane %v13272_v57, 3  ;;  %18213 = vmatpush3.bf16.msra.mxu0 %v18212_v25 }
0x334e   :  { %v13282_v48 = vsel %vm10720_vm11, %v13281_v0, %v13267_v14  ;;  %17963 = vmatprep.subr.mxu0 %v18704_v22 }
0x334f   :  { %v13284_v42 = vsel %vm10723_vm12, %v13283_v58, %v13282_v48 }
0x3350   :  { %v13286_v41 = vsel %vm10726_vm13, %v13285_v61, %v13284_v42 }
0x3351   :  { %v13288_v53 = vsel %vm10729_vm14, %v13287_v55, %v13286_v41 }
0x3352   :  { %v13290_v15 = vsel %vm10732_vm15, %v13289_v34, %v13288_v53 }
0x3353   :  { %v13292_v28 = vsel %vm12973_vm1, %v13290_v15, 0.0 }
0x3354   :  { %13293 = vadd.xlane.f32.xlu0 %v13292_v28 }
0x33e1   :  { %v13294_v47 = vpop.xlane.xlu0 %13293 }
0x33e2   :  { %v13295_v43 = vmul.f32 0.03125, %v13294_v47 }
0x33e4   :  { %v13297_v11 = vrot.slane %v13295_v43, 1  ;;  %v13298_v49 = vrot.slane %v13295_v43, 2  ;;  %v13299_v39 = vrot.slane %v13295_v43, 3  ;;  %v13300_v20 = vrot.slane %v13295_v43, 4 }
0x33e5   :  { %v13301_v36 = vrot.slane %v13295_v43, 5  ;;  %v13308_v29 = vsub.f32 %v13267_v14, %v13295_v43  ;;  %v16569_v43 = vld [vmem:[%s18873_s4] ss:$0 sm:$0xff] }
0x33e6   :  { %v13309_v62 = vsub.f32 %v13268_v33, %v13297_v11  ;;  %v13310_v6 = vsub.f32 %v13269_v45, %v13298_v49  ;;  %v13311_v40 = vsub.f32 %v13270_v46, %v13299_v39  ;;  %v13312_v56 = vsub.f32 %v13271_v52, %v13300_v20  ;;  %v16568_v45 = vld [vmem:[%s21233_s23] ss:$0 sm:$0xff] }
0x33e7   :  { %v13313_v63 = vsub.f32 %v13272_v57, %v13301_v36  ;;  %v13314_v4 = vmul.f32 %v13308_v29, %v13308_v29 }
0x33e8   :  { %v13315_v27 = vmul.f32 %v13309_v62, %v13309_v62  ;;  %v13316_v17 = vmul.f32 %v13310_v6, %v13310_v6  ;;  %v13317_v50 = vmul.f32 %v13311_v40, %v13311_v40  ;;  %v13318_v3 = vmul.f32 %v13312_v56, %v13312_v56 }
0x33e9   :  { %v13319_v54 = vmul.f32 %v13313_v63, %v13313_v63 }
0x33ea   :  { %v13326_v21 = vrot.slane %v13315_v27, 7  ;;  %v13328_v44 = vrot.slane %v13316_v17, 6  ;;  %v13330_v1 = vrot.slane %v13317_v50, 5  ;;  %v13332_v30 = vrot.slane %v13318_v3, 4 }
0x33eb   :  { %v13334_v35 = vrot.slane %v13319_v54, 3 }
0x33ec   :  { %v13327_v10 = vsel %vm10720_vm11, %v13326_v21, %v13314_v4  ;;  %v16575_v21 = vld [vmem:[%s21219_s8 + $0x1] ss:$0 sm:$0xff] }
0x33ed   :  { %v13329_v9 = vsel %vm10723_vm12, %v13328_v44, %v13327_v10 }
0x33ee   :  { %v13331_v32 = vsel %vm10726_vm13, %v13330_v1, %v13329_v9 }
0x33ef   :  { %v13333_v26 = vsel %vm10729_vm14, %v13332_v30, %v13331_v32 }
0x33f0   :  { %v13335_v5 = vsel %vm10732_vm15, %v13334_v35, %v13333_v26 }
0x33f1   :  { %v13337_v7 = vsel %vm12973_vm1, %v13335_v5, 0.0 }
0x33f2   :  { %13338 = vadd.xlane.f32.xlu1 %v13337_v7 }
0x347f   :  { %v13339_v8 = vpop.xlane.xlu1 %13338 }
0x3480   :  { %v13340_v2 = vmul.f32 0.03125, %v13339_v8 }
0x3482   :  { %v13341_v16 = vadd.f32 1e-05, %v13340_v2 }
0x3484   :  { %18602 = vrsqrt.f32 %v13341_v16 }
0x348e   :  { %v18603_v33 = vpop.eup %18602 }
0x348f   :  { %v13344_v46 = vrot.slane %v18603_v33, 1  ;;  %v13345_v52 = vrot.slane %v18603_v33, 2  ;;  %v13346_v14 = vrot.slane %v18603_v33, 3  ;;  %v13347_v57 = vrot.slane %v18603_v33, 4 }
0x3490   :  { %v13348_v0 = vrot.slane %v18603_v33, 5  ;;  %v13355_v58 = vmul.f32 %v18603_v33, %v13308_v29 }
0x3491   :  { %v13356_v48 = vmul.f32 %v13344_v46, %v13309_v62  ;;  %v13357_v61 = vmul.f32 %v13345_v52, %v13310_v6  ;;  %v13358_v42 = vmul.f32 %v13346_v14, %v13311_v40  ;;  %v13359_v55 = vmul.f32 %v13347_v57, %v13312_v56 }
0x3492   :  { %v13360_v41 = vmul.f32 %v13348_v0, %v13313_v63  ;;  %v13367_v34 = vmul.f32 %v16568_v45, %v13355_v58 }
0x3493   :  { %v13368_v53 = vmul.f32 %v16568_v45, %v13356_v48  ;;  %v13369_v15 = vmul.f32 %v16568_v45, %v13357_v61  ;;  %v13370_v28 = vmul.f32 %v16568_v45, %v13358_v42  ;;  %v13371_v47 = vmul.f32 %v16568_v45, %v13359_v55 }
0x3494   :  { %v13372_v11 = vmul.f32 %v16568_v45, %v13360_v41  ;;  %v20827_v29 = vadd.f32 %v16569_v43, %v13367_v34 }
0x3495   :  { %v20819_v49 = vadd.f32 %v16569_v43, %v13368_v53  ;;  %v20821_v39 = vadd.f32 %v16569_v43, %v13369_v15  ;;  %v20823_v20 = vadd.f32 %v16569_v43, %v13370_v28  ;;  %v20825_v36 = vadd.f32 %v16569_v43, %v13371_v47 }
0x3496   :  { %v20829_v62 = vadd.f32 %v16569_v43, %v13372_v11 }
0x3497   :  { %v13404_v6 = vrot.slane %v20819_v49, 7  ;;  %v13406_v40 = vrot.slane %v20821_v39, 6  ;;  %v13408_v63 = vrot.slane %v20823_v20, 5  ;;  %v13410_v17 = vrot.slane %v20825_v36, 4 }
0x3498   :  { %v13412_v3 = vrot.slane %v20829_v62, 3 }
0x3499   :  { %v13405_v56 = vsel %vm10720_vm11, %v13404_v6, %v20827_v29 }
0x349a   :  { %v13407_v27 = vsel %vm10723_vm12, %v13406_v40, %v13405_v56 }
0x349b   :  { %v13409_v50 = vsel %vm10726_vm13, %v13408_v63, %v13407_v27 }
0x349c   :  { %v13411_v4 = vsel %vm10729_vm14, %v13410_v17, %v13409_v50 }
0x349d   :  { %v13413_v54 = vsel %vm10732_vm15, %v13412_v3, %v13411_v4 }
0x349e   :  { %17961 = vmatmul.mubr.msk.f32.vlgmr.msra.gmra.mrb[144].mxu0 %vm320_vm7, %v13413_v54 }
0x349f   :  { %17965 = vmatprep.mubr.msk.f32.mxu0 %vm18705_vm8, %v18704_v22 }
0x3571   :  { %v13482_v44 = vpop.f32.mrb[144].mxu0 }
0x3572   :  { %v13483_v10 = vadd.f32 %v16575_v21, %v13482_v44  ;;  %v17962_v1 = vpop.f32.mrb[145].mxu0 }
0x3574   :  { %v13487_v9 = vcombine.high %v13483_v10, %v13483_v10  ;;  %v13494_v30 = vrot.slane %v13483_v10, %v19019_v13 }
0x3576   :  { %v13501_v32 = vrot.slane %v13487_v9, %v19019_v13  ;;  %v13502_v35 = vcombine.high %v13494_v30, %v13494_v30  ;;  %v13510_v26 = vrot.slane %v13494_v30, %v19019_v13 }
0x3578   :  { %v13503_v5 = vcombine.high %v13501_v32, %v13501_v32  ;;  %v13524_v7 = vrot.slane %v13502_v35, %v19019_v13  ;;  %v13532_v51 = vcombine.high %v13510_v26, %v13510_v26  ;;  %v13517_v23 = vrot.slane %v13501_v32, %v19019_v13 }
0x357a   :  { %v13531_v18 = vrot.slane %v13503_v5, %v19019_v13  ;;  %v13533_v31 = vcombine.high %v13524_v7, %v13524_v7  ;;  %v13539_v38 = vcombine.low %v13510_v26, %v13524_v7  ;;  %v13553_v8 = vrot.slane %v13532_v51, %v19019_v13 }
0x357c   :  { %v13546_v25 = vrot.slane %v13539_v38, %v19019_v13  ;;  %v13638_v2 = vcombine.low %v13533_v31, %v13517_v23  ;;  %v13652_v45 = vrot.slane %v13531_v18, %v19019_v13 }
0x357e   :  { %v13554_v16 = vcombine.low %v13546_v25, %v13553_v8  ;;  %v13645_v33 = vrot.slane %v13638_v2, %v19019_v13 }
0x3580   :  { %v20857_v46 = vrot.slane %v13554_v16, %v19019_v13  ;;  %v13653_v52 = vcombine.low %v13645_v33, %v13652_v45 }
0x3582   :  { %v20860_v14 = vrot.slane %v13653_v52, %v19019_v13  ;;  %13562 = vrot.lane.b32.xlu0 %v20857_v46, %s18706_s0 }
0x3584   :  { %13661 = vrot.lane.b32.xlu1 %v20860_v14, %s18706_s0 }
0x35f4   :  { %v13563_v57 = vpop.permute.xlu0 %13562 }
0x35f5   :  { %17964 = vmatpush3.xpose.msk.msra.mxu0 %vm501_vm9, %v13563_v57 }
0x35f6   :  { %v13662_v0 = vpop.permute.xlu1 %13661  ;;  %17973 = vmatprep.subr.mxu0 %v18704_v22 }
0x35f7   :  { %17969 = vmatpush3.xpose.msk.msra.mxu1 %vm501_vm9, %v13662_v0 }
0x35f8   :  { %17966 = vmatmul.mubr.msk.f32.vlgmr.msra.gmra.mrb[146].mxu0 %vm501_vm9, %v20857_v46  ;;  %17978 = vmatprep.subr.mxu1 %v18704_v22 }
0x35f9   :  { %17975 = vmatprep.mubr.msk.f32.mxu0 %vm18705_vm8, %v18704_v22 }
0x35fa   :  { %17971 = vmatmul.mubr.msk.f32.vlgmr.msra.gmra.mrb[148].mxu1 %vm501_vm9, %v20860_v14 }
0x35fb   :  { %17980 = vmatprep.mubr.msk.f32.mxu1 %vm18705_vm8, %v18704_v22 }
0x36cb   :  { %v13634_v58 = vpop.f32.mrb[146].mxu0 }
0x36cc   :  { %v13737_v48 = vmul.f32 0.35355338, %v13634_v58  ;;  %v17967_v61 = vpop.f32.mrb[147].mxu0 }
0x36cd   :  { %v13733_v42 = vpop.f32.mrb[148].mxu1 }
0x36ce   :  { %v13739_v55 = vsel %vm20526_vm3, -1e+09, %v13737_v48  ;;  %v13738_v41 = vmul.f32 0.35355338, %v13733_v42  ;;  %v17972_v34 = vpop.f32.mrb[149].mxu1 }
0x36cf   :  { %v13741_v53 = vsel %vm11099_vm4, %v13739_v55, -inf }
0x36d0   :  { %v13740_v15 = vsel %vm20533_vm5, -1e+09, %v13738_v41  ;;  %13742 = vmax.xlane.f32.xlu1 %v13741_v53 }
0x36d1   :  { %v13744_v28 = vsel %vm11099_vm4, %v13740_v15, -inf }
0x36d2   :  { %13745 = vmax.xlane.f32.xlu0 %v13744_v28 }
0x36e1   :  { %13840 = vrot.lane.b32.xlu1 %v20860_v14, %s18708_s5 }
0x36e5   :  { %13967 = vrot.lane.b32.xlu1 %v20857_v46, %s18709_s17 }
0x36e8   :  { %13763 = vrot.lane.b32.xlu0 %v20857_v46, %s18708_s5 }
0x375d   :  { %v13743_v47 = vpop.xlane.xlu1 %13742 }
0x375e   :  { %v13747_v43 = vsub.f32 %v13739_v55, %v13743_v47 }
0x375f   :  { %v13746_v11 = vpop.xlane.xlu0 %13745 }
0x3760   :  { %v13749_v6 = vmul.f32 1.442695, %v13747_v43  ;;  %v13748_v40 = vsub.f32 %v13740_v15, %v13746_v11 }
0x3761   :  { %v13841_v56 = vpop.permute.xlu1 %13840 }
0x3762   :  { %18604 = vpow2.f32 %v13749_v6  ;;  %v13751_v63 = vmul.f32 1.442695, %v13748_v40  ;;  %17979 = vmatpush3.msk.msra.mxu1 %vm11128_vm6, %v13841_v56 }
0x3763   :  { %v13764_v27 = vpop.permute.xlu0 %13763  ;;  %17988 = vmatprep.subr.mxu1 %v18704_v22 }
0x3764   :  { %18606 = vpow2.f32 %v13751_v63  ;;  %17974 = vmatpush3.msk.msra.mxu0 %vm11128_vm6, %v13764_v27 }
0x3765   :  { %17983 = vmatprep.subr.mxu0 %v18704_v22  ;;  %v13968_v54 = vpop.permute.xlu1 %13967 }
0x376c   :  { %v18605_v17 = vpop.eup %18604 }
0x376d   :  { %v13753_v50 = vsel %vm11099_vm4, %v18605_v17, 0.0 }
0x376e   :  { %v18607_v3 = vpop.eup %18606  ;;  %13754 = vadd.xlane.f32.xlu0 %v13753_v50 }
0x376f   :  { %v13756_v4 = vsel %vm11099_vm4, %v18607_v3, 0.0 }
0x3770   :  { %13757 = vadd.xlane.f32.xlu1 %v13756_v4 }
0x3781   :  { %13965 = vrot.lane.b32.xlu1 %v20857_v46, %s18710_s21 }
0x3784   :  { %14045 = vrot.lane.b32.xlu0 %v20860_v14, %s18709_s17 }
0x3788   :  { %14043 = vrot.lane.b32.xlu0 %v20860_v14, %s18710_s21 }
0x37fb   :  { %v13755_v21 = vpop.xlane.xlu0 %13754 }
0x37fc   :  { %18608 = vrcp.f32 %v13755_v21 }
0x37fd   :  { %v13758_v44 = vpop.xlane.xlu1 %13757 }
0x37fe   :  { %18610 = vrcp.f32 %v13758_v44 }
0x37ff   :  { %v14046_v30 = vpop.permute.xlu0 %14045 }
0x3801   :  { %v13966_v35 = vpop.permute.xlu1 %13965 }
0x3803   :  { %v14044_v26 = vpop.permute.xlu0 %14043 }
0x3806   :  { %v18609_v10 = vpop.eup %18608 }
0x3807   :  { %v13761_v1 = vmul.f32 %v18609_v10, %v18605_v17 }
0x3808   :  { %v18611_v9 = vpop.eup %18610 }
0x3809   :  { %v13762_v32 = vmul.f32 %v18611_v9, %v18607_v3  ;;  %17976 = vmatmul.mubr.msk.f32.vlgmr.msra.gmra.mrb[148].mxu0 %vm11124_vm10, %v13761_v1 }
0x380a   :  { %17984 = vmatpush3.xpose.msk.msra.mxu0 %vm501_vm9, %v13968_v54  ;;  %17985 = vmatprep.mubr.msk.f32.mxu0 %vm18705_vm8, %v18704_v22 }
0x380b   :  { %17981 = vmatmul.mubr.msk.f32.vlgmr.msra.gmra.mrb[150].mxu1 %vm11124_vm10, %v13762_v32  ;;  %17993 = vmatprep.subr.mxu0 %v18704_v22 }
0x380c   :  { %17989 = vmatpush3.xpose.msk.msra.mxu1 %vm501_vm9, %v14046_v30  ;;  %17990 = vmatprep.mubr.msk.f32.mxu1 %vm18705_vm8, %v18704_v22 }
0x380d   :  { %17986 = vmatmul.mubr.msk.f32.vlgmr.msra.gmra.mrb[150].mxu0 %vm501_vm9, %v13966_v35  ;;  %17998 = vmatprep.subr.mxu1 %v18704_v22 }
0x380e   :  { %17995 = vmatprep.mubr.msk.f32.mxu0 %vm18705_vm8, %v18704_v22 }
0x380f   :  { %17991 = vmatmul.mubr.msk.f32.vlgmr.msra.gmra.mrb[152].mxu1 %vm501_vm9, %v14044_v26 }
0x3810   :  { %18000 = vmatprep.mubr.msk.f32.mxu1 %vm18705_vm8, %v18704_v22 }
0x38dc   :  { %v13836_v5 = vpop.f32.mrb[148].mxu0 }
0x38dd   :  { %v13925_v7 = vrot.slane %v13836_v5, %v19019_v13  ;;  %v17977_v51 = vpop.f32.mrb[149].mxu0 }
0x38de   :  { %v13913_v23 = vpop.f32.mrb[150].mxu1 }
0x38df   :  { %v13926_v18 = vcombine.high %v13925_v7, %v13925_v7  ;;  %v13933_v31 = vrot.slane %v13925_v7, %v19019_v13  ;;  %v13948_v38 = vrot.slane %v13913_v23, %v19019_v13  ;;  %v17982_v25 = vpop.f32.mrb[151].mxu1 }
0x38e0   :  { %v14039_v8 = vpop.f32.mrb[150].mxu0  ;;  %v16578_v25 = vld [vmem:[%s21225_s19 + $0x28] sm:$0xff] }
0x38e1   :  { %v13940_v2 = vrot.slane %v13926_v18, %v19019_v13  ;;  %v13941_v16 = vcombine.high %v13933_v31, %v13933_v31  ;;  %v13949_v33 = vcombine.high %v13948_v38, %v13948_v38  ;;  %v13956_v45 = vrot.slane %v13948_v38, %v19019_v13  ;;  %v17987_v52 = vpop.f32.mrb[151].mxu0  ;;  %v16577_v18 = vld [vmem:[%s21225_s19 + $0x20] sm:$0xff] }
0x38e2   :  { %v14121_v57 = vmul.f32 0.35355338, %v14039_v8  ;;  %v14117_v0 = vpop.f32.mrb[152].mxu1 }
0x38e3   :  { %v14461_v58 = vcombine.low %v13933_v31, %v13940_v2  ;;  %v13963_v48 = vrot.slane %v13949_v33, %v19019_v13  ;;  %v13964_v61 = vcombine.high %v13956_v45, %v13956_v45  ;;  %v14462_v42 = vcombine.low %v13941_v16, %v13956_v45  ;;  %v17992_v55 = vpop.f32.mrb[153].mxu1 }
0x38e4   :  { %v14123_v41 = vsel %vm20526_vm3, -1e+09, %v14121_v57  ;;  %v14122_v34 = vmul.f32 0.35355338, %v14117_v0 }
0x38e5   :  { %v14470_v53 = vrot.slane %v14461_v58, %v19019_v13  ;;  %v14463_v15 = vcombine.low %v13963_v48, %v13964_v61  ;;  %v14477_v28 = vrot.slane %v14462_v42, %v19019_v13  ;;  %v14125_v47 = vsel %vm11099_vm4, %v14123_v41, -inf }
0x38e6   :  { %v14124_v43 = vsel %vm20533_vm5, -1e+09, %v14122_v34  ;;  %14126 = vmax.xlane.f32.xlu1 %v14125_v47 }
0x38e7   :  { %v14484_v11 = vrot.slane %v14463_v15, %v19019_v13  ;;  %v14485_v6 = vcombine.low %v14470_v53, %v14477_v28  ;;  %v14128_v40 = vsel %vm11099_vm4, %v14124_v43, -inf }
0x38e8   :  { %14129 = vmax.xlane.f32.xlu0 %v14128_v40 }
0x38e9   :  { %v14492_v56 = vrot.slane %v14485_v6, %v19019_v13  ;;  %v14499_v63 = vrot.slane %v14484_v11, %v19019_v13 }
0x38eb   :  { %v14500_v27 = vcombine.low %v14492_v56, %v14499_v63 }
0x3973   :  { %v14127_v17 = vpop.xlane.xlu1 %14126 }
0x3974   :  { %v14131_v50 = vsub.f32 %v14123_v41, %v14127_v17 }
0x3975   :  { %v14130_v3 = vpop.xlane.xlu0 %14129 }
0x3976   :  { %v14133_v4 = vmul.f32 1.442695, %v14131_v50  ;;  %v14132_v54 = vsub.f32 %v14124_v43, %v14130_v3 }
0x3978   :  { %18612 = vpow2.f32 %v14133_v4  ;;  %v14135_v21 = vmul.f32 1.442695, %v14132_v54 }
0x397a   :  { %18614 = vpow2.f32 %v14135_v21 }
0x3982   :  { %v18613_v44 = vpop.eup %18612 }
0x3983   :  { %v14137_v10 = vsel %vm11099_vm4, %v18613_v44, 0.0 }
0x3984   :  { %v18615_v1 = vpop.eup %18614  ;;  %14138 = vadd.xlane.f32.xlu0 %v14137_v10 }
0x3985   :  { %v14140_v9 = vsel %vm11099_vm4, %v18615_v1, 0.0 }
0x3986   :  { %14141 = vadd.xlane.f32.xlu1 %v14140_v9 }
0x3997   :  { %14224 = vrot.lane.b32.xlu1 %v20860_v14, %s18711_s28 }
0x399a   :  { %14147 = vrot.lane.b32.xlu0 %v20857_v46, %s18711_s28 }
0x399b   :  { %14575 = vrot.lane.b32.xlu1 %v20857_v46, %s18712_s1 }
0x399e   :  { %14653 = vrot.lane.b32.xlu0 %v20860_v14, %s18712_s1 }
0x399f   :  { %14573 = vrot.lane.b32.xlu1 %v20857_v46, %s18713_s2 }
0x39a2   :  { %14651 = vrot.lane.b32.xlu0 %v20860_v14, %s18713_s2 }
0x3a11   :  { %v14139_v30 = vpop.xlane.xlu0 %14138 }
0x3a12   :  { %18616 = vrcp.f32 %v14139_v30 }
0x3a13   :  { %v14142_v32 = vpop.xlane.xlu1 %14141 }
0x3a14   :  { %18618 = vrcp.f32 %v14142_v32 }
0x3a15   :  { %v14148_v35 = vpop.permute.xlu0 %14147 }
0x3a16   :  { %17994 = vmatpush3.msk.msra.mxu0 %vm11128_vm6, %v14148_v35 }
0x3a17   :  { %v14225_v26 = vpop.permute.xlu1 %14224  ;;  %18003 = vmatprep.subr.mxu0 %v18704_v22 }
0x3a18   :  { %17999 = vmatpush3.msk.msra.mxu1 %vm11128_vm6, %v14225_v26 }
0x3a19   :  { %18008 = vmatprep.subr.mxu1 %v18704_v22  ;;  %v14654_v31 = vpop.permute.xlu0 %14653 }
0x3a1b   :  { %v14576_v17 = vpop.permute.xlu1 %14575 }
0x3a1c   :  { %v18617_v5 = vpop.eup %18616 }
0x3a1d   :  { %v14145_v7 = vmul.f32 %v18617_v5, %v18613_v44  ;;  %v14652_v38 = vpop.permute.xlu0 %14651 }
0x3a1e   :  { %v18619_v51 = vpop.eup %18618 }
0x3a1f   :  { %v14146_v23 = vmul.f32 %v18619_v51, %v18615_v1  ;;  %17996 = vmatmul.mubr.msk.f32.vlgmr.msra.gmra.mrb[152].mxu0 %vm11124_vm10, %v14145_v7  ;;  %v14574_v44 = vpop.permute.xlu1 %14573 }
0x3a20   :  { %18005 = vmatprep.mubr.msk.f32.mxu0 %vm18705_vm8, %v18704_v22  ;;  %18004 = vmatpush3.msra.mxu0 %v16578_v25 }
0x3a21   :  { %18001 = vmatmul.mubr.msk.f32.vlgmr.msra.gmra.mrb[154].mxu1 %vm11124_vm10, %v14146_v23  ;;  %18013 = vmatprep.subr.mxu0 %v18704_v22 }
0x3a22   :  { %18009 = vmatpush3.msra.mxu1 %v16577_v18  ;;  %18010 = vmatprep.mubr.msk.f32.mxu1 %vm18705_vm8, %v18704_v22 }
0x3a23   :  { %18018 = vmatprep.subr.mxu1 %v18704_v22 }
0x3a25   :  { %18011 = vmatmul.mubr.msk.f32.vlgmr.msra.gmra.mrb[156].mxu1 %vm501_vm9, %v14500_v27 }
0x3a26   :  { %18020 = vmatprep.mubr.msk.f32.mxu1 %vm18705_vm8, %v18704_v22 }
0x3a29   :  { %18019 = vmatpush3.xpose.msk.msra.mxu1 %vm501_vm9, %v14654_v31 }
0x3a2a   :  { %18028 = vmatprep.subr.mxu1 %v18704_v22 }
0x3a2c   :  { %18021 = vmatmul.mubr.msk.f32.vlgmr.msra.gmra.mrb[158].mxu1 %vm501_vm9, %v14652_v38 }
0x3a2d   :  { %18030 = vmatprep.mubr.msk.f32.mxu1 %vm18705_vm8, %v18704_v22 }
0x3af2   :  { %v14220_v8 = vpop.f32.mrb[152].mxu0 }
0x3af3   :  { %v14309_v2 = vrot.slane %v14220_v8, %v19019_v13  ;;  %v17997_v16 = vpop.f32.mrb[153].mxu0 }
0x3af4   :  { %v14297_v33 = vpop.f32.mrb[154].mxu1 }
0x3af5   :  { %v14310_v45 = vcombine.high %v14309_v2, %v14309_v2  ;;  %v14317_v52 = vrot.slane %v14309_v2, %v19019_v13  ;;  %v14332_v57 = vrot.slane %v14297_v33, %v19019_v13  ;;  %v18002_v0 = vpop.f32.mrb[155].mxu1 }
0x3af7   :  { %v14324_v58 = vrot.slane %v14310_v45, %v19019_v13  ;;  %v14325_v48 = vcombine.high %v14317_v52, %v14317_v52  ;;  %v14333_v61 = vcombine.high %v14332_v57, %v14332_v57  ;;  %v14340_v42 = vrot.slane %v14332_v57, %v19019_v13 }
0x3af8   :  { %v14569_v55 = vpop.f32.mrb[156].mxu1 }
0x3af9   :  { %v14349_v41 = vcombine.low %v14317_v52, %v14324_v58  ;;  %v14347_v34 = vrot.slane %v14333_v61, %v19019_v13  ;;  %v14348_v53 = vcombine.high %v14340_v42, %v14340_v42  ;;  %v14350_v15 = vcombine.low %v14325_v48, %v14340_v42  ;;  %v18012_v28 = vpop.f32.mrb[157].mxu1 }
0x3afb   :  { %v14358_v47 = vrot.slane %v14349_v41, %v19019_v13  ;;  %v14351_v43 = vcombine.low %v14347_v34, %v14348_v53  ;;  %v14365_v11 = vrot.slane %v14350_v15, %v19019_v13 }
0x3afd   :  { %v14372_v6 = vrot.slane %v14351_v43, %v19019_v13  ;;  %v14373_v40 = vcombine.low %v14358_v47, %v14365_v11  ;;  %v16579_v11 = vld [vmem:[%s21225_s19 + $0x30] sm:$0xff] }
0x3aff   :  { %v14380_v56 = vrot.slane %v14373_v40, %v19019_v13  ;;  %v14387_v63 = vrot.slane %v14372_v6, %v19019_v13  ;;  %v14725_v27 = vpop.f32.mrb[158].mxu1 }
0x3b00   :  { %v14730_v50 = vmul.f32 0.35355338, %v14725_v27  ;;  %v18022_v3 = vpop.f32.mrb[159].mxu1 }
0x3b01   :  { %v14388_v4 = vcombine.low %v14380_v56, %v14387_v63 }
0x3b02   :  { %v14732_v54 = vsel %vm20533_vm5, -1e+09, %v14730_v50 }
0x3b03   :  { %v14736_v21 = vsel %vm11099_vm4, %v14732_v54, -inf  ;;  %18006 = vmatmul.mubr.msk.f32.vlgmr.msra.gmra.mrb[154].mxu0 %vm501_vm9, %v14388_v4 }
0x3b04   :  { %14737 = vmax.xlane.f32.xlu0 %v14736_v21  ;;  %18014 = vmatpush3.xpose.msk.msra.mxu0 %vm501_vm9, %v14576_v17 }
0x3b05   :  { %18015 = vmatprep.mubr.msk.f32.mxu0 %vm18705_vm8, %v18704_v22  ;;  %18023 = vmatprep.subr.mxu0 %v18704_v22 }
0x3b07   :  { %18016 = vmatmul.mubr.msk.f32.vlgmr.msra.gmra.mrb[156].mxu0 %vm501_vm9, %v14574_v44 }
0x3b08   :  { %18025 = vmatprep.mubr.msk.f32.mxu0 %vm18705_vm8, %v18704_v22 }
0x3b91   :  { %v14738_v10 = vpop.xlane.xlu0 %14737 }
0x3b92   :  { %v14740_v1 = vsub.f32 %v14732_v54, %v14738_v10 }
0x3b94   :  { %v14743_v9 = vmul.f32 1.442695, %v14740_v1 }
0x3b96   :  { %18620 = vpow2.f32 %v14743_v9 }
0x3ba0   :  { %v18621_v18 = vpop.eup %18620 }
0x3ba1   :  { %v14748_v31 = vsel %vm11099_vm4, %v18621_v18, 0.0 }
0x3bd6   :  { %v14457_v30 = vpop.f32.mrb[154].mxu0 }
0x3bd7   :  { %v20993_v32 = vadd.f32 %v14569_v55, %v14457_v30  ;;  %v18007_v35 = vpop.f32.mrb[155].mxu0 }
0x3bda   :  { %v14647_v26 = vpop.f32.mrb[156].mxu0 }
0x3bdb   :  { %v14729_v5 = vmul.f32 0.35355338, %v14647_v26  ;;  %v18017_v7 = vpop.f32.mrb[157].mxu0 }
0x3bdd   :  { %v14731_v51 = vsel %vm20526_vm3, -1e+09, %v14729_v5 }
0x3bde   :  { %v14733_v23 = vsel %vm11099_vm4, %v14731_v51, -inf }
0x3bdf   :  { %14734 = vmax.xlane.f32.xlu1 %v14733_v23 }
0x3be3   :  { %14749 = vadd.xlane.f32.xlu1 %v14748_v31 }
0x3bf4   :  { %14832 = vrot.lane.b32.xlu1 %v20860_v14, %s18714_s7 }
0x3bf8   :  { %15072 = vrot.lane.b32.xlu1 %v20857_v46, %s18716_s11 }
0x3bfc   :  { %15070 = vrot.lane.b32.xlu1 %v20857_v46, %s18715_s10 }
0x3c6c   :  { %v14735_v38 = vpop.xlane.xlu1 %14734 }
0x3c6d   :  { %v14739_v25 = vsub.f32 %v14731_v51, %v14735_v38 }
0x3c6f   :  { %v14741_v8 = vmul.f32 1.442695, %v14739_v25 }
0x3c70   :  { %v14750_v2 = vpop.xlane.xlu1 %14749 }
0x3c71   :  { %18622 = vpow2.f32 %v14741_v8 }
0x3c72   :  { %18624 = vrcp.f32 %v14750_v2 }
0x3c74   :  { %v14833_v16 = vpop.permute.xlu1 %14832 }
0x3c75   :  { %18029 = vmatpush3.msk.msra.mxu1 %vm11128_vm6, %v14833_v16 }
0x3c76   :  { %18038 = vmatprep.subr.mxu1 %v18704_v22 }
0x3c78   :  { %v15073_v52 = vpop.permute.xlu1 %15072 }
0x3c7b   :  { %v18623_v33 = vpop.eup %18622 }
0x3c7c   :  { %v18625_v45 = vpop.eup %18624  ;;  %v14745_v57 = vsel %vm11099_vm4, %v18623_v33, 0.0  ;;  %v15071_v58 = vpop.permute.xlu1 %15070 }
0x3c7d   :  { %v14754_v0 = vmul.f32 %v18625_v45, %v18621_v18  ;;  %14746 = vadd.xlane.f32.xlu0 %v14745_v57 }
0x3c7f   :  { %18031 = vmatmul.mubr.msk.f32.vlgmr.msra.gmra.mrb[160].mxu1 %vm11124_vm10, %v14754_v0 }
0x3c80   :  { %18039 = vmatpush3.xpose.msk.msra.mxu1 %vm501_vm9, %v15073_v52  ;;  %18040 = vmatprep.mubr.msk.f32.mxu1 %vm18705_vm8, %v18704_v22 }
0x3c81   :  { %18048 = vmatprep.subr.mxu1 %v18704_v22 }
0x3c83   :  { %18041 = vmatmul.mubr.msk.f32.vlgmr.msra.gmra.mrb[162].mxu1 %vm501_vm9, %v15071_v58 }
0x3c84   :  { %18050 = vmatprep.mubr.msk.f32.mxu1 %vm18705_vm8, %v18704_v22 }
0x3c93   :  { %14755 = vrot.lane.b32.xlu0 %v20857_v46, %s18714_s7 }
0x3c97   :  { %15150 = vrot.lane.b32.xlu0 %v20860_v14, %s18716_s11 }
0x3c9b   :  { %15148 = vrot.lane.b32.xlu0 %v20860_v14, %s18715_s10 }
0x3d0a   :  { %v14747_v48 = vpop.xlane.xlu0 %14746 }
0x3d0b   :  { %18626 = vrcp.f32 %v14747_v48 }
0x3d0e   :  { %v14756_v61 = vpop.permute.xlu0 %14755 }
0x3d0f   :  { %18024 = vmatpush3.msk.msra.mxu0 %vm11128_vm6, %v14756_v61 }
0x3d10   :  { %18033 = vmatprep.subr.mxu0 %v18704_v22 }
0x3d12   :  { %v15151_v51 = vpop.permute.xlu0 %15150 }
0x3d15   :  { %v18627_v42 = vpop.eup %18626 }
0x3d16   :  { %v14753_v55 = vmul.f32 %v18627_v42, %v18623_v33  ;;  %v15149_v18 = vpop.permute.xlu0 %15148 }
0x3d18   :  { %18026 = vmatmul.mubr.msk.f32.vlgmr.msra.gmra.mrb[158].mxu0 %vm11124_vm10, %v14753_v55 }
0x3d19   :  { %18035 = vmatprep.mubr.msk.f32.mxu0 %vm18705_vm8, %v18704_v22  ;;  %18034 = vmatpush3.msra.mxu0 %v16579_v11 }
0x3d1a   :  { %18043 = vmatprep.subr.mxu0 %v18704_v22 }
0x3d52   :  { %v14905_v41 = vpop.f32.mrb[160].mxu1 }
0x3d53   :  { %v18032_v34 = vpop.f32.mrb[161].mxu1  ;;  %v14940_v6 = vrot.slane %v14905_v41, %v19019_v13 }
0x3d55   :  { %v14941_v40 = vcombine.high %v14940_v6, %v14940_v6  ;;  %v14948_v56 = vrot.slane %v14940_v6, %v19019_v13 }
0x3d56   :  { %v15144_v53 = vpop.f32.mrb[162].mxu1 }
0x3d57   :  { %v15226_v15 = vmul.f32 0.35355338, %v15144_v53  ;;  %v18042_v28 = vpop.f32.mrb[163].mxu1  ;;  %v14955_v27 = vrot.slane %v14941_v40, %v19019_v13  ;;  %v14956_v17 = vcombine.high %v14948_v56, %v14948_v56  ;;  %v16580_v40 = vld [vmem:[%s21225_s19 + $0x38] sm:$0xff] }
0x3d59   :  { %v15228_v47 = vsel %vm20526_vm3, -1e+09, %v15226_v15  ;;  %v14959_v54 = vcombine.low %v14955_v27, %v14956_v17 }
0x3d5a   :  { %v15230_v43 = vsel %vm11099_vm4, %v15228_v47, -inf }
0x3d5b   :  { %15231 = vmax.xlane.f32.xlu1 %v15230_v43  ;;  %v14980_v9 = vrot.slane %v14959_v54, %v19019_v13 }
0x3d5d   :  { %v14995_v5 = vrot.slane %v14980_v9, %v19019_v13 }
0x3de8   :  { %v15232_v31 = vpop.xlane.xlu1 %15231 }
0x3de9   :  { %v15236_v38 = vsub.f32 %v15228_v47, %v15232_v31  ;;  %v16618_v31 = vld [vmem:[%s21226_s24 + $0x1] ss:$0 sm:$0xff] }
0x3deb   :  { %v14828_v63 = vpop.f32.mrb[158].mxu0  ;;  %v15238_v25 = vmul.f32 1.442695, %v15236_v38 }
0x3dec   :  { %v14917_v50 = vrot.slane %v14828_v63, %v19019_v13  ;;  %v18027_v37 = vpop.f32.mrb[159].mxu0 }
0x3ded   :  { %18628 = vpow2.f32 %v15238_v25 }
0x3dee   :  { %v14918_v3 = vcombine.high %v14917_v50, %v14917_v50  ;;  %v14925_v4 = vrot.slane %v14917_v50, %v19019_v13 }
0x3df0   :  { %v14932_v21 = vrot.slane %v14918_v3, %v19019_v13  ;;  %v14933_v44 = vcombine.high %v14925_v4, %v14925_v4 }
0x3df2   :  { %v14957_v10 = vcombine.low %v14925_v4, %v14932_v21  ;;  %v14958_v1 = vcombine.low %v14933_v44, %v14948_v56 }
0x3df4   :  { %v14966_v30 = vrot.slane %v14957_v10, %v19019_v13  ;;  %v14973_v35 = vrot.slane %v14958_v1, %v19019_v13 }
0x3df6   :  { %v14981_v26 = vcombine.low %v14966_v30, %v14973_v35 }
0x3df7   :  { %v18629_v58 = vpop.eup %18628 }
0x3df8   :  { %v14988_v7 = vrot.slane %v14981_v26, %v19019_v13  ;;  %v15242_v48 = vsel %vm11099_vm4, %v18629_v58, 0.0 }
0x3dfa   :  { %v14996_v23 = vcombine.low %v14988_v7, %v14995_v5 }
0x3dfc   :  { %18036 = vmatmul.mubr.msk.f32.vlgmr.msra.gmra.mrb[160].mxu0 %vm501_vm9, %v14996_v23 }
0x3dfd   :  { %18044 = vmatpush3.xpose.msk.msra.mxu0 %vm501_vm9, %v15151_v51  ;;  %18045 = vmatprep.mubr.msk.f32.mxu0 %vm18705_vm8, %v18704_v22 }
0x3dfe   :  { %18053 = vmatprep.subr.mxu0 %v18704_v22 }
0x3e00   :  { %18046 = vmatmul.mubr.msk.f32.vlgmr.msra.gmra.mrb[162].mxu0 %vm501_vm9, %v15149_v18 }
0x3e01   :  { %18055 = vmatprep.mubr.msk.f32.mxu0 %vm18705_vm8, %v18704_v22 }
0x3ecf   :  { %v15065_v8 = vpop.f32.mrb[160].mxu0 }
0x3ed0   :  { %v21052_v2 = vadd.f32 %v15065_v8, %v20993_v32  ;;  %v18037_v16 = vpop.f32.mrb[161].mxu0 }
0x3ed3   :  { %v15222_v33 = vpop.f32.mrb[162].mxu0 }
0x3ed4   :  { %v15227_v45 = vmul.f32 0.35355338, %v15222_v33  ;;  %v18047_v52 = vpop.f32.mrb[163].mxu0 }
0x3ed6   :  { %v15229_v57 = vsel %vm20533_vm5, -1e+09, %v15227_v45 }
0x3ed7   :  { %v15233_v0 = vsel %vm11099_vm4, %v15229_v57, -inf }
0x3ed8   :  { %15234 = vmax.xlane.f32.xlu0 %v15233_v0 }
0x3edc   :  { %15243 = vadd.xlane.f32.xlu0 %v15242_v48 }
0x3ef2   :  { %15252 = vrot.lane.b32.xlu0 %v20857_v46, %s18717_s15 }
0x3f65   :  { %v15235_v61 = vpop.xlane.xlu0 %15234 }
0x3f66   :  { %v15237_v32 = vsub.f32 %v15229_v57, %v15235_v61 }
0x3f68   :  { %v15240_v42 = vmul.f32 1.442695, %v15237_v32 }
0x3f69   :  { %v15244_v55 = vpop.xlane.xlu0 %15243 }
0x3f6a   :  { %18630 = vpow2.f32 %v15240_v42 }
0x3f6b   :  { %18632 = vrcp.f32 %v15244_v55 }
0x3f6d   :  { %v15253_v41 = vpop.permute.xlu0 %15252 }
0x3f6e   :  { %18049 = vmatpush3.msk.msra.mxu1 %vm11128_vm6, %v15253_v41 }
0x3f6f   :  { %18058 = vmatprep.subr.mxu1 %v18704_v22 }
0x3f74   :  { %v18631_v19 = vpop.eup %18630 }
0x3f75   :  { %v18633_v34 = vpop.eup %18632  ;;  %v15245_v53 = vsel %vm11099_vm4, %v18631_v19, 0.0 }
0x3f76   :  { %v15250_v15 = vmul.f32 %v18633_v34, %v18629_v58  ;;  %15246 = vadd.xlane.f32.xlu1 %v15245_v53 }
0x3f78   :  { %18051 = vmatmul.mubr.msk.f32.vlgmr.msra.gmra.mrb[164].mxu1 %vm11124_vm10, %v15250_v15 }
0x3f79   :  { %18060 = vmatprep.mubr.msk.f32.mxu1 %vm18705_vm8, %v18704_v22  ;;  %18059 = vmatpush3.msra.mxu1 %v16580_v40 }
0x3f7a   :  { %18220 = vmatprep.subr.bf16.mxu1 %v18718_v59 }
0x3f87   :  { %15329 = vrot.lane.b32.xlu1 %v20860_v14, %s18717_s15 }
0x4003   :  { %v15247_v46 = vpop.xlane.xlu1 %15246 }
0x4004   :  { %18634 = vrcp.f32 %v15247_v46 }
0x4007   :  { %v15330_v28 = vpop.permute.xlu1 %15329 }
0x4008   :  { %18054 = vmatpush3.msk.msra.mxu0 %vm11128_vm6, %v15330_v28 }
0x4009   :  { %18214 = vmatprep.subr.bf16.mxu0 %v18718_v59 }
0x400e   :  { %v18635_v47 = vpop.eup %18634 }
0x400f   :  { %v15251_v43 = vmul.f32 %v18635_v47, %v18631_v19 }
0x4011   :  { %18056 = vmatmul.mubr.msk.f32.vlgmr.msra.gmra.mrb[164].mxu0 %vm11124_vm10, %v15251_v43 }
0x4012   :  { %18071 = vmatprep.mubr.msk.f32.mxu0 %vm18705_vm8, %v18704_v22 }
0x404b   :  { %v15325_v11 = vpop.f32.mrb[164].mxu1 }
0x404c   :  { %v18052_v6 = vpop.f32.mrb[165].mxu1  ;;  %v15414_v14 = vrot.slane %v15325_v11, %v19019_v13 }
0x404e   :  { %v15415_v56 = vcombine.high %v15414_v14, %v15414_v14  ;;  %v15422_v63 = vrot.slane %v15414_v14, %v19019_v13 }
0x4050   :  { %v15429_v27 = vrot.slane %v15415_v56, %v19019_v13  ;;  %v15430_v3 = vcombine.high %v15422_v63, %v15422_v63 }
0x4052   :  { %v15454_v4 = vcombine.low %v15422_v63, %v15429_v27 }
0x4054   :  { %v15463_v9 = vrot.slane %v15454_v4, %v19019_v13 }
0x40e4   :  { %v15402_v17 = vpop.f32.mrb[164].mxu0 }
0x40e5   :  { %v15437_v50 = vrot.slane %v15402_v17, %v19019_v13  ;;  %v18057_v37 = vpop.f32.mrb[165].mxu0 }
0x40e7   :  { %v15438_v54 = vcombine.high %v15437_v50, %v15437_v50  ;;  %v15445_v21 = vrot.slane %v15437_v50, %v19019_v13 }
0x40e9   :  { %v15452_v44 = vrot.slane %v15438_v54, %v19019_v13  ;;  %v15453_v10 = vcombine.high %v15445_v21, %v15445_v21  ;;  %v15455_v1 = vcombine.low %v15430_v3, %v15445_v21 }
0x40eb   :  { %v15456_v30 = vcombine.low %v15452_v44, %v15453_v10  ;;  %v15470_v35 = vrot.slane %v15455_v1, %v19019_v13 }
0x40ed   :  { %v15477_v26 = vrot.slane %v15456_v30, %v19019_v13  ;;  %v15478_v5 = vcombine.low %v15463_v9, %v15470_v35 }
0x40ef   :  { %v15485_v7 = vrot.slane %v15478_v5, %v19019_v13  ;;  %v15492_v51 = vrot.slane %v15477_v26, %v19019_v13 }
0x40f1   :  { %v15493_v23 = vcombine.low %v15485_v7, %v15492_v51  ;;  %v16623_v51 = vld [vmem:[%s21227_s30 + $0x20] sm:$0xff] }
0x40f3   :  { %18061 = vmatmul.mubr.msk.f32.vlgmr.msra.gmra.mrb[166].mxu1 %vm501_vm9, %v15493_v23  ;;  %v16624_v23 = vld [vmem:[%s21227_s30 + $0x28] sm:$0xff]  ;;  %vm16033_vm9 = vcmask 17408  }
0x40f4   :  { %18090 = vmatprep.mubr.msk.f32.mxu1 %vm18705_vm8, %v18704_v22 }
0x41c6   :  { %v15562_v18 = vpop.f32.mrb[166].mxu1 }
0x41c7   :  { %v15566_v38 = vadd.f32 %v15562_v18, %v21052_v2  ;;  %v18062_v25 = vpop.f32.mrb[167].mxu1  ;;  %v16625_v18 = vld [vmem:[%s21227_s30 + $0x30] sm:$0xff] }
0x41c9   :  { %v15575_v8 = vadd.f32 %v16618_v31, %v15566_v38  ;;  %v18215_v31 = vpack.c.bf16 %v16624_v23, %v16623_v51  ;;  %v16626_v38 = vld [vmem:[%s21227_s30 + $0x38] sm:$0xff] }
0x41ca   :  { %v18218_v25 = vpack.c.bf16 %v16626_v38, %v16625_v18 }
0x41cb   :  { %v15577_v16 = vrot.slane %v15575_v8, 1  ;;  %v15578_v33 = vrot.slane %v15575_v8, 2  ;;  %v15579_v45 = vrot.slane %v15575_v8, 3  ;;  %v15580_v52 = vrot.slane %v15575_v8, 4  ;;  %18216 = vmatpush3.bf16.msra.mxu0 %v18215_v31  ;;  %v18645_v31 = vld [vmem:[%s21220_s14] sm:$0x3] }
0x41cc   :  { %v15581_v57 = vrot.slane %v15575_v8, 5  ;;  %v15588_v61 = vadd.f32 %v15575_v8, %v20827_v29  ;;  %18217 = vmatprep.subr.bf16.mxu0 %v18718_v59  ;;  %v16630_v8 = vld [vmem:[%s21228_s6 + $0x40] sm:$0xff]  ;;  %v16032_v38 = vsub.f32 1.0, %v18645_v31 }
0x41cd   :  { %v15589_v0 = vadd.f32 %v15577_v16, %v20819_v49  ;;  %v15590_v13 = vadd.f32 %v15578_v33, %v20821_v39  ;;  %v15591_v58 = vadd.f32 %v15579_v45, %v20823_v20  ;;  %v15592_v48 = vadd.f32 %v15580_v52, %v20825_v36  ;;  %v16631_v16 = vld [vmem:[%s21228_s6 + $0x48] sm:$0xff]  ;;  %v16632_v33 = vld [vmem:[%s21228_s6 + $0x50] sm:$0xff]  ;;  %v16633_v52 = vld [vmem:[%s21228_s6 + $0x58] sm:$0xff] }
0x41ce   :  { %v15593_v32 = vadd.f32 %v15581_v57, %v20829_v62  ;;  %v18221_v45 = vpack.c.bf16 %v16631_v16, %v16630_v8  ;;  %v18224_v57 = vpack.c.bf16 %v16633_v52, %v16632_v33  ;;  %v16639_v8 = vld [vmem:[%s21232_s22 + $0x1] ss:$0 sm:$0xff] }
0x41cf   :  { %v15604_v2 = vrot.slane %v15589_v0, 7  ;;  %v15606_v42 = vrot.slane %v15590_v13, 6  ;;  %v15608_v41 = vrot.slane %v15591_v58, 5  ;;  %v15610_v34 = vrot.slane %v15592_v48, 4  ;;  %18219 = vmatpush3.bf16.msra.mxu0 %v18218_v25 }
0x41d0   :  { %v15612_v53 = vrot.slane %v15593_v32, 3  ;;  %18232 = vmatprep.subr.bf16.mxu0 %v18718_v59  ;;  %18222 = vmatpush3.bf16.msra.mxu1 %v18221_v45  ;;  %v16034_v25 = vsel %vm16033_vm9, %v16032_v38, 0.0 }
0x41d1   :  { %v15605_v55 = vsel %vm10720_vm11, %v15604_v2, %v15588_v61  ;;  %18223 = vmatprep.subr.bf16.mxu1 %v18718_v59 }
0x41d2   :  { %v15607_v19 = vsel %vm10723_vm12, %v15606_v42, %v15605_v55  ;;  %v16621_v42 = vld [vmem:[%s21229_s12 + $0x1] ss:$0 sm:$0xff] }
0x41d3   :  { %v15609_v49 = vsel %vm10726_vm13, %v15608_v41, %v15607_v19 }
0x41d4   :  { %v15611_v39 = vsel %vm10729_vm14, %v15610_v34, %v15609_v49  ;;  %18225 = vmatpush3.bf16.msra.mxu1 %v18224_v57 }
0x41d5   :  { %v15613_v20 = vsel %vm10732_vm15, %v15612_v53, %v15611_v39  ;;  %18226 = vmatprep.subr.bf16.mxu1 %v18718_v59 }
0x41d6   :  { %v15615_v36 = vsel %vm12973_vm1, %v15613_v20, 0.0 }
0x41d7   :  { %15616 = vadd.xlane.f32.xlu1 %v15615_v36 }
0x41db   :  { %16035 = vadd.xlane.f32.xlu1 %v16034_v25 }
0x4264   :  { %v15617_v29 = vpop.xlane.xlu1 %15616 }
0x4265   :  { %v15618_v62 = vmul.f32 0.03125, %v15617_v29 }
0x4267   :  { %v15620_v15 = vrot.slane %v15618_v62, 1  ;;  %v15621_v46 = vrot.slane %v15618_v62, 2  ;;  %v15622_v28 = vrot.slane %v15618_v62, 3  ;;  %v15623_v47 = vrot.slane %v15618_v62, 4 }
0x4268   :  { %v15624_v43 = vrot.slane %v15618_v62, 5  ;;  %v15631_v11 = vsub.f32 %v15588_v61, %v15618_v62 }
0x4269   :  { %v15632_v6 = vsub.f32 %v15589_v0, %v15620_v15  ;;  %v15633_v40 = vsub.f32 %v15590_v13, %v15621_v46  ;;  %v15634_v14 = vsub.f32 %v15591_v58, %v15622_v28  ;;  %v15635_v56 = vsub.f32 %v15592_v48, %v15623_v47  ;;  %v16634_v0 = vld [vmem:[%s21228_s6 + $0x60] sm:$0xff]  ;;  %v16635_v13 = vld [vmem:[%s21228_s6 + $0x68] sm:$0xff] }
0x426a   :  { %v15636_v63 = vsub.f32 %v15593_v32, %v15624_v43  ;;  %v15637_v3 = vmul.f32 %v15631_v11, %v15631_v11  ;;  %v18227_v58 = vpack.c.bf16 %v16635_v13, %v16634_v0 }
0x426b   :  { %v15638_v27 = vmul.f32 %v15632_v6, %v15632_v6  ;;  %v15639_v17 = vmul.f32 %v15633_v40, %v15633_v40  ;;  %v15640_v50 = vmul.f32 %v15634_v14, %v15634_v14  ;;  %v15641_v37 = vmul.f32 %v15635_v56, %v15635_v56 }
0x426c   :  { %v15642_v4 = vmul.f32 %v15636_v63, %v15636_v63  ;;  %18228 = vmatpush3.bf16.msra.mxu1 %v18227_v58 }
0x426d   :  { %v15649_v54 = vrot.slane %v15638_v27, 7  ;;  %v15651_v21 = vrot.slane %v15639_v17, 6  ;;  %v15653_v10 = vrot.slane %v15640_v50, 5  ;;  %v15655_v9 = vrot.slane %v15641_v37, 4  ;;  %18229 = vmatprep.subr.bf16.mxu1 %v18718_v59  ;;  %v16622_v27 = vld [vmem:[%s21230_s20 + $0x1] ss:$0 sm:$0xff] }
0x426e   :  { %v15657_v35 = vrot.slane %v15642_v4, 3 }
0x426f   :  { %v15650_v44 = vsel %vm10720_vm11, %v15649_v54, %v15637_v3 }
0x4270   :  { %v15652_v1 = vsel %vm10723_vm12, %v15651_v21, %v15650_v44 }
0x4271   :  { %v15654_v30 = vsel %vm10726_vm13, %v15653_v10, %v15652_v1 }
0x4272   :  { %v15656_v26 = vsel %vm10729_vm14, %v15655_v9, %v15654_v30  ;;  %v16636_v30 = vld [vmem:[%s21228_s6 + $0x70] sm:$0xff] }
0x4273   :  { %v15658_v5 = vsel %vm10732_vm15, %v15657_v35, %v15656_v26  ;;  %v16637_v35 = vld [vmem:[%s21228_s6 + $0x78] sm:$0xff] }
0x4274   :  { %v15660_v7 = vsel %vm12973_vm1, %v15658_v5, 0.0  ;;  %v18230_v26 = vpack.c.bf16 %v16637_v35, %v16636_v30  ;;  %v16628_v5 = vld [vmem:[%s21231_s18 + $0x1] ss:$0 sm:$0xff] }
0x4275   :  { %15661 = vadd.xlane.f32.xlu0 %v15660_v7 }
0x4276   :  { %18231 = vmatpush3.bf16.msra.mxu1 %v18230_v26 }
0x4302   :  { %v15662_v48 = vpop.xlane.xlu0 %15661 }
0x4303   :  { %v15663_v61 = vmul.f32 0.03125, %v15662_v48 }
0x4305   :  { %v15664_v32 = vadd.f32 1e-05, %v15663_v61 }
0x4307   :  { %18636 = vrsqrt.f32 %v15664_v32 }
0x4311   :  { %v18637_v2 = vpop.eup %18636 }
0x4312   :  { %v15667_v55 = vrot.slane %v18637_v2, 1  ;;  %v15668_v41 = vrot.slane %v18637_v2, 2  ;;  %v15669_v19 = vrot.slane %v18637_v2, 3  ;;  %v15670_v34 = vrot.slane %v18637_v2, 4 }
0x4313   :  { %v15671_v49 = vrot.slane %v18637_v2, 5  ;;  %v15678_v53 = vmul.f32 %v18637_v2, %v15631_v11 }
0x4314   :  { %v15679_v39 = vmul.f32 %v15667_v55, %v15632_v6  ;;  %v15680_v20 = vmul.f32 %v15668_v41, %v15633_v40  ;;  %v15681_v36 = vmul.f32 %v15669_v19, %v15634_v14  ;;  %v15682_v29 = vmul.f32 %v15670_v34, %v15635_v56 }
0x4315   :  { %v15683_v62 = vmul.f32 %v15671_v49, %v15636_v63  ;;  %v15690_v15 = vmul.f32 %v16621_v42, %v15678_v53 }
0x4316   :  { %v15691_v46 = vmul.f32 %v16621_v42, %v15679_v39  ;;  %v15692_v28 = vmul.f32 %v16621_v42, %v15680_v20  ;;  %v15693_v47 = vmul.f32 %v16621_v42, %v15681_v36  ;;  %v15694_v43 = vmul.f32 %v16621_v42, %v15682_v29 }
0x4317   :  { %v15695_v17 = vmul.f32 %v16621_v42, %v15683_v62  ;;  %v15702_v54 = vadd.f32 %v16622_v27, %v15690_v15  ;;  %v16036_v15 = vpop.xlane.xlu1 %16035 }
0x4318   :  { %v15703_v50 = vadd.f32 %v16622_v27, %v15691_v46  ;;  %v15704_v37 = vadd.f32 %v16622_v27, %v15692_v28  ;;  %v15705_v3 = vadd.f32 %v16622_v27, %v15693_v47  ;;  %v15706_v4 = vadd.f32 %v16622_v27, %v15694_v43 }
0x4319   :  { %v15707_v11 = vadd.f32 %v16622_v27, %v15695_v17  ;;  %v16037_v46 = vadd.f32 1e-12, %v16036_v15 }
0x431a   :  { %v15727_v6 = vrot.slane %v15703_v50, 7  ;;  %v15729_v40 = vrot.slane %v15704_v37, 6  ;;  %v15731_v56 = vrot.slane %v15705_v3, 5  ;;  %v15733_v21 = vrot.slane %v15706_v4, 4 }
0x431b   :  { %v15735_v10 = vrot.slane %v15707_v11, 3  ;;  %18638 = vrcp.f32 %v16037_v46 }
0x431c   :  { %v15728_v14 = vsel %vm10720_vm11, %v15727_v6, %v15702_v54 }
0x431d   :  { %v15730_v63 = vsel %vm10723_vm12, %v15729_v40, %v15728_v14 }
0x431e   :  { %v15732_v44 = vsel %vm10726_vm13, %v15731_v56, %v15730_v63 }
0x431f   :  { %v15734_v1 = vsel %vm10729_vm14, %v15733_v21, %v15732_v44 }
0x4320   :  { %v15736_v9 = vsel %vm10732_vm15, %v15735_v10, %v15734_v1 }
0x4321   :  { %18072 = vmatmul.mubr.msk.f32.vlgmr.msra.gmra.mrb[166].mxu0 %vm320_vm7, %v15736_v9 }
0x4322   :  { %18101 = vmatprep.mubr.msk.f32.mxu0 %vm18705_vm8, %v18704_v22  ;;  %vm16191_vm8 = vcmask 123904  }
0x4325   :  { %v18639_v28 = vpop.eup %18638 }
0x4326   :  { %v16039_v47 = vmul.f32 %v18639_v28, %v16032_v38 }
0x4328   :  { %v16050_v43 = vrot.slane %v16039_v47, %v10607_v60  ;;  %v16043_v25 = vrot.slane %v16039_v47, %v19035_v24  ;;  %v16643_v24 = vld [vmem:[%s21233_s23 + $0x1] ss:$0 sm:$0xff] }
0x432a   :  { %16052 = vbcast.lane.b32.xlu1 %v16050_v43, 256 }
0x43f4   :  { %v15805_v7 = vpop.f32.mrb[166].mxu0 }
0x43f5   :  { %v15806_v51 = vadd.f32 %v16628_v5, %v15805_v7  ;;  %v18073_v23 = vpop.f32.mrb[167].mxu0 }
0x43f7   :  { %v15809_v18 = vmax.f32 %v15806_v51, 0.0 }
0x43f9   :  { %18091 = vmatmul.mubr.msk.f32.vlgmr.msra.gmra.mrb[168].mxu1 %vm187_vm0, %v15809_v18  ;;  %vm16088_vm0 = vcmask 256000  }
0x44cc   :  { %v15896_v16 = vpop.f32.mrb[168].mxu1 }
0x44cd   :  { %v15897_v22 = vadd.f32 %v16639_v8, %v15896_v16  ;;  %v18092_v33 = vpop.f32.mrb[169].mxu1  ;;  %v16103_v8 = vld [vmem:[%s18878_s13] sm:$0xff]  ;;  %v16104_v16 = vld [vmem:[%s18878_s13 + $0x8] sm:$0xff] }
0x44ce   :  { %v18233_v33 = vpack.c.bf16 %v16104_v16, %v16103_v8 }
0x44cf   :  { %v15901_v45 = vrot.slane %v15897_v22, 1  ;;  %v15902_v52 = vrot.slane %v15897_v22, 2  ;;  %v15903_v57 = vrot.slane %v15897_v22, 3  ;;  %v15904_v0 = vrot.slane %v15897_v22, 4 }
0x44d0   :  { %v15905_v13 = vrot.slane %v15897_v22, 5  ;;  %v15912_v2 = vadd.f32 %v15897_v22, %v15702_v54  ;;  %v16105_v22 = vld [vmem:[%s18878_s13 + $0x10] sm:$0xff]  ;;  %18234 = vmatpush3.bf16.msra.mxu0 %v18233_v33 }
0x44d1   :  { %v15913_v58 = vadd.f32 %v15901_v45, %v15703_v50  ;;  %v15914_v48 = vadd.f32 %v15902_v52, %v15704_v37  ;;  %v15915_v61 = vadd.f32 %v15903_v57, %v15705_v3  ;;  %v15916_v32 = vadd.f32 %v15904_v0, %v15706_v4  ;;  %v16106_v45 = vld [vmem:[%s18878_s13 + $0x18] sm:$0xff]  ;;  %18235 = vmatprep.subr.bf16.mxu0 %v18718_v59  ;;  %s18719_s13 = smov [#allocation2]  }
0x44d2   :  { %v15917_v42 = vadd.f32 %v15905_v13, %v15707_v11  ;;  %v18236_v52 = vpack.c.bf16 %v16106_v45, %v16105_v22 }
0x44d3   :  { %v15928_v55 = vrot.slane %v15913_v58, 7  ;;  %v15930_v41 = vrot.slane %v15914_v48, 6  ;;  %v15932_v34 = vrot.slane %v15915_v61, 5  ;;  %v15934_v53 = vrot.slane %v15916_v32, 4 }
0x44d4   :  { %v15936_v20 = vrot.slane %v15917_v42, 3  ;;  %18237 = vmatpush3.bf16.msra.mxu0 %v18236_v52 }
0x44d5   :  { %v15929_v19 = vsel %vm10720_vm11, %v15928_v55, %v15912_v2 }
0x44d6   :  { %v15931_v49 = vsel %vm10723_vm12, %v15930_v41, %v15929_v19 }
0x44d7   :  { %v15933_v39 = vsel %vm10726_vm13, %v15932_v34, %v15931_v49  ;;  %v16644_v49 = vld [vmem:[%s18873_s4 + $0x1] ss:$0 sm:$0xff]  ;;  %s16199_s4 = sshll.u32 %s18719_s13, 4  ;;  %s16200_s4 = int_to_ptr.vmem [resolvable:$true] %s16199_s4 }
0x44d8   :  { %v15935_v36 = vsel %vm10729_vm14, %v15934_v53, %v15933_v39  ;;  %s18647_s26 = scalar_lea.vmem %s16200_s4, 32  ;;  %p18652_p1 = scmp.lt.s32.totalorder %s16200_s4, %s16200_s4 }
0x44d9   :  { %v15937_v29 = vsel %vm10732_vm15, %v15936_v20, %v15935_v36  ;;  %p18648_p0 = scmp.ne.s32.totalorder %s16200_s4, %s18647_s26  ;;  %p18653_p2 = scmp.lt.s32.totalorder %s18647_s26, %s18647_s26 }
0x44da   :  { %v15939_v62 = vsel %vm12973_vm1, %v15937_v29, 0.0 }
0x44db   :  { %15940 = vadd.xlane.f32.xlu0 %v15939_v62  ;;  %p18654_p3 = por %p18653_p2, %p18652_p1 }
0x44dd   :  { %p18655_p4 = pnand %p18654_p3, %p18648_p0 }
0x4568   :  { %v15941_v27 = vpop.xlane.xlu0 %15940 }
0x4569   :  { %v15942_v17 = vmul.f32 0.03125, %v15941_v27 }
0x456b   :  { %v15944_v50 = vrot.slane %v15942_v17, 1  ;;  %v15945_v37 = vrot.slane %v15942_v17, 2  ;;  %v15946_v3 = vrot.slane %v15942_v17, 3  ;;  %v15947_v4 = vrot.slane %v15942_v17, 4 }
0x456c   :  { %v15948_v54 = vrot.slane %v15942_v17, 5  ;;  %v15955_v11 = vsub.f32 %v15912_v2, %v15942_v17 }
0x456d   :  { %v15956_v6 = vsub.f32 %v15913_v58, %v15944_v50  ;;  %v15957_v40 = vsub.f32 %v15914_v48, %v15945_v37  ;;  %v15958_v14 = vsub.f32 %v15915_v61, %v15946_v3  ;;  %v15959_v56 = vsub.f32 %v15916_v32, %v15947_v4  ;;  %v16053_v58 = vpop.permute.xlu1 %16052 }
0x456e   :  { %v15960_v63 = vsub.f32 %v15917_v42, %v15948_v54  ;;  %v15961_v12 = vmul.f32 %v15955_v11, %v15955_v11  ;;  %v16058_v41 = vrot.slane %v16053_v58, 1  ;;  %v16059_v36 = vrot.slane %v16053_v58, 2 }
0x456f   :  { %v15962_v21 = vmul.f32 %v15956_v6, %v15956_v6  ;;  %v15963_v44 = vmul.f32 %v15957_v40, %v15957_v40  ;;  %v15964_v10 = vmul.f32 %v15958_v14, %v15958_v14  ;;  %v15965_v1 = vmul.f32 %v15959_v56, %v15959_v56 }
0x4570   :  { %v15966_v60 = vmul.f32 %v15960_v63, %v15960_v63 }
0x4571   :  { %v15973_v9 = vrot.slane %v15962_v21, 7  ;;  %v15975_v30 = vrot.slane %v15963_v44, 6  ;;  %v15977_v26 = vrot.slane %v15964_v10, 5  ;;  %v15979_v7 = vrot.slane %v15965_v1, 4 }
0x4572   :  { %v15981_v23 = vrot.slane %v15966_v60, 3 }
0x4573   :  { %v15974_v35 = vsel %vm10720_vm11, %v15973_v9, %v15961_v12 }
0x4574   :  { %v15976_v5 = vsel %vm10723_vm12, %v15975_v30, %v15974_v35 }
0x4575   :  { %v15978_v51 = vsel %vm10726_vm13, %v15977_v26, %v15976_v5 }
0x4576   :  { %v15980_v18 = vsel %vm10729_vm14, %v15979_v7, %v15978_v51 }
0x4577   :  { %v15982_v31 = vsel %vm10732_vm15, %v15981_v23, %v15980_v18 }
0x4578   :  { %v15984_v38 = vsel %vm12973_vm1, %v15982_v31, 0.0 }
0x4579   :  { %15985 = vadd.xlane.f32.xlu0 %v15984_v38 }
0x458f   :  { %16045 = vbcast.lane.b32.xlu0 %v16043_v25, 256 }
0x4606   :  { %v15986_v57 = vpop.xlane.xlu0 %15985 }
0x4607   :  { %v15987_v0 = vmul.f32 0.03125, %v15986_v57 }
0x4609   :  { %v15988_v13 = vadd.f32 1e-05, %v15987_v0  ;;  %v16645_v0 = vld [vmem:[%s18883_s25] ss:$0 sm:$0xff] }
0x460a   :  { %v16046_v55 = vpop.permute.xlu0 %16045 }
0x460b   :  { %18640 = vrsqrt.f32 %v15988_v13  ;;  %v16056_v15 = vrot.slane %v16046_v55, 1  ;;  %v16057_v50 = vrot.slane %v16046_v55, 2 }
0x4615   :  { %v18641_v48 = vpop.eup %18640 }
0x4616   :  { %v15993_v61 = vrot.slane %v18641_v48, 3  ;;  %v15994_v32 = vrot.slane %v18641_v48, 4  ;;  %v15995_v2 = vrot.slane %v18641_v48, 5  ;;  %v15991_v42 = vrot.slane %v18641_v48, 1 }
0x4617   :  { %v15992_v19 = vrot.slane %v18641_v48, 2  ;;  %v16002_v34 = vmul.f32 %v18641_v48, %v15955_v11 }
0x4618   :  { %v16005_v53 = vmul.f32 %v15993_v61, %v15958_v14  ;;  %v16006_v59 = vmul.f32 %v15994_v32, %v15959_v56  ;;  %v16007_v39 = vmul.f32 %v15995_v2, %v15960_v63  ;;  %v16003_v20 = vmul.f32 %v15991_v42, %v15956_v6 }
0x4619   :  { %v16004_v29 = vmul.f32 %v15992_v19, %v15957_v40  ;;  %v16014_v62 = vmul.f32 %v16643_v24, %v16002_v34 }
0x461a   :  { %v16017_v46 = vmul.f32 %v16643_v24, %v16005_v53  ;;  %v16018_v28 = vmul.f32 %v16643_v24, %v16006_v59  ;;  %v16019_v47 = vmul.f32 %v16643_v24, %v16007_v39  ;;  %v16015_v43 = vmul.f32 %v16643_v24, %v16003_v20 }
0x461b   :  { %v16016_v27 = vmul.f32 %v16643_v24, %v16004_v29  ;;  %v16026_v17 = vadd.f32 %v16644_v49, %v16014_v62 }
0x461c   :  { %v16029_v37 = vadd.f32 %v16644_v49, %v16017_v46  ;;  %v16030_v3 = vadd.f32 %v16644_v49, %v16018_v28  ;;  %v16031_v4 = vadd.f32 %v16644_v49, %v16019_v47  ;;  %v16027_v54 = vadd.f32 %v16644_v49, %v16015_v43 }
0x461d   :  { %v16028_v11 = vadd.f32 %v16644_v49, %v16016_v27  ;;  %v16066_v6 = vmul.f32 %v16046_v55, %v16026_v17 }
0x461e   :  { %v16070_v14 = vmul.f32 %v16058_v41, %v16030_v3  ;;  %v16071_v56 = vmul.f32 %v16059_v36, %v16031_v4  ;;  %v16067_v63 = vmul.f32 %v16056_v15, %v16027_v54  ;;  %v16069_v40 = vmul.f32 %v16053_v58, %v16029_v37 }
0x461f   :  { %v16068_v21 = vmul.f32 %v16057_v50, %v16028_v11 }
0x4620   :  { %v16082_v44 = vrot.slane %v16070_v14, 7  ;;  %v16084_v10 = vrot.slane %v16071_v56, 6  ;;  %v16078_v1 = vrot.slane %v16067_v63, 7 }
0x4621   :  { %v16080_v12 = vrot.slane %v16068_v21, 6 }
0x4622   :  { %v16083_v60 = vsel %vm10720_vm11, %v16082_v44, %v16069_v40  ;;  %v16079_v9 = vsel %vm10720_vm11, %v16078_v1, %v16066_v6 }
0x4623   :  { %v16085_v30 = vsel %vm10723_vm12, %v16084_v10, %v16083_v60  ;;  %v16081_v35 = vsel %vm10723_vm12, %v16080_v12, %v16079_v9 }
0x4624   :  { %v16096_v26 = vsel %vm16088_vm0, %v16085_v30, 0.0  ;;  %v16089_v5 = vsel %vm16088_vm0, %v16081_v35, 0.0 }
0x4625   :  { %v16097_v7 = vrot.slane %v16096_v26, 4  ;;  %v16090_v51 = vrot.slane %v16089_v5, 4 }
0x4627   :  { %v16098_v23 = vadd.f32 %v16097_v7, %v16096_v26  ;;  %v16091_v18 = vadd.f32 %v16090_v51, %v16089_v5 }
0x4629   :  { %v16099_v31 = vrot.slane %v16098_v23, 2  ;;  %v16092_v38 = vrot.slane %v16091_v18, 2 }
0x462b   :  { %v16100_v25 = vadd.f32 %v16099_v31, %v16098_v23  ;;  %v16093_v8 = vadd.f32 %v16092_v38, %v16091_v18 }
0x462d   :  { %v16094_v16 = vrot.slane %v16093_v8, 1  ;;  %v16101_v22 = vrot.slane %v16100_v25, 1 }
0x462f   :  { %v16102_v33 = vadd.f32 %v16101_v22, %v16100_v25  ;;  %v16095_v45 = vadd.f32 %v16094_v16, %v16093_v8 }
0x4631   :  { %v16116_v52 = vrot.slane %v16102_v33, 7 }
0x4633   :  { %v16117_v57 = vsel %vm10720_vm11, %v16116_v52, %v16095_v45 }
0x4634   :  { %18102 = vmatmul.mubr.msk.f32.vlgmr.msra.gmra.mrb[168].mxu0 %vm320_vm7, %v16117_v57 }
0x4707   :  { %v16186_v13 = vpop.f32.mrb[168].mxu0 }
0x4708   :  { %v16187_v58 = vadd.f32 %v16645_v0, %v16186_v13  ;;  %v18103_v48 = vpop.f32.mrb[169].mxu0 }
0x470a   :  { %18642 = vtanh.f32 %v16187_v58 }
0x4714   :  { %v18643_v24 = vpop.eup %18642 }
0x4715   :  { %16192 = vst.msk [vmem:[#allocation2] sm:$0x3] %vm16191_vm8, %v18643_v24 }
0x4716   :  { %18658 = shalt.err (!%p18655_p4)
}
0x4717   :  { %s18659_s25 = scalar_lea.hbm %s18888_s27, 32 }
0x4718   :  { %p18660_p5 = scmp.ne.s32.totalorder %s18888_s27, %s18659_s25  ;;  %p18663_p6 = scmp.lt.u32.totalorder %s18659_s25, %s18888_s27 }
0x471a   :  { %p18665_p7 = pnand %p18663_p6, %p18660_p5 }
0x471c   :  { %18668 = shalt.err (!%p18665_p7)
}
0x471d   :  { %16202 = dma.vmem_to_hbm [thread:$0]  %s16200_s4, 32, %s18888_s27, [#allocation3]  }
0x471e   :  { %18669 = dma.done.wait [#allocation3], 32  }
0x471f   :  { %18670 = vsyncadd [#allocation3], 4294967264 }
0x4720   :  { %16206 = vsyncpa [#allocation3], 1 }

</bundles_post_ra>
